<compile_context>
chip_gen: v7x
topology: tpu7x:2x2x1
jax: 0.10.0
libtpu: 0.0.40
codegen_flags: <defaults>
</compile_context>

<pallas_src>
import functools

import jax
import jax.numpy as jnp
from jax import lax
from jax.experimental import pallas as pl
from jax.experimental.pallas import tpu as pltpu

K = 5          # conv kernel size used throughout EBlock
PAD = K // 2   # 'same' padding


# -----------------------------------------------------------------------------
# geometry helpers (static python ints)
# -----------------------------------------------------------------------------
def _geom(B, H, W):
    Hp, Wp = H + 2 * PAD, W + 2 * PAD
    hpwp = Hp * Wp
    nflat = B * hpwp                         # padded, flattened batch*spatial
    q0 = PAD * Wp + PAD                      # flat index of output pixel (0, 0, 0)
    lq = (B - 1) * hpwp + (H - 1) * Wp + W   # contiguous compute-range length
    return Hp, Wp, nflat, q0, lq


def _interior_mask(B, H, W):
    """1.0 on valid output pixels inside the contiguous compute range,
    0.0 on the zero-padding 'junk' positions that fall inside that range."""
    Hp, Wp, _, q0, lq = _geom(B, H, W)
    q = q0 + jnp.arange(lq)
    r = q % (Hp * Wp)
    ii, jj = r // Wp, r % Wp
    ok = (ii >= PAD) & (ii < PAD + H) & (jj >= PAD) & (jj < PAD + W)
    return ok.astype(jnp.float32).reshape(1, lq)


def _to_padded_flat(x_nchw):
    """NCHW -> channel-major, zero-padded, flattened activation (C, B*Hp*Wp)."""
    B, C, H, W = x_nchw.shape
    x = jnp.transpose(x_nchw, (1, 0, 2, 3))
    x = jnp.pad(x, ((0, 0), (0, 0), (PAD, PAD), (PAD, PAD)))
    return x.reshape(C, B * (H + 2 * PAD) * (W + 2 * PAD))


def _from_padded_flat(yf, B, H, W):
    C = yf.shape[0]
    y = yf.reshape(C, B, H + 2 * PAD, W + 2 * PAD)[:, :, PAD:PAD + H, PAD:PAD + W]
    return jnp.transpose(y, (1, 0, 2, 3))


def _prep_conv_weight(w_oihw):
    """PyTorch (Cout, Cin, K, K) -> per-tap (K*K, Cout, Cin_padded_to_8), bf16."""
    Cout, Cin, Kh, Kw = w_oihw.shape
    w = jnp.transpose(w_oihw, (2, 3, 0, 1)).reshape(Kh * Kw, Cout, Cin)
    cin_p = -(-Cin // 8) * 8
    if cin_p != Cin:
        w = jnp.pad(w, ((0, 0), (0, 0), (0, cin_p - Cin)))
    return w.astype(jnp.bfloat16)


# -----------------------------------------------------------------------------
# kernels
# -----------------------------------------------------------------------------
def _head_conv_kernel(x_ref, w_ref, b_ref, m_ref, o_ref, *, Wp, q0, Lq):
    """5x5 'same' conv (stride 1) + bias + ReLU; padded-in / padded-out."""
    Cout = o_ref.shape[0]
    acc = jnp.zeros((Cout, Lq), jnp.float32)
    for t in range(K * K):                      # static unroll: K*K MXU matmuls
        off = q0 + (t // K - PAD) * Wp + (t % K - PAD)
        x_tap = x_ref[:, off:off + Lq].astype(jnp.bfloat16)
        acc = acc + jnp.dot(w_ref[t], x_tap, preferred_element_type=jnp.float32)
    y = jnp.maximum(acc + b_ref[...], 0.0) * m_ref[...]
    o_ref[...] = jnp.zeros(o_ref.shape, o_ref.dtype)   # keep pad region exactly 0
    o_ref[:, q0:q0 + Lq] = y


def _resblock_kernel(x_ref, w1_ref, b1_ref, w2_ref, b2_ref, m_ref, o_ref, t_ref,
                     *, Wp, q0, Lq):
    """Fused residual block: y = conv2(relu(conv1(x) + b1)) + b2 + x."""
    C = o_ref.shape[0]
    m = m_ref[...]

    # conv1 + bias + ReLU
    acc = jnp.zeros((C, Lq), jnp.float32)
    for t in range(K * K):
        off = q0 + (t // K - PAD) * Wp + (t % K - PAD)
        x_tap = x_ref[:, off:off + Lq].astype(jnp.bfloat16)
        acc = acc + jnp.dot(w1_ref[t], x_tap, preferred_element_type=jnp.float32)
    h = jnp.maximum(acc + b1_ref[...], 0.0) * m

    # re-padded intermediate lives only in a bf16 VMEM scratch (no HBM round trip)
    t_ref[...] = jnp.zeros(t_ref.shape, t_ref.dtype)
    t_ref[:, q0:q0 + Lq] = h.astype(t_ref.dtype)

    # conv2 + bias + residual (scaling_factor = 1.0, no final activation)
    acc2 = jnp.zeros((C, Lq), jnp.float32)
    for t in range(K * K):
        off = q0 + (t // K - PAD) * Wp + (t % K - PAD)
        acc2 = acc2 + jnp.dot(w2_ref[t], t_ref[:, off:off + Lq],
                              preferred_element_type=jnp.float32)
    y = (acc2 + b2_ref[...]) * m + x_ref[:, q0:q0 + Lq]
    o_ref[...] = jnp.zeros(o_ref.shape, o_ref.dtype)
    o_ref[:, q0:q0 + Lq] = y


# -----------------------------------------------------------------------------
# pallas_call wrappers
# -----------------------------------------------------------------------------
# TODO(synk): for large H*W (or v7x dual-TensorCore), add a 'parallel' grid axis
# tiling the flat lane dimension and set vmem_limit_bytes accordingly.
def _head_conv(xf, w_taps, b_col, mask, *, B, H, W):
    Cin_p, nflat = xf.shape
    Cout = w_taps.shape[1]
    _, Wp, _, q0, lq = _geom(B, H, W)
    kern = functools.partial(_head_conv_kernel, Wp=Wp, q0=q0, Lq=lq)
    return pl.pallas_call(
        kern,
        out_shape=jax.ShapeDtypeStruct((Cout, nflat), jnp.float32),
        grid=(1,),
        in_specs=[
            pl.BlockSpec((Cin_p, nflat), lambda i: (0, 0)),
            pl.BlockSpec((K * K, Cout, Cin_p), lambda i: (0, 0, 0)),
            pl.BlockSpec((Cout, 1), lambda i: (0, 0)),
            pl.BlockSpec((1, lq), lambda i: (0, 0)),
        ],
        out_specs=pl.BlockSpec((Cout, nflat), lambda i: (0, 0)),
        compiler_params=pltpu.CompilerParams(dimension_semantics=("arbitrary",)),
    )(xf, w_taps, b_col, mask)


def _resblock(xf, w1, b1, w2, b2, mask, *, B, H, W):
    C, nflat = xf.shape
    _, Wp, _, q0, lq = _geom(B, H, W)
    kern = functools.partial(_resblock_kernel, Wp=Wp, q0=q0, Lq=lq)
    return pl.pallas_call(
        kern,
        out_shape=jax.ShapeDtypeStruct((C, nflat), jnp.float32),
        grid=(1,),
        in_specs=[
            pl.BlockSpec((C, nflat), lambda i: (0, 0)),
            pl.BlockSpec((K * K, C, C), lambda i: (0, 0, 0)),
            pl.BlockSpec((C, 1), lambda i: (0, 0)),
            pl.BlockSpec((K * K, C, C), lambda i: (0, 0, 0)),
            pl.BlockSpec((C, 1), lambda i: (0, 0)),
            pl.BlockSpec((1, lq), lambda i: (0, 0)),
        ],
        out_specs=pl.BlockSpec((C, nflat), lambda i: (0, 0)),
        scratch_shapes=[pltpu.VMEM((C, nflat), jnp.bfloat16)],
        compiler_params=pltpu.CompilerParams(dimension_semantics=("arbitrary",)),
    )(xf, w1, b1, w2, b2, mask)


@functools.partial(jax.jit, static_argnames=("stride",))
def eblock_forward(x_nchw, params, *, stride=1):
    """EBlock forward: NCHW in / NCHW out, matching the PyTorch module."""
    B, Cin, H, W = x_nchw.shape
    Cout = params["b0"].shape[0]

    xf = _to_padded_flat(x_nchw)
    cin_p = params["w0"].shape[2]
    if cin_p != Cin:                       # pad tiny Cin to a clean sublane count
        xf = jnp.pad(xf, ((0, cin_p - Cin), (0, 0)))

    # Head conv5x5 + ReLU.  Computed at stride 1; for a 5x5 / pad-2 conv a
    # strided output is exactly the [::s, ::s] subsample of the stride-1 output.
    y = _head_conv(xf, params["w0"], params["b0"].reshape(Cout, 1),
                   _interior_mask(B, H, W), B=B, H=H, W=W)
    if stride != 1:
        Hp, Wp = H + 2 * PAD, W + 2 * PAD
        y = y.reshape(Cout, B, Hp, Wp)[:, :, PAD:PAD + H:stride, PAD:PAD + W:stride]
        H, W = int(y.shape[2]), int(y.shape[3])
        y = jnp.pad(y, ((0, 0), (0, 0), (PAD, PAD), (PAD, PAD))).reshape(
            Cout, B * (H + 2 * PAD) * (W + 2 * PAD))
        # TODO(synk): fold the stride into the kernel tap reads for large inputs
        # instead of subsampling a stride-1 result.

    mask = _interior_mask(B, H, W)
    for i in range(3):
        y = _resblock(y,
                      params[f"w1_{i}"], params[f"b1_{i}"].reshape(Cout, 1),
                      params[f"w2_{i}"], params[f"b2_{i}"].reshape(Cout, 1),
                      mask, B=B, H=H, W=W)
    return _from_padded_flat(y, B, H, W)


# -----------------------------------------------------------------------------
# pure-JAX reference (mirrors the PyTorch module, f32, NCHW)
# -----------------------------------------------------------------------------
def _conv5x5_ref(x, w, b, stride=1):
    y = lax.conv_general_dilated(x, w, (stride, stride), [(PAD, PAD), (PAD, PAD)],
                                 dimension_numbers=("NCHW", "OIHW", "NCHW"))
    return y + b.reshape(1, -1, 1, 1)


def eblock_reference(x, raw, stride):
    y = jax.nn.relu(_conv5x5_ref(x, raw["w0"], raw["b0"], stride))
    for i in range(3):
        res = y
        h = jax.nn.relu(_conv5x5_ref(y, raw[f"w1_{i}"], raw[f"b1_{i}"]))
        y = _conv5x5_ref(h, raw[f"w2_{i}"], raw[f"b2_{i}"]) + res   # no last ReLU
    return y


def _make_conv_params(key, cin, cout):
    kw_, kb_ = jax.random.split(key)
    fan_in = cin * K * K
    w = jax.random.normal(kw_, (cout, cin, K, K), jnp.float32) / jnp.sqrt(fan_in)
    b = jax.random.normal(kb_, (cout,), jnp.float32) * 0.05
    # the kernel feeds the MXU in bf16; validate the module at that weight precision
    w = w.astype(jnp.bfloat16).astype(jnp.float32)
    return w, b


if __name__ == "__main__":
    # EBlock(in_channels=4, out_channels=32, stride=1) at a small spatial size.
    B, Cin, H, W, Cout = 2, 4, 16, 16, 32

    key = jax.random.PRNGKey(0)
    keys = jax.random.split(key, 8)
    x = jax.random.normal(keys[0], (B, Cin, H, W), jnp.float32)

    raw = {}
    raw["w0"], raw["b0"] = _make_conv_params(keys[1], Cin, Cout)
    for i in range(3):
        raw[f"w1_{i}"], raw[f"b1_{i}"] = _make_conv_params(keys[2 + 2 * i], Cout, Cout)
        raw[f"w2_{i}"], raw[f"b2_{i}"] = _make_conv_params(keys[3 + 2 * i], Cout, Cout)

    params = {"w0": _prep_conv_weight(raw["w0"]), "b0": raw["b0"]}
    for i in range(3):
        params[f"w1_{i}"] = _prep_conv_weight(raw[f"w1_{i}"])
        params[f"b1_{i}"] = raw[f"b1_{i}"]
        params[f"w2_{i}"] = _prep_conv_weight(raw[f"w2_{i}"])
        params[f"b2_{i}"] = raw[f"b2_{i}"]

    # stride = 1
    out = eblock_forward(x, params, stride=1)
    jax.block_until_ready(out)
    ref = eblock_reference(x, raw, 1)
    assert out.shape == ref.shape
    assert jnp.allclose(out, ref, atol=3e-2, rtol=3e-2), \
        float(jnp.max(jnp.abs(out - ref)))

    # strided head conv path (stride = 2)
    out2 = eblock_forward(x, params, stride=2)
    jax.block_until_ready(out2)
    ref2 = eblock_reference(x, raw, 2)
    assert out2.shape == ref2.shape
    assert jnp.allclose(out2, ref2, atol=3e-2, rtol=3e-2), \
        float(jnp.max(jnp.abs(out2 - ref2)))

    print("KERNEL_OK")
</pallas_src>

<mosaic_0001>
module attributes {stable_mosaic.version = 11 : i64} {
  func.func @_head_conv_kernel(%arg0: i32, %arg1: memref<8x800xf32, #tpu.memory_space<vmem>>, %arg2: memref<25x32x8xbf16, #tpu.memory_space<vmem>>, %arg3: memref<32x1xf32, #tpu.memory_space<vmem>>, %arg4: memref<1x716xf32, #tpu.memory_space<vmem>>, %arg5: memref<32x800xf32, #tpu.memory_space<vmem>>) attributes {dimension_semantics = [#tpu.dimension_semantics<arbitrary>], iteration_bounds = array<i64: 1>, scalar_prefetch = 0 : i64, scratch_operands = 0 : i64, tpu.core_type = #tpu.core_type<tc>, window_params = [{pipeline_mode = #tpu.pipeline_mode<synchronous>, transform_indices = @transform_0, window_bounds = array<i64: 8, 800>}, {pipeline_mode = #tpu.pipeline_mode<synchronous>, transform_indices = @transform_1, window_bounds = array<i64: 25, 32, 8>}, {pipeline_mode = #tpu.pipeline_mode<synchronous>, transform_indices = @transform_2, window_bounds = array<i64: 32, 1>}, {pipeline_mode = #tpu.pipeline_mode<synchronous>, transform_indices = @transform_3, window_bounds = array<i64: 1, 716>}, {pipeline_mode = #tpu.pipeline_mode<synchronous>, transform_indices = @transform_4, window_bounds = array<i64: 32, 800>}]} {
    %cst = arith.constant 0.000000e+00 : f32
    %0 = vector.broadcast %cst : f32 to vector<32x716xf32>
    %c0 = arith.constant 0 : index
    %c0_0 = arith.constant 0 : index
    %1 = vector.load %arg1[%c0, %c0_0] : memref<8x800xf32, #tpu.memory_space<vmem>>, vector<8x716xf32>
    %2 = arith.truncf %1 : vector<8x716xf32> to vector<8x716xbf16>
    %c0_1 = arith.constant 0 : index
    %c0_2 = arith.constant 0 : index
    %c0_3 = arith.constant 0 : index
    %3 = vector.load %arg2[%c0_1, %c0_2, %c0_3] : memref<25x32x8xbf16, #tpu.memory_space<vmem>>, vector<1x32x8xbf16>
    %4 = vector.shape_cast %3 : vector<1x32x8xbf16> to vector<32x8xbf16>
    %cst_4 = arith.constant dense<0.000000e+00> : vector<32x716xf32>
    %5 = tpu.matmul %4, %2, %cst_4 {dimension_numbers = #tpu.dot_dimension_numbers<[1], [0], [0], [1], [0, 0, 1, 1], [], []>} : vector<32x8xbf16>, vector<8x716xbf16>, vector<32x716xf32> -> vector<32x716xf32>
    %6 = arith.addf %0, %5 : vector<32x716xf32>
    %c0_5 = arith.constant 0 : index
    %c1 = arith.constant 1 : index
    %7 = vector.load %arg1[%c0_5, %c1] : memref<8x800xf32, #tpu.memory_space<vmem>>, vector<8x716xf32>
    %8 = arith.truncf %7 : vector<8x716xf32> to vector<8x716xbf16>
    %c1_6 = arith.constant 1 : index
    %c0_7 = arith.constant 0 : index
    %c0_8 = arith.constant 0 : index
    %9 = vector.load %arg2[%c1_6, %c0_7, %c0_8] : memref<25x32x8xbf16, #tpu.memory_space<vmem>>, vector<1x32x8xbf16>
    %10 = vector.shape_cast %9 : vector<1x32x8xbf16> to vector<32x8xbf16>
    %cst_9 = arith.constant dense<0.000000e+00> : vector<32x716xf32>
    %11 = tpu.matmul %10, %8, %cst_9 {dimension_numbers = #tpu.dot_dimension_numbers<[1], [0], [0], [1], [0, 0, 1, 1], [], []>} : vector<32x8xbf16>, vector<8x716xbf16>, vector<32x716xf32> -> vector<32x716xf32>
    %12 = arith.addf %6, %11 : vector<32x716xf32>
    %c0_10 = arith.constant 0 : index
    %c2 = arith.constant 2 : index
    %13 = vector.load %arg1[%c0_10, %c2] : memref<8x800xf32, #tpu.memory_space<vmem>>, vector<8x716xf32>
    %14 = arith.truncf %13 : vector<8x716xf32> to vector<8x716xbf16>
    %c2_11 = arith.constant 2 : index
    %c0_12 = arith.constant 0 : index
    %c0_13 = arith.constant 0 : index
    %15 = vector.load %arg2[%c2_11, %c0_12, %c0_13] : memref<25x32x8xbf16, #tpu.memory_space<vmem>>, vector<1x32x8xbf16>
    %16 = vector.shape_cast %15 : vector<1x32x8xbf16> to vector<32x8xbf16>
    %cst_14 = arith.constant dense<0.000000e+00> : vector<32x716xf32>
    %17 = tpu.matmul %16, %14, %cst_14 {dimension_numbers = #tpu.dot_dimension_numbers<[1], [0], [0], [1], [0, 0, 1, 1], [], []>} : vector<32x8xbf16>, vector<8x716xbf16>, vector<32x716xf32> -> vector<32x716xf32>
    %18 = arith.addf %12, %17 : vector<32x716xf32>
    %c0_15 = arith.constant 0 : index
    %c3 = arith.constant 3 : index
    %19 = vector.load %arg1[%c0_15, %c3] : memref<8x800xf32, #tpu.memory_space<vmem>>, vector<8x716xf32>
    %20 = arith.truncf %19 : vector<8x716xf32> to vector<8x716xbf16>
    %c3_16 = arith.constant 3 : index
    %c0_17 = arith.constant 0 : index
    %c0_18 = arith.constant 0 : index
    %21 = vector.load %arg2[%c3_16, %c0_17, %c0_18] : memref<25x32x8xbf16, #tpu.memory_space<vmem>>, vector<1x32x8xbf16>
    %22 = vector.shape_cast %21 : vector<1x32x8xbf16> to vector<32x8xbf16>
    %cst_19 = arith.constant dense<0.000000e+00> : vector<32x716xf32>
    %23 = tpu.matmul %22, %20, %cst_19 {dimension_numbers = #tpu.dot_dimension_numbers<[1], [0], [0], [1], [0, 0, 1, 1], [], []>} : vector<32x8xbf16>, vector<8x716xbf16>, vector<32x716xf32> -> vector<32x716xf32>
    %24 = arith.addf %18, %23 : vector<32x716xf32>
    %c0_20 = arith.constant 0 : index
    %c4 = arith.constant 4 : index
    %25 = vector.load %arg1[%c0_20, %c4] : memref<8x800xf32, #tpu.memory_space<vmem>>, vector<8x716xf32>
    %26 = arith.truncf %25 : vector<8x716xf32> to vector<8x716xbf16>
    %c4_21 = arith.constant 4 : index
    %c0_22 = arith.constant 0 : index
    %c0_23 = arith.constant 0 : index
    %27 = vector.load %arg2[%c4_21, %c0_22, %c0_23] : memref<25x32x8xbf16, #tpu.memory_space<vmem>>, vector<1x32x8xbf16>
    %28 = vector.shape_cast %27 : vector<1x32x8xbf16> to vector<32x8xbf16>
    %cst_24 = arith.constant dense<0.000000e+00> : vector<32x716xf32>
    %29 = tpu.matmul %28, %26, %cst_24 {dimension_numbers = #tpu.dot_dimension_numbers<[1], [0], [0], [1], [0, 0, 1, 1], [], []>} : vector<32x8xbf16>, vector<8x716xbf16>, vector<32x716xf32> -> vector<32x716xf32>
    %30 = arith.addf %24, %29 : vector<32x716xf32>
    %c0_25 = arith.constant 0 : index
    %c20 = arith.constant 20 : index
    %31 = vector.load %arg1[%c0_25, %c20] : memref<8x800xf32, #tpu.memory_space<vmem>>, vector<8x716xf32>
    %32 = arith.truncf %31 : vector<8x716xf32> to vector<8x716xbf16>
    %c5 = arith.constant 5 : index
    %c0_26 = arith.constant 0 : index
    %c0_27 = arith.constant 0 : index
    %33 = vector.load %arg2[%c5, %c0_26, %c0_27] : memref<25x32x8xbf16, #tpu.memory_space<vmem>>, vector<1x32x8xbf16>
    %34 = vector.shape_cast %33 : vector<1x32x8xbf16> to vector<32x8xbf16>
    %cst_28 = arith.constant dense<0.000000e+00> : vector<32x716xf32>
    %35 = tpu.matmul %34, %32, %cst_28 {dimension_numbers = #tpu.dot_dimension_numbers<[1], [0], [0], [1], [0, 0, 1, 1], [], []>} : vector<32x8xbf16>, vector<8x716xbf16>, vector<32x716xf32> -> vector<32x716xf32>
    %36 = arith.addf %30, %35 : vector<32x716xf32>
    %c0_29 = arith.constant 0 : index
    %c21 = arith.constant 21 : index
    %37 = vector.load %arg1[%c0_29, %c21] : memref<8x800xf32, #tpu.memory_space<vmem>>, vector<8x716xf32>
    %38 = arith.truncf %37 : vector<8x716xf32> to vector<8x716xbf16>
    %c6 = arith.constant 6 : index
    %c0_30 = arith.constant 0 : index
    %c0_31 = arith.constant 0 : index
    %39 = vector.load %arg2[%c6, %c0_30, %c0_31] : memref<25x32x8xbf16, #tpu.memory_space<vmem>>, vector<1x32x8xbf16>
    %40 = vector.shape_cast %39 : vector<1x32x8xbf16> to vector<32x8xbf16>
    %cst_32 = arith.constant dense<0.000000e+00> : vector<32x716xf32>
    %41 = tpu.matmul %40, %38, %cst_32 {dimension_numbers = #tpu.dot_dimension_numbers<[1], [0], [0], [1], [0, 0, 1, 1], [], []>} : vector<32x8xbf16>, vector<8x716xbf16>, vector<32x716xf32> -> vector<32x716xf32>
    %42 = arith.addf %36, %41 : vector<32x716xf32>
    %c0_33 = arith.constant 0 : index
    %c22 = arith.constant 22 : index
    %43 = vector.load %arg1[%c0_33, %c22] : memref<8x800xf32, #tpu.memory_space<vmem>>, vector<8x716xf32>
    %44 = arith.truncf %43 : vector<8x716xf32> to vector<8x716xbf16>
    %c7 = arith.constant 7 : index
    %c0_34 = arith.constant 0 : index
    %c0_35 = arith.constant 0 : index
    %45 = vector.load %arg2[%c7, %c0_34, %c0_35] : memref<25x32x8xbf16, #tpu.memory_space<vmem>>, vector<1x32x8xbf16>
    %46 = vector.shape_cast %45 : vector<1x32x8xbf16> to vector<32x8xbf16>
    %cst_36 = arith.constant dense<0.000000e+00> : vector<32x716xf32>
    %47 = tpu.matmul %46, %44, %cst_36 {dimension_numbers = #tpu.dot_dimension_numbers<[1], [0], [0], [1], [0, 0, 1, 1], [], []>} : vector<32x8xbf16>, vector<8x716xbf16>, vector<32x716xf32> -> vector<32x716xf32>
    %48 = arith.addf %42, %47 : vector<32x716xf32>
    %c0_37 = arith.constant 0 : index
    %c23 = arith.constant 23 : index
    %49 = vector.load %arg1[%c0_37, %c23] : memref<8x800xf32, #tpu.memory_space<vmem>>, vector<8x716xf32>
    %50 = arith.truncf %49 : vector<8x716xf32> to vector<8x716xbf16>
    %c8 = arith.constant 8 : index
    %c0_38 = arith.constant 0 : index
    %c0_39 = arith.constant 0 : index
    %51 = vector.load %arg2[%c8, %c0_38, %c0_39] : memref<25x32x8xbf16, #tpu.memory_space<vmem>>, vector<1x32x8xbf16>
    %52 = vector.shape_cast %51 : vector<1x32x8xbf16> to vector<32x8xbf16>
    %cst_40 = arith.constant dense<0.000000e+00> : vector<32x716xf32>
    %53 = tpu.matmul %52, %50, %cst_40 {dimension_numbers = #tpu.dot_dimension_numbers<[1], [0], [0], [1], [0, 0, 1, 1], [], []>} : vector<32x8xbf16>, vector<8x716xbf16>, vector<32x716xf32> -> vector<32x716xf32>
    %54 = arith.addf %48, %53 : vector<32x716xf32>
    %c0_41 = arith.constant 0 : index
    %c24 = arith.constant 24 : index
    %55 = vector.load %arg1[%c0_41, %c24] : memref<8x800xf32, #tpu.memory_space<vmem>>, vector<8x716xf32>
    %56 = arith.truncf %55 : vector<8x716xf32> to vector<8x716xbf16>
    %c9 = arith.constant 9 : index
    %c0_42 = arith.constant 0 : index
    %c0_43 = arith.constant 0 : index
    %57 = vector.load %arg2[%c9, %c0_42, %c0_43] : memref<25x32x8xbf16, #tpu.memory_space<vmem>>, vector<1x32x8xbf16>
    %58 = vector.shape_cast %57 : vector<1x32x8xbf16> to vector<32x8xbf16>
    %cst_44 = arith.constant dense<0.000000e+00> : vector<32x716xf32>
    %59 = tpu.matmul %58, %56, %cst_44 {dimension_numbers = #tpu.dot_dimension_numbers<[1], [0], [0], [1], [0, 0, 1, 1], [], []>} : vector<32x8xbf16>, vector<8x716xbf16>, vector<32x716xf32> -> vector<32x716xf32>
    %60 = arith.addf %54, %59 : vector<32x716xf32>
    %c0_45 = arith.constant 0 : index
    %c40 = arith.constant 40 : index
    %61 = vector.load %arg1[%c0_45, %c40] : memref<8x800xf32, #tpu.memory_space<vmem>>, vector<8x716xf32>
    %62 = arith.truncf %61 : vector<8x716xf32> to vector<8x716xbf16>
    %c10 = arith.constant 10 : index
    %c0_46 = arith.constant 0 : index
    %c0_47 = arith.constant 0 : index
    %63 = vector.load %arg2[%c10, %c0_46, %c0_47] : memref<25x32x8xbf16, #tpu.memory_space<vmem>>, vector<1x32x8xbf16>
    %64 = vector.shape_cast %63 : vector<1x32x8xbf16> to vector<32x8xbf16>
    %cst_48 = arith.constant dense<0.000000e+00> : vector<32x716xf32>
    %65 = tpu.matmul %64, %62, %cst_48 {dimension_numbers = #tpu.dot_dimension_numbers<[1], [0], [0], [1], [0, 0, 1, 1], [], []>} : vector<32x8xbf16>, vector<8x716xbf16>, vector<32x716xf32> -> vector<32x716xf32>
    %66 = arith.addf %60, %65 : vector<32x716xf32>
    %c0_49 = arith.constant 0 : index
    %c41 = arith.constant 41 : index
    %67 = vector.load %arg1[%c0_49, %c41] : memref<8x800xf32, #tpu.memory_space<vmem>>, vector<8x716xf32>
    %68 = arith.truncf %67 : vector<8x716xf32> to vector<8x716xbf16>
    %c11 = arith.constant 11 : index
    %c0_50 = arith.constant 0 : index
    %c0_51 = arith.constant 0 : index
    %69 = vector.load %arg2[%c11, %c0_50, %c0_51] : memref<25x32x8xbf16, #tpu.memory_space<vmem>>, vector<1x32x8xbf16>
    %70 = vector.shape_cast %69 : vector<1x32x8xbf16> to vector<32x8xbf16>
    %cst_52 = arith.constant dense<0.000000e+00> : vector<32x716xf32>
    %71 = tpu.matmul %70, %68, %cst_52 {dimension_numbers = #tpu.dot_dimension_numbers<[1], [0], [0], [1], [0, 0, 1, 1], [], []>} : vector<32x8xbf16>, vector<8x716xbf16>, vector<32x716xf32> -> vector<32x716xf32>
    %72 = arith.addf %66, %71 : vector<32x716xf32>
    %c0_53 = arith.constant 0 : index
    %c42 = arith.constant 42 : index
    %73 = vector.load %arg1[%c0_53, %c42] : memref<8x800xf32, #tpu.memory_space<vmem>>, vector<8x716xf32>
    %74 = arith.truncf %73 : vector<8x716xf32> to vector<8x716xbf16>
    %c12 = arith.constant 12 : index
    %c0_54 = arith.constant 0 : index
    %c0_55 = arith.constant 0 : index
    %75 = vector.load %arg2[%c12, %c0_54, %c0_55] : memref<25x32x8xbf16, #tpu.memory_space<vmem>>, vector<1x32x8xbf16>
    %76 = vector.shape_cast %75 : vector<1x32x8xbf16> to vector<32x8xbf16>
    %cst_56 = arith.constant dense<0.000000e+00> : vector<32x716xf32>
    %77 = tpu.matmul %76, %74, %cst_56 {dimension_numbers = #tpu.dot_dimension_numbers<[1], [0], [0], [1], [0, 0, 1, 1], [], []>} : vector<32x8xbf16>, vector<8x716xbf16>, vector<32x716xf32> -> vector<32x716xf32>
    %78 = arith.addf %72, %77 : vector<32x716xf32>
    %c0_57 = arith.constant 0 : index
    %c43 = arith.constant 43 : index
    %79 = vector.load %arg1[%c0_57, %c43] : memref<8x800xf32, #tpu.memory_space<vmem>>, vector<8x716xf32>
    %80 = arith.truncf %79 : vector<8x716xf32> to vector<8x716xbf16>
    %c13 = arith.constant 13 : index
    %c0_58 = arith.constant 0 : index
    %c0_59 = arith.constant 0 : index
    %81 = vector.load %arg2[%c13, %c0_58, %c0_59] : memref<25x32x8xbf16, #tpu.memory_space<vmem>>, vector<1x32x8xbf16>
    %82 = vector.shape_cast %81 : vector<1x32x8xbf16> to vector<32x8xbf16>
    %cst_60 = arith.constant dense<0.000000e+00> : vector<32x716xf32>
    %83 = tpu.matmul %82, %80, %cst_60 {dimension_numbers = #tpu.dot_dimension_numbers<[1], [0], [0], [1], [0, 0, 1, 1], [], []>} : vector<32x8xbf16>, vector<8x716xbf16>, vector<32x716xf32> -> vector<32x716xf32>
    %84 = arith.addf %78, %83 : vector<32x716xf32>
    %c0_61 = arith.constant 0 : index
    %c44 = arith.constant 44 : index
    %85 = vector.load %arg1[%c0_61, %c44] : memref<8x800xf32, #tpu.memory_space<vmem>>, vector<8x716xf32>
    %86 = arith.truncf %85 : vector<8x716xf32> to vector<8x716xbf16>
    %c14 = arith.constant 14 : index
    %c0_62 = arith.constant 0 : index
    %c0_63 = arith.constant 0 : index
    %87 = vector.load %arg2[%c14, %c0_62, %c0_63] : memref<25x32x8xbf16, #tpu.memory_space<vmem>>, vector<1x32x8xbf16>
    %88 = vector.shape_cast %87 : vector<1x32x8xbf16> to vector<32x8xbf16>
    %cst_64 = arith.constant dense<0.000000e+00> : vector<32x716xf32>
    %89 = tpu.matmul %88, %86, %cst_64 {dimension_numbers = #tpu.dot_dimension_numbers<[1], [0], [0], [1], [0, 0, 1, 1], [], []>} : vector<32x8xbf16>, vector<8x716xbf16>, vector<32x716xf32> -> vector<32x716xf32>
    %90 = arith.addf %84, %89 : vector<32x716xf32>
    %c0_65 = arith.constant 0 : index
    %c60 = arith.constant 60 : index
    %91 = vector.load %arg1[%c0_65, %c60] : memref<8x800xf32, #tpu.memory_space<vmem>>, vector<8x716xf32>
    %92 = arith.truncf %91 : vector<8x716xf32> to vector<8x716xbf16>
    %c15 = arith.constant 15 : index
    %c0_66 = arith.constant 0 : index
    %c0_67 = arith.constant 0 : index
    %93 = vector.load %arg2[%c15, %c0_66, %c0_67] : memref<25x32x8xbf16, #tpu.memory_space<vmem>>, vector<1x32x8xbf16>
    %94 = vector.shape_cast %93 : vector<1x32x8xbf16> to vector<32x8xbf16>
    %cst_68 = arith.constant dense<0.000000e+00> : vector<32x716xf32>
    %95 = tpu.matmul %94, %92, %cst_68 {dimension_numbers = #tpu.dot_dimension_numbers<[1], [0], [0], [1], [0, 0, 1, 1], [], []>} : vector<32x8xbf16>, vector<8x716xbf16>, vector<32x716xf32> -> vector<32x716xf32>
    %96 = arith.addf %90, %95 : vector<32x716xf32>
    %c0_69 = arith.constant 0 : index
    %c61 = arith.constant 61 : index
    %97 = vector.load %arg1[%c0_69, %c61] : memref<8x800xf32, #tpu.memory_space<vmem>>, vector<8x716xf32>
    %98 = arith.truncf %97 : vector<8x716xf32> to vector<8x716xbf16>
    %c16 = arith.constant 16 : index
    %c0_70 = arith.constant 0 : index
    %c0_71 = arith.constant 0 : index
    %99 = vector.load %arg2[%c16, %c0_70, %c0_71] : memref<25x32x8xbf16, #tpu.memory_space<vmem>>, vector<1x32x8xbf16>
    %100 = vector.shape_cast %99 : vector<1x32x8xbf16> to vector<32x8xbf16>
    %cst_72 = arith.constant dense<0.000000e+00> : vector<32x716xf32>
    %101 = tpu.matmul %100, %98, %cst_72 {dimension_numbers = #tpu.dot_dimension_numbers<[1], [0], [0], [1], [0, 0, 1, 1], [], []>} : vector<32x8xbf16>, vector<8x716xbf16>, vector<32x716xf32> -> vector<32x716xf32>
    %102 = arith.addf %96, %101 : vector<32x716xf32>
    %c0_73 = arith.constant 0 : index
    %c62 = arith.constant 62 : index
    %103 = vector.load %arg1[%c0_73, %c62] : memref<8x800xf32, #tpu.memory_space<vmem>>, vector<8x716xf32>
    %104 = arith.truncf %103 : vector<8x716xf32> to vector<8x716xbf16>
    %c17 = arith.constant 17 : index
    %c0_74 = arith.constant 0 : index
    %c0_75 = arith.constant 0 : index
    %105 = vector.load %arg2[%c17, %c0_74, %c0_75] : memref<25x32x8xbf16, #tpu.memory_space<vmem>>, vector<1x32x8xbf16>
    %106 = vector.shape_cast %105 : vector<1x32x8xbf16> to vector<32x8xbf16>
    %cst_76 = arith.constant dense<0.000000e+00> : vector<32x716xf32>
    %107 = tpu.matmul %106, %104, %cst_76 {dimension_numbers = #tpu.dot_dimension_numbers<[1], [0], [0], [1], [0, 0, 1, 1], [], []>} : vector<32x8xbf16>, vector<8x716xbf16>, vector<32x716xf32> -> vector<32x716xf32>
    %108 = arith.addf %102, %107 : vector<32x716xf32>
    %c0_77 = arith.constant 0 : index
    %c63 = arith.constant 63 : index
    %109 = vector.load %arg1[%c0_77, %c63] : memref<8x800xf32, #tpu.memory_space<vmem>>, vector<8x716xf32>
    %110 = arith.truncf %109 : vector<8x716xf32> to vector<8x716xbf16>
    %c18 = arith.constant 18 : index
    %c0_78 = arith.constant 0 : index
    %c0_79 = arith.constant 0 : index
    %111 = vector.load %arg2[%c18, %c0_78, %c0_79] : memref<25x32x8xbf16, #tpu.memory_space<vmem>>, vector<1x32x8xbf16>
    %112 = vector.shape_cast %111 : vector<1x32x8xbf16> to vector<32x8xbf16>
    %cst_80 = arith.constant dense<0.000000e+00> : vector<32x716xf32>
    %113 = tpu.matmul %112, %110, %cst_80 {dimension_numbers = #tpu.dot_dimension_numbers<[1], [0], [0], [1], [0, 0, 1, 1], [], []>} : vector<32x8xbf16>, vector<8x716xbf16>, vector<32x716xf32> -> vector<32x716xf32>
    %114 = arith.addf %108, %113 : vector<32x716xf32>
    %c0_81 = arith.constant 0 : index
    %c64 = arith.constant 64 : index
    %115 = vector.load %arg1[%c0_81, %c64] : memref<8x800xf32, #tpu.memory_space<vmem>>, vector<8x716xf32>
    %116 = arith.truncf %115 : vector<8x716xf32> to vector<8x716xbf16>
    %c19 = arith.constant 19 : index
    %c0_82 = arith.constant 0 : index
    %c0_83 = arith.constant 0 : index
    %117 = vector.load %arg2[%c19, %c0_82, %c0_83] : memref<25x32x8xbf16, #tpu.memory_space<vmem>>, vector<1x32x8xbf16>
    %118 = vector.shape_cast %117 : vector<1x32x8xbf16> to vector<32x8xbf16>
    %cst_84 = arith.constant dense<0.000000e+00> : vector<32x716xf32>
    %119 = tpu.matmul %118, %116, %cst_84 {dimension_numbers = #tpu.dot_dimension_numbers<[1], [0], [0], [1], [0, 0, 1, 1], [], []>} : vector<32x8xbf16>, vector<8x716xbf16>, vector<32x716xf32> -> vector<32x716xf32>
    %120 = arith.addf %114, %119 : vector<32x716xf32>
    %c0_85 = arith.constant 0 : index
    %c80 = arith.constant 80 : index
    %121 = vector.load %arg1[%c0_85, %c80] : memref<8x800xf32, #tpu.memory_space<vmem>>, vector<8x716xf32>
    %122 = arith.truncf %121 : vector<8x716xf32> to vector<8x716xbf16>
    %c20_86 = arith.constant 20 : index
    %c0_87 = arith.constant 0 : index
    %c0_88 = arith.constant 0 : index
    %123 = vector.load %arg2[%c20_86, %c0_87, %c0_88] : memref<25x32x8xbf16, #tpu.memory_space<vmem>>, vector<1x32x8xbf16>
    %124 = vector.shape_cast %123 : vector<1x32x8xbf16> to vector<32x8xbf16>
    %cst_89 = arith.constant dense<0.000000e+00> : vector<32x716xf32>
    %125 = tpu.matmul %124, %122, %cst_89 {dimension_numbers = #tpu.dot_dimension_numbers<[1], [0], [0], [1], [0, 0, 1, 1], [], []>} : vector<32x8xbf16>, vector<8x716xbf16>, vector<32x716xf32> -> vector<32x716xf32>
    %126 = arith.addf %120, %125 : vector<32x716xf32>
    %c0_90 = arith.constant 0 : index
    %c81 = arith.constant 81 : index
    %127 = vector.load %arg1[%c0_90, %c81] : memref<8x800xf32, #tpu.memory_space<vmem>>, vector<8x716xf32>
    %128 = arith.truncf %127 : vector<8x716xf32> to vector<8x716xbf16>
    %c21_91 = arith.constant 21 : index
    %c0_92 = arith.constant 0 : index
    %c0_93 = arith.constant 0 : index
    %129 = vector.load %arg2[%c21_91, %c0_92, %c0_93] : memref<25x32x8xbf16, #tpu.memory_space<vmem>>, vector<1x32x8xbf16>
    %130 = vector.shape_cast %129 : vector<1x32x8xbf16> to vector<32x8xbf16>
    %cst_94 = arith.constant dense<0.000000e+00> : vector<32x716xf32>
    %131 = tpu.matmul %130, %128, %cst_94 {dimension_numbers = #tpu.dot_dimension_numbers<[1], [0], [0], [1], [0, 0, 1, 1], [], []>} : vector<32x8xbf16>, vector<8x716xbf16>, vector<32x716xf32> -> vector<32x716xf32>
    %132 = arith.addf %126, %131 : vector<32x716xf32>
    %c0_95 = arith.constant 0 : index
    %c82 = arith.constant 82 : index
    %133 = vector.load %arg1[%c0_95, %c82] : memref<8x800xf32, #tpu.memory_space<vmem>>, vector<8x716xf32>
    %134 = arith.truncf %133 : vector<8x716xf32> to vector<8x716xbf16>
    %c22_96 = arith.constant 22 : index
    %c0_97 = arith.constant 0 : index
    %c0_98 = arith.constant 0 : index
    %135 = vector.load %arg2[%c22_96, %c0_97, %c0_98] : memref<25x32x8xbf16, #tpu.memory_space<vmem>>, vector<1x32x8xbf16>
    %136 = vector.shape_cast %135 : vector<1x32x8xbf16> to vector<32x8xbf16>
    %cst_99 = arith.constant dense<0.000000e+00> : vector<32x716xf32>
    %137 = tpu.matmul %136, %134, %cst_99 {dimension_numbers = #tpu.dot_dimension_numbers<[1], [0], [0], [1], [0, 0, 1, 1], [], []>} : vector<32x8xbf16>, vector<8x716xbf16>, vector<32x716xf32> -> vector<32x716xf32>
    %138 = arith.addf %132, %137 : vector<32x716xf32>
    %c0_100 = arith.constant 0 : index
    %c83 = arith.constant 83 : index
    %139 = vector.load %arg1[%c0_100, %c83] : memref<8x800xf32, #tpu.memory_space<vmem>>, vector<8x716xf32>
    %140 = arith.truncf %139 : vector<8x716xf32> to vector<8x716xbf16>
    %c23_101 = arith.constant 23 : index
    %c0_102 = arith.constant 0 : index
    %c0_103 = arith.constant 0 : index
    %141 = vector.load %arg2[%c23_101, %c0_102, %c0_103] : memref<25x32x8xbf16, #tpu.memory_space<vmem>>, vector<1x32x8xbf16>
    %142 = vector.shape_cast %141 : vector<1x32x8xbf16> to vector<32x8xbf16>
    %cst_104 = arith.constant dense<0.000000e+00> : vector<32x716xf32>
    %143 = tpu.matmul %142, %140, %cst_104 {dimension_numbers = #tpu.dot_dimension_numbers<[1], [0], [0], [1], [0, 0, 1, 1], [], []>} : vector<32x8xbf16>, vector<8x716xbf16>, vector<32x716xf32> -> vector<32x716xf32>
    %144 = arith.addf %138, %143 : vector<32x716xf32>
    %c0_105 = arith.constant 0 : index
    %c84 = arith.constant 84 : index
    %145 = vector.load %arg1[%c0_105, %c84] : memref<8x800xf32, #tpu.memory_space<vmem>>, vector<8x716xf32>
    %146 = arith.truncf %145 : vector<8x716xf32> to vector<8x716xbf16>
    %c24_106 = arith.constant 24 : index
    %c0_107 = arith.constant 0 : index
    %c0_108 = arith.constant 0 : index
    %147 = vector.load %arg2[%c24_106, %c0_107, %c0_108] : memref<25x32x8xbf16, #tpu.memory_space<vmem>>, vector<1x32x8xbf16>
    %148 = vector.shape_cast %147 : vector<1x32x8xbf16> to vector<32x8xbf16>
    %cst_109 = arith.constant dense<0.000000e+00> : vector<32x716xf32>
    %149 = tpu.matmul %148, %146, %cst_109 {dimension_numbers = #tpu.dot_dimension_numbers<[1], [0], [0], [1], [0, 0, 1, 1], [], []>} : vector<32x8xbf16>, vector<8x716xbf16>, vector<32x716xf32> -> vector<32x716xf32>
    %150 = arith.addf %144, %149 : vector<32x716xf32>
    %c0_110 = arith.constant 0 : index
    %c0_111 = arith.constant 0 : index
    %151 = vector.load %arg3[%c0_110, %c0_111] : memref<32x1xf32, #tpu.memory_space<vmem>>, vector<32x1xf32>
    %152 = vector.broadcast %151 : vector<32x1xf32> to vector<32x716xf32>
    %153 = arith.addf %150, %152 : vector<32x716xf32>
    %cst_112 = arith.constant 0.000000e+00 : f32
    %154 = vector.broadcast %cst_112 : f32 to vector<32x716xf32>
    %155 = arith.maximumf %153, %154 : vector<32x716xf32>
    %c0_113 = arith.constant 0 : index
    %c0_114 = arith.constant 0 : index
    %156 = vector.load %arg4[%c0_113, %c0_114] : memref<1x716xf32, #tpu.memory_space<vmem>>, vector<1x716xf32>
    %157 = vector.broadcast %156 : vector<1x716xf32> to vector<32x716xf32>
    %158 = arith.mulf %155, %157 : vector<32x716xf32>
    %cst_115 = arith.constant 0.000000e+00 : f32
    %159 = vector.broadcast %cst_115 : f32 to vector<32x800xf32>
    %c0_116 = arith.constant 0 : index
    %c0_117 = arith.constant 0 : index
    %160 = vector.load %arg5[%c0_116, %c0_117] : memref<32x800xf32, #tpu.memory_space<vmem>>, vector<32x800xf32>
    tpu.vector_store %arg5[%c0_116, %c0_117], %159 {strides = array<i32>} : memref<32x800xf32, #tpu.memory_space<vmem>>, vector<32x800xf32>,
    %c0_118 = arith.constant 0 : index
    %c42_119 = arith.constant 42 : index
    %161 = vector.load %arg5[%c0_118, %c42_119] : memref<32x800xf32, #tpu.memory_space<vmem>>, vector<32x716xf32>
    tpu.vector_store %arg5[%c0_118, %c42_119], %158 {strides = array<i32>} : memref<32x800xf32, #tpu.memory_space<vmem>>, vector<32x716xf32>,
    return
  }
  func.func @transform_0(%arg0: i32) -> (i32, i32) {
    %c0_i32 = arith.constant 0 : i32
    %c0_i32_0 = arith.constant 0 : i32
    %c0_i32_1 = arith.constant 0 : i32
    return %c0_i32, %c0_i32_0 : i32, i32
  }
  func.func @transform_1(%arg0: i32) -> (i32, i32, i32) {
    %c0_i32 = arith.constant 0 : i32
    %c0_i32_0 = arith.constant 0 : i32
    %c0_i32_1 = arith.constant 0 : i32
    %c0_i32_2 = arith.constant 0 : i32
    return %c0_i32, %c0_i32_0, %c0_i32_1 : i32, i32, i32
  }
  func.func @transform_2(%arg0: i32) -> (i32, i32) {
    %c0_i32 = arith.constant 0 : i32
    %c0_i32_0 = arith.constant 0 : i32
    %c0_i32_1 = arith.constant 0 : i32
    return %c0_i32, %c0_i32_0 : i32, i32
  }
  func.func @transform_3(%arg0: i32) -> (i32, i32) {
    %c0_i32 = arith.constant 0 : i32
    %c0_i32_0 = arith.constant 0 : i32
    %c0_i32_1 = arith.constant 0 : i32
    return %c0_i32, %c0_i32_0 : i32, i32
  }
  func.func @transform_4(%arg0: i32) -> (i32, i32) {
    %c0_i32 = arith.constant 0 : i32
    %c0_i32_0 = arith.constant 0 : i32
    %c0_i32_1 = arith.constant 0 : i32
    return %c0_i32, %c0_i32_0 : i32, i32
  }
}

module attributes {stable_mosaic.version = 11 : i64} {
  func.func @_resblock_kernel(%arg0: i32, %arg1: memref<32x800xf32, #tpu.memory_space<vmem>>, %arg2: memref<25x32x32xbf16, #tpu.memory_space<vmem>>, %arg3: memref<32x1xf32, #tpu.memory_space<vmem>>, %arg4: memref<25x32x32xbf16, #tpu.memory_space<vmem>>, %arg5: memref<32x1xf32, #tpu.memory_space<vmem>>, %arg6: memref<1x716xf32, #tpu.memory_space<vmem>>, %arg7: memref<32x800xf32, #tpu.memory_space<vmem>>, %arg8: memref<32x800xbf16, #tpu.memory_space<vmem>>) attributes {dimension_semantics = [#tpu.dimension_semantics<arbitrary>], iteration_bounds = array<i64: 1>, scalar_prefetch = 0 : i64, scratch_operands = 1 : i64, tpu.core_type = #tpu.core_type<tc>, window_params = [{pipeline_mode = #tpu.pipeline_mode<synchronous>, transform_indices = @transform_0, window_bounds = array<i64: 32, 800>}, {pipeline_mode = #tpu.pipeline_mode<synchronous>, transform_indices = @transform_1, window_bounds = array<i64: 25, 32, 32>}, {pipeline_mode = #tpu.pipeline_mode<synchronous>, transform_indices = @transform_2, window_bounds = array<i64: 32, 1>}, {pipeline_mode = #tpu.pipeline_mode<synchronous>, transform_indices = @transform_3, window_bounds = array<i64: 25, 32, 32>}, {pipeline_mode = #tpu.pipeline_mode<synchronous>, transform_indices = @transform_4, window_bounds = array<i64: 32, 1>}, {pipeline_mode = #tpu.pipeline_mode<synchronous>, transform_indices = @transform_5, window_bounds = array<i64: 1, 716>}, {pipeline_mode = #tpu.pipeline_mode<synchronous>, transform_indices = @transform_6, window_bounds = array<i64: 32, 800>}]} {
    %c0 = arith.constant 0 : index
    %c0_0 = arith.constant 0 : index
    %0 = vector.load %arg6[%c0, %c0_0] : memref<1x716xf32, #tpu.memory_space<vmem>>, vector<1x716xf32>
    %cst = arith.constant 0.000000e+00 : f32
    %1 = vector.broadcast %cst : f32 to vector<32x716xf32>
    %c0_1 = arith.constant 0 : index
    %c0_2 = arith.constant 0 : index
    %2 = vector.load %arg1[%c0_1, %c0_2] : memref<32x800xf32, #tpu.memory_space<vmem>>, vector<32x716xf32>
    %3 = arith.truncf %2 : vector<32x716xf32> to vector<32x716xbf16>
    %c0_3 = arith.constant 0 : index
    %c0_4 = arith.constant 0 : index
    %c0_5 = arith.constant 0 : index
    %4 = vector.load %arg2[%c0_3, %c0_4, %c0_5] : memref<25x32x32xbf16, #tpu.memory_space<vmem>>, vector<1x32x32xbf16>
    %5 = vector.shape_cast %4 : vector<1x32x32xbf16> to vector<32x32xbf16>
    %cst_6 = arith.constant dense<0.000000e+00> : vector<32x716xf32>
    %6 = tpu.matmul %5, %3, %cst_6 {dimension_numbers = #tpu.dot_dimension_numbers<[1], [0], [0], [1], [0, 0, 1, 1], [], []>} : vector<32x32xbf16>, vector<32x716xbf16>, vector<32x716xf32> -> vector<32x716xf32>
    %7 = arith.addf %1, %6 : vector<32x716xf32>
    %c0_7 = arith.constant 0 : index
    %c1 = arith.constant 1 : index
    %8 = vector.load %arg1[%c0_7, %c1] : memref<32x800xf32, #tpu.memory_space<vmem>>, vector<32x716xf32>
    %9 = arith.truncf %8 : vector<32x716xf32> to vector<32x716xbf16>
    %c1_8 = arith.constant 1 : index
    %c0_9 = arith.constant 0 : index
    %c0_10 = arith.constant 0 : index
    %10 = vector.load %arg2[%c1_8, %c0_9, %c0_10] : memref<25x32x32xbf16, #tpu.memory_space<vmem>>, vector<1x32x32xbf16>
    %11 = vector.shape_cast %10 : vector<1x32x32xbf16> to vector<32x32xbf16>
    %cst_11 = arith.constant dense<0.000000e+00> : vector<32x716xf32>
    %12 = tpu.matmul %11, %9, %cst_11 {dimension_numbers = #tpu.dot_dimension_numbers<[1], [0], [0], [1], [0, 0, 1, 1], [], []>} : vector<32x32xbf16>, vector<32x716xbf16>, vector<32x716xf32> -> vector<32x716xf32>
    %13 = arith.addf %7, %12 : vector<32x716xf32>
    %c0_12 = arith.constant 0 : index
    %c2 = arith.constant 2 : index
    %14 = vector.load %arg1[%c0_12, %c2] : memref<32x800xf32, #tpu.memory_space<vmem>>, vector<32x716xf32>
    %15 = arith.truncf %14 : vector<32x716xf32> to vector<32x716xbf16>
    %c2_13 = arith.constant 2 : index
    %c0_14 = arith.constant 0 : index
    %c0_15 = arith.constant 0 : index
    %16 = vector.load %arg2[%c2_13, %c0_14, %c0_15] : memref<25x32x32xbf16, #tpu.memory_space<vmem>>, vector<1x32x32xbf16>
    %17 = vector.shape_cast %16 : vector<1x32x32xbf16> to vector<32x32xbf16>
    %cst_16 = arith.constant dense<0.000000e+00> : vector<32x716xf32>
    %18 = tpu.matmul %17, %15, %cst_16 {dimension_numbers = #tpu.dot_dimension_numbers<[1], [0], [0], [1], [0, 0, 1, 1], [], []>} : vector<32x32xbf16>, vector<32x716xbf16>, vector<32x716xf32> -> vector<32x716xf32>
    %19 = arith.addf %13, %18 : vector<32x716xf32>
    %c0_17 = arith.constant 0 : index
    %c3 = arith.constant 3 : index
    %20 = vector.load %arg1[%c0_17, %c3] : memref<32x800xf32, #tpu.memory_space<vmem>>, vector<32x716xf32>
    %21 = arith.truncf %20 : vector<32x716xf32> to vector<32x716xbf16>
    %c3_18 = arith.constant 3 : index
    %c0_19 = arith.constant 0 : index
    %c0_20 = arith.constant 0 : index
    %22 = vector.load %arg2[%c3_18, %c0_19, %c0_20] : memref<25x32x32xbf16, #tpu.memory_space<vmem>>, vector<1x32x32xbf16>
    %23 = vector.shape_cast %22 : vector<1x32x32xbf16> to vector<32x32xbf16>
    %cst_21 = arith.constant dense<0.000000e+00> : vector<32x716xf32>
    %24 = tpu.matmul %23, %21, %cst_21 {dimension_numbers = #tpu.dot_dimension_numbers<[1], [0], [0], [1], [0, 0, 1, 1], [], []>} : vector<32x32xbf16>, vector<32x716xbf16>, vector<32x716xf32> -> vector<32x716xf32>
    %25 = arith.addf %19, %24 : vector<32x716xf32>
    %c0_22 = arith.constant 0 : index
    %c4 = arith.constant 4 : index
    %26 = vector.load %arg1[%c0_22, %c4] : memref<32x800xf32, #tpu.memory_space<vmem>>, vector<32x716xf32>
    %27 = arith.truncf %26 : vector<32x716xf32> to vector<32x716xbf16>
    %c4_23 = arith.constant 4 : index
    %c0_24 = arith.constant 0 : index
    %c0_25 = arith.constant 0 : index
    %28 = vector.load %arg2[%c4_23, %c0_24, %c0_25] : memref<25x32x32xbf16, #tpu.memory_space<vmem>>, vector<1x32x32xbf16>
    %29 = vector.shape_cast %28 : vector<1x32x32xbf16> to vector<32x32xbf16>
    %cst_26 = arith.constant dense<0.000000e+00> : vector<32x716xf32>
    %30 = tpu.matmul %29, %27, %cst_26 {dimension_numbers = #tpu.dot_dimension_numbers<[1], [0], [0], [1], [0, 0, 1, 1], [], []>} : vector<32x32xbf16>, vector<32x716xbf16>, vector<32x716xf32> -> vector<32x716xf32>
    %31 = arith.addf %25, %30 : vector<32x716xf32>
    %c0_27 = arith.constant 0 : index
    %c20 = arith.constant 20 : index
    %32 = vector.load %arg1[%c0_27, %c20] : memref<32x800xf32, #tpu.memory_space<vmem>>, vector<32x716xf32>
    %33 = arith.truncf %32 : vector<32x716xf32> to vector<32x716xbf16>
    %c5 = arith.constant 5 : index
    %c0_28 = arith.constant 0 : index
    %c0_29 = arith.constant 0 : index
    %34 = vector.load %arg2[%c5, %c0_28, %c0_29] : memref<25x32x32xbf16, #tpu.memory_space<vmem>>, vector<1x32x32xbf16>
    %35 = vector.shape_cast %34 : vector<1x32x32xbf16> to vector<32x32xbf16>
    %cst_30 = arith.constant dense<0.000000e+00> : vector<32x716xf32>
    %36 = tpu.matmul %35, %33, %cst_30 {dimension_numbers = #tpu.dot_dimension_numbers<[1], [0], [0], [1], [0, 0, 1, 1], [], []>} : vector<32x32xbf16>, vector<32x716xbf16>, vector<32x716xf32> -> vector<32x716xf32>
    %37 = arith.addf %31, %36 : vector<32x716xf32>
    %c0_31 = arith.constant 0 : index
    %c21 = arith.constant 21 : index
    %38 = vector.load %arg1[%c0_31, %c21] : memref<32x800xf32, #tpu.memory_space<vmem>>, vector<32x716xf32>
    %39 = arith.truncf %38 : vector<32x716xf32> to vector<32x716xbf16>
    %c6 = arith.constant 6 : index
    %c0_32 = arith.constant 0 : index
    %c0_33 = arith.constant 0 : index
    %40 = vector.load %arg2[%c6, %c0_32, %c0_33] : memref<25x32x32xbf16, #tpu.memory_space<vmem>>, vector<1x32x32xbf16>
    %41 = vector.shape_cast %40 : vector<1x32x32xbf16> to vector<32x32xbf16>
    %cst_34 = arith.constant dense<0.000000e+00> : vector<32x716xf32>
    %42 = tpu.matmul %41, %39, %cst_34 {dimension_numbers = #tpu.dot_dimension_numbers<[1], [0], [0], [1], [0, 0, 1, 1], [], []>} : vector<32x32xbf16>, vector<32x716xbf16>, vector<32x716xf32> -> vector<32x716xf32>
    %43 = arith.addf %37, %42 : vector<32x716xf32>
    %c0_35 = arith.constant 0 : index
    %c22 = arith.constant 22 : index
    %44 = vector.load %arg1[%c0_35, %c22] : memref<32x800xf32, #tpu.memory_space<vmem>>, vector<32x716xf32>
    %45 = arith.truncf %44 : vector<32x716xf32> to vector<32x716xbf16>
    %c7 = arith.constant 7 : index
    %c0_36 = arith.constant 0 : index
    %c0_37 = arith.constant 0 : index
    %46 = vector.load %arg2[%c7, %c0_36, %c0_37] : memref<25x32x32xbf16, #tpu.memory_space<vmem>>, vector<1x32x32xbf16>
    %47 = vector.shape_cast %46 : vector<1x32x32xbf16> to vector<32x32xbf16>
    %cst_38 = arith.constant dense<0.000000e+00> : vector<32x716xf32>
    %48 = tpu.matmul %47, %45, %cst_38 {dimension_numbers = #tpu.dot_dimension_numbers<[1], [0], [0], [1], [0, 0, 1, 1], [], []>} : vector<32x32xbf16>, vector<32x716xbf16>, vector<32x716xf32> -> vector<32x716xf32>
    %49 = arith.addf %43, %48 : vector<32x716xf32>
    %c0_39 = arith.constant 0 : index
    %c23 = arith.constant 23 : index
    %50 = vector.load %arg1[%c0_39, %c23] : memref<32x800xf32, #tpu.memory_space<vmem>>, vector<32x716xf32>
    %51 = arith.truncf %50 : vector<32x716xf32> to vector<32x716xbf16>
    %c8 = arith.constant 8 : index
    %c0_40 = arith.constant 0 : index
    %c0_41 = arith.constant 0 : index
    %52 = vector.load %arg2[%c8, %c0_40, %c0_41] : memref<25x32x32xbf16, #tpu.memory_space<vmem>>, vector<1x32x32xbf16>
    %53 = vector.shape_cast %52 : vector<1x32x32xbf16> to vector<32x32xbf16>
    %cst_42 = arith.constant dense<0.000000e+00> : vector<32x716xf32>
    %54 = tpu.matmul %53, %51, %cst_42 {dimension_numbers = #tpu.dot_dimension_numbers<[1], [0], [0], [1], [0, 0, 1, 1], [], []>} : vector<32x32xbf16>, vector<32x716xbf16>, vector<32x716xf32> -> vector<32x716xf32>
    %55 = arith.addf %49, %54 : vector<32x716xf32>
    %c0_43 = arith.constant 0 : index
    %c24 = arith.constant 24 : index
    %56 = vector.load %arg1[%c0_43, %c24] : memref<32x800xf32, #tpu.memory_space<vmem>>, vector<32x716xf32>
    %57 = arith.truncf %56 : vector<32x716xf32> to vector<32x716xbf16>
    %c9 = arith.constant 9 : index
    %c0_44 = arith.constant 0 : index
    %c0_45 = arith.constant 0 : index
    %58 = vector.load %arg2[%c9, %c0_44, %c0_45] : memref<25x32x32xbf16, #tpu.memory_space<vmem>>, vector<1x32x32xbf16>
    %59 = vector.shape_cast %58 : vector<1x32x32xbf16> to vector<32x32xbf16>
    %cst_46 = arith.constant dense<0.000000e+00> : vector<32x716xf32>
    %60 = tpu.matmul %59, %57, %cst_46 {dimension_numbers = #tpu.dot_dimension_numbers<[1], [0], [0], [1], [0, 0, 1, 1], [], []>} : vector<32x32xbf16>, vector<32x716xbf16>, vector<32x716xf32> -> vector<32x716xf32>
    %61 = arith.addf %55, %60 : vector<32x716xf32>
    %c0_47 = arith.constant 0 : index
    %c40 = arith.constant 40 : index
    %62 = vector.load %arg1[%c0_47, %c40] : memref<32x800xf32, #tpu.memory_space<vmem>>, vector<32x716xf32>
    %63 = arith.truncf %62 : vector<32x716xf32> to vector<32x716xbf16>
    %c10 = arith.constant 10 : index
    %c0_48 = arith.constant 0 : index
    %c0_49 = arith.constant 0 : index
    %64 = vector.load %arg2[%c10, %c0_48, %c0_49] : memref<25x32x32xbf16, #tpu.memory_space<vmem>>, vector<1x32x32xbf16>
    %65 = vector.shape_cast %64 : vector<1x32x32xbf16> to vector<32x32xbf16>
    %cst_50 = arith.constant dense<0.000000e+00> : vector<32x716xf32>
    %66 = tpu.matmul %65, %63, %cst_50 {dimension_numbers = #tpu.dot_dimension_numbers<[1], [0], [0], [1], [0, 0, 1, 1], [], []>} : vector<32x32xbf16>, vector<32x716xbf16>, vector<32x716xf32> -> vector<32x716xf32>
    %67 = arith.addf %61, %66 : vector<32x716xf32>
    %c0_51 = arith.constant 0 : index
    %c41 = arith.constant 41 : index
    %68 = vector.load %arg1[%c0_51, %c41] : memref<32x800xf32, #tpu.memory_space<vmem>>, vector<32x716xf32>
    %69 = arith.truncf %68 : vector<32x716xf32> to vector<32x716xbf16>
    %c11 = arith.constant 11 : index
    %c0_52 = arith.constant 0 : index
    %c0_53 = arith.constant 0 : index
    %70 = vector.load %arg2[%c11, %c0_52, %c0_53] : memref<25x32x32xbf16, #tpu.memory_space<vmem>>, vector<1x32x32xbf16>
    %71 = vector.shape_cast %70 : vector<1x32x32xbf16> to vector<32x32xbf16>
    %cst_54 = arith.constant dense<0.000000e+00> : vector<32x716xf32>
    %72 = tpu.matmul %71, %69, %cst_54 {dimension_numbers = #tpu.dot_dimension_numbers<[1], [0], [0], [1], [0, 0, 1, 1], [], []>} : vector<32x32xbf16>, vector<32x716xbf16>, vector<32x716xf32> -> vector<32x716xf32>
    %73 = arith.addf %67, %72 : vector<32x716xf32>
    %c0_55 = arith.constant 0 : index
    %c42 = arith.constant 42 : index
    %74 = vector.load %arg1[%c0_55, %c42] : memref<32x800xf32, #tpu.memory_space<vmem>>, vector<32x716xf32>
    %75 = arith.truncf %74 : vector<32x716xf32> to vector<32x716xbf16>
    %c12 = arith.constant 12 : index
    %c0_56 = arith.constant 0 : index
    %c0_57 = arith.constant 0 : index
    %76 = vector.load %arg2[%c12, %c0_56, %c0_57] : memref<25x32x32xbf16, #tpu.memory_space<vmem>>, vector<1x32x32xbf16>
    %77 = vector.shape_cast %76 : vector<1x32x32xbf16> to vector<32x32xbf16>
    %cst_58 = arith.constant dense<0.000000e+00> : vector<32x716xf32>
    %78 = tpu.matmul %77, %75, %cst_58 {dimension_numbers = #tpu.dot_dimension_numbers<[1], [0], [0], [1], [0, 0, 1, 1], [], []>} : vector<32x32xbf16>, vector<32x716xbf16>, vector<32x716xf32> -> vector<32x716xf32>
    %79 = arith.addf %73, %78 : vector<32x716xf32>
    %c0_59 = arith.constant 0 : index
    %c43 = arith.constant 43 : index
    %80 = vector.load %arg1[%c0_59, %c43] : memref<32x800xf32, #tpu.memory_space<vmem>>, vector<32x716xf32>
    %81 = arith.truncf %80 : vector<32x716xf32> to vector<32x716xbf16>
    %c13 = arith.constant 13 : index
    %c0_60 = arith.constant 0 : index
    %c0_61 = arith.constant 0 : index
    %82 = vector.load %arg2[%c13, %c0_60, %c0_61] : memref<25x32x32xbf16, #tpu.memory_space<vmem>>, vector<1x32x32xbf16>
    %83 = vector.shape_cast %82 : vector<1x32x32xbf16> to vector<32x32xbf16>
    %cst_62 = arith.constant dense<0.000000e+00> : vector<32x716xf32>
    %84 = tpu.matmul %83, %81, %cst_62 {dimension_numbers = #tpu.dot_dimension_numbers<[1], [0], [0], [1], [0, 0, 1, 1], [], []>} : vector<32x32xbf16>, vector<32x716xbf16>, vector<32x716xf32> -> vector<32x716xf32>
    %85 = arith.addf %79, %84 : vector<32x716xf32>
    %c0_63 = arith.constant 0 : index
    %c44 = arith.constant 44 : index
    %86 = vector.load %arg1[%c0_63, %c44] : memref<32x800xf32, #tpu.memory_space<vmem>>, vector<32x716xf32>
    %87 = arith.truncf %86 : vector<32x716xf32> to vector<32x716xbf16>
    %c14 = arith.constant 14 : index
    %c0_64 = arith.constant 0 : index
    %c0_65 = arith.constant 0 : index
    %88 = vector.load %arg2[%c14, %c0_64, %c0_65] : memref<25x32x32xbf16, #tpu.memory_space<vmem>>, vector<1x32x32xbf16>
    %89 = vector.shape_cast %88 : vector<1x32x32xbf16> to vector<32x32xbf16>
    %cst_66 = arith.constant dense<0.000000e+00> : vector<32x716xf32>
    %90 = tpu.matmul %89, %87, %cst_66 {dimension_numbers = #tpu.dot_dimension_numbers<[1], [0], [0], [1], [0, 0, 1, 1], [], []>} : vector<32x32xbf16>, vector<32x716xbf16>, vector<32x716xf32> -> vector<32x716xf32>
    %91 = arith.addf %85, %90 : vector<32x716xf32>
    %c0_67 = arith.constant 0 : index
    %c60 = arith.constant 60 : index
    %92 = vector.load %arg1[%c0_67, %c60] : memref<32x800xf32, #tpu.memory_space<vmem>>, vector<32x716xf32>
    %93 = arith.truncf %92 : vector<32x716xf32> to vector<32x716xbf16>
    %c15 = arith.constant 15 : index
    %c0_68 = arith.constant 0 : index
    %c0_69 = arith.constant 0 : index
    %94 = vector.load %arg2[%c15, %c0_68, %c0_69] : memref<25x32x32xbf16, #tpu.memory_space<vmem>>, vector<1x32x32xbf16>
    %95 = vector.shape_cast %94 : vector<1x32x32xbf16> to vector<32x32xbf16>
    %cst_70 = arith.constant dense<0.000000e+00> : vector<32x716xf32>
    %96 = tpu.matmul %95, %93, %cst_70 {dimension_numbers = #tpu.dot_dimension_numbers<[1], [0], [0], [1], [0, 0, 1, 1], [], []>} : vector<32x32xbf16>, vector<32x716xbf16>, vector<32x716xf32> -> vector<32x716xf32>
    %97 = arith.addf %91, %96 : vector<32x716xf32>
    %c0_71 = arith.constant 0 : index
    %c61 = arith.constant 61 : index
    %98 = vector.load %arg1[%c0_71, %c61] : memref<32x800xf32, #tpu.memory_space<vmem>>, vector<32x716xf32>
    %99 = arith.truncf %98 : vector<32x716xf32> to vector<32x716xbf16>
    %c16 = arith.constant 16 : index
    %c0_72 = arith.constant 0 : index
    %c0_73 = arith.constant 0 : index
    %100 = vector.load %arg2[%c16, %c0_72, %c0_73] : memref<25x32x32xbf16, #tpu.memory_space<vmem>>, vector<1x32x32xbf16>
    %101 = vector.shape_cast %100 : vector<1x32x32xbf16> to vector<32x32xbf16>
    %cst_74 = arith.constant dense<0.000000e+00> : vector<32x716xf32>
    %102 = tpu.matmul %101, %99, %cst_74 {dimension_numbers = #tpu.dot_dimension_numbers<[1], [0], [0], [1], [0, 0, 1, 1], [], []>} : vector<32x32xbf16>, vector<32x716xbf16>, vector<32x716xf32> -> vector<32x716xf32>
    %103 = arith.addf %97, %102 : vector<32x716xf32>
    %c0_75 = arith.constant 0 : index
    %c62 = arith.constant 62 : index
    %104 = vector.load %arg1[%c0_75, %c62] : memref<32x800xf32, #tpu.memory_space<vmem>>, vector<32x716xf32>
    %105 = arith.truncf %104 : vector<32x716xf32> to vector<32x716xbf16>
    %c17 = arith.constant 17 : index
    %c0_76 = arith.constant 0 : index
    %c0_77 = arith.constant 0 : index
    %106 = vector.load %arg2[%c17, %c0_76, %c0_77] : memref<25x32x32xbf16, #tpu.memory_space<vmem>>, vector<1x32x32xbf16>
    %107 = vector.shape_cast %106 : vector<1x32x32xbf16> to vector<32x32xbf16>
    %cst_78 = arith.constant dense<0.000000e+00> : vector<32x716xf32>
    %108 = tpu.matmul %107, %105, %cst_78 {dimension_numbers = #tpu.dot_dimension_numbers<[1], [0], [0], [1], [0, 0, 1, 1], [], []>} : vector<32x32xbf16>, vector<32x716xbf16>, vector<32x716xf32> -> vector<32x716xf32>
    %109 = arith.addf %103, %108 : vector<32x716xf32>
    %c0_79 = arith.constant 0 : index
    %c63 = arith.constant 63 : index
    %110 = vector.load %arg1[%c0_79, %c63] : memref<32x800xf32, #tpu.memory_space<vmem>>, vector<32x716xf32>
    %111 = arith.truncf %110 : vector<32x716xf32> to vector<32x716xbf16>
    %c18 = arith.constant 18 : index
    %c0_80 = arith.constant 0 : index
    %c0_81 = arith.constant 0 : index
    %112 = vector.load %arg2[%c18, %c0_80, %c0_81] : memref<25x32x32xbf16, #tpu.memory_space<vmem>>, vector<1x32x32xbf16>
    %113 = vector.shape_cast %112 : vector<1x32x32xbf16> to vector<32x32xbf16>
    %cst_82 = arith.constant dense<0.000000e+00> : vector<32x716xf32>
    %114 = tpu.matmul %113, %111, %cst_82 {dimension_numbers = #tpu.dot_dimension_numbers<[1], [0], [0], [1], [0, 0, 1, 1], [], []>} : vector<32x32xbf16>, vector<32x716xbf16>, vector<32x716xf32> -> vector<32x716xf32>
    %115 = arith.addf %109, %114 : vector<32x716xf32>
    %c0_83 = arith.constant 0 : index
    %c64 = arith.constant 64 : index
    %116 = vector.load %arg1[%c0_83, %c64] : memref<32x800xf32, #tpu.memory_space<vmem>>, vector<32x716xf32>
    %117 = arith.truncf %116 : vector<32x716xf32> to vector<32x716xbf16>
    %c19 = arith.constant 19 : index
    %c0_84 = arith.constant 0 : index
    %c0_85 = arith.constant 0 : index
    %118 = vector.load %arg2[%c19, %c0_84, %c0_85] : memref<25x32x32xbf16, #tpu.memory_space<vmem>>, vector<1x32x32xbf16>
    %119 = vector.shape_cast %118 : vector<1x32x32xbf16> to vector<32x32xbf16>
    %cst_86 = arith.constant dense<0.000000e+00> : vector<32x716xf32>
    %120 = tpu.matmul %119, %117, %cst_86 {dimension_numbers = #tpu.dot_dimension_numbers<[1], [0], [0], [1], [0, 0, 1, 1], [], []>} : vector<32x32xbf16>, vector<32x716xbf16>, vector<32x716xf32> -> vector<32x716xf32>
    %121 = arith.addf %115, %120 : vector<32x716xf32>
    %c0_87 = arith.constant 0 : index
    %c80 = arith.constant 80 : index
    %122 = vector.load %arg1[%c0_87, %c80] : memref<32x800xf32, #tpu.memory_space<vmem>>, vector<32x716xf32>
    %123 = arith.truncf %122 : vector<32x716xf32> to vector<32x716xbf16>
    %c20_88 = arith.constant 20 : index
    %c0_89 = arith.constant 0 : index
    %c0_90 = arith.constant 0 : index
    %124 = vector.load %arg2[%c20_88, %c0_89, %c0_90] : memref<25x32x32xbf16, #tpu.memory_space<vmem>>, vector<1x32x32xbf16>
    %125 = vector.shape_cast %124 : vector<1x32x32xbf16> to vector<32x32xbf16>
    %cst_91 = arith.constant dense<0.000000e+00> : vector<32x716xf32>
    %126 = tpu.matmul %125, %123, %cst_91 {dimension_numbers = #tpu.dot_dimension_numbers<[1], [0], [0], [1], [0, 0, 1, 1], [], []>} : vector<32x32xbf16>, vector<32x716xbf16>, vector<32x716xf32> -> vector<32x716xf32>
    %127 = arith.addf %121, %126 : vector<32x716xf32>
    %c0_92 = arith.constant 0 : index
    %c81 = arith.constant 81 : index
    %128 = vector.load %arg1[%c0_92, %c81] : memref<32x800xf32, #tpu.memory_space<vmem>>, vector<32x716xf32>
    %129 = arith.truncf %128 : vector<32x716xf32> to vector<32x716xbf16>
    %c21_93 = arith.constant 21 : index
    %c0_94 = arith.constant 0 : index
    %c0_95 = arith.constant 0 : index
    %130 = vector.load %arg2[%c21_93, %c0_94, %c0_95] : memref<25x32x32xbf16, #tpu.memory_space<vmem>>, vector<1x32x32xbf16>
    %131 = vector.shape_cast %130 : vector<1x32x32xbf16> to vector<32x32xbf16>
    %cst_96 = arith.constant dense<0.000000e+00> : vector<32x716xf32>
    %132 = tpu.matmul %131, %129, %cst_96 {dimension_numbers = #tpu.dot_dimension_numbers<[1], [0], [0], [1], [0, 0, 1, 1], [], []>} : vector<32x32xbf16>, vector<32x716xbf16>, vector<32x716xf32> -> vector<32x716xf32>
    %133 = arith.addf %127, %132 : vector<32x716xf32>
    %c0_97 = arith.constant 0 : index
    %c82 = arith.constant 82 : index
    %134 = vector.load %arg1[%c0_97, %c82] : memref<32x800xf32, #tpu.memory_space<vmem>>, vector<32x716xf32>
    %135 = arith.truncf %134 : vector<32x716xf32> to vector<32x716xbf16>
    %c22_98 = arith.constant 22 : index
    %c0_99 = arith.constant 0 : index
    %c0_100 = arith.constant 0 : index
    %136 = vector.load %arg2[%c22_98, %c0_99, %c0_100] : memref<25x32x32xbf16, #tpu.memory_space<vmem>>, vector<1x32x32xbf16>
    %137 = vector.shape_cast %136 : vector<1x32x32xbf16> to vector<32x32xbf16>
    %cst_101 = arith.constant dense<0.000000e+00> : vector<32x716xf32>
    %138 = tpu.matmul %137, %135, %cst_101 {dimension_numbers = #tpu.dot_dimension_numbers<[1], [0], [0], [1], [0, 0, 1, 1], [], []>} : vector<32x32xbf16>, vector<32x716xbf16>, vector<32x716xf32> -> vector<32x716xf32>
    %139 = arith.addf %133, %138 : vector<32x716xf32>
    %c0_102 = arith.constant 0 : index
    %c83 = arith.constant 83 : index
    %140 = vector.load %arg1[%c0_102, %c83] : memref<32x800xf32, #tpu.memory_space<vmem>>, vector<32x716xf32>
    %141 = arith.truncf %140 : vector<32x716xf32> to vector<32x716xbf16>
    %c23_103 = arith.constant 23 : index
    %c0_104 = arith.constant 0 : index
    %c0_105 = arith.constant 0 : index
    %142 = vector.load %arg2[%c23_103, %c0_104, %c0_105] : memref<25x32x32xbf16, #tpu.memory_space<vmem>>, vector<1x32x32xbf16>
    %143 = vector.shape_cast %142 : vector<1x32x32xbf16> to vector<32x32xbf16>
    %cst_106 = arith.constant dense<0.000000e+00> : vector<32x716xf32>
    %144 = tpu.matmul %143, %141, %cst_106 {dimension_numbers = #tpu.dot_dimension_numbers<[1], [0], [0], [1], [0, 0, 1, 1], [], []>} : vector<32x32xbf16>, vector<32x716xbf16>, vector<32x716xf32> -> vector<32x716xf32>
    %145 = arith.addf %139, %144 : vector<32x716xf32>
    %c0_107 = arith.constant 0 : index
    %c84 = arith.constant 84 : index
    %146 = vector.load %arg1[%c0_107, %c84] : memref<32x800xf32, #tpu.memory_space<vmem>>, vector<32x716xf32>
    %147 = arith.truncf %146 : vector<32x716xf32> to vector<32x716xbf16>
    %c24_108 = arith.constant 24 : index
    %c0_109 = arith.constant 0 : index
    %c0_110 = arith.constant 0 : index
    %148 = vector.load %arg2[%c24_108, %c0_109, %c0_110] : memref<25x32x32xbf16, #tpu.memory_space<vmem>>, vector<1x32x32xbf16>
    %149 = vector.shape_cast %148 : vector<1x32x32xbf16> to vector<32x32xbf16>
    %cst_111 = arith.constant dense<0.000000e+00> : vector<32x716xf32>
    %150 = tpu.matmul %149, %147, %cst_111 {dimension_numbers = #tpu.dot_dimension_numbers<[1], [0], [0], [1], [0, 0, 1, 1], [], []>} : vector<32x32xbf16>, vector<32x716xbf16>, vector<32x716xf32> -> vector<32x716xf32>
    %151 = arith.addf %145, %150 : vector<32x716xf32>
    %c0_112 = arith.constant 0 : index
    %c0_113 = arith.constant 0 : index
    %152 = vector.load %arg3[%c0_112, %c0_113] : memref<32x1xf32, #tpu.memory_space<vmem>>, vector<32x1xf32>
    %153 = vector.broadcast %152 : vector<32x1xf32> to vector<32x716xf32>
    %154 = arith.addf %151, %153 : vector<32x716xf32>
    %cst_114 = arith.constant 0.000000e+00 : f32
    %155 = vector.broadcast %cst_114 : f32 to vector<32x716xf32>
    %156 = arith.maximumf %154, %155 : vector<32x716xf32>
    %157 = vector.broadcast %0 : vector<1x716xf32> to vector<32x716xf32>
    %158 = arith.mulf %156, %157 : vector<32x716xf32>
    %cst_115 = arith.constant 0.000000e+00 : bf16
    %159 = vector.broadcast %cst_115 : bf16 to vector<32x800xbf16>
    %c0_116 = arith.constant 0 : index
    %c0_117 = arith.constant 0 : index
    %160 = vector.load %arg8[%c0_116, %c0_117] : memref<32x800xbf16, #tpu.memory_space<vmem>>, vector<32x800xbf16>
    tpu.vector_store %arg8[%c0_116, %c0_117], %159 {strides = array<i32>} : memref<32x800xbf16, #tpu.memory_space<vmem>>, vector<32x800xbf16>,
    %161 = arith.truncf %158 : vector<32x716xf32> to vector<32x716xbf16>
    %c0_118 = arith.constant 0 : index
    %c42_119 = arith.constant 42 : index
    %162 = vector.load %arg8[%c0_118, %c42_119] : memref<32x800xbf16, #tpu.memory_space<vmem>>, vector<32x716xbf16>
    tpu.vector_store %arg8[%c0_118, %c42_119], %161 {strides = array<i32>} : memref<32x800xbf16, #tpu.memory_space<vmem>>, vector<32x716xbf16>,
    %cst_120 = arith.constant 0.000000e+00 : f32
    %163 = vector.broadcast %cst_120 : f32 to vector<32x716xf32>
    %c0_121 = arith.constant 0 : index
    %c0_122 = arith.constant 0 : index
    %c0_123 = arith.constant 0 : index
    %164 = vector.load %arg4[%c0_121, %c0_122, %c0_123] : memref<25x32x32xbf16, #tpu.memory_space<vmem>>, vector<1x32x32xbf16>
    %165 = vector.shape_cast %164 : vector<1x32x32xbf16> to vector<32x32xbf16>
    %c0_124 = arith.constant 0 : index
    %c0_125 = arith.constant 0 : index
    %166 = vector.load %arg8[%c0_124, %c0_125] : memref<32x800xbf16, #tpu.memory_space<vmem>>, vector<32x716xbf16>
    %cst_126 = arith.constant dense<0.000000e+00> : vector<32x716xf32>
    %167 = tpu.matmul %165, %166, %cst_126 {dimension_numbers = #tpu.dot_dimension_numbers<[1], [0], [0], [1], [0, 0, 1, 1], [], []>} : vector<32x32xbf16>, vector<32x716xbf16>, vector<32x716xf32> -> vector<32x716xf32>
    %168 = arith.addf %163, %167 : vector<32x716xf32>
    %c1_127 = arith.constant 1 : index
    %c0_128 = arith.constant 0 : index
    %c0_129 = arith.constant 0 : index
    %169 = vector.load %arg4[%c1_127, %c0_128, %c0_129] : memref<25x32x32xbf16, #tpu.memory_space<vmem>>, vector<1x32x32xbf16>
    %170 = vector.shape_cast %169 : vector<1x32x32xbf16> to vector<32x32xbf16>
    %c0_130 = arith.constant 0 : index
    %c1_131 = arith.constant 1 : index
    %171 = vector.load %arg8[%c0_130, %c1_131] : memref<32x800xbf16, #tpu.memory_space<vmem>>, vector<32x716xbf16>
    %cst_132 = arith.constant dense<0.000000e+00> : vector<32x716xf32>
    %172 = tpu.matmul %170, %171, %cst_132 {dimension_numbers = #tpu.dot_dimension_numbers<[1], [0], [0], [1], [0, 0, 1, 1], [], []>} : vector<32x32xbf16>, vector<32x716xbf16>, vector<32x716xf32> -> vector<32x716xf32>
    %173 = arith.addf %168, %172 : vector<32x716xf32>
    %c2_133 = arith.constant 2 : index
    %c0_134 = arith.constant 0 : index
    %c0_135 = arith.constant 0 : index
    %174 = vector.load %arg4[%c2_133, %c0_134, %c0_135] : memref<25x32x32xbf16, #tpu.memory_space<vmem>>, vector<1x32x32xbf16>
    %175 = vector.shape_cast %174 : vector<1x32x32xbf16> to vector<32x32xbf16>
    %c0_136 = arith.constant 0 : index
    %c2_137 = arith.constant 2 : index
    %176 = vector.load %arg8[%c0_136, %c2_137] : memref<32x800xbf16, #tpu.memory_space<vmem>>, vector<32x716xbf16>
    %cst_138 = arith.constant dense<0.000000e+00> : vector<32x716xf32>
    %177 = tpu.matmul %175, %176, %cst_138 {dimension_numbers = #tpu.dot_dimension_numbers<[1], [0], [0], [1], [0, 0, 1, 1], [], []>} : vector<32x32xbf16>, vector<32x716xbf16>, vector<32x716xf32> -> vector<32x716xf32>
    %178 = arith.addf %173, %177 : vector<32x716xf32>
    %c3_139 = arith.constant 3 : index
    %c0_140 = arith.constant 0 : index
    %c0_141 = arith.constant 0 : index
    %179 = vector.load %arg4[%c3_139, %c0_140, %c0_141] : memref<25x32x32xbf16, #tpu.memory_space<vmem>>, vector<1x32x32xbf16>
    %180 = vector.shape_cast %179 : vector<1x32x32xbf16> to vector<32x32xbf16>
    %c0_142 = arith.constant 0 : index
    %c3_143 = arith.constant 3 : index
    %181 = vector.load %arg8[%c0_142, %c3_143] : memref<32x800xbf16, #tpu.memory_space<vmem>>, vector<32x716xbf16>
    %cst_144 = arith.constant dense<0.000000e+00> : vector<32x716xf32>
    %182 = tpu.matmul %180, %181, %cst_144 {dimension_numbers = #tpu.dot_dimension_numbers<[1], [0], [0], [1], [0, 0, 1, 1], [], []>} : vector<32x32xbf16>, vector<32x716xbf16>, vector<32x716xf32> -> vector<32x716xf32>
    %183 = arith.addf %178, %182 : vector<32x716xf32>
    %c4_145 = arith.constant 4 : index
    %c0_146 = arith.constant 0 : index
    %c0_147 = arith.constant 0 : index
    %184 = vector.load %arg4[%c4_145, %c0_146, %c0_147] : memref<25x32x32xbf16, #tpu.memory_space<vmem>>, vector<1x32x32xbf16>
    %185 = vector.shape_cast %184 : vector<1x32x32xbf16> to vector<32x32xbf16>
    %c0_148 = arith.constant 0 : index
    %c4_149 = arith.constant 4 : index
    %186 = vector.load %arg8[%c0_148, %c4_149] : memref<32x800xbf16, #tpu.memory_space<vmem>>, vector<32x716xbf16>
    %cst_150 = arith.constant dense<0.000000e+00> : vector<32x716xf32>
    %187 = tpu.matmul %185, %186, %cst_150 {dimension_numbers = #tpu.dot_dimension_numbers<[1], [0], [0], [1], [0, 0, 1, 1], [], []>} : vector<32x32xbf16>, vector<32x716xbf16>, vector<32x716xf32> -> vector<32x716xf32>
    %188 = arith.addf %183, %187 : vector<32x716xf32>
    %c5_151 = arith.constant 5 : index
    %c0_152 = arith.constant 0 : index
    %c0_153 = arith.constant 0 : index
    %189 = vector.load %arg4[%c5_151, %c0_152, %c0_153] : memref<25x32x32xbf16, #tpu.memory_space<vmem>>, vector<1x32x32xbf16>
    %190 = vector.shape_cast %189 : vector<1x32x32xbf16> to vector<32x32xbf16>
    %c0_154 = arith.constant 0 : index
    %c20_155 = arith.constant 20 : index
    %191 = vector.load %arg8[%c0_154, %c20_155] : memref<32x800xbf16, #tpu.memory_space<vmem>>, vector<32x716xbf16>
    %cst_156 = arith.constant dense<0.000000e+00> : vector<32x716xf32>
    %192 = tpu.matmul %190, %191, %cst_156 {dimension_numbers = #tpu.dot_dimension_numbers<[1], [0], [0], [1], [0, 0, 1, 1], [], []>} : vector<32x32xbf16>, vector<32x716xbf16>, vector<32x716xf32> -> vector<32x716xf32>
    %193 = arith.addf %188, %192 : vector<32x716xf32>
    %c6_157 = arith.constant 6 : index
    %c0_158 = arith.constant 0 : index
    %c0_159 = arith.constant 0 : index
    %194 = vector.load %arg4[%c6_157, %c0_158, %c0_159] : memref<25x32x32xbf16, #tpu.memory_space<vmem>>, vector<1x32x32xbf16>
    %195 = vector.shape_cast %194 : vector<1x32x32xbf16> to vector<32x32xbf16>
    %c0_160 = arith.constant 0 : index
    %c21_161 = arith.constant 21 : index
    %196 = vector.load %arg8[%c0_160, %c21_161] : memref<32x800xbf16, #tpu.memory_space<vmem>>, vector<32x716xbf16>
    %cst_162 = arith.constant dense<0.000000e+00> : vector<32x716xf32>
    %197 = tpu.matmul %195, %196, %cst_162 {dimension_numbers = #tpu.dot_dimension_numbers<[1], [0], [0], [1], [0, 0, 1, 1], [], []>} : vector<32x32xbf16>, vector<32x716xbf16>, vector<32x716xf32> -> vector<32x716xf32>
    %198 = arith.addf %193, %197 : vector<32x716xf32>
    %c7_163 = arith.constant 7 : index
    %c0_164 = arith.constant 0 : index
    %c0_165 = arith.constant 0 : index
    %199 = vector.load %arg4[%c7_163, %c0_164, %c0_165] : memref<25x32x32xbf16, #tpu.memory_space<vmem>>, vector<1x32x32xbf16>
    %200 = vector.shape_cast %199 : vector<1x32x32xbf16> to vector<32x32xbf16>
    %c0_166 = arith.constant 0 : index
    %c22_167 = arith.constant 22 : index
    %201 = vector.load %arg8[%c0_166, %c22_167] : memref<32x800xbf16, #tpu.memory_space<vmem>>, vector<32x716xbf16>
    %cst_168 = arith.constant dense<0.000000e+00> : vector<32x716xf32>
    %202 = tpu.matmul %200, %201, %cst_168 {dimension_numbers = #tpu.dot_dimension_numbers<[1], [0], [0], [1], [0, 0, 1, 1], [], []>} : vector<32x32xbf16>, vector<32x716xbf16>, vector<32x716xf32> -> vector<32x716xf32>
    %203 = arith.addf %198, %202 : vector<32x716xf32>
    %c8_169 = arith.constant 8 : index
    %c0_170 = arith.constant 0 : index
    %c0_171 = arith.constant 0 : index
    %204 = vector.load %arg4[%c8_169, %c0_170, %c0_171] : memref<25x32x32xbf16, #tpu.memory_space<vmem>>, vector<1x32x32xbf16>
    %205 = vector.shape_cast %204 : vector<1x32x32xbf16> to vector<32x32xbf16>
    %c0_172 = arith.constant 0 : index
    %c23_173 = arith.constant 23 : index
    %206 = vector.load %arg8[%c0_172, %c23_173] : memref<32x800xbf16, #tpu.memory_space<vmem>>, vector<32x716xbf16>
    %cst_174 = arith.constant dense<0.000000e+00> : vector<32x716xf32>
    %207 = tpu.matmul %205, %206, %cst_174 {dimension_numbers = #tpu.dot_dimension_numbers<[1], [0], [0], [1], [0, 0, 1, 1], [], []>} : vector<32x32xbf16>, vector<32x716xbf16>, vector<32x716xf32> -> vector<32x716xf32>
    %208 = arith.addf %203, %207 : vector<32x716xf32>
    %c9_175 = arith.constant 9 : index
    %c0_176 = arith.constant 0 : index
    %c0_177 = arith.constant 0 : index
    %209 = vector.load %arg4[%c9_175, %c0_176, %c0_177] : memref<25x32x32xbf16, #tpu.memory_space<vmem>>, vector<1x32x32xbf16>
    %210 = vector.shape_cast %209 : vector<1x32x32xbf16> to vector<32x32xbf16>
    %c0_178 = arith.constant 0 : index
    %c24_179 = arith.constant 24 : index
    %211 = vector.load %arg8[%c0_178, %c24_179] : memref<32x800xbf16, #tpu.memory_space<vmem>>, vector<32x716xbf16>
    %cst_180 = arith.constant dense<0.000000e+00> : vector<32x716xf32>
    %212 = tpu.matmul %210, %211, %cst_180 {dimension_numbers = #tpu.dot_dimension_numbers<[1], [0], [0], [1], [0, 0, 1, 1], [], []>} : vector<32x32xbf16>, vector<32x716xbf16>, vector<32x716xf32> -> vector<32x716xf32>
    %213 = arith.addf %208, %212 : vector<32x716xf32>
    %c10_181 = arith.constant 10 : index
    %c0_182 = arith.constant 0 : index
    %c0_183 = arith.constant 0 : index
    %214 = vector.load %arg4[%c10_181, %c0_182, %c0_183] : memref<25x32x32xbf16, #tpu.memory_space<vmem>>, vector<1x32x32xbf16>
    %215 = vector.shape_cast %214 : vector<1x32x32xbf16> to vector<32x32xbf16>
    %c0_184 = arith.constant 0 : index
    %c40_185 = arith.constant 40 : index
    %216 = vector.load %arg8[%c0_184, %c40_185] : memref<32x800xbf16, #tpu.memory_space<vmem>>, vector<32x716xbf16>
    %cst_186 = arith.constant dense<0.000000e+00> : vector<32x716xf32>
    %217 = tpu.matmul %215, %216, %cst_186 {dimension_numbers = #tpu.dot_dimension_numbers<[1], [0], [0], [1], [0, 0, 1, 1], [], []>} : vector<32x32xbf16>, vector<32x716xbf16>, vector<32x716xf32> -> vector<32x716xf32>
    %218 = arith.addf %213, %217 : vector<32x716xf32>
    %c11_187 = arith.constant 11 : index
    %c0_188 = arith.constant 0 : index
    %c0_189 = arith.constant 0 : index
    %219 = vector.load %arg4[%c11_187, %c0_188, %c0_189] : memref<25x32x32xbf16, #tpu.memory_space<vmem>>, vector<1x32x32xbf16>
    %220 = vector.shape_cast %219 : vector<1x32x32xbf16> to vector<32x32xbf16>
    %c0_190 = arith.constant 0 : index
    %c41_191 = arith.constant 41 : index
    %221 = vector.load %arg8[%c0_190, %c41_191] : memref<32x800xbf16, #tpu.memory_space<vmem>>, vector<32x716xbf16>
    %cst_192 = arith.constant dense<0.000000e+00> : vector<32x716xf32>
    %222 = tpu.matmul %220, %221, %cst_192 {dimension_numbers = #tpu.dot_dimension_numbers<[1], [0], [0], [1], [0, 0, 1, 1], [], []>} : vector<32x32xbf16>, vector<32x716xbf16>, vector<32x716xf32> -> vector<32x716xf32>
    %223 = arith.addf %218, %222 : vector<32x716xf32>
    %c12_193 = arith.constant 12 : index
    %c0_194 = arith.constant 0 : index
    %c0_195 = arith.constant 0 : index
    %224 = vector.load %arg4[%c12_193, %c0_194, %c0_195] : memref<25x32x32xbf16, #tpu.memory_space<vmem>>, vector<1x32x32xbf16>
    %225 = vector.shape_cast %224 : vector<1x32x32xbf16> to vector<32x32xbf16>
    %c0_196 = arith.constant 0 : index
    %c42_197 = arith.constant 42 : index
    %226 = vector.load %arg8[%c0_196, %c42_197] : memref<32x800xbf16, #tpu.memory_space<vmem>>, vector<32x716xbf16>
    %cst_198 = arith.constant dense<0.000000e+00> : vector<32x716xf32>
    %227 = tpu.matmul %225, %226, %cst_198 {dimension_numbers = #tpu.dot_dimension_numbers<[1], [0], [0], [1], [0, 0, 1, 1], [], []>} : vector<32x32xbf16>, vector<32x716xbf16>, vector<32x716xf32> -> vector<32x716xf32>
    %228 = arith.addf %223, %227 : vector<32x716xf32>
    %c13_199 = arith.constant 13 : index
    %c0_200 = arith.constant 0 : index
    %c0_201 = arith.constant 0 : index
    %229 = vector.load %arg4[%c13_199, %c0_200, %c0_201] : memref<25x32x32xbf16, #tpu.memory_space<vmem>>, vector<1x32x32xbf16>
    %230 = vector.shape_cast %229 : vector<1x32x32xbf16> to vector<32x32xbf16>
    %c0_202 = arith.constant 0 : index
    %c43_203 = arith.constant 43 : index
    %231 = vector.load %arg8[%c0_202, %c43_203] : memref<32x800xbf16, #tpu.memory_space<vmem>>, vector<32x716xbf16>
    %cst_204 = arith.constant dense<0.000000e+00> : vector<32x716xf32>
    %232 = tpu.matmul %230, %231, %cst_204 {dimension_numbers = #tpu.dot_dimension_numbers<[1], [0], [0], [1], [0, 0, 1, 1], [], []>} : vector<32x32xbf16>, vector<32x716xbf16>, vector<32x716xf32> -> vector<32x716xf32>
    %233 = arith.addf %228, %232 : vector<32x716xf32>
    %c14_205 = arith.constant 14 : index
    %c0_206 = arith.constant 0 : index
    %c0_207 = arith.constant 0 : index
    %234 = vector.load %arg4[%c14_205, %c0_206, %c0_207] : memref<25x32x32xbf16, #tpu.memory_space<vmem>>, vector<1x32x32xbf16>
    %235 = vector.shape_cast %234 : vector<1x32x32xbf16> to vector<32x32xbf16>
    %c0_208 = arith.constant 0 : index
    %c44_209 = arith.constant 44 : index
    %236 = vector.load %arg8[%c0_208, %c44_209] : memref<32x800xbf16, #tpu.memory_space<vmem>>, vector<32x716xbf16>
    %cst_210 = arith.constant dense<0.000000e+00> : vector<32x716xf32>
    %237 = tpu.matmul %235, %236, %cst_210 {dimension_numbers = #tpu.dot_dimension_numbers<[1], [0], [0], [1], [0, 0, 1, 1], [], []>} : vector<32x32xbf16>, vector<32x716xbf16>, vector<32x716xf32> -> vector<32x716xf32>
    %238 = arith.addf %233, %237 : vector<32x716xf32>
    %c15_211 = arith.constant 15 : index
    %c0_212 = arith.constant 0 : index
    %c0_213 = arith.constant 0 : index
    %239 = vector.load %arg4[%c15_211, %c0_212, %c0_213] : memref<25x32x32xbf16, #tpu.memory_space<vmem>>, vector<1x32x32xbf16>
    %240 = vector.shape_cast %239 : vector<1x32x32xbf16> to vector<32x32xbf16>
    %c0_214 = arith.constant 0 : index
    %c60_215 = arith.constant 60 : index
    %241 = vector.load %arg8[%c0_214, %c60_215] : memref<32x800xbf16, #tpu.memory_space<vmem>>, vector<32x716xbf16>
    %cst_216 = arith.constant dense<0.000000e+00> : vector<32x716xf32>
    %242 = tpu.matmul %240, %241, %cst_216 {dimension_numbers = #tpu.dot_dimension_numbers<[1], [0], [0], [1], [0, 0, 1, 1], [], []>} : vector<32x32xbf16>, vector<32x716xbf16>, vector<32x716xf32> -> vector<32x716xf32>
    %243 = arith.addf %238, %242 : vector<32x716xf32>
    %c16_217 = arith.constant 16 : index
    %c0_218 = arith.constant 0 : index
    %c0_219 = arith.constant 0 : index
    %244 = vector.load %arg4[%c16_217, %c0_218, %c0_219] : memref<25x32x32xbf16, #tpu.memory_space<vmem>>, vector<1x32x32xbf16>
    %245 = vector.shape_cast %244 : vector<1x32x32xbf16> to vector<32x32xbf16>
    %c0_220 = arith.constant 0 : index
    %c61_221 = arith.constant 61 : index
    %246 = vector.load %arg8[%c0_220, %c61_221] : memref<32x800xbf16, #tpu.memory_space<vmem>>, vector<32x716xbf16>
    %cst_222 = arith.constant dense<0.000000e+00> : vector<32x716xf32>
    %247 = tpu.matmul %245, %246, %cst_222 {dimension_numbers = #tpu.dot_dimension_numbers<[1], [0], [0], [1], [0, 0, 1, 1], [], []>} : vector<32x32xbf16>, vector<32x716xbf16>, vector<32x716xf32> -> vector<32x716xf32>
    %248 = arith.addf %243, %247 : vector<32x716xf32>
    %c17_223 = arith.constant 17 : index
    %c0_224 = arith.constant 0 : index
    %c0_225 = arith.constant 0 : index
    %249 = vector.load %arg4[%c17_223, %c0_224, %c0_225] : memref<25x32x32xbf16, #tpu.memory_space<vmem>>, vector<1x32x32xbf16>
    %250 = vector.shape_cast %249 : vector<1x32x32xbf16> to vector<32x32xbf16>
    %c0_226 = arith.constant 0 : index
    %c62_227 = arith.constant 62 : index
    %251 = vector.load %arg8[%c0_226, %c62_227] : memref<32x800xbf16, #tpu.memory_space<vmem>>, vector<32x716xbf16>
    %cst_228 = arith.constant dense<0.000000e+00> : vector<32x716xf32>
    %252 = tpu.matmul %250, %251, %cst_228 {dimension_numbers = #tpu.dot_dimension_numbers<[1], [0], [0], [1], [0, 0, 1, 1], [], []>} : vector<32x32xbf16>, vector<32x716xbf16>, vector<32x716xf32> -> vector<32x716xf32>
    %253 = arith.addf %248, %252 : vector<32x716xf32>
    %c18_229 = arith.constant 18 : index
    %c0_230 = arith.constant 0 : index
    %c0_231 = arith.constant 0 : index
    %254 = vector.load %arg4[%c18_229, %c0_230, %c0_231] : memref<25x32x32xbf16, #tpu.memory_space<vmem>>, vector<1x32x32xbf16>
    %255 = vector.shape_cast %254 : vector<1x32x32xbf16> to vector<32x32xbf16>
    %c0_232 = arith.constant 0 : index
    %c63_233 = arith.constant 63 : index
    %256 = vector.load %arg8[%c0_232, %c63_233] : memref<32x800xbf16, #tpu.memory_space<vmem>>, vector<32x716xbf16>
    %cst_234 = arith.constant dense<0.000000e+00> : vector<32x716xf32>
    %257 = tpu.matmul %255, %256, %cst_234 {dimension_numbers = #tpu.dot_dimension_numbers<[1], [0], [0], [1], [0, 0, 1, 1], [], []>} : vector<32x32xbf16>, vector<32x716xbf16>, vector<32x716xf32> -> vector<32x716xf32>
    %258 = arith.addf %253, %257 : vector<32x716xf32>
    %c19_235 = arith.constant 19 : index
    %c0_236 = arith.constant 0 : index
    %c0_237 = arith.constant 0 : index
    %259 = vector.load %arg4[%c19_235, %c0_236, %c0_237] : memref<25x32x32xbf16, #tpu.memory_space<vmem>>, vector<1x32x32xbf16>
    %260 = vector.shape_cast %259 : vector<1x32x32xbf16> to vector<32x32xbf16>
    %c0_238 = arith.constant 0 : index
    %c64_239 = arith.constant 64 : index
    %261 = vector.load %arg8[%c0_238, %c64_239] : memref<32x800xbf16, #tpu.memory_space<vmem>>, vector<32x716xbf16>
    %cst_240 = arith.constant dense<0.000000e+00> : vector<32x716xf32>
    %262 = tpu.matmul %260, %261, %cst_240 {dimension_numbers = #tpu.dot_dimension_numbers<[1], [0], [0], [1], [0, 0, 1, 1], [], []>} : vector<32x32xbf16>, vector<32x716xbf16>, vector<32x716xf32> -> vector<32x716xf32>
    %263 = arith.addf %258, %262 : vector<32x716xf32>
    %c20_241 = arith.constant 20 : index
    %c0_242 = arith.constant 0 : index
    %c0_243 = arith.constant 0 : index
    %264 = vector.load %arg4[%c20_241, %c0_242, %c0_243] : memref<25x32x32xbf16, #tpu.memory_space<vmem>>, vector<1x32x32xbf16>
    %265 = vector.shape_cast %264 : vector<1x32x32xbf16> to vector<32x32xbf16>
    %c0_244 = arith.constant 0 : index
    %c80_245 = arith.constant 80 : index
    %266 = vector.load %arg8[%c0_244, %c80_245] : memref<32x800xbf16, #tpu.memory_space<vmem>>, vector<32x716xbf16>
    %cst_246 = arith.constant dense<0.000000e+00> : vector<32x716xf32>
    %267 = tpu.matmul %265, %266, %cst_246 {dimension_numbers = #tpu.dot_dimension_numbers<[1], [0], [0], [1], [0, 0, 1, 1], [], []>} : vector<32x32xbf16>, vector<32x716xbf16>, vector<32x716xf32> -> vector<32x716xf32>
    %268 = arith.addf %263, %267 : vector<32x716xf32>
    %c21_247 = arith.constant 21 : index
    %c0_248 = arith.constant 0 : index
    %c0_249 = arith.constant 0 : index
    %269 = vector.load %arg4[%c21_247, %c0_248, %c0_249] : memref<25x32x32xbf16, #tpu.memory_space<vmem>>, vector<1x32x32xbf16>
    %270 = vector.shape_cast %269 : vector<1x32x32xbf16> to vector<32x32xbf16>
    %c0_250 = arith.constant 0 : index
    %c81_251 = arith.constant 81 : index
    %271 = vector.load %arg8[%c0_250, %c81_251] : memref<32x800xbf16, #tpu.memory_space<vmem>>, vector<32x716xbf16>
    %cst_252 = arith.constant dense<0.000000e+00> : vector<32x716xf32>
    %272 = tpu.matmul %270, %271, %cst_252 {dimension_numbers = #tpu.dot_dimension_numbers<[1], [0], [0], [1], [0, 0, 1, 1], [], []>} : vector<32x32xbf16>, vector<32x716xbf16>, vector<32x716xf32> -> vector<32x716xf32>
    %273 = arith.addf %268, %272 : vector<32x716xf32>
    %c22_253 = arith.constant 22 : index
    %c0_254 = arith.constant 0 : index
    %c0_255 = arith.constant 0 : index
    %274 = vector.load %arg4[%c22_253, %c0_254, %c0_255] : memref<25x32x32xbf16, #tpu.memory_space<vmem>>, vector<1x32x32xbf16>
    %275 = vector.shape_cast %274 : vector<1x32x32xbf16> to vector<32x32xbf16>
    %c0_256 = arith.constant 0 : index
    %c82_257 = arith.constant 82 : index
    %276 = vector.load %arg8[%c0_256, %c82_257] : memref<32x800xbf16, #tpu.memory_space<vmem>>, vector<32x716xbf16>
    %cst_258 = arith.constant dense<0.000000e+00> : vector<32x716xf32>
    %277 = tpu.matmul %275, %276, %cst_258 {dimension_numbers = #tpu.dot_dimension_numbers<[1], [0], [0], [1], [0, 0, 1, 1], [], []>} : vector<32x32xbf16>, vector<32x716xbf16>, vector<32x716xf32> -> vector<32x716xf32>
    %278 = arith.addf %273, %277 : vector<32x716xf32>
    %c23_259 = arith.constant 23 : index
    %c0_260 = arith.constant 0 : index
    %c0_261 = arith.constant 0 : index
    %279 = vector.load %arg4[%c23_259, %c0_260, %c0_261] : memref<25x32x32xbf16, #tpu.memory_space<vmem>>, vector<1x32x32xbf16>
    %280 = vector.shape_cast %279 : vector<1x32x32xbf16> to vector<32x32xbf16>
    %c0_262 = arith.constant 0 : index
    %c83_263 = arith.constant 83 : index
    %281 = vector.load %arg8[%c0_262, %c83_263] : memref<32x800xbf16, #tpu.memory_space<vmem>>, vector<32x716xbf16>
    %cst_264 = arith.constant dense<0.000000e+00> : vector<32x716xf32>
    %282 = tpu.matmul %280, %281, %cst_264 {dimension_numbers = #tpu.dot_dimension_numbers<[1], [0], [0], [1], [0, 0, 1, 1], [], []>} : vector<32x32xbf16>, vector<32x716xbf16>, vector<32x716xf32> -> vector<32x716xf32>
    %283 = arith.addf %278, %282 : vector<32x716xf32>
    %c24_265 = arith.constant 24 : index
    %c0_266 = arith.constant 0 : index
    %c0_267 = arith.constant 0 : index
    %284 = vector.load %arg4[%c24_265, %c0_266, %c0_267] : memref<25x32x32xbf16, #tpu.memory_space<vmem>>, vector<1x32x32xbf16>
    %285 = vector.shape_cast %284 : vector<1x32x32xbf16> to vector<32x32xbf16>
    %c0_268 = arith.constant 0 : index
    %c84_269 = arith.constant 84 : index
    %286 = vector.load %arg8[%c0_268, %c84_269] : memref<32x800xbf16, #tpu.memory_space<vmem>>, vector<32x716xbf16>
    %cst_270 = arith.constant dense<0.000000e+00> : vector<32x716xf32>
    %287 = tpu.matmul %285, %286, %cst_270 {dimension_numbers = #tpu.dot_dimension_numbers<[1], [0], [0], [1], [0, 0, 1, 1], [], []>} : vector<32x32xbf16>, vector<32x716xbf16>, vector<32x716xf32> -> vector<32x716xf32>
    %288 = arith.addf %283, %287 : vector<32x716xf32>
    %c0_271 = arith.constant 0 : index
    %c0_272 = arith.constant 0 : index
    %289 = vector.load %arg5[%c0_271, %c0_272] : memref<32x1xf32, #tpu.memory_space<vmem>>, vector<32x1xf32>
    %290 = vector.broadcast %289 : vector<32x1xf32> to vector<32x716xf32>
    %291 = arith.addf %288, %290 : vector<32x716xf32>
    %292 = vector.broadcast %0 : vector<1x716xf32> to vector<32x716xf32>
    %293 = arith.mulf %291, %292 : vector<32x716xf32>
    %c0_273 = arith.constant 0 : index
    %c42_274 = arith.constant 42 : index
    %294 = vector.load %arg1[%c0_273, %c42_274] : memref<32x800xf32, #tpu.memory_space<vmem>>, vector<32x716xf32>
    %295 = arith.addf %293, %294 : vector<32x716xf32>
    %cst_275 = arith.constant 0.000000e+00 : f32
    %296 = vector.broadcast %cst_275 : f32 to vector<32x800xf32>
    %c0_276 = arith.constant 0 : index
    %c0_277 = arith.constant 0 : index
    %297 = vector.load %arg7[%c0_276, %c0_277] : memref<32x800xf32, #tpu.memory_space<vmem>>, vector<32x800xf32>
    tpu.vector_store %arg7[%c0_276, %c0_277], %296 {strides = array<i32>} : memref<32x800xf32, #tpu.memory_space<vmem>>, vector<32x800xf32>,
    %c0_278 = arith.constant 0 : index
    %c42_279 = arith.constant 42 : index
    %298 = vector.load %arg7[%c0_278, %c42_279] : memref<32x800xf32, #tpu.memory_space<vmem>>, vector<32x716xf32>
    tpu.vector_store %arg7[%c0_278, %c42_279], %295 {strides = array<i32>} : memref<32x800xf32, #tpu.memory_space<vmem>>, vector<32x716xf32>,
    return
  }
  func.func @transform_0(%arg0: i32) -> (i32, i32) {
    %c0_i32 = arith.constant 0 : i32
    %c0_i32_0 = arith.constant 0 : i32
    %c0_i32_1 = arith.constant 0 : i32
    return %c0_i32, %c0_i32_0 : i32, i32
  }
  func.func @transform_1(%arg0: i32) -> (i32, i32, i32) {
    %c0_i32 = arith.constant 0 : i32
    %c0_i32_0 = arith.constant 0 : i32
    %c0_i32_1 = arith.constant 0 : i32
    %c0_i32_2 = arith.constant 0 : i32
    return %c0_i32, %c0_i32_0, %c0_i32_1 : i32, i32, i32
  }
  func.func @transform_2(%arg0: i32) -> (i32, i32) {
    %c0_i32 = arith.constant 0 : i32
    %c0_i32_0 = arith.constant 0 : i32
    %c0_i32_1 = arith.constant 0 : i32
    return %c0_i32, %c0_i32_0 : i32, i32
  }
  func.func @transform_3(%arg0: i32) -> (i32, i32, i32) {
    %c0_i32 = arith.constant 0 : i32
    %c0_i32_0 = arith.constant 0 : i32
    %c0_i32_1 = arith.constant 0 : i32
    %c0_i32_2 = arith.constant 0 : i32
    return %c0_i32, %c0_i32_0, %c0_i32_1 : i32, i32, i32
  }
  func.func @transform_4(%arg0: i32) -> (i32, i32) {
    %c0_i32 = arith.constant 0 : i32
    %c0_i32_0 = arith.constant 0 : i32
    %c0_i32_1 = arith.constant 0 : i32
    return %c0_i32, %c0_i32_0 : i32, i32
  }
  func.func @transform_5(%arg0: i32) -> (i32, i32) {
    %c0_i32 = arith.constant 0 : i32
    %c0_i32_0 = arith.constant 0 : i32
    %c0_i32_1 = arith.constant 0 : i32
    return %c0_i32, %c0_i32_0 : i32, i32
  }
  func.func @transform_6(%arg0: i32) -> (i32, i32) {
    %c0_i32 = arith.constant 0 : i32
    %c0_i32_0 = arith.constant 0 : i32
    %c0_i32_1 = arith.constant 0 : i32
    return %c0_i32, %c0_i32_0 : i32, i32
  }
}

</mosaic_0001>

<bundles_post_ra>
// kernel: eblock_forward.4
= control target key start
LH: loop header
LB: loop body
LE: loop exit
PB: predicated region body
PF: predicated region fallthrough
CT: control target
= control target key end

     0   :  { %v9488_v3 = vmov 0   ;;  %s7361_s21 = smov 107   ;;  %s7362_s26 = smov 127   ;;  %vm1438_vm0 = vcmask 875520   ;;  %vm80_vm1 = vcmask 1043456   ;;  %vm67_vm2 = vcmask 1039360   ;;  %s9469_s0 = inlined_call_operand.vmem [shape: f32[8,800], index: 0, kind: input, shape index: {}]   ;;  %s9470_s1 = inlined_call_operand.vmem [shape: bf16[25,32,8], index: 1, kind: input, shape index: {}]   ;;  %s9471_s2 = inlined_call_operand.vmem [shape: f32[32,1], index: 2, kind: input, shape index: {}]   ;;  %s9472_s4 = inlined_call_operand.vmem [shape: f32[32,800], index: 4, kind: output, shape index: {}]   ;;  %s9473_s3 = inlined_call_operand.vmem [shape: f32[1,716], index: 3, kind: input, shape index: {}]  }
   0x1   :  { %v20_v0 = vld [vmem:[%s9469_s0 + $0x10] sm:$0xff]  ;;  %v18_v1 = vld [vmem:[%s9469_s0] sm:$0xff]  ;;  %v19_v2 = vld [vmem:[%s9469_s0 + $0x8] sm:$0xff]  ;;  %1500 = vmatprep.mubr.bf16.mxu0 %v9488_v3  ;;  %131 = vmatprep.mubr.bf16.mxu1 %v9488_v3  ;;  %s7363_s29 = smov 106   ;;  %s7364_s30 = smov 105   ;;  %vm73_vm3 = vcmask 64512  }
   0x2   :  { %v7423_v4 = vpack.c.bf16 %v20_v0, %v20_v0  ;;  %v7425_v5 = vpack.c.bf16 %v18_v1, %v18_v1  ;;  %7302 = vset.pattern.permute.xlu0 %v9488_v3  ;;  %7303 = vset.pattern.permute.xlu1 %v9488_v3  ;;  %v7433_v6 = vpack.c.bf16 %v19_v2, %v19_v2  ;;  %v23_v7 = vld [vmem:[%s9469_s0 + $0x28] sm:$0xff]  ;;  %v22_v8 = vld [vmem:[%s9469_s0 + $0x20] sm:$0xff]  ;;  %v21_v9 = vld [vmem:[%s9469_s0 + $0x18] sm:$0xff]  ;;  %s7365_s5 = smov 104   ;;  %s7366_s6 = smov 126   ;;  %vm1678_vm4 = vcmask 867328  }
   0x3   :  { %v7449_v10 = vpack.c.bf16 %v23_v7, %v23_v7  ;;  %v7451_v11 = vpack.c.bf16 %v22_v8, %v22_v8  ;;  %v7457_v12 = vpack.c.bf16 %v21_v9, %v21_v9  ;;  %s7367_s7 = smov 88   ;;  %s7368_s8 = smov 125   ;;  %v7304_v20 = vld [vmem:[%s9470_s1 + $0x60] sm:$0xff]   ;;  %v7571_v26 = vld [vmem:[%s9470_s1 + $0x10] sm:$0xff]   ;;  %v7599_v36 = vld [vmem:[%s9470_s1 + $0x18] sm:$0xff]   ;;  %vm1918_vm5 = vcmask 859136  }
   0x4   :  { %1430 = vrot.lane.b32.xlu1 %v7423_v4, %s7361_s21  ;;  %1426 = vrot.lane.b32.xlu0 %v7425_v5, %s7361_s21  ;;  %s7369_s9 = smov 87   ;;  %s7370_s10 = smov 86   ;;  %v7307_v40 = vld [vmem:[%s9470_s1 + $0x68] sm:$0xff]   ;;  %v7308_v50 = vld [vmem:[%s9470_s1 + $0x70] sm:$0xff]   ;;  %v275_v60 = vsel %vm80_vm1, %v7425_v5, 0  ;;  %vm2158_vm6 = vcmask 850944  }
   0x5   :  { %s7371_s11 = smov 124   ;;  %s7372_s12 = smov 85   ;;  %v7309_v57 = vld [vmem:[%s9470_s1 + $0x78] sm:$0xff]   ;;  %v3577_v2 = vld [vmem:[%s9469_s0 + $0x30] sm:$0xff]  ;;  %vm478_vm7 = vcmask 1031168   ;;  %vm2398_vm8 = vcmask 719872  }
   0x6   :  { %s7373_s17 = smov 108   ;;  %s7374_s18 = smov 84   ;;  %v7703_v7 = vpack.c.bf16 %v3577_v2, %v3577_v2  ;;  %vm718_vm9 = vcmask 1022976   ;;  %vm2638_vm10 = vcmask 711680   ;;  %vm2878_vm11 = vcmask 703488  }
   0x7   :  { %s7381_s27 = smov 47   ;;  %vm958_vm12 = vcmask 1014784   ;;  %vm3118_vm13 = vcmask 695296   ;;  %vm1198_vm14 = vcmask 883712   ;;  %vm3358_vm15 = vcmask 687104   ;;  %s7384_s13 = smov 44  }
   0x8   :  { %55 = vrot.lane.b32.xlu1 %v7425_v5, %s7362_s26  ;;  %1428 = vrot.lane.b32.xlu0 %v7433_v6, %s7361_s21 }
   0xc   :  { %59 = vrot.lane.b32.xlu1 %v7423_v4, %s7362_s26  ;;  %57 = vrot.lane.b32.xlu0 %v7433_v6, %s7362_s26 }
  0x10   :  { %1436 = vrot.lane.b32.xlu1 %v7449_v10, %s7361_s21  ;;  %1434 = vrot.lane.b32.xlu0 %v7451_v11, %s7361_s21 }
  0x14   :  { %63 = vrot.lane.b32.xlu1 %v7451_v11, %s7362_s26  ;;  %61 = vrot.lane.b32.xlu0 %v7457_v12, %s7362_s26 }
  0x18   :  { %1668 = vrot.lane.b32.xlu1 %v7433_v6, %s7363_s29  ;;  %1666 = vrot.lane.b32.xlu0 %v7425_v5, %s7363_s29 }
  0x1c   :  { %65 = vrot.lane.b32.xlu1 %v7449_v10, %s7362_s26  ;;  %1670 = vrot.lane.b32.xlu0 %v7423_v4, %s7363_s29  ;;  %s7375_s26 = smov 68  }
  0x20   :  { %1676 = vrot.lane.b32.xlu1 %v7449_v10, %s7363_s29  ;;  %1674 = vrot.lane.b32.xlu0 %v7451_v11, %s7363_s29 }
  0x24   :  { %1908 = vrot.lane.b32.xlu1 %v7433_v6, %s7364_s30  ;;  %1906 = vrot.lane.b32.xlu0 %v7425_v5, %s7364_s30 }
  0x28   :  { %1914 = vrot.lane.b32.xlu1 %v7451_v11, %s7364_s30  ;;  %1910 = vrot.lane.b32.xlu0 %v7423_v4, %s7364_s30 }
  0x2c   :  { %2146 = vrot.lane.b32.xlu1 %v7425_v5, %s7365_s5  ;;  %1916 = vrot.lane.b32.xlu0 %v7449_v10, %s7364_s30 }
  0x30   :  { %2150 = vrot.lane.b32.xlu1 %v7423_v4, %s7365_s5  ;;  %2148 = vrot.lane.b32.xlu0 %v7433_v6, %s7365_s5 }
  0x34   :  { %468 = vrot.lane.b32.xlu1 %v7433_v6, %s7366_s6  ;;  %466 = vrot.lane.b32.xlu0 %v7425_v5, %s7366_s6 }
  0x38   :  { %2154 = vrot.lane.b32.xlu1 %v7451_v11, %s7365_s5  ;;  %470 = vrot.lane.b32.xlu0 %v7423_v4, %s7366_s6 }
  0x3c   :  { %472 = vrot.lane.b32.xlu1 %v7457_v12, %s7366_s6  ;;  %2156 = vrot.lane.b32.xlu0 %v7449_v10, %s7365_s5 }
  0x40   :  { %2386 = vrot.lane.b32.xlu1 %v7425_v5, %s7367_s7  ;;  %474 = vrot.lane.b32.xlu0 %v7451_v11, %s7366_s6 }
  0x44   :  { %2390 = vrot.lane.b32.xlu1 %v7423_v4, %s7367_s7  ;;  %2388 = vrot.lane.b32.xlu0 %v7433_v6, %s7367_s7 }
  0x48   :  { %2394 = vrot.lane.b32.xlu1 %v7451_v11, %s7367_s7  ;;  %476 = vrot.lane.b32.xlu0 %v7449_v10, %s7366_s6  ;;  %s7376_s6 = smov 67  }
  0x4c   :  { %706 = vrot.lane.b32.xlu1 %v7425_v5, %s7368_s8  ;;  %2396 = vrot.lane.b32.xlu0 %v7449_v10, %s7367_s7 }
  0x50   :  { %710 = vrot.lane.b32.xlu1 %v7423_v4, %s7368_s8  ;;  %708 = vrot.lane.b32.xlu0 %v7433_v6, %s7368_s8 }
  0x54   :  { %2628 = vrot.lane.b32.xlu1 %v7433_v6, %s7369_s9  ;;  %2626 = vrot.lane.b32.xlu0 %v7425_v5, %s7369_s9 }
  0x58   :  { %712 = vrot.lane.b32.xlu1 %v7457_v12, %s7368_s8  ;;  %2630 = vrot.lane.b32.xlu0 %v7423_v4, %s7369_s9 }
  0x5c   :  { %2634 = vrot.lane.b32.xlu1 %v7451_v11, %s7369_s9  ;;  %714 = vrot.lane.b32.xlu0 %v7451_v11, %s7368_s8 }
  0x60   :  { %716 = vrot.lane.b32.xlu1 %v7449_v10, %s7368_s8  ;;  %2636 = vrot.lane.b32.xlu0 %v7449_v10, %s7369_s9 }
  0x64   :  { %2868 = vrot.lane.b32.xlu1 %v7433_v6, %s7370_s10  ;;  %2866 = vrot.lane.b32.xlu0 %v7425_v5, %s7370_s10 }
  0x68   :  { %946 = vrot.lane.b32.xlu1 %v7425_v5, %s7371_s11  ;;  %2870 = vrot.lane.b32.xlu0 %v7423_v4, %s7370_s10 }
  0x6c   :  { %950 = vrot.lane.b32.xlu1 %v7423_v4, %s7371_s11  ;;  %948 = vrot.lane.b32.xlu0 %v7433_v6, %s7371_s11 }
  0x70   :  { %2876 = vrot.lane.b32.xlu1 %v7449_v10, %s7370_s10  ;;  %2874 = vrot.lane.b32.xlu0 %v7451_v11, %s7370_s10 }
  0x74   :  { %954 = vrot.lane.b32.xlu1 %v7451_v11, %s7371_s11  ;;  %952 = vrot.lane.b32.xlu0 %v7457_v12, %s7371_s11 }
  0x76   :  { %v7539_v13 = vpop.permute.xlu1 %1430  ;;  %v1427_v14 = vpop.permute.xlu0 %1426 }
  0x78   :  { %3108 = vrot.lane.b32.xlu1 %v7433_v6, %s7372_s12  ;;  %3106 = vrot.lane.b32.xlu0 %v7425_v5, %s7372_s12 }
  0x7a   :  { %v56_v15 = vpop.permute.xlu1 %55  ;;  %v1429_v16 = vpop.permute.xlu0 %1428 }
  0x7b   :  { %v7547_v17 = vsel %vm1438_vm0, %v1429_v16, %v7539_v13  ;;  %v1439_v18 = vsel %vm1438_vm0, %v1427_v14, %v1429_v16 }
  0x7c   :  { %956 = vrot.lane.b32.xlu1 %v7449_v10, %s7371_s11  ;;  %6418 = vmatprep.subr.msk.bf16.mxu0 %vm80_vm1, %v7547_v17  ;;  %v7554_v19 = vsel %vm80_vm1, %v1439_v18, 0  ;;  %v281_v18 = vsel %vm80_vm1, %v7423_v4, 0 }
  0x7d   :  { %1469 = vmatpush1.bf16.msra.mxu0 %v7554_v19  ;;  %3110 = vrot.lane.b32.xlu0 %v7423_v4, %s7372_s12 }
  0x7e   :  { %v60_v21 = vpop.permute.xlu1 %59  ;;  %v58_v22 = vpop.permute.xlu0 %57 }
  0x7f   :  { %v69_v23 = vsel %vm67_vm2, %v58_v22, %v60_v21  ;;  %v68_v24 = vsel %vm67_vm2, %v56_v15, %v58_v22  ;;  %v7727_v15 = vld [vmem:[%s9470_s1] sm:$0xff]  }
  0x80   :  { %3116 = vrot.lane.b32.xlu1 %v7449_v10, %s7372_s12  ;;  %6332 = vmatprep.subr.msk.bf16.mxu1 %vm80_vm1, %v69_v23  ;;  %v82_v25 = vsel %vm80_vm1, %v68_v24, 0  ;;  %v7311_v22 = vld [vmem:[%s9470_s1 + $0x80] sm:$0xff]  }
  0x81   :  { %6419 = vmatmul.mubr.msk.bf16.vlgmr.msra.gmra.mrb[0].mxu0 %vm73_vm3, %v7304_v20  ;;  %100 = vmatpush1.bf16.msra.mxu1 %v82_v25  ;;  %v7761_v25 = vld [vmem:[%s9470_s1 + $0x8] sm:$0xff]  }
  0x82   :  { %v1437_v27 = vpop.permute.xlu1 %1436  ;;  %v7574_v28 = vpop.permute.xlu0 %1434  ;;  %1606 = vmatprep.mubr.bf16.mxu0 %v9488_v3  ;;  %3114 = vrot.lane.b32.xlu0 %v7451_v11, %s7372_s12 }
  0x83   :  { %v1443_v29 = vsel %vm1438_vm0, %v7574_v28, %v1437_v27  ;;  %6424 = vmatprep.subr.msk.bf16.mxu0 %vm80_vm1, %v1437_v27 }
  0x84   :  { %1188 = vrot.lane.b32.xlu1 %v7433_v6, %s7373_s17  ;;  %6333 = vmatmul.mubr.msk.bf16.vlgmr.msra.gmra.mrb[0].mxu1 %vm73_vm3, %v7571_v26  ;;  %v1463_v30 = vsel %vm80_vm1, %v1443_v29, 0 }
  0x85   :  { %1575 = vmatpush1.bf16.msra.mxu0 %v1463_v30  ;;  %141 = vmatprep.mubr.bf16.mxu1 %v9488_v3  ;;  %v7313_v30 = vld [vmem:[%s9470_s1 + $0x88] sm:$0xff]  }
  0x86   :  { %v64_v31 = vpop.permute.xlu1 %63  ;;  %v62_v32 = vpop.permute.xlu0 %61  ;;  %1186 = vrot.lane.b32.xlu0 %v7425_v5, %s7373_s17 }
  0x87   :  { %v70_v33 = vsel %vm67_vm2, %v60_v21, %v62_v32  ;;  %v71_v34 = vsel %vm67_vm2, %v62_v32, %v64_v31 }
  0x88   :  { %3346 = vrot.lane.b32.xlu1 %v7425_v5, %s7374_s18  ;;  %6335 = vmatprep.subr.msk.bf16.mxu1 %vm80_vm1, %v71_v34  ;;  %v88_v35 = vsel %vm80_vm1, %v70_v33, 0  ;;  %v287_v34 = vsel %vm80_vm1, %v7451_v11, 0 }
  0x89   :  { %6425 = vmatmul.mubr.msk.bf16.vlgmr.msra.gmra.mrb[4].mxu0 %vm73_vm3, %v7304_v20  ;;  %153 = vmatpush1.bf16.msra.mxu1 %v88_v35 }
  0x8a   :  { %v1669_v37 = vpop.permute.xlu1 %1668  ;;  %v1667_v38 = vpop.permute.xlu0 %1666  ;;  %1616 = vmatprep.mubr.bf16.mxu0 %v9488_v3  ;;  %1190 = vrot.lane.b32.xlu0 %v7423_v4, %s7373_s17 }
  0x8b   :  { %v1679_v39 = vsel %vm1678_vm4, %v1667_v38, %v1669_v37 }
  0x8c   :  { %3350 = vrot.lane.b32.xlu1 %v7423_v4, %s7374_s18  ;;  %6334 = vmatmul.mubr.msk.bf16.gmra.mrb[4].mxu1 %vm73_vm3, %v7599_v36  ;;  %v1691_v43 = vsel %vm80_vm1, %v1679_v39, 0 }
  0x8d   :  { %184 = vmatprep.mubr.bf16.mxu1 %v9488_v3 }
  0x8e   :  { %v66_v41 = vpop.permute.xlu1 %65  ;;  %v7614_v42 = vpop.permute.xlu0 %1670  ;;  %3348 = vrot.lane.b32.xlu0 %v7433_v6, %s7374_s18 }
  0x8f   :  { %v1680_v44 = vsel %vm1678_vm4, %v1669_v37, %v7614_v42  ;;  %6338 = vmatprep.subr.msk.bf16.mxu1 %vm80_vm1, %v66_v41  ;;  %v72_v45 = vsel %vm67_vm2, %v64_v31, %v66_v41  ;;  %vm3864_vm2 = vcmask 547840  }
  0x90   :  { %1194 = vrot.lane.b32.xlu1 %v7451_v11, %s7373_s17  ;;  %6433 = vmatprep.subr.msk.bf16.mxu0 %vm80_vm1, %v1680_v44  ;;  %v94_v48 = vsel %vm80_vm1, %v72_v45, 0 }
  0x91   :  { %6426 = vmatmul.mubr.msk.bf16.gmra.mrb[8].mxu0 %vm73_vm3, %v7307_v40 }
  0x92   :  { %1709 = vmatpush1.bf16.msra.mxu0 %v1691_v43  ;;  %v1677_v46 = vpop.permute.xlu1 %1676  ;;  %1740 = vmatprep.mubr.bf16.mxu0 %v9488_v3  ;;  %v7628_v47 = vpop.permute.xlu0 %1674 }
  0x93   :  { %6439 = vmatprep.subr.msk.bf16.mxu0 %vm80_vm1, %v1677_v46  ;;  %1192 = vrot.lane.b32.xlu0 %v7457_v12, %s7373_s17  ;;  %v1683_v49 = vsel %vm1678_vm4, %v7628_v47, %v1677_v46 }
  0x94   :  { %3356 = vrot.lane.b32.xlu1 %v7449_v10, %s7374_s18  ;;  %6336 = vmatmul.mubr.msk.bf16.vlgmr.msra.gmra.mrb[8].mxu1 %vm73_vm3, %v7571_v26  ;;  %v1703_v53 = vsel %vm80_vm1, %v1683_v49, 0 }
  0x95   :  { %206 = vmatpush1.bf16.msra.mxu1 %v94_v48  ;;  %194 = vmatprep.mubr.bf16.mxu1 %v9488_v3 }
  0x96   :  { %v1909_v51 = vpop.permute.xlu1 %1908  ;;  %v1907_v52 = vpop.permute.xlu0 %1906  ;;  %6343 = vmatprep.subr.msk.bf16.mxu1 %vm80_vm1, %v7433_v6 }
  0x97   :  { %3354 = vrot.lane.b32.xlu0 %v7451_v11, %s7374_s18  ;;  %v1919_v62 = vsel %vm1918_vm5, %v1907_v52, %v1909_v51  ;;  %v7864_v52 = vld [vmem:[%s9470_s1 + $0x90] sm:$0xff]  }
  0x98   :  { %3607 = vrot.lane.b32.xlu1 %v7425_v5, %s7375_s26  ;;  %v1931_v1 = vsel %vm80_vm1, %v1919_v62, 0 }
  0x99   :  { %6434 = vmatmul.mubr.msk.bf16.vlgmr.msra.gmra.mrb[0].mxu0 %vm73_vm3, %v7308_v50 }
  0x9a   :  { %v7652_v54 = vpop.permute.xlu1 %1914  ;;  %1750 = vmatprep.mubr.bf16.mxu0 %v9488_v3  ;;  %1815 = vmatpush1.bf16.msra.mxu0 %v1703_v53  ;;  %v7655_v55 = vpop.permute.xlu0 %1910 }
  0x9b   :  { %v1920_v56 = vsel %vm1918_vm5, %v1909_v51, %v7655_v55  ;;  %1196 = vrot.lane.b32.xlu0 %v7449_v10, %s7373_s17 }
  0x9c   :  { %3611 = vrot.lane.b32.xlu1 %v7423_v4, %s7375_s26  ;;  %6337 = vmatmul.mubr.msk.bf16.gmra.mrb[12].mxu1 %vm73_vm3, %v7599_v36 }
  0x9d   :  { %237 = vmatprep.mubr.bf16.mxu1 %v9488_v3  ;;  %6448 = vmatprep.subr.msk.bf16.mxu0 %vm80_vm1, %v1920_v56 }
  0x9e   :  { %v7670_v58 = vpop.permute.xlu1 %2146  ;;  %v1917_v61 = vpop.permute.xlu0 %1916 }
  0x9f   :  { %3609 = vrot.lane.b32.xlu0 %v7433_v6, %s7375_s26  ;;  %v1923_v21 = vsel %vm1918_vm5, %v7652_v54, %v1917_v61 }
  0xa0   :  { %3617 = vrot.lane.b32.xlu1 %v7449_v10, %s7375_s26  ;;  %v1943_v24 = vsel %vm80_vm1, %v1923_v21, 0 }
  0xa1   :  { %6435 = vmatmul.mubr.msk.bf16.gmra.mrb[12].mxu0 %vm73_vm3, %v7309_v57 }
  0xa2   :  { %v7677_v59 = vpop.permute.xlu1 %2150  ;;  %1846 = vmatprep.mubr.bf16.mxu0 %v9488_v3  ;;  %v7694_v0 = vpop.permute.xlu0 %2148 }
  0xa3   :  { %3615 = vrot.lane.b32.xlu0 %v7451_v11, %s7375_s26  ;;  %v2159_v37 = vsel %vm2158_vm6, %v7670_v58, %v7694_v0 }
  0xa4   :  { %1432 = vrot.lane.b32.xlu1 %v7457_v12, %s7361_s21  ;;  %6339 = vmatmul.mubr.msk.bf16.vlgmr.msra.gmra.mrb[16].mxu1 %vm73_vm3, %v7571_v26  ;;  %v2160_v26 = vsel %vm2158_vm6, %v7694_v0, %v7677_v59  ;;  %v2171_v39 = vsel %vm80_vm1, %v2159_v37, 0  ;;  %v7907_v0 = vld [vmem:[%s9470_s1 + $0x20] sm:$0xff]  }
  0xa5   :  { %247 = vmatprep.mubr.bf16.mxu1 %v9488_v3  ;;  %293 = vmatpush1.bf16.msra.mxu1 %v275_v60 }
  0xa6   :  { %v7690_v63 = vpop.permute.xlu1 %468  ;;  %6346 = vmatprep.subr.msk.bf16.mxu1 %vm80_vm1, %v7457_v12  ;;  %v7715_v9 = vpop.permute.xlu0 %466 }
  0xa7   :  { %3619 = vrot.lane.b32.xlu0 %v7703_v7, %s7375_s26  ;;  %v479_v45 = vsel %vm478_vm7, %v7715_v9, %v7690_v63 }
  0xa8   :  { %3852 = vrot.lane.b32.xlu1 %v7433_v6, %s7376_s6  ;;  %v491_v46 = vsel %vm80_vm1, %v479_v45, 0 }
  0xa9   :  { %6440 = vmatmul.mubr.msk.bf16.vlgmr.msra.gmra.mrb[4].mxu0 %vm73_vm3, %v7308_v50 }
  0xaa   :  { %v7705_v8 = vpop.permute.xlu1 %2154  ;;  %1949 = vmatpush1.bf16.msra.mxu0 %v1931_v1  ;;  %1856 = vmatprep.mubr.bf16.mxu0 %v9488_v3  ;;  %v7735_v20 = vpop.permute.xlu0 %470 }
  0xab   :  { %6454 = vmatprep.subr.msk.bf16.mxu0 %vm80_vm1, %v1917_v61  ;;  %3850 = vrot.lane.b32.xlu0 %v7425_v5, %s7376_s6  ;;  %v7895_v61 = vld [vmem:[%s9470_s1 + $0x98] sm:$0xff]  }
  0xac   :  { %1672 = vrot.lane.b32.xlu1 %v7457_v12, %s7363_s29  ;;  %6340 = vmatmul.mubr.msk.bf16.gmra.mrb[20].mxu1 %vm73_vm3, %v7599_v36  ;;  %v480_v36 = vsel %vm478_vm7, %v7690_v63, %v7735_v20  ;;  %9501 = vst [vmem:[#allocation3_spill] sm:$0xff] %v7895_v61  ;;  %s7382_s29 = smov 46  }
  0xad   :  { %324 = vmatprep.mubr.bf16.mxu1 %v9488_v3 }
  0xae   :  { %v7718_v14 = vpop.permute.xlu1 %472  ;;  %v2157_v27 = vpop.permute.xlu0 %2156 }
  0xaf   :  { %3854 = vrot.lane.b32.xlu0 %v7423_v4, %s7376_s6  ;;  %v2163_v51 = vsel %vm2158_vm6, %v7705_v8, %v2157_v27  ;;  %v481_v1 = vsel %vm478_vm7, %v7735_v20, %v7718_v14  ;;  %v7942_v20 = vld [vmem:[%s9470_s1 + $0x28] sm:$0xff]  }
  0xb0   :  { %3860 = vrot.lane.b32.xlu1 %v7449_v10, %s7376_s6  ;;  %v2183_v56 = vsel %vm80_vm1, %v2163_v51, 0 }
  0xb1   :  { %6441 = vmatmul.mubr.msk.bf16.gmra.mrb[8].mxu0 %vm73_vm3, %v7309_v57 }
  0xb2   :  { %v7730_v16 = vpop.permute.xlu1 %2386  ;;  %1980 = vmatprep.mubr.bf16.mxu0 %v9488_v3  ;;  %v7783_v32 = vpop.permute.xlu0 %474 }
  0xb3   :  { %3858 = vrot.lane.b32.xlu0 %v7451_v11, %s7376_s6  ;;  %v482_v50 = vsel %vm478_vm7, %v7718_v14, %v7783_v32 }
  0xb4   :  { %1912 = vrot.lane.b32.xlu1 %v7457_v12, %s7364_s30  ;;  %6344 = vmatmul.mubr.msk.bf16.vlgmr.msra.gmra.mrb[0].mxu1 %vm73_vm3, %v7727_v15  ;;  %s7377_s30 = smov 66  }
  0xb5   :  { %334 = vmatprep.mubr.bf16.mxu1 %v9488_v3  ;;  %346 = vmatpush1.bf16.msra.mxu1 %v281_v18 }
  0xb6   :  { %v7749_v23 = vpop.permute.xlu1 %2390  ;;  %6349 = vmatprep.subr.msk.bf16.mxu1 %vm80_vm1, %v7449_v10  ;;  %v7795_v35 = vpop.permute.xlu0 %2388 }
  0xb7   :  { %3862 = vrot.lane.b32.xlu0 %v7703_v7, %s7376_s6  ;;  %v2400_v57 = vsel %vm2398_vm8, %v7795_v35, %v7749_v23  ;;  %v2399_v9 = vsel %vm2398_vm8, %v7730_v16, %v7795_v35 }
  0xb8   :  { %4095 = vrot.lane.b32.xlu1 %v7433_v6, %s7377_s30  ;;  %v2411_v16 = vsel %vm80_vm1, %v2399_v9, 0 }
  0xb9   :  { %6449 = vmatmul.mubr.msk.bf16.vlgmr.msra.gmra.mrb[0].mxu0 %vm73_vm3, %v7311_v22 }
  0xba   :  { %v7767_v29 = vpop.permute.xlu1 %2394  ;;  %1990 = vmatprep.mubr.bf16.mxu0 %v9488_v3  ;;  %2055 = vmatpush1.bf16.msra.mxu0 %v1943_v24  ;;  %v7818_v40 = vpop.permute.xlu0 %476 }
  0xbb   :  { %6463 = vmatprep.subr.msk.bf16.mxu0 %vm80_vm1, %v2160_v26  ;;  %4093 = vrot.lane.b32.xlu0 %v7425_v5, %s7377_s30  ;;  %v483_v26 = vsel %vm478_vm7, %v7783_v32, %v7818_v40  ;;  %vm4107_vm7 = vcmask 539648  }
  0xbc   :  { %2152 = vrot.lane.b32.xlu1 %v7457_v12, %s7365_s5  ;;  %6345 = vmatmul.mubr.msk.bf16.gmra.mrb[4].mxu1 %vm73_vm3, %v7761_v25  ;;  %s7378_s5 = smov 65   ;;  %v503_v32 = vsel %vm80_vm1, %v483_v26, 0 }
  0xbd   :  { %377 = vmatprep.mubr.bf16.mxu1 %v9488_v3 }
  0xbe   :  { %v7781_v31 = vpop.permute.xlu1 %706  ;;  %v7831_v43 = vpop.permute.xlu0 %2396 }
  0xbf   :  { %4097 = vrot.lane.b32.xlu0 %v7423_v4, %s7377_s30  ;;  %v2403_v35 = vsel %vm2398_vm8, %v7767_v29, %v7831_v43 }
  0xc0   :  { %4103 = vrot.lane.b32.xlu1 %v7449_v10, %s7377_s30 }
  0xc1   :  { %6450 = vmatmul.mubr.msk.bf16.gmra.mrb[12].mxu0 %vm73_vm3, %v7313_v30 }
  0xc2   :  { %v7790_v33 = vpop.permute.xlu1 %710  ;;  %2086 = vmatprep.mubr.bf16.mxu0 %v9488_v3  ;;  %v7848_v49 = vpop.permute.xlu0 %708 }
  0xc3   :  { %4101 = vrot.lane.b32.xlu0 %v7451_v11, %s7377_s30 }
  0xc4   :  { %2392 = vrot.lane.b32.xlu1 %v7457_v12, %s7367_s7  ;;  %6347 = vmatmul.mubr.msk.bf16.vlgmr.msra.gmra.mrb[8].mxu1 %vm73_vm3, %v7727_v15 }
  0xc5   :  { %387 = vmatprep.mubr.bf16.mxu1 %v9488_v3  ;;  %399 = vmatpush1.bf16.msra.mxu1 %v287_v34  ;;  %v720_v34 = vsel %vm718_vm9, %v7848_v49, %v7790_v33 }
  0xc6   :  { %v7810_v38 = vpop.permute.xlu1 %2628  ;;  %6358 = vmatprep.subr.msk.bf16.mxu1 %vm80_vm1, %v480_v36  ;;  %v7878_v58 = vpop.permute.xlu0 %2626  ;;  %v7996_v36 = vld [vmem:[%s9470_s1 + $0xa0] sm:$0xff]  }
  0xc7   :  { %4105 = vrot.lane.b32.xlu0 %v7703_v7, %s7377_s30  ;;  %9504 = vst [vmem:[#allocation6_spill] sm:$0xff] %v7996_v36 }
  0xc8   :  { %4338 = vrot.lane.b32.xlu1 %v7433_v6, %s7378_s5 }
  0xc9   :  { %6455 = vmatmul.mubr.msk.bf16.vlgmr.msra.gmra.mrb[4].mxu0 %vm73_vm3, %v7311_v22 }
  0xca   :  { %v7821_v41 = vpop.permute.xlu1 %712  ;;  %2189 = vmatpush1.bf16.msra.mxu0 %v2171_v39  ;;  %2096 = vmatprep.mubr.bf16.mxu0 %v9488_v3  ;;  %v7900_v63 = vpop.permute.xlu0 %2630 }
  0xcb   :  { %6469 = vmatprep.subr.msk.bf16.mxu0 %vm80_vm1, %v2157_v27  ;;  %4336 = vrot.lane.b32.xlu0 %v7425_v5, %s7378_s5  ;;  %9502 = vst [vmem:[#allocation4_spill] sm:$0xff] %v7900_v63 }
  0xcc   :  { %2632 = vrot.lane.b32.xlu1 %v7457_v12, %s7369_s9  ;;  %6348 = vmatmul.mubr.msk.bf16.gmra.mrb[12].mxu1 %vm73_vm3, %v7761_v25 }
  0xcd   :  { %430 = vmatprep.mubr.bf16.mxu1 %v9488_v3 }
  0xce   :  { %v7834_v44 = vpop.permute.xlu1 %2634  ;;  %v7929_v14 = vpop.permute.xlu0 %714 }
  0xcf   :  { %9500 = vst [vmem:[#allocation2_spill] sm:$0xff] %v7834_v44  ;;  %4340 = vrot.lane.b32.xlu0 %v7423_v4, %s7378_s5 }
  0xd0   :  { %4346 = vrot.lane.b32.xlu1 %v7449_v10, %s7378_s5 }
  0xd1   :  { %6456 = vmatmul.mubr.msk.bf16.gmra.mrb[8].mxu0 %vm73_vm3, %v7313_v30 }
  0xd2   :  { %v7845_v48 = vpop.permute.xlu1 %716  ;;  %2220 = vmatprep.mubr.bf16.mxu0 %v9488_v3  ;;  %v7946_v21 = vpop.permute.xlu0 %2636 }
  0xd3   :  { %4344 = vrot.lane.b32.xlu0 %v7451_v11, %s7378_s5 }
  0xd4   :  { %2872 = vrot.lane.b32.xlu1 %v7457_v12, %s7370_s10  ;;  %6350 = vmatmul.mubr.msk.bf16.vlgmr.msra.gmra.mrb[16].mxu1 %vm73_vm3, %v7727_v15  ;;  %s7379_s10 = smov 64   ;;  %v497_v15 = vsel %vm80_vm1, %v481_v1, 0 }
  0xd5   :  { %509 = vmatpush1.bf16.msra.mxu1 %v491_v46  ;;  %440 = vmatprep.mubr.bf16.mxu1 %v9488_v3 }
  0xd6   :  { %v7867_v53 = vpop.permute.xlu1 %2868  ;;  %6361 = vmatprep.subr.msk.bf16.mxu1 %vm80_vm1, %v482_v50  ;;  %v7961_v24 = vpop.permute.xlu0 %2866  ;;  %v8029_v50 = vld [vmem:[%s9470_s1 + $0xa8] sm:$0xff]  }
  0xd7   :  { %4348 = vrot.lane.b32.xlu0 %v7703_v7, %s7378_s5  ;;  %9506 = vst [vmem:[#allocation8_spill] sm:$0xff] %v8029_v50 }
  0xd8   :  { %4581 = vrot.lane.b32.xlu1 %v7433_v6, %s7379_s10 }
  0xd9   :  { %6464 = vmatmul.mubr.msk.bf16.vlgmr.msra.gmra.mrb[0].mxu0 %vm73_vm3, %v7864_v52 }
  0xda   :  { %v7882_v60 = vpop.permute.xlu1 %946  ;;  %2230 = vmatprep.mubr.bf16.mxu0 %v9488_v3  ;;  %2295 = vmatpush1.bf16.msra.mxu0 %v2183_v56  ;;  %v7978_v30 = vpop.permute.xlu0 %2870  ;;  %v719_v56 = vsel %vm718_vm9, %v7781_v31, %v7848_v49  ;;  %v722_v31 = vsel %vm718_vm9, %v7821_v41, %v7929_v14  ;;  %v2639_v49 = vsel %vm2638_vm10, %v7878_v58, %v7810_v38 }
  0xdb   :  { %6478 = vmatprep.subr.msk.bf16.mxu0 %vm80_vm1, %v2400_v57  ;;  %4579 = vrot.lane.b32.xlu0 %v7425_v5, %s7379_s10  ;;  %9503 = vst [vmem:[#allocation5_spill] sm:$0xff] %v7978_v30  ;;  %v731_v1 = vsel %vm80_vm1, %v719_v56, 0  ;;  %v2651_v26 = vsel %vm80_vm1, %v2639_v49, 0 }
  0xdc   :  { %3112 = vrot.lane.b32.xlu1 %v7457_v12, %s7372_s12  ;;  %6351 = vmatmul.mubr.msk.bf16.gmra.mrb[20].mxu1 %vm73_vm3, %v7761_v25  ;;  %s7383_s12 = smov 45  }
  0xdd   :  { %540 = vmatprep.mubr.bf16.mxu1 %v9488_v3 }
  0xde   :  { %v7898_v62 = vpop.permute.xlu1 %950  ;;  %v8002_v39 = vpop.permute.xlu0 %948 }
  0xdf   :  { %4583 = vrot.lane.b32.xlu0 %v7423_v4, %s7379_s10 }
  0xe0   :  { %4589 = vrot.lane.b32.xlu1 %v7449_v10, %s7379_s10 }
  0xe1   :  { %6465 = vmatmul.mubr.msk.bf16.gmra.mrb[12].mxu0 %vm73_vm3, %v7895_v61 }
  0xe2   :  { %v7916_v2 = vpop.permute.xlu1 %2876  ;;  %2326 = vmatprep.mubr.bf16.mxu0 %v9488_v3  ;;  %v8022_v46 = vpop.permute.xlu0 %2874 }
  0xe3   :  { %4587 = vrot.lane.b32.xlu0 %v7451_v11, %s7379_s10  ;;  %9505 = vst [vmem:[#allocation7_spill] sm:$0xff] %v8022_v46 }
  0xe4   :  { %6359 = vmatmul.mubr.msk.bf16.vlgmr.msra.gmra.mrb[0].mxu1 %vm73_vm3, %v7907_v0  ;;  %3352 = vrot.lane.b32.xlu1 %v7457_v12, %s7374_s18  ;;  %s7380_s18 = smov 48  }
  0xe5   :  { %562 = vmatpush1.bf16.msra.mxu1 %v497_v15  ;;  %550 = vmatprep.mubr.bf16.mxu1 %v9488_v3 }
  0xe6   :  { %v7932_v18 = vpop.permute.xlu1 %954  ;;  %6364 = vmatprep.subr.msk.bf16.mxu1 %vm80_vm1, %v7818_v40  ;;  %v2423_v40 = vsel %vm80_vm1, %v2403_v35, 0  ;;  %v8047_v9 = vpop.permute.xlu0 %952  ;;  %v721_v35 = vsel %vm718_vm9, %v7790_v33, %v7821_v41  ;;  %v8110_v33 = vld [vmem:[%s9470_s1 + $0xb0] sm:$0xff]  }
  0xe7   :  { %4591 = vrot.lane.b32.xlu0 %v7703_v7, %s7379_s10  ;;  %9510 = vst [vmem:[#allocation12_spill] sm:$0xff] %v8110_v33 }
  0xe8   :  { %4824 = vrot.lane.b32.xlu1 %v7433_v6, %s7380_s18 }
  0xe9   :  { %6470 = vmatmul.mubr.msk.bf16.vlgmr.msra.gmra.mrb[4].mxu0 %vm73_vm3, %v7864_v52 }
  0xea   :  { %v7950_v22 = vpop.permute.xlu1 %3108  ;;  %2429 = vmatpush1.bf16.msra.mxu0 %v2411_v16  ;;  %2336 = vmatprep.mubr.bf16.mxu0 %v9488_v3  ;;  %v8065_v16 = vpop.permute.xlu0 %3106 }
  0xeb   :  { %6484 = vmatprep.subr.msk.bf16.mxu0 %vm80_vm1, %v7831_v43  ;;  %4822 = vrot.lane.b32.xlu0 %v7425_v5, %s7380_s18  ;;  %v2640_v43 = vsel %vm2638_vm10, %v7810_v38, %v7900_v63 }
  0xec   :  { %6360 = vmatmul.mubr.msk.bf16.gmra.mrb[4].mxu1 %vm73_vm3, %v7942_v20  ;;  %3613 = vrot.lane.b32.xlu1 %v7457_v12, %s7375_s26 }
  0xed   :  { %593 = vmatprep.mubr.bf16.mxu1 %v9488_v3 }
  0xee   :  { %v7964_v25 = vpop.permute.xlu1 %956 }
  0xef   :  { %4826 = vrot.lane.b32.xlu0 %v7423_v4, %s7380_s18  ;;  %v8081_v58 = vpop.permute.xlu0 %3110 }
  0xf0   :  { %4832 = vrot.lane.b32.xlu1 %v7449_v10, %s7380_s18  ;;  %9508 = vst [vmem:[#allocation10_spill] sm:$0xff] %v8081_v58 }
  0xf1   :  { %6471 = vmatmul.mubr.msk.bf16.gmra.mrb[8].mxu0 %vm73_vm3, %v7895_v61  ;;  %v2883_v61 = vsel %vm2878_vm11, %v8022_v46, %v7916_v2 }
  0xf2   :  { %v7975_v27 = vpop.permute.xlu1 %3116  ;;  %2460 = vmatprep.mubr.bf16.mxu0 %v9488_v3 }
  0xf3   :  { %4830 = vrot.lane.b32.xlu0 %v7451_v11, %s7380_s18 }
  0xf4   :  { %6362 = vmatmul.mubr.msk.bf16.vlgmr.msra.gmra.mrb[8].mxu1 %vm73_vm3, %v7907_v0  ;;  %3856 = vrot.lane.b32.xlu1 %v7457_v12, %s7376_s6 }
  0xf5   :  { %615 = vmatpush1.bf16.msra.mxu1 %v503_v32  ;;  %603 = vmatprep.mubr.bf16.mxu1 %v9488_v3  ;;  %v8091_v32 = vpop.permute.xlu0 %3114 }
  0xf6   :  { %v7999_v37 = vpop.permute.xlu1 %1188  ;;  %6373 = vmatprep.subr.msk.bf16.mxu1 %vm80_vm1, %v720_v34  ;;  %v8089_v34 = vld [vmem:[%s9470_s1 + $0x30] sm:$0xff]   ;;  %9509 = vst [vmem:[#allocation11_spill] sm:$0xff] %v8091_v32 }
  0xf7   :  { %4834 = vrot.lane.b32.xlu0 %v7703_v7, %s7380_s18 }
  0xf8   :  { %5067 = vrot.lane.b32.xlu1 %v7433_v6, %s7381_s27 }
  0xf9   :  { %6479 = vmatmul.mubr.msk.bf16.vlgmr.msra.gmra.mrb[0].mxu0 %vm73_vm3, %v7996_v36  ;;  %v8117_v56 = vpop.permute.xlu0 %1186 }
  0xfa   :  { %v8014_v45 = vpop.permute.xlu1 %3346  ;;  %2470 = vmatprep.mubr.bf16.mxu0 %v9488_v3  ;;  %2535 = vmatpush1.bf16.msra.mxu0 %v2423_v40  ;;  %v737_v40 = vsel %vm80_vm1, %v721_v35, 0  ;;  %v8149_v35 = vld [vmem:[%s9470_s1 + $0xb8] sm:$0xff]  }
  0xfb   :  { %6493 = vmatprep.subr.msk.bf16.mxu0 %vm80_vm1, %v2640_v43  ;;  %5065 = vrot.lane.b32.xlu0 %v7425_v5, %s7381_s27  ;;  %v2643_v43 = vsel %vm2638_vm10, %v7834_v44, %v7946_v21  ;;  %9511 = vst [vmem:[#allocation13_spill] sm:$0xff] %v8149_v35 }
  0xfc   :  { %6363 = vmatmul.mubr.msk.bf16.gmra.mrb[12].mxu1 %vm73_vm3, %v7942_v20  ;;  %4099 = vrot.lane.b32.xlu1 %v7457_v12, %s7377_s30 }
  0xfd   :  { %646 = vmatprep.mubr.bf16.mxu1 %v9488_v3 }
  0xfe   :  { %v8032_v51 = vpop.permute.xlu1 %3350 }
  0xff   :  { %9507 = vst [vmem:[#allocation9_spill] sm:$0xff] %v8032_v51  ;;  %5069 = vrot.lane.b32.xlu0 %v7423_v4, %s7381_s27 }
 0x100   :  { %5075 = vrot.lane.b32.xlu1 %v7449_v10, %s7381_s27 }
 0x101   :  { %6480 = vmatmul.mubr.msk.bf16.gmra.mrb[12].mxu0 %vm73_vm3, %v8029_v50 }
 0x102   :  { %v8043_v57 = vpop.permute.xlu1 %1194  ;;  %2566 = vmatprep.mubr.bf16.mxu0 %v9488_v3 }
 0x103   :  { %5073 = vrot.lane.b32.xlu0 %v7451_v11, %s7381_s27 }
 0x104   :  { %6365 = vmatmul.mubr.msk.bf16.vlgmr.msra.gmra.mrb[16].mxu1 %vm73_vm3, %v7907_v0  ;;  %4342 = vrot.lane.b32.xlu1 %v7457_v12, %s7378_s5 }
 0x105   :  { %749 = vmatpush1.bf16.msra.mxu1 %v731_v1  ;;  %656 = vmatprep.mubr.bf16.mxu1 %v9488_v3  ;;  %v2663_v1 = vsel %vm80_vm1, %v2643_v43, 0  ;;  %v723_v43 = vsel %vm718_vm9, %v7929_v14, %v7845_v48  ;;  %v2879_v14 = vsel %vm2878_vm11, %v7961_v24, %v7867_v53  ;;  %vm3621_vm9 = vcmask 556032  }
 0x106   :  { %v8062_v15 = vpop.permute.xlu1 %3356  ;;  %6376 = vmatprep.subr.msk.bf16.mxu1 %vm80_vm1, %v722_v31  ;;  %v2880_v31 = vsel %vm2878_vm11, %v7867_v53, %v7978_v30  ;;  %v960_v30 = vsel %vm958_vm12, %v8002_v39, %v7898_v62 }
 0x107   :  { %5077 = vrot.lane.b32.xlu0 %v7703_v7, %s7381_s27 }
 0x108   :  { %5310 = vrot.lane.b32.xlu1 %v7433_v6, %s7382_s29 }
 0x109   :  { %6485 = vmatmul.mubr.msk.bf16.vlgmr.msra.gmra.mrb[4].mxu0 %vm73_vm3, %v7996_v36  ;;  %v2891_v36 = vsel %vm80_vm1, %v2879_v14, 0 }
 0x10a   :  { %v8072_v38 = vpop.permute.xlu1 %3607  ;;  %2669 = vmatpush1.bf16.msra.mxu0 %v2651_v26  ;;  %2576 = vmatprep.mubr.bf16.mxu0 %v9488_v3  ;;  %v8142_v26 = vpop.permute.xlu0 %1190 }
 0x10b   :  { %6499 = vmatprep.subr.msk.bf16.mxu0 %vm80_vm1, %v7946_v21  ;;  %5308 = vrot.lane.b32.xlu0 %v7425_v5, %s7382_s29  ;;  %v8127_v21 = vld [vmem:[%s9470_s1 + $0x38] sm:$0xff]  }
 0x10c   :  { %6366 = vmatmul.mubr.msk.bf16.gmra.mrb[20].mxu1 %vm73_vm3, %v7942_v20  ;;  %4585 = vrot.lane.b32.xlu1 %v7457_v12, %s7379_s10 }
 0x10d   :  { %780 = vmatprep.mubr.bf16.mxu1 %v9488_v3 }
 0x10e   :  { %v8084_v0 = vpop.permute.xlu1 %3611 }
 0x10f   :  { %5312 = vrot.lane.b32.xlu0 %v7423_v4, %s7382_s29 }
 0x110   :  { %5318 = vrot.lane.b32.xlu1 %v7449_v10, %s7382_s29 }
 0x111   :  { %6486 = vmatmul.mubr.msk.bf16.gmra.mrb[8].mxu0 %vm73_vm3, %v8029_v50 }
 0x112   :  { %v8098_v20 = vpop.permute.xlu1 %3617  ;;  %2700 = vmatprep.mubr.bf16.mxu0 %v9488_v3 }
 0x113   :  { %5316 = vrot.lane.b32.xlu0 %v7451_v11, %s7382_s29 }
 0x114   :  { %6374 = vmatmul.mubr.msk.bf16.vlgmr.msra.gmra.mrb[0].mxu1 %vm73_vm3, %v8089_v34  ;;  %4828 = vrot.lane.b32.xlu1 %v7457_v12, %s7380_s18 }
 0x115   :  { %802 = vmatpush1.bf16.msra.mxu1 %v737_v40  ;;  %790 = vmatprep.mubr.bf16.mxu1 %v9488_v3 }
 0x116   :  { %v8113_v41 = vpop.permute.xlu1 %1432  ;;  %6379 = vmatprep.subr.msk.bf16.mxu1 %vm80_vm1, %v7845_v48  ;;  %v743_v48 = vsel %vm80_vm1, %v723_v43, 0 }
 0x117   :  { %5320 = vrot.lane.b32.xlu0 %v7703_v7, %s7382_s29 }
 0x118   :  { %5553 = vrot.lane.b32.xlu1 %v7433_v6, %s7383_s12 }
 0x119   :  { %6494 = vmatmul.mubr.msk.bf16.vlgmr.msra.gmra.mrb[0].mxu0 %vm73_vm3, %v8110_v33 }
 0x11a   :  { %v8134_v49 = vpop.permute.xlu1 %3852  ;;  %2710 = vmatprep.mubr.bf16.mxu0 %v9488_v3  ;;  %2775 = vmatpush1.bf16.msra.mxu0 %v2663_v1 }
 0x11b   :  { %6508 = vmatprep.subr.msk.bf16.mxu0 %vm80_vm1, %v2880_v31  ;;  %v8166_v31 = vpop.permute.xlu0 %3348  ;;  %5551 = vrot.lane.b32.xlu0 %v7425_v5, %s7383_s12 }
 0x11c   :  { %6375 = vmatmul.mubr.msk.bf16.gmra.mrb[4].mxu1 %vm73_vm3, %v8127_v21  ;;  %5071 = vrot.lane.b32.xlu1 %v7457_v12, %s7381_s27 }
 0x11d   :  { %833 = vmatprep.mubr.bf16.mxu1 %v9488_v3 }
 0x11e   :  { %v8152_v40 = vpop.permute.xlu1 %1672 }
 0x11f   :  { %v8186_v63 = vpop.permute.xlu0 %1192  ;;  %5555 = vrot.lane.b32.xlu0 %v7423_v4, %s7383_s12 }
 0x120   :  { %5561 = vrot.lane.b32.xlu1 %v7449_v10, %s7383_s12 }
 0x121   :  { %6495 = vmatmul.mubr.msk.bf16.gmra.mrb[12].mxu0 %vm73_vm3, %v8149_v35 }
 0x122   :  { %v8163_v1 = vpop.permute.xlu1 %3860  ;;  %2806 = vmatprep.mubr.bf16.mxu0 %v9488_v3 }
 0x123   :  { %v8197_v53 = vpop.permute.xlu0 %3354  ;;  %5559 = vrot.lane.b32.xlu0 %v7451_v11, %s7383_s12 }
 0x124   :  { %6377 = vmatmul.mubr.msk.bf16.vlgmr.msra.gmra.mrb[8].mxu1 %vm73_vm3, %v8089_v34  ;;  %5314 = vrot.lane.b32.xlu1 %v7457_v12, %s7382_s29 }
 0x125   :  { %855 = vmatpush1.bf16.msra.mxu1 %v743_v48  ;;  %843 = vmatprep.mubr.bf16.mxu1 %v9488_v3 }
 0x126   :  { %v8182_v50 = vpop.permute.xlu1 %1912  ;;  %6388 = vmatprep.subr.msk.bf16.mxu1 %vm80_vm1, %v960_v30  ;;  %v959_v30 = vsel %vm958_vm12, %v7882_v60, %v8002_v39  ;;  %v8224_v60 = vld [vmem:[%s9470_s1 + $0xc0] sm:$0xff]  }
 0x127   :  { %v971_v48 = vsel %vm80_vm1, %v959_v30, 0  ;;  %v8211_v14 = vpop.permute.xlu0 %1196  ;;  %9512 = vst [vmem:[#allocation14_spill] sm:$0xff] %v8224_v60  ;;  %5563 = vrot.lane.b32.xlu0 %v7703_v7, %s7383_s12 }
 0x128   :  { %5796 = vrot.lane.b32.xlu1 %v7433_v6, %s7384_s13  ;;  %v1441_v6 = vsel %vm1438_vm0, %v7539_v13, %v8113_v41 }
 0x129   :  { %6500 = vmatmul.mubr.msk.bf16.vlgmr.msra.gmra.mrb[4].mxu0 %vm73_vm3, %v8110_v33  ;;  %v962_v33 = vsel %vm958_vm12, %v8047_v9, %v7932_v18 }
 0x12a   :  { %v8190_v43 = vpop.permute.xlu1 %4095  ;;  %2909 = vmatpush1.bf16.msra.mxu0 %v2891_v36  ;;  %2816 = vmatprep.mubr.bf16.mxu0 %v9488_v3 }
 0x12b   :  { %6514 = vmatprep.subr.msk.bf16.mxu0 %vm80_vm1, %v7916_v2  ;;  %v8230_v30 = vpop.permute.xlu0 %3609  ;;  %v2903_v2 = vsel %vm80_vm1, %v2883_v61, 0  ;;  %v8249_v61 = vld [vmem:[%s9470_s1 + $0xc8] sm:$0xff]   ;;  %5794 = vrot.lane.b32.xlu0 %v7425_v5, %s7384_s13  ;;  %v8555_v5 = vld [vmem:[%s9470_s1 + $0xf8] sm:$0xff]  }
 0x12c   :  { %6378 = vmatmul.mubr.msk.bf16.gmra.mrb[12].mxu1 %vm73_vm3, %v8127_v21  ;;  %9513 = vst [vmem:[#allocation15_spill] sm:$0xff] %v8249_v61  ;;  %5557 = vrot.lane.b32.xlu1 %v7457_v12, %s7383_s12 }
 0x12d   :  { %886 = vmatprep.mubr.bf16.mxu1 %v9488_v3 }
 0x12e   :  { %v8200_v24 = vpop.permute.xlu1 %2152 }
 0x12f   :  { %5798 = vrot.lane.b32.xlu0 %v7423_v4, %s7384_s13  ;;  %v7354_v4 = vld [vmem:[%s9470_s1 + $0x68] sm:$0xff]  }
 0x130   :  { %5804 = vrot.lane.b32.xlu1 %v7449_v10, %s7384_s13  ;;  %v1457_v10 = vsel %vm80_vm1, %v1441_v6, 0 }
 0x131   :  { %6501 = vmatmul.mubr.msk.bf16.gmra.mrb[8].mxu0 %vm73_vm3, %v8149_v35  ;;  %v8241_v35 = vpop.permute.xlu0 %3615 }
 0x132   :  { %v8207_v36 = vpop.permute.xlu1 %4103  ;;  %2940 = vmatprep.mubr.bf16.mxu0 %v9488_v3 }
 0x133   :  { %5802 = vrot.lane.b32.xlu0 %v7451_v11, %s7384_s13 }
 0x134   :  { %6380 = vmatmul.mubr.msk.bf16.vlgmr.msra.gmra.mrb[16].mxu1 %vm73_vm3, %v8089_v34  ;;  %v3120_v34 = vsel %vm3118_vm13, %v7950_v22, %v8081_v58  ;;  %5800 = vrot.lane.b32.xlu1 %v7457_v12, %s7384_s13  ;;  %v1682_v12 = vsel %vm1678_vm4, %v8152_v40, %v7628_v47 }
 0x135   :  { %989 = vmatpush1.bf16.msra.mxu1 %v971_v48  ;;  %896 = vmatprep.mubr.bf16.mxu1 %v9488_v3  ;;  %v8259_v58 = vpop.permute.xlu0 %3619 }
 0x136   :  { %v8227_v39 = vpop.permute.xlu1 %2392  ;;  %6391 = vmatprep.subr.msk.bf16.mxu1 %vm80_vm1, %v962_v33 }
 0x137   :  { %5806 = vrot.lane.b32.xlu0 %v7703_v7, %s7384_s13  ;;  %v1681_v7 = vsel %vm1678_vm4, %v7614_v42, %v8152_v40  ;;  %v1922_v42 = vsel %vm1918_vm5, %v8182_v50, %v7652_v54  ;;  %vm5079_vm4 = vcmask 384000  }
 0x139   :  { %6509 = vmatmul.mubr.msk.bf16.vlgmr.msra.gmra.mrb[0].mxu0 %vm73_vm3, %v8224_v60  ;;  %v8275_v44 = vpop.permute.xlu0 %3850 }
 0x13a   :  { %v8238_v48 = vpop.permute.xlu1 %4338  ;;  %2950 = vmatprep.mubr.bf16.mxu0 %v9488_v3  ;;  %3015 = vmatpush1.bf16.msra.mxu0 %v2903_v2  ;;  %v8257_v2 = vld [vmem:[%s9470_s1 + $0x40] sm:$0xff]   ;;  %v3865_v11 = vsel %vm3864_vm2, %v8275_v44, %v8134_v49 }
 0x13b   :  { %6523 = vmatprep.subr.msk.bf16.mxu0 %vm80_vm1, %v3120_v34 }
 0x13c   :  { %6381 = vmatmul.mubr.msk.bf16.gmra.mrb[20].mxu1 %vm73_vm3, %v8127_v21  ;;  %v961_v21 = vsel %vm958_vm12, %v7898_v62, %v8047_v9 }
 0x13d   :  { %1020 = vmatprep.mubr.bf16.mxu1 %v9488_v3  ;;  %v977_v46 = vsel %vm80_vm1, %v961_v21, 0  ;;  %v8286_v21 = vld [vmem:[%s9470_s1 + $0x48] sm:$0xff]  }
 0x13e   :  { %v8252_v33 = vpop.permute.xlu1 %2632 }
 0x13f   :  { %9514 = vst [vmem:[#allocation16_spill] sm:$0xff] %v8252_v33  ;;  %v3119_v33 = vsel %vm3118_vm13, %v8065_v16, %v7950_v22 }
 0x140   :  { %v3131_v9 = vsel %vm80_vm1, %v3119_v33, 0 }
 0x141   :  { %6510 = vmatmul.mubr.msk.bf16.gmra.mrb[12].mxu0 %vm73_vm3, %v8249_v61 }
 0x142   :  { %v8266_v34 = vpop.permute.xlu1 %4346  ;;  %3046 = vmatprep.mubr.bf16.mxu0 %v9488_v3 }
 0x144   :  { %6389 = vmatmul.mubr.msk.bf16.vlgmr.msra.gmra.mrb[0].mxu1 %vm73_vm3, %v8257_v2 }
 0x145   :  { %1042 = vmatpush1.bf16.msra.mxu1 %v977_v46  ;;  %1030 = vmatprep.mubr.bf16.mxu1 %v9488_v3  ;;  %v8293_v46 = vpop.permute.xlu0 %3854 }
 0x146   :  { %v8278_v62 = vpop.permute.xlu1 %2872  ;;  %6394 = vmatprep.subr.msk.bf16.mxu1 %vm80_vm1, %v7964_v25 }
 0x149   :  { %6515 = vmatmul.mubr.msk.bf16.vlgmr.msra.gmra.mrb[4].mxu0 %vm73_vm3, %v8224_v60  ;;  %v8302_v33 = vpop.permute.xlu0 %3858 }
 0x14a   :  { %v8290_v22 = vpop.permute.xlu1 %4581  ;;  %3149 = vmatpush1.bf16.msra.mxu0 %v3131_v9  ;;  %3056 = vmatprep.mubr.bf16.mxu0 %v9488_v3  ;;  %v963_v9 = vsel %vm958_vm12, %v7932_v18, %v7964_v25  ;;  %v3123_v18 = vsel %vm3118_vm13, %v8091_v32, %v7975_v27  ;;  %vm4350_vm12 = vcmask 531456   ;;  %v3869_v54 = vsel %vm3864_vm2, %v8302_v33, %v8163_v1 }
 0x14b   :  { %9515 = vst [vmem:[#allocation17_spill] sm:$0xff] %v8290_v22  ;;  %6529 = vmatprep.subr.msk.bf16.mxu0 %vm80_vm1, %v7975_v27  ;;  %v1200_v22 = vsel %vm1198_vm14, %v7999_v37, %v8142_v26  ;;  %v3143_v27 = vsel %vm80_vm1, %v3123_v18, 0  ;;  %v8357_v18 = vld [vmem:[%s9470_s1 + $0xd8] sm:$0xff]  }
 0x14c   :  { %6390 = vmatmul.mubr.msk.bf16.gmra.mrb[4].mxu1 %vm73_vm3, %v8286_v21 }
 0x14d   :  { %1073 = vmatprep.mubr.bf16.mxu1 %v9488_v3  ;;  %v8321_v25 = vpop.permute.xlu0 %3862 }
 0x14e   :  { %v8300_v16 = vpop.permute.xlu1 %3112 }
 0x14f   :  { %9516 = vst [vmem:[#allocation18_spill] sm:$0xff] %v8300_v16  ;;  %v983_v16 = vsel %vm80_vm1, %v963_v9, 0 }
 0x151   :  { %6516 = vmatmul.mubr.msk.bf16.gmra.mrb[8].mxu0 %vm73_vm3, %v8249_v61  ;;  %v9518_v61 = vmov 0   ;;  %v8340_v9 = vpop.permute.xlu0 %4093 }
 0x152   :  { %3180 = vmatprep.mubr.bf16.mxu0 %v9488_v3  ;;  %v8310_v60 = vpop.permute.xlu1 %4589  ;;  %v8326_v3 = vld [vmem:[%s9470_s1 + $0xd0] sm:$0xff]  }
 0x153   :  { %9517 = vst [vmem:[#allocation19_spill] sm:$0xff] %v8310_v60 }
 0x154   :  { %6392 = vmatmul.mubr.msk.bf16.vlgmr.msra.gmra.mrb[8].mxu1 %vm73_vm3, %v8257_v2 }
 0x155   :  { %1095 = vmatpush1.bf16.msra.mxu1 %v983_v16  ;;  %1083 = vmatprep.mubr.bf16.mxu1 %v9518_v61  ;;  %v3360_v16 = vsel %vm3358_vm15, %v8166_v31, %v8032_v51  ;;  %v8362_v51 = vpop.permute.xlu0 %4097 }
 0x156   :  { %6403 = vmatprep.subr.msk.bf16.mxu1 %vm80_vm1, %v1200_v22  ;;  %v8330_v60 = vpop.permute.xlu1 %3352 }
 0x157   :  { %9519 = vst [vmem:[#allocation20_spill] sm:$0xff] %v8330_v60 }
 0x159   :  { %6524 = vmatmul.mubr.msk.bf16.vlgmr.msra.gmra.mrb[0].mxu0 %vm73_vm3, %v8326_v3  ;;  %v8377_v60 = vpop.permute.xlu0 %4101 }
 0x15a   :  { %3190 = vmatprep.mubr.bf16.mxu0 %v9518_v61  ;;  %3255 = vmatpush1.bf16.msra.mxu0 %v3143_v27  ;;  %v8345_v22 = vpop.permute.xlu1 %4824 }
 0x15b   :  { %9520 = vst [vmem:[#allocation21_spill] sm:$0xff] %v8345_v22  ;;  %6538 = vmatprep.subr.msk.bf16.mxu0 %vm80_vm1, %v3360_v16  ;;  %v1199_v16 = vsel %vm1198_vm14, %v8117_v56, %v7999_v37  ;;  %v1202_v37 = vsel %vm1198_vm14, %v8186_v63, %v8043_v57  ;;  %v3359_v56 = vsel %vm3358_vm15, %v8014_v45, %v8166_v31 }
 0x15c   :  { %6393 = vmatmul.mubr.msk.bf16.gmra.mrb[12].mxu1 %vm73_vm3, %v8286_v21  ;;  %v1211_v22 = vsel %vm80_vm1, %v1199_v16, 0 }
 0x15d   :  { %1126 = vmatprep.mubr.bf16.mxu1 %v9518_v61  ;;  %v8402_v31 = vpop.permute.xlu0 %4105 }
 0x15e   :  { %v8360_v27 = vpop.permute.xlu1 %3613 }
 0x15f   :  { %9521 = vst [vmem:[#allocation22_spill] sm:$0xff] %v8360_v27 }
 0x161   :  { %6525 = vmatmul.mubr.msk.bf16.gmra.mrb[12].mxu0 %vm73_vm3, %v8357_v18 }
 0x162   :  { %3286 = vmatprep.mubr.bf16.mxu0 %v9518_v61  ;;  %v8375_v27 = vpop.permute.xlu1 %4832 }
 0x163   :  { %9522 = vst [vmem:[#allocation23_spill] sm:$0xff] %v8375_v27  ;;  %v3371_v27 = vsel %vm80_vm1, %v3359_v56, 0 }
 0x164   :  { %6395 = vmatmul.mubr.msk.bf16.vlgmr.msra.gmra.mrb[16].mxu1 %vm73_vm3, %v8257_v2 }
 0x165   :  { %1229 = vmatpush1.bf16.msra.mxu1 %v1211_v22  ;;  %1136 = vmatprep.mubr.bf16.mxu1 %v9518_v61  ;;  %v8413_v22 = vpop.permute.xlu0 %4336 }
 0x166   :  { %6406 = vmatprep.subr.msk.bf16.mxu1 %vm80_vm1, %v1202_v37  ;;  %v3857_v16 = vpop.permute.xlu1 %3856 }
 0x167   :  { %v8396_v32 = vsel %vm3864_vm2, %v8293_v46, %v3857_v16  ;;  %v8400_v45 = vsel %vm3864_vm2, %v3857_v16, %v8302_v33  ;;  %v7330_v16 = vld [vmem:[%s9470_s1 + $0x50] sm:$0xff]  }
 0x168   :  { %9523 = vst [vmem:[#allocation24_spill] sm:$0xff] %v8396_v32  ;;  %9524 = vst [vmem:[#allocation25_spill] sm:$0xff] %v8400_v45  ;;  %v3623_v45 = vsel %vm3621_vm9, %v8230_v30, %v8084_v0 }
 0x169   :  { %6530 = vmatmul.mubr.msk.bf16.vlgmr.msra.gmra.mrb[4].mxu0 %vm73_vm3, %v8326_v3 }
 0x16a   :  { %3389 = vmatpush1.bf16.msra.mxu0 %v3371_v27  ;;  %3296 = vmatprep.mubr.bf16.mxu0 %v9518_v61  ;;  %v8407_v2 = vpop.permute.xlu1 %5067 }
 0x16b   :  { %9525 = vst [vmem:[#allocation26_spill] sm:$0xff] %v8407_v2  ;;  %6544 = vmatprep.subr.msk.bf16.mxu0 %vm80_vm1, %v8062_v15  ;;  %v7332_v2 = vld [vmem:[%s9470_s1 + $0x58] sm:$0xff]  }
 0x16c   :  { %6396 = vmatmul.mubr.msk.bf16.gmra.mrb[20].mxu1 %vm73_vm3, %v8286_v21  ;;  %v1201_v21 = vsel %vm1198_vm14, %v8142_v26, %v8186_v63  ;;  %v8445_v63 = vld [vmem:[%s9470_s1 + $0xe0] sm:$0xff]  }
 0x16d   :  { %1260 = vmatprep.mubr.bf16.mxu1 %v9518_v61 }
 0x16e   :  { %v4100_v37 = vpop.permute.xlu1 %4099 }
 0x16f   :  { %v8418_v56 = vsel %vm4107_vm7, %v8362_v51, %v4100_v37  ;;  %v8422_v27 = vsel %vm4107_vm7, %v4100_v37, %v8377_v60  ;;  %v3363_v37 = vsel %vm3358_vm15, %v8197_v53, %v8062_v15 }
 0x170   :  { %9526 = vst [vmem:[#allocation27_spill] sm:$0xff] %v8418_v56  ;;  %9527 = vst [vmem:[#allocation28_spill] sm:$0xff] %v8422_v27  ;;  %v8435_v56 = vpop.permute.xlu0 %4340  ;;  %v1217_v27 = vsel %vm80_vm1, %v1201_v21, 0  ;;  %v3383_v15 = vsel %vm80_vm1, %v3363_v37, 0  ;;  %v8475_v37 = vld [vmem:[%s9470_s1 + $0xe8] sm:$0xff]  }
 0x171   :  { %6531 = vmatmul.mubr.msk.bf16.gmra.mrb[8].mxu0 %vm73_vm3, %v8357_v18 }
 0x172   :  { %3420 = vmatprep.mubr.bf16.mxu0 %v9518_v61  ;;  %v8433_v32 = vpop.permute.xlu1 %5075 }
 0x173   :  { %9528 = vst [vmem:[#allocation29_spill] sm:$0xff] %v8433_v32 }
 0x174   :  { %6404 = vmatmul.mubr.msk.bf16.vlgmr.msra.gmra.mrb[0].mxu1 %vm73_vm3, %v7330_v16  ;;  %v8450_v32 = vpop.permute.xlu0 %4344 }
 0x175   :  { %1282 = vmatpush1.bf16.msra.mxu1 %v1217_v27  ;;  %1270 = vmatprep.mubr.bf16.mxu1 %v9518_v61 }
 0x176   :  { %6409 = vmatprep.subr.msk.bf16.mxu1 %vm80_vm1, %v8211_v14  ;;  %v4343_v26 = vpop.permute.xlu1 %4342 }
 0x177   :  { %v8455_v27 = vsel %vm4350_vm12, %v8435_v56, %v4343_v26  ;;  %v8459_v21 = vsel %vm4350_vm12, %v4343_v26, %v8450_v32  ;;  %v1203_v26 = vsel %vm1198_vm14, %v8043_v57, %v8211_v14  ;;  %v3627_v14 = vsel %vm3621_vm9, %v8098_v20, %v8259_v58 }
 0x178   :  { %9529 = vst [vmem:[#allocation30_spill] sm:$0xff] %v8455_v27  ;;  %9530 = vst [vmem:[#allocation31_spill] sm:$0xff] %v8459_v21  ;;  %v8489_v27 = vpop.permute.xlu0 %4348  ;;  %vm4593_vm14 = vcmask 523264  }
 0x179   :  { %6539 = vmatmul.mubr.msk.bf16.vlgmr.msra.gmra.mrb[0].mxu0 %vm73_vm3, %v8445_v63 }
 0x17a   :  { %3430 = vmatprep.mubr.bf16.mxu0 %v9518_v61  ;;  %3495 = vmatpush1.bf16.msra.mxu0 %v3383_v15  ;;  %v3622_v15 = vsel %vm3621_vm9, %v8072_v38, %v8230_v30  ;;  %v8502_v38 = vpop.permute.xlu1 %5310 }
 0x17b   :  { %6553 = vmatprep.subr.msk.bf16.mxu0 %vm80_vm1, %v3623_v45  ;;  %v1223_v45 = vsel %vm80_vm1, %v1203_v26, 0  ;;  %v3635_v57 = vsel %vm80_vm1, %v3622_v15, 0  ;;  %v3626_v26 = vsel %vm3621_vm9, %v8241_v35, %v8098_v20  ;;  %v1442_v15 = vsel %vm1438_vm0, %v8113_v41, %v7574_v28 }
 0x17c   :  { %6405 = vmatmul.mubr.msk.bf16.gmra.mrb[4].mxu1 %vm73_vm3, %v7332_v2  ;;  %v8498_v21 = vpop.permute.xlu0 %4579  ;;  %v3866_v28 = vsel %vm3864_vm2, %v8134_v49, %v8293_v46  ;;  %v3878_v20 = vsel %vm80_vm1, %v3865_v11, 0  ;;  %v3870_v41 = vsel %vm3864_vm2, %v8163_v1, %v8321_v25  ;;  %v1697_v49 = vsel %vm80_vm1, %v1681_v7, 0  ;;  %v7355_v46 = vld [vmem:[%s9470_s1 + $0x60] sm:$0xff]  }
 0x17d   :  { %1313 = vmatprep.mubr.bf16.mxu1 %v9518_v61  ;;  %vm4836_vm0 = vcmask 392192   ;;  %v1921_v1 = vsel %vm1918_vm5, %v7655_v55, %v8182_v50  ;;  %v2162_v55 = vsel %vm2158_vm6, %v8200_v24, %v7705_v8  ;;  %v8655_v50 = vld [vmem:[%s9470_s1 + $0x108] sm:$0xff]   ;;  %v4108_v8 = vsel %vm4107_vm7, %v8340_v9, %v8190_v43 }
 0x17e   :  { %v4586_v58 = vpop.permute.xlu1 %4585  ;;  %v1937_v33 = vsel %vm80_vm1, %v1921_v1, 0  ;;  %v4112_v7 = vsel %vm4107_vm7, %v8377_v60, %v8207_v36  ;;  %v9531_v60 = vld [vmem:[#allocation2_spill] sm:$0xff]  ;;  %vm5322_vm5 = vcmask 375808  }
 0x181   :  { %6540 = vmatmul.mubr.msk.bf16.gmra.mrb[12].mxu0 %vm73_vm3, %v8475_v37 }
 0x182   :  { %3526 = vmatprep.mubr.bf16.mxu0 %v9518_v61  ;;  %v8594_v47 = vpop.permute.xlu1 %5318 }
 0x184   :  { %6407 = vmatmul.mubr.msk.bf16.vlgmr.msra.gmra.mrb[8].mxu1 %vm73_vm3, %v7330_v16 }
 0x185   :  { %1335 = vmatpush1.bf16.msra.mxu1 %v1223_v45  ;;  %1323 = vmatprep.mubr.bf16.mxu1 %v9518_v61 }
 0x186   :  { %6697 = vmatprep.subr.msk.bf16.mxu1 %vm80_vm1, %v7547_v17  ;;  %v8508_v17 = vpop.permute.xlu0 %4583  ;;  %v4829_v25 = vpop.permute.xlu1 %4828 }
 0x187   :  { %v8512_v30 = vsel %vm4593_vm14, %v8508_v17, %v4586_v58 }
 0x189   :  { %6545 = vmatmul.mubr.msk.bf16.vlgmr.msra.gmra.mrb[4].mxu0 %vm73_vm3, %v8445_v63 }
 0x18a   :  { %3653 = vmatpush1.bf16.msra.mxu0 %v3635_v57  ;;  %3536 = vmatprep.mubr.bf16.mxu0 %v9518_v61  ;;  %v8521_v45 = vpop.permute.xlu0 %4587  ;;  %v8530_v57 = vld [vmem:[%s9470_s1 + $0xf0] sm:$0xff]  }
 0x18b   :  { %6559 = vmatprep.subr.msk.bf16.mxu0 %vm80_vm1, %v3627_v14 }
 0x18c   :  { %6408 = vmatmul.mubr.msk.bf16.gmra.mrb[12].mxu1 %vm73_vm3, %v7332_v2 }
 0x18d   :  { %1366 = vmatprep.mubr.bf16.mxu1 %v9518_v61 }
 0x18e   :  { %v8575_v13 = vpop.permute.xlu0 %4591 }
 0x191   :  { %6546 = vmatmul.mubr.msk.bf16.gmra.mrb[8].mxu0 %vm73_vm3, %v8475_v37 }
 0x192   :  { %3684 = vmatprep.mubr.bf16.mxu0 %v9518_v61  ;;  %v8587_v44 = vpop.permute.xlu0 %4822 }
 0x194   :  { %6410 = vmatmul.mubr.msk.bf16.vlgmr.msra.gmra.mrb[16].mxu1 %vm73_vm3, %v7330_v16  ;;  %v8535_v16 = vsel %vm4593_vm14, %v4586_v58, %v8521_v45  ;;  %v8626_v58 = vld [vmem:[%s9470_s1 + $0x100] sm:$0xff]  }
 0x195   :  { %6698 = vmatpush1.bf16.msra.mxu1 %v7554_v19  ;;  %1376 = vmatprep.mubr.bf16.mxu1 %v9518_v61  ;;  %v3647_v19 = vsel %vm80_vm1, %v3626_v26, 0 }
 0x196   :  { %6421 = vmatprep.subr.msk.bf16.mxu1 %vm80_vm1, %v1442_v15  ;;  %v8608_v40 = vpop.permute.xlu0 %4826  ;;  %v3890_v15 = vsel %vm80_vm1, %v3869_v54, 0  ;;  %v9532_v54 = vld [vmem:[#allocation16_spill] sm:$0xff] }
 0x199   :  { %6554 = vmatmul.mubr.msk.bf16.vlgmr.msra.gmra.mrb[0].mxu0 %vm73_vm3, %v8530_v57 }
 0x19a   :  { %3759 = vmatpush1.bf16.msra.mxu0 %v3647_v19  ;;  %3694 = vmatprep.mubr.bf16.mxu0 %v9518_v61  ;;  %v8621_v14 = vpop.permute.xlu0 %4830  ;;  %v4109_v19 = vsel %vm4107_vm7, %v8190_v43, %v8362_v51  ;;  %v7357_v51 = vld [vmem:[%s9470_s1 + $0x78] sm:$0xff]   ;;  %v8683_v43 = vpop.permute.xlu1 %5553 }
 0x19b   :  { %6568 = vmatprep.subr.msk.bf16.mxu0 %vm80_vm1, %v3866_v28  ;;  %v8631_v26 = vsel %vm4836_vm0, %v4829_v25, %v8621_v14  ;;  %v7356_v28 = vld [vmem:[%s9470_s1 + $0x70] sm:$0xff]  }
 0x19c   :  { %6411 = vmatmul.mubr.msk.bf16.gmra.mrb[20].mxu1 %vm73_vm3, %v7332_v2  ;;  %v8612_v2 = vsel %vm4836_vm0, %v8608_v40, %v4829_v25  ;;  %v2401_v25 = vsel %vm2398_vm8, %v7749_v23, %v8227_v39  ;;  %v8742_v23 = vld [vmem:[%s9470_s1 + $0x118] sm:$0xff]  }
 0x19d   :  { %1510 = vmatprep.mubr.bf16.mxu1 %v9518_v61 }
 0x19e   :  { %v8669_v6 = vpop.permute.xlu0 %4834 }
 0x1a1   :  { %6555 = vmatmul.mubr.msk.bf16.gmra.mrb[12].mxu0 %vm73_vm3, %v8555_v5 }
 0x1a2   :  { %3790 = vmatprep.mubr.bf16.mxu0 %v9518_v61  ;;  %v8676_v11 = vpop.permute.xlu0 %5065 }
 0x1a4   :  { %6420 = vmatmul.mubr.msk.bf16.vlgmr.msra.gmra.mrb[4].mxu1 %vm73_vm3, %v7354_v4 }
 0x1a5   :  { %1522 = vmatpush1.bf16.msra.mxu1 %v1457_v10  ;;  %1553 = vmatprep.mubr.bf16.mxu1 %v9518_v61  ;;  %v4113_v10 = vsel %vm4107_vm7, %v8207_v36, %v8402_v31  ;;  %v7358_v31 = vld [vmem:[%s9470_s1 + $0x80] sm:$0xff]   ;;  %v2417_v36 = vsel %vm80_vm1, %v2401_v25, 0  ;;  %v9539_v25 = vld [vmem:[#allocation5_spill] sm:$0xff] }
 0x1a6   :  { %6436 = vmatprep.subr.msk.bf16.mxu1 %vm80_vm1, %v1682_v12  ;;  %v2161_v12 = vsel %vm2158_vm6, %v7677_v59, %v8200_v24  ;;  %v2402_v59 = vsel %vm2398_vm8, %v8227_v39, %v7767_v29  ;;  %v8697_v24 = vpop.permute.xlu0 %5069  ;;  %v7359_v29 = vld [vmem:[%s9470_s1 + $0x88] sm:$0xff]   ;;  %vm5565_vm6 = vcmask 367616   ;;  %vm5808_vm8 = vcmask 359424  }
 0x1a7   :  { %v2177_v9 = vsel %vm80_vm1, %v2161_v12, 0 }
 0x1a9   :  { %6560 = vmatmul.mubr.msk.bf16.vlgmr.msra.gmra.mrb[4].mxu0 %vm73_vm3, %v8530_v57 }
 0x1aa   :  { %3896 = vmatpush1.bf16.msra.mxu0 %v3878_v20  ;;  %3800 = vmatprep.mubr.bf16.mxu0 %v9518_v61  ;;  %v8699_v20 = vpop.permute.xlu1 %5071  ;;  %v8746_v39 = vpop.permute.xlu0 %5073 }
 0x1ab   :  { %6574 = vmatprep.subr.msk.bf16.mxu0 %vm80_vm1, %v3870_v41  ;;  %v8704_v41 = vsel %vm5079_vm4, %v8697_v24, %v8699_v20 }
 0x1ac   :  { %6422 = vmatmul.mubr.msk.bf16.vlgmr.msra.gmra.mrb[8].mxu1 %vm73_vm3, %v7355_v46  ;;  %v4133_v46 = vsel %vm80_vm1, %v4112_v7, 0 }
 0x1ad   :  { %1762 = vmatpush1.bf16.msra.mxu1 %v1697_v49  ;;  %1563 = vmatprep.mubr.bf16.mxu1 %v9518_v61  ;;  %v8719_v49 = vld [vmem:[%s9470_s1 + $0x110] sm:$0xff]  }
 0x1ae   :  { %6451 = vmatprep.subr.msk.bf16.mxu1 %vm80_vm1, %v1922_v42  ;;  %v4352_v42 = vsel %vm4350_vm12, %v8238_v48, %v8435_v56  ;;  %v2642_v56 = vsel %vm2638_vm10, %v9532_v54, %v9531_v60  ;;  %v9541_v60 = vld [vmem:[#allocation11_spill] sm:$0xff] }
 0x1b1   :  { %6561 = vmatmul.mubr.msk.bf16.gmra.mrb[8].mxu0 %vm73_vm3, %v8555_v5 }
 0x1b2   :  { %3927 = vmatprep.mubr.bf16.mxu0 %v9518_v61 }
 0x1b4   :  { %6423 = vmatmul.mubr.msk.bf16.gmra.mrb[12].mxu1 %vm73_vm3, %v7354_v4  ;;  %v4121_v4 = vsel %vm80_vm1, %v4108_v8, 0  ;;  %v9535_v8 = vld [vmem:[#allocation6_spill] sm:$0xff] }
 0x1b5   :  { %1793 = vmatprep.mubr.bf16.mxu1 %v9518_v61 }
 0x1b9   :  { %6569 = vmatmul.mubr.msk.bf16.vlgmr.msra.gmra.mrb[0].mxu0 %vm73_vm3, %v8626_v58 }
 0x1ba   :  { %4002 = vmatpush1.bf16.msra.mxu0 %v3890_v15  ;;  %3937 = vmatprep.mubr.bf16.mxu0 %v9518_v61  ;;  %v4351_v15 = vsel %vm4350_vm12, %v8413_v22, %v8238_v48  ;;  %v8770_v48 = vpop.permute.xlu1 %5561 }
 0x1bb   :  { %6583 = vmatprep.subr.msk.bf16.mxu0 %vm80_vm1, %v4109_v19  ;;  %v8756_v19 = vpop.permute.xlu0 %5077  ;;  %v4364_v1 = vsel %vm80_vm1, %v4351_v15, 0 }
 0x1bc   :  { %6437 = vmatmul.mubr.msk.bf16.vlgmr.msra.gmra.mrb[8].mxu1 %vm73_vm3, %v7356_v28 }
 0x1bd   :  { %2002 = vmatpush1.bf16.msra.mxu1 %v1937_v33  ;;  %1803 = vmatprep.mubr.bf16.mxu1 %v9518_v61  ;;  %v4356_v33 = vsel %vm4350_vm12, %v8266_v34, %v8489_v27  ;;  %v9536_v27 = vld [vmem:[#allocation7_spill] sm:$0xff] }
 0x1be   :  { %6466 = vmatprep.subr.msk.bf16.mxu1 %vm80_vm1, %v2162_v55  ;;  %v9534_v55 = vld [vmem:[#allocation4_spill] sm:$0xff]  ;;  %v8784_v12 = vpop.permute.xlu1 %5314 }
 0x1bf   :  { %v8763_v28 = vpop.permute.xlu0 %5308 }
 0x1c1   :  { %6570 = vmatmul.mubr.msk.bf16.gmra.mrb[12].mxu0 %vm73_vm3, %v8655_v50 }
 0x1c2   :  { %4033 = vmatprep.mubr.bf16.mxu0 %v9518_v61 }
 0x1c4   :  { %6438 = vmatmul.mubr.msk.bf16.gmra.mrb[12].mxu1 %vm73_vm3, %v7357_v51  ;;  %v2641_v51 = vsel %vm2638_vm10, %v9534_v55, %v9532_v54  ;;  %v9545_v55 = vld [vmem:[#allocation10_spill] sm:$0xff]  ;;  %vm6251_vm10 = vcmask 343040  }
 0x1c5   :  { %2033 = vmatprep.mubr.bf16.mxu1 %v9518_v61  ;;  %v2657_v22 = vsel %vm80_vm1, %v2641_v51, 0 }
 0x1c9   :  { %6575 = vmatmul.mubr.msk.bf16.vlgmr.msra.gmra.mrb[4].mxu0 %vm73_vm3, %v8626_v58 }
 0x1ca   :  { %4139 = vmatpush1.bf16.msra.mxu0 %v4121_v4  ;;  %4043 = vmatprep.mubr.bf16.mxu0 %v9518_v61  ;;  %v2882_v4 = vsel %vm2878_vm11, %v8278_v62, %v9536_v27  ;;  %v9548_v27 = vld [vmem:[#allocation15_spill] sm:$0xff] }
 0x1cb   :  { %6589 = vmatprep.subr.msk.bf16.mxu0 %vm80_vm1, %v4113_v10  ;;  %v8782_v10 = vpop.permute.xlu0 %5312 }
 0x1cc   :  { %6452 = vmatmul.mubr.msk.bf16.vlgmr.msra.gmra.mrb[8].mxu1 %vm73_vm3, %v7358_v31  ;;  %v9537_v31 = vld [vmem:[#allocation8_spill] sm:$0xff] }
 0x1cd   :  { %2242 = vmatpush1.bf16.msra.mxu1 %v2177_v9  ;;  %2043 = vmatprep.mubr.bf16.mxu1 %v9518_v61  ;;  %v8789_v9 = vsel %vm5322_vm5, %v8782_v10, %v8784_v12 }
 0x1ce   :  { %6481 = vmatprep.subr.msk.bf16.mxu1 %vm80_vm1, %v2402_v59  ;;  %v4355_v59 = vsel %vm4350_vm12, %v8450_v32, %v8266_v34  ;;  %v9540_v34 = vld [vmem:[#allocation12_spill] sm:$0xff] }
 0x1cf   :  { %v4376_v7 = vsel %vm80_vm1, %v4355_v59, 0  ;;  %v9549_v59 = vld [vmem:[#allocation21_spill] sm:$0xff] }
 0x1d1   :  { %6576 = vmatmul.mubr.msk.bf16.gmra.mrb[8].mxu0 %vm73_vm3, %v8655_v50 }
 0x1d2   :  { %4170 = vmatprep.mubr.bf16.mxu0 %v9518_v61 }
 0x1d4   :  { %6453 = vmatmul.mubr.msk.bf16.gmra.mrb[12].mxu1 %vm73_vm3, %v7359_v29  ;;  %v8802_v29 = vld [vmem:[%s9470_s1 + $0x120] sm:$0xff]  }
 0x1d5   :  { %2273 = vmatprep.mubr.bf16.mxu1 %v9518_v61 }
 0x1d9   :  { %6584 = vmatmul.mubr.msk.bf16.vlgmr.msra.gmra.mrb[0].mxu0 %vm73_vm3, %v8719_v49 }
 0x1da   :  { %4245 = vmatpush1.bf16.msra.mxu0 %v4133_v46  ;;  %4180 = vmatprep.mubr.bf16.mxu0 %v9518_v61  ;;  %v9538_v46 = vld [vmem:[#allocation17_spill] sm:$0xff] }
 0x1db   :  { %6598 = vmatprep.subr.msk.bf16.mxu0 %vm80_vm1, %v4352_v42  ;;  %v4595_v42 = vsel %vm4593_vm14, %v9538_v46, %v8508_v17  ;;  %v9542_v17 = vld [vmem:[#allocation18_spill] sm:$0xff] }
 0x1dc   :  { %6467 = vmatmul.mubr.msk.bf16.vlgmr.msra.gmra.mrb[8].mxu1 %vm73_vm3, %v7864_v52  ;;  %v9533_v52 = vld [vmem:[#allocation3_spill] sm:$0xff]  ;;  %v3122_v54 = vsel %vm3118_vm13, %v9542_v17, %v9541_v60  ;;  %v3121_v51 = vsel %vm3118_vm13, %v9545_v55, %v9542_v17  ;;  %v9554_v17 = vld [vmem:[#allocation26_spill] sm:$0xff] }
 0x1dd   :  { %2482 = vmatpush1.bf16.msra.mxu1 %v2417_v36  ;;  %2283 = vmatprep.mubr.bf16.mxu1 %v9518_v61  ;;  %v2881_v36 = vsel %vm2878_vm11, %v9539_v25, %v8278_v62  ;;  %v8825_v62 = vld [vmem:[%s9470_s1 + $0x128] sm:$0xff]   ;;  %vm6302_vm11 = vcmask 965632  }
 0x1de   :  { %6496 = vmatprep.subr.msk.bf16.mxu1 %vm80_vm1, %v2642_v56  ;;  %v2897_v32 = vsel %vm80_vm1, %v2881_v36, 0  ;;  %v9543_v56 = vld [vmem:[#allocation13_spill] sm:$0xff] }
 0x1df   :  { %v8891_v36 = vld [vmem:[%s9470_s1 + $0x138] sm:$0xff]  }
 0x1e1   :  { %6585 = vmatmul.mubr.msk.bf16.gmra.mrb[12].mxu0 %vm73_vm3, %v8742_v23 }
 0x1e2   :  { %4276 = vmatprep.mubr.bf16.mxu0 %v9518_v61 }
 0x1e4   :  { %6468 = vmatmul.mubr.msk.bf16.gmra.mrb[12].mxu1 %vm73_vm3, %v9533_v52  ;;  %v4594_v52 = vsel %vm4593_vm14, %v8498_v21, %v9538_v46  ;;  %v3137_v21 = vsel %vm80_vm1, %v3121_v51, 0  ;;  %v9550_v46 = vld [vmem:[#allocation9_spill] sm:$0xff] }
 0x1e5   :  { %2513 = vmatprep.mubr.bf16.mxu1 %v9518_v61  ;;  %v4607_v15 = vsel %vm80_vm1, %v4594_v52, 0 }
 0x1e9   :  { %6590 = vmatmul.mubr.msk.bf16.vlgmr.msra.gmra.mrb[4].mxu0 %vm73_vm3, %v8719_v49 }
 0x1ea   :  { %4382 = vmatpush1.bf16.msra.mxu0 %v4364_v1  ;;  %4286 = vmatprep.mubr.bf16.mxu0 %v9518_v61  ;;  %v9544_v1 = vld [vmem:[#allocation19_spill] sm:$0xff] }
 0x1eb   :  { %6604 = vmatprep.subr.msk.bf16.mxu0 %vm80_vm1, %v4356_v33  ;;  %v4599_v33 = vsel %vm4593_vm14, %v9544_v1, %v8575_v13  ;;  %v9547_v13 = vld [vmem:[#allocation20_spill] sm:$0xff] }
 0x1ec   :  { %6482 = vmatmul.mubr.msk.bf16.vlgmr.msra.gmra.mrb[8].mxu1 %vm73_vm3, %v9535_v8  ;;  %v3362_v8 = vsel %vm3358_vm15, %v9547_v13, %v8197_v53  ;;  %v8868_v53 = vld [vmem:[%s9470_s1 + $0x130] sm:$0xff]  }
 0x1ed   :  { %2722 = vmatpush1.bf16.msra.mxu1 %v2657_v22  ;;  %2523 = vmatprep.mubr.bf16.mxu1 %v9518_v61  ;;  %v9546_v22 = vld [vmem:[#allocation14_spill] sm:$0xff] }
 0x1ee   :  { %6511 = vmatprep.subr.msk.bf16.mxu1 %vm80_vm1, %v2882_v4  ;;  %v4598_v4 = vsel %vm4593_vm14, %v8521_v45, %v9544_v1 }
 0x1f1   :  { %6591 = vmatmul.mubr.msk.bf16.gmra.mrb[8].mxu0 %vm73_vm3, %v8742_v23 }
 0x1f2   :  { %4413 = vmatprep.mubr.bf16.mxu0 %v9518_v61 }
 0x1f4   :  { %6483 = vmatmul.mubr.msk.bf16.gmra.mrb[12].mxu1 %vm73_vm3, %v9537_v31  ;;  %v4619_v31 = vsel %vm80_vm1, %v4598_v4, 0  ;;  %v6024_v4 = vld [vmem:[%s9471_s2 + $0x10] sm:$0xff] }
 0x1f5   :  { %2753 = vmatprep.mubr.bf16.mxu1 %v9518_v61 }
 0x1f9   :  { %6599 = vmatmul.mubr.msk.bf16.vlgmr.msra.gmra.mrb[0].mxu0 %vm73_vm3, %v8802_v29 }
 0x1fa   :  { %4488 = vmatpush1.bf16.msra.mxu0 %v4376_v7  ;;  %4423 = vmatprep.mubr.bf16.mxu0 %v9518_v61  ;;  %v4838_v7 = vsel %vm4836_vm0, %v9549_v59, %v8608_v40  ;;  %v9551_v40 = vld [vmem:[#allocation22_spill] sm:$0xff] }
 0x1fb   :  { %6613 = vmatprep.subr.msk.bf16.mxu0 %vm80_vm1, %v4595_v42  ;;  %v3361_v42 = vsel %vm3358_vm15, %v9550_v46, %v9547_v13  ;;  %v3625_v25 = vsel %vm3621_vm9, %v9551_v40, %v8241_v35  ;;  %v3624_v60 = vsel %vm3621_vm9, %v8084_v0, %v9551_v40  ;;  %v6022_v13 = vld [vmem:[%s9471_s2] sm:$0xff]  ;;  %v9033_v46 = vpop.permute.xlu0 %5316 }
 0x1fc   :  { %6497 = vmatmul.mubr.msk.bf16.vlgmr.msra.gmra.mrb[8].mxu1 %vm73_vm3, %v9540_v34  ;;  %v3377_v45 = vsel %vm80_vm1, %v3361_v42, 0  ;;  %6028 = vperm.xlu0 %7302, %v6022_v13  }
 0x1fd   :  { %2962 = vmatpush1.bf16.msra.mxu1 %v2897_v32  ;;  %2763 = vmatprep.mubr.bf16.mxu1 %v9518_v61  ;;  %v9552_v32 = vld [vmem:[#allocation23_spill] sm:$0xff] }
 0x1fe   :  { %6526 = vmatprep.subr.msk.bf16.mxu1 %vm80_vm1, %v3122_v54  ;;  %v4842_v34 = vsel %vm4836_vm0, %v9552_v32, %v8669_v6  ;;  %v4841_v0 = vsel %vm4836_vm0, %v8621_v14, %v9552_v32  ;;  %v5081_v54 = vsel %vm5079_vm4, %v9554_v17, %v8697_v24  ;;  %v9556_v24 = vld [vmem:[#allocation28_spill] sm:$0xff] }
 0x1ff   :  { %v4862_v6 = vsel %vm80_vm1, %v4841_v0, 0  ;;  %v5321_v42 = vpop.permute.xlu0 %5320 }
 0x201   :  { %6600 = vmatmul.mubr.msk.bf16.gmra.mrb[12].mxu0 %vm73_vm3, %v8825_v62 }
 0x202   :  { %4519 = vmatprep.mubr.bf16.mxu0 %v9518_v61 }
 0x204   :  { %6498 = vmatmul.mubr.msk.bf16.gmra.mrb[12].mxu1 %vm73_vm3, %v9543_v56  ;;  %v8950_v56 = vld [vmem:[%s9470_s1 + $0x148] sm:$0xff]  }
 0x205   :  { %2993 = vmatprep.mubr.bf16.mxu1 %v9518_v61 }
 0x209   :  { %6605 = vmatmul.mubr.msk.bf16.vlgmr.msra.gmra.mrb[4].mxu0 %vm73_vm3, %v8802_v29 }
 0x20a   :  { %4625 = vmatpush1.bf16.msra.mxu0 %v4607_v15  ;;  %4529 = vmatprep.mubr.bf16.mxu0 %v9518_v61 }
 0x20b   :  { %6619 = vmatprep.subr.msk.bf16.mxu0 %vm80_vm1, %v4599_v33  ;;  %v9557_v33 = vld [vmem:[#allocation29_spill] sm:$0xff] }
 0x20c   :  { %6512 = vmatmul.mubr.msk.bf16.vlgmr.msra.gmra.mrb[8].mxu1 %vm73_vm3, %v9546_v22  ;;  %v5085_v55 = vsel %vm5079_vm4, %v9557_v33, %v8756_v19  ;;  %v9559_v19 = vld [vmem:[#allocation31_spill] sm:$0xff]  ;;  %v5084_v22 = vsel %vm5079_vm4, %v8746_v39, %v9557_v33 }
 0x20d   :  { %3202 = vmatpush1.bf16.msra.mxu1 %v3137_v21  ;;  %3003 = vmatprep.mubr.bf16.mxu1 %v9518_v61 }
 0x20e   :  { %6541 = vmatprep.subr.msk.bf16.mxu1 %vm80_vm1, %v3362_v8  ;;  %v6023_v8 = vld [vmem:[%s9471_s2 + $0x8] sm:$0xff] }
 0x20f   :  { %6033 = vperm.xlu1 %7303, %v6023_v8  }
 0x211   :  { %6606 = vmatmul.mubr.msk.bf16.gmra.mrb[8].mxu0 %vm73_vm3, %v8825_v62 }
 0x212   :  { %4656 = vmatprep.mubr.bf16.mxu0 %v9518_v61 }
 0x213   :  { %6038 = vperm.xlu1 %7303, %v6024_v4  }
 0x214   :  { %6513 = vmatmul.mubr.msk.bf16.gmra.mrb[12].mxu1 %vm73_vm3, %v9548_v27  ;;  %v5324_v27 = vsel %vm5322_vm5, %v8502_v38, %v8782_v10 }
 0x215   :  { %3233 = vmatprep.mubr.bf16.mxu1 %v9518_v61 }
 0x219   :  { %6614 = vmatmul.mubr.msk.bf16.vlgmr.msra.gmra.mrb[0].mxu0 %vm73_vm3, %v8868_v53 }
 0x21a   :  { %4731 = vmatpush1.bf16.msra.mxu0 %v4619_v31  ;;  %4666 = vmatprep.mubr.bf16.mxu0 %v9518_v61  ;;  %v6025_v31 = vld [vmem:[%s9471_s2 + $0x18] sm:$0xff] }
 0x21b   :  { %6628 = vmatprep.subr.msk.bf16.mxu0 %vm80_vm1, %v4838_v7  ;;  %6043 = vperm.xlu0 %7302, %v6025_v31   ;;  %v9028_v7 = vld [vmem:[%s9470_s1 + $0x158] sm:$0xff]  }
 0x21c   :  { %6527 = vmatmul.mubr.msk.bf16.vlgmr.msra.gmra.mrb[8].mxu1 %vm73_vm3, %v8326_v3  ;;  %v4837_v3 = vsel %vm4836_vm0, %v8587_v44, %v9549_v59  ;;  %v9553_v44 = vld [vmem:[#allocation25_spill] sm:$0xff]  ;;  %v9560_v59 = vld [vmem:[#allocation30_spill] sm:$0xff] }
 0x21d   :  { %3442 = vmatpush1.bf16.msra.mxu1 %v3377_v45  ;;  %3243 = vmatprep.mubr.bf16.mxu1 %v9518_v61  ;;  %v4850_v35 = vsel %vm80_vm1, %v4837_v3, 0  ;;  %v4370_v10 = vsel %vm80_vm1, %v9560_v59, 0  ;;  %v7352_v59 = vld [vmem:[%s9470_s1 + $0x180] sm:$0xff]  }
 0x21e   :  { %6556 = vmatprep.subr.msk.bf16.mxu1 %vm80_vm1, %v3625_v25  ;;  %v5328_v25 = vsel %vm5322_vm5, %v8594_v47, %v5321_v42  ;;  %v7385_v42 = vmov 0.0  }
 0x21f   :  { %6150 = vst [vmem:[%s9472_s4] sm:$0xff] %v7385_v42  ;;  %6155 = vst [vmem:[%s9472_s4 + $0x28] sm:$0xff] %v7385_v42 }
 0x220   :  { %6158 = vst [vmem:[%s9472_s4 + $0x38] sm:$0xff] %v7385_v42  ;;  %6163 = vst [vmem:[%s9472_s4 + $0x60] sm:$0xff] %v7385_v42 }
 0x221   :  { %6615 = vmatmul.mubr.msk.bf16.gmra.mrb[12].mxu0 %vm73_vm3, %v8891_v36  ;;  %6165 = vst [vmem:[%s9472_s4 + $0x70] sm:$0xff] %v7385_v42  ;;  %6170 = vst [vmem:[%s9472_s4 + $0x98] sm:$0xff] %v7385_v42 }
 0x222   :  { %4762 = vmatprep.mubr.bf16.mxu0 %v9518_v61  ;;  %6172 = vst [vmem:[%s9472_s4 + $0xa8] sm:$0xff] %v7385_v42  ;;  %6177 = vst [vmem:[%s9472_s4 + $0xd0] sm:$0xff] %v7385_v42 }
 0x224   :  { %6528 = vmatmul.mubr.msk.bf16.gmra.mrb[12].mxu1 %vm73_vm3, %v8357_v18  ;;  %v3641_v18 = vsel %vm80_vm1, %v3624_v60, 0 }
 0x225   :  { %3473 = vmatprep.mubr.bf16.mxu1 %v9518_v61 }
 0x229   :  { %6620 = vmatmul.mubr.msk.bf16.vlgmr.msra.gmra.mrb[4].mxu0 %vm73_vm3, %v8868_v53 }
 0x22a   :  { %4868 = vmatpush1.bf16.msra.mxu0 %v4850_v35  ;;  %4772 = vmatprep.mubr.bf16.mxu0 %v9518_v61  ;;  %v5552_v35 = vpop.permute.xlu0 %5551 }
 0x22b   :  { %6634 = vmatprep.subr.msk.bf16.mxu0 %vm80_vm1, %v4842_v34 }
 0x22c   :  { %6542 = vmatmul.mubr.msk.bf16.vlgmr.msra.gmra.mrb[8].mxu1 %vm73_vm3, %v8445_v63  ;;  %v8932_v63 = vld [vmem:[%s9470_s1 + $0x140] sm:$0xff]  }
 0x22d   :  { %3706 = vmatpush1.bf16.msra.mxu1 %v3641_v18  ;;  %3483 = vmatprep.mubr.bf16.mxu1 %v9518_v61 }
 0x22e   :  { %6571 = vmatprep.subr.msk.bf16.mxu1 %vm80_vm1, %v9553_v44  ;;  %v9088_v60 = vpop.permute.xlu0 %5555 }
 0x231   :  { %6621 = vmatmul.mubr.msk.bf16.gmra.mrb[8].mxu0 %vm73_vm3, %v8891_v36 }
 0x232   :  { %4899 = vmatprep.mubr.bf16.mxu0 %v9518_v61 }
 0x234   :  { %6543 = vmatmul.mubr.msk.bf16.gmra.mrb[12].mxu1 %vm73_vm3, %v8475_v37  ;;  %v9555_v37 = vld [vmem:[#allocation24_spill] sm:$0xff] }
 0x235   :  { %3737 = vmatprep.mubr.bf16.mxu1 %v9518_v61  ;;  %v3884_v14 = vsel %vm80_vm1, %v9555_v37, 0  ;;  %v9116_v37 = vld [vmem:[%s9470_s1 + $0x168] sm:$0xff]  }
 0x239   :  { %6629 = vmatmul.mubr.msk.bf16.vlgmr.msra.gmra.mrb[0].mxu0 %vm73_vm3, %v8932_v63 }
 0x23a   :  { %4974 = vmatpush1.bf16.msra.mxu0 %v4862_v6  ;;  %4909 = vmatprep.mubr.bf16.mxu0 %v9518_v61 }
 0x23b   :  { %6643 = vmatprep.subr.msk.bf16.mxu0 %vm80_vm1, %v5081_v54  ;;  %v5083_v54 = vsel %vm5079_vm4, %v8699_v20, %v8746_v39 }
 0x23c   :  { %6557 = vmatmul.mubr.msk.bf16.vlgmr.msra.gmra.mrb[8].mxu1 %vm73_vm3, %v8530_v57  ;;  %v5080_v57 = vsel %vm5079_vm4, %v8676_v11, %v9554_v17  ;;  %v9558_v11 = vld [vmem:[#allocation27_spill] sm:$0xff]  ;;  %v4856_v17 = vsel %vm80_vm1, %v8612_v2, 0  ;;  %v5566_v2 = vsel %vm5565_vm6, %v5552_v35, %v8683_v43 }
 0x23d   :  { %3949 = vmatpush1.bf16.msra.mxu1 %v3884_v14  ;;  %3747 = vmatprep.mubr.bf16.mxu1 %v9518_v61  ;;  %v5093_v52 = vsel %vm80_vm1, %v5080_v57, 0  ;;  %v4127_v21 = vsel %vm80_vm1, %v9558_v11, 0  ;;  %v5560_v14 = vpop.permute.xlu0 %5559  ;;  %v5579_v39 = vsel %vm80_vm1, %v5566_v2, 0  ;;  %v5797_v57 = vpop.permute.xlu1 %5796  ;;  %v7351_v11 = vld [vmem:[%s9470_s1 + $0x178] sm:$0xff]  }
 0x23e   :  { %6586 = vmatprep.subr.msk.bf16.mxu1 %vm80_vm1, %v9556_v24 }
 0x241   :  { %6630 = vmatmul.mubr.msk.bf16.gmra.mrb[12].mxu0 %vm73_vm3, %v8950_v56  ;;  %v5564_v20 = vpop.permute.xlu0 %5563 }
 0x242   :  { %5005 = vmatprep.mubr.bf16.mxu0 %v9518_v61 }
 0x244   :  { %6558 = vmatmul.mubr.msk.bf16.gmra.mrb[12].mxu1 %vm73_vm3, %v8555_v5 }
 0x245   :  { %3980 = vmatprep.mubr.bf16.mxu1 %v9518_v61  ;;  %v5795_v24 = vpop.permute.xlu0 %5794 }
 0x247   :  { %v8965_v15 = vpop.f32.mrb[0].mxu1 }
 0x248   :  { %v8967_v1 = vpop.f32.mrb[1].mxu1 }
 0x249   :  { %6635 = vmatmul.mubr.msk.bf16.vlgmr.msra.gmra.mrb[4].mxu0 %vm73_vm3, %v8932_v63  ;;  %v8974_v5 = vpop.f32.mrb[2].mxu1 }
 0x24a   :  { %v8976_v51 = vpop.f32.mrb[3].mxu1  ;;  %5111 = vmatpush1.bf16.msra.mxu0 %v5093_v52  ;;  %5015 = vmatprep.mubr.bf16.mxu0 %v9518_v61 }
 0x24b   :  { %6649 = vmatprep.subr.msk.bf16.mxu0 %vm80_vm1, %v5085_v55  ;;  %v5558_v55 = vpop.permute.xlu1 %5557 }
 0x24c   :  { %6572 = vmatmul.mubr.msk.bf16.vlgmr.msra.gmra.mrb[8].mxu1 %vm73_vm3, %v8626_v58  ;;  %v8998_v58 = vld [vmem:[%s9470_s1 + $0x150] sm:$0xff]   ;;  %v5568_v8 = vsel %vm5565_vm6, %v9088_v60, %v5558_v55 }
 0x24d   :  { %4192 = vmatpush1.bf16.msra.mxu1 %v4127_v21  ;;  %3990 = vmatprep.mubr.bf16.mxu1 %v9518_v61  ;;  %v5585_v4 = vsel %vm80_vm1, %v5568_v8, 0 }
 0x24e   :  { %6601 = vmatprep.subr.msk.bf16.mxu1 %vm80_vm1, %v9559_v19 }
 0x24f   :  { %v5805_v19 = vpop.permute.xlu1 %5804 }
 0x251   :  { %6636 = vmatmul.mubr.msk.bf16.gmra.mrb[8].mxu0 %vm73_vm3, %v8950_v56 }
 0x252   :  { %5142 = vmatprep.mubr.bf16.mxu0 %v9518_v61 }
 0x254   :  { %6573 = vmatmul.mubr.msk.bf16.gmra.mrb[12].mxu1 %vm73_vm3, %v8655_v50  ;;  %v5105_v50 = vsel %vm80_vm1, %v5084_v22, 0 }
 0x255   :  { %4223 = vmatprep.mubr.bf16.mxu1 %v9518_v61 }
 0x259   :  { %6644 = vmatmul.mubr.msk.bf16.vlgmr.msra.gmra.mrb[0].mxu0 %vm73_vm3, %v8998_v58 }
 0x25a   :  { %5217 = vmatpush1.bf16.msra.mxu0 %v5105_v50  ;;  %5152 = vmatprep.mubr.bf16.mxu0 %v9518_v61  ;;  %v5801_v50 = vpop.permute.xlu1 %5800 }
 0x25b   :  { %6658 = vmatprep.subr.msk.bf16.mxu0 %vm80_vm1, %v5324_v27 }
 0x25c   :  { %6587 = vmatmul.mubr.msk.bf16.vlgmr.msra.gmra.mrb[8].mxu1 %vm73_vm3, %v8719_v49  ;;  %v5323_v49 = vsel %vm5322_vm5, %v8763_v28, %v8502_v38  ;;  %v4613_v38 = vsel %vm80_vm1, %v8512_v30, 0 }
 0x25d   :  { %4435 = vmatpush1.bf16.msra.mxu1 %v4370_v10  ;;  %4233 = vmatprep.mubr.bf16.mxu1 %v9518_v61  ;;  %v5336_v45 = vsel %vm80_vm1, %v5323_v49, 0  ;;  %v7353_v49 = vld [vmem:[%s9470_s1 + $0x188] sm:$0xff]  }
 0x25e   :  { %6616 = vmatprep.subr.msk.bf16.mxu1 %vm80_vm1, %v8535_v16 }
 0x261   :  { %6645 = vmatmul.mubr.msk.bf16.gmra.mrb[12].mxu0 %vm73_vm3, %v9028_v7 }
 0x262   :  { %5248 = vmatprep.mubr.bf16.mxu0 %v9518_v61 }
 0x264   :  { %6588 = vmatmul.mubr.msk.bf16.gmra.mrb[12].mxu1 %vm73_vm3, %v8742_v23 }
 0x265   :  { %4466 = vmatprep.mubr.bf16.mxu1 %v9518_v61 }
 0x267   :  { %v9045_v16 = vpop.f32.mrb[16].mxu1 }
 0x268   :  { %v9047_v40 = vpop.f32.mrb[17].mxu1 }
 0x269   :  { %6650 = vmatmul.mubr.msk.bf16.vlgmr.msra.gmra.mrb[4].mxu0 %vm73_vm3, %v8998_v58  ;;  %v9053_v23 = vpop.f32.mrb[18].mxu1 }
 0x26a   :  { %v9055_v3 = vpop.f32.mrb[19].mxu1  ;;  %5354 = vmatpush1.bf16.msra.mxu0 %v5336_v45  ;;  %5258 = vmatprep.mubr.bf16.mxu0 %v9518_v61 }
 0x26b   :  { %6664 = vmatprep.subr.msk.bf16.mxu0 %vm80_vm1, %v5328_v25 }
 0x26c   :  { %6602 = vmatmul.mubr.msk.bf16.vlgmr.msra.gmra.mrb[8].mxu1 %vm73_vm3, %v8802_v29  ;;  %v9085_v29 = vld [vmem:[%s9470_s1 + $0x160] sm:$0xff]  }
 0x26d   :  { %4678 = vmatpush1.bf16.msra.mxu1 %v4613_v38  ;;  %4476 = vmatprep.mubr.bf16.mxu1 %v9518_v61 }
 0x26e   :  { %6631 = vmatprep.subr.msk.bf16.mxu1 %vm80_vm1, %v8631_v26  ;;  %v5327_v26 = vsel %vm5322_vm5, %v9033_v46, %v8594_v47  ;;  %v5567_v47 = vsel %vm5565_vm6, %v8683_v43, %v9088_v60  ;;  %v5326_v43 = vsel %vm5322_vm5, %v8784_v12, %v9033_v46  ;;  %v7350_v12 = vld [vmem:[%s9470_s1 + $0x170] sm:$0xff]  }
 0x26f   :  { %v9066_v28 = vpop.f32.mrb[20].mxu1  ;;  %v5348_v18 = vsel %vm80_vm1, %v5327_v26, 0  ;;  %v9262_v26 = vld [vmem:[%s9473_s3] sm:$0x3f]  ;;  %s7386_s3 = smov 42  }
 0x270   :  { %v9068_v32 = vpop.f32.mrb[21].mxu1 }
 0x271   :  { %6651 = vmatmul.mubr.msk.bf16.gmra.mrb[8].mxu0 %vm73_vm3, %v9028_v7  ;;  %v9072_v34 = vpop.f32.mrb[22].mxu1 }
 0x272   :  { %v9074_v30 = vpop.f32.mrb[23].mxu1  ;;  %5385 = vmatprep.mubr.bf16.mxu0 %v9518_v61 }
 0x274   :  { %6603 = vmatmul.mubr.msk.bf16.gmra.mrb[12].mxu1 %vm73_vm3, %v8825_v62 }
 0x275   :  { %4709 = vmatprep.mubr.bf16.mxu1 %v9518_v61 }
 0x277   :  { %v9091_v44 = vpop.f32.mrb[4].mxu1 }
 0x278   :  { %v9093_v0 = vpop.f32.mrb[5].mxu1 }
 0x279   :  { %6659 = vmatmul.mubr.msk.bf16.vlgmr.msra.gmra.mrb[0].mxu0 %vm73_vm3, %v9085_v29  ;;  %v9100_v62 = vpop.f32.mrb[6].mxu1 }
 0x27a   :  { %v9102_v6 = vpop.f32.mrb[7].mxu1  ;;  %5460 = vmatpush1.bf16.msra.mxu0 %v5348_v18  ;;  %5395 = vmatprep.mubr.bf16.mxu0 %v9518_v61 }
 0x27b   :  { %6673 = vmatprep.subr.msk.bf16.mxu0 %vm80_vm1, %v5567_v47 }
 0x27c   :  { %6617 = vmatmul.mubr.msk.bf16.vlgmr.msra.gmra.mrb[8].mxu1 %vm73_vm3, %v8868_v53  ;;  %v5571_v53 = vsel %vm5565_vm6, %v8770_v48, %v5564_v20 }
 0x27d   :  { %4921 = vmatpush1.bf16.msra.mxu1 %v4856_v17  ;;  %4719 = vmatprep.mubr.bf16.mxu1 %v9518_v61 }
 0x27e   :  { %6646 = vmatprep.subr.msk.bf16.mxu1 %vm80_vm1, %v5083_v54 }
 0x281   :  { %6660 = vmatmul.mubr.msk.bf16.gmra.mrb[12].mxu0 %vm73_vm3, %v9116_v37 }
 0x282   :  { %5491 = vmatprep.mubr.bf16.mxu0 %v9518_v61 }
 0x284   :  { %6618 = vmatmul.mubr.msk.bf16.gmra.mrb[12].mxu1 %vm73_vm3, %v8891_v36  ;;  %v5099_v36 = vsel %vm80_vm1, %v8704_v41, 0  ;;  %v5570_v41 = vsel %vm5565_vm6, %v5560_v14, %v8770_v48  ;;  %v5569_v48 = vsel %vm5565_vm6, %v5558_v55, %v5560_v14 }
 0x285   :  { %4952 = vmatprep.mubr.bf16.mxu1 %v9518_v61  ;;  %v5591_v52 = vsel %vm80_vm1, %v5570_v41, 0 }
 0x289   :  { %6665 = vmatmul.mubr.msk.bf16.vlgmr.msra.gmra.mrb[4].mxu0 %vm73_vm3, %v9085_v29 }
 0x28a   :  { %5597 = vmatpush1.bf16.msra.mxu0 %v5579_v39  ;;  %5501 = vmatprep.mubr.bf16.mxu0 %v9518_v61 }
 0x28b   :  { %6679 = vmatprep.subr.msk.bf16.mxu0 %vm80_vm1, %v5571_v53 }
 0x28c   :  { %6632 = vmatmul.mubr.msk.bf16.vlgmr.msra.gmra.mrb[8].mxu1 %vm73_vm3, %v8932_v63  ;;  %v5799_v63 = vpop.permute.xlu0 %5798 }
 0x28d   :  { %5164 = vmatpush1.bf16.msra.mxu1 %v5099_v36  ;;  %4962 = vmatprep.mubr.bf16.mxu1 %v9518_v61  ;;  %v5810_v33 = vsel %vm5808_vm8, %v5797_v57, %v5799_v63 }
 0x28e   :  { %6661 = vmatprep.subr.msk.bf16.mxu1 %vm80_vm1, %v5326_v43  ;;  %v9267_v54 = vpop.permute.xlu1 %6033 }
 0x290   :  { %v5803_v21 = vpop.permute.xlu0 %5802 }
 0x291   :  { %6666 = vmatmul.mubr.msk.bf16.gmra.mrb[8].mxu0 %vm73_vm3, %v9116_v37  ;;  %v5812_v27 = vsel %vm5808_vm8, %v5801_v50, %v5803_v21  ;;  %v5813_v31 = vsel %vm5808_vm8, %v5803_v21, %v5805_v19 }
 0x292   :  { %5628 = vmatprep.mubr.bf16.mxu0 %v9518_v61  ;;  %v5834_v10 = vsel %vm80_vm1, %v5813_v31, 0 }
 0x294   :  { %6633 = vmatmul.mubr.msk.bf16.gmra.mrb[12].mxu1 %vm73_vm3, %v8950_v56  ;;  %v5342_v56 = vsel %vm80_vm1, %v8789_v9, 0  ;;  %v5809_v9 = vsel %vm5808_vm8, %v5795_v24, %v5797_v57  ;;  %v5807_v22 = vpop.permute.xlu0 %5806 }
 0x295   :  { %5195 = vmatprep.mubr.bf16.mxu1 %v9518_v61  ;;  %v5814_v13 = vsel %vm5808_vm8, %v5805_v19, %v5807_v22 }
 0x298   :  { %v9257_v35 = vpop.permute.xlu0 %6028 }
 0x299   :  { %6674 = vmatmul.mubr.msk.bf16.vlgmr.msra.gmra.mrb[0].mxu0 %vm73_vm3, %v7350_v12 }
 0x29a   :  { %5703 = vmatpush1.bf16.msra.mxu0 %v5591_v52  ;;  %5638 = vmatprep.mubr.bf16.mxu0 %v9518_v61 }
 0x29b   :  { %6688 = vmatprep.subr.msk.bf16.mxu0 %vm80_vm1, %v5810_v33 }
 0x29c   :  { %6647 = vmatmul.mubr.msk.bf16.vlgmr.msra.gmra.mrb[8].mxu1 %vm73_vm3, %v8998_v58  ;;  %v5822_v58 = vsel %vm80_vm1, %v5809_v9, 0  ;;  %v9286_v22 = vpop.permute.xlu0 %6043 }
 0x29d   :  { %5407 = vmatpush1.bf16.msra.mxu1 %v5342_v56  ;;  %5205 = vmatprep.mubr.bf16.mxu1 %v9518_v61 }
 0x29e   :  { %6676 = vmatprep.subr.msk.bf16.mxu1 %vm80_vm1, %v5569_v48 }
 0x2a1   :  { %6675 = vmatmul.mubr.msk.bf16.gmra.mrb[12].mxu0 %vm73_vm3, %v7351_v11 }
 0x2a2   :  { %5734 = vmatprep.mubr.bf16.mxu0 %v9518_v61 }
 0x2a4   :  { %6648 = vmatmul.mubr.msk.bf16.gmra.mrb[12].mxu1 %vm73_vm3, %v9028_v7  ;;  %v5811_v7 = vsel %vm5808_vm8, %v5799_v63, %v5801_v50 }
 0x2a5   :  { %5438 = vmatprep.mubr.bf16.mxu1 %v9518_v61  ;;  %v5828_v46 = vsel %vm80_vm1, %v5811_v7, 0 }
 0x2a9   :  { %6680 = vmatmul.mubr.msk.bf16.vlgmr.msra.gmra.mrb[4].mxu0 %vm73_vm3, %v7350_v12 }
 0x2aa   :  { %5840 = vmatpush1.bf16.msra.mxu0 %v5822_v58  ;;  %5744 = vmatprep.mubr.bf16.mxu0 %v9518_v61 }
 0x2ab   :  { %6694 = vmatprep.subr.msk.bf16.mxu0 %vm80_vm1, %v5814_v13 }
 0x2ac   :  { %6662 = vmatmul.mubr.msk.bf16.vlgmr.msra.gmra.mrb[8].mxu1 %vm73_vm3, %v9085_v29 }
 0x2ad   :  { %5650 = vmatpush1.bf16.msra.mxu1 %v5585_v4  ;;  %5448 = vmatprep.mubr.bf16.mxu1 %v9518_v61 }
 0x2ae   :  { %6691 = vmatprep.subr.msk.bf16.mxu1 %vm80_vm1, %v5812_v27  ;;  %vm6156_vm1 = vcmask 261120  }
 0x2af   :  { %6157 = vst.msk [vmem:[%s9472_s4 + $0x30] sm:$0xff] %vm6156_vm1, %v7385_v42  ;;  %6164 = vst.msk [vmem:[%s9472_s4 + $0x68] sm:$0xff] %vm6156_vm1, %v7385_v42 }
 0x2b0   :  { %6171 = vst.msk [vmem:[%s9472_s4 + $0xa0] sm:$0xff] %vm6156_vm1, %v7385_v42  ;;  %6178 = vst.msk [vmem:[%s9472_s4 + $0xd8] sm:$0xff] %vm6156_vm1, %v7385_v42 }
 0x2b1   :  { %6681 = vmatmul.mubr.msk.bf16.gmra.mrb[8].mxu0 %vm73_vm3, %v7351_v11 }
 0x2b2   :  { %5871 = vmatprep.mubr.bf16.mxu0 %v9518_v61 }
 0x2b4   :  { %6663 = vmatmul.mubr.msk.bf16.gmra.mrb[12].mxu1 %vm73_vm3, %v9116_v37 }
 0x2b5   :  { %5681 = vmatprep.mubr.bf16.mxu1 %v9518_v61 }
 0x2b9   :  { %6689 = vmatmul.mubr.msk.bf16.vlgmr.msra.gmra.mrb[0].mxu0 %vm73_vm3, %v7352_v59 }
 0x2ba   :  { %5881 = vmatprep.mubr.bf16.mxu0 %v9518_v61  ;;  %5946 = vmatpush1.bf16.msra.mxu0 %v5834_v10 }
 0x2bc   :  { %6677 = vmatmul.mubr.msk.bf16.vlgmr.msra.gmra.mrb[8].mxu1 %vm73_vm3, %v7350_v12  ;;  %v9277_v12 = vpop.permute.xlu1 %6038 }
 0x2bd   :  { %5893 = vmatpush1.bf16.msra.mxu1 %v5828_v46  ;;  %5691 = vmatprep.mubr.bf16.mxu1 %v9518_v61 }
 0x2c1   :  { %6690 = vmatmul.mubr.msk.bf16.gmra.mrb[12].mxu0 %vm73_vm3, %v7353_v49 }
 0x2c2   :  { %5977 = vmatprep.mubr.bf16.mxu0 %v9518_v61 }
 0x2c4   :  { %6678 = vmatmul.mubr.msk.bf16.gmra.mrb[12].mxu1 %vm73_vm3, %v7351_v11 }
 0x2c5   :  { %5924 = vmatprep.mubr.bf16.mxu1 %v9518_v61 }
 0x2c9   :  { %6695 = vmatmul.mubr.msk.bf16.vlgmr.msra.gmra.mrb[4].mxu0 %vm73_vm3, %v7352_v59 }
 0x2ca   :  { %5987 = vmatprep.mubr.bf16.mxu0 %v9518_v61 }
 0x2cc   :  { %6692 = vmatmul.mubr.msk.bf16.vlgmr.msra.gmra.mrb[8].mxu1 %vm73_vm3, %v7352_v59 }
 0x2cd   :  { %5934 = vmatprep.mubr.bf16.mxu1 %v9518_v61  ;;  %v6096_v61 = vlaneseq }
 0x2cf   :  { %v9254_v45 = vshrl.u32 %v6096_v61, 7 }
 0x2d1   :  { %6696 = vmatmul.mubr.msk.bf16.gmra.mrb[8].mxu0 %vm73_vm3, %v7353_v49  ;;  %v6098_v25 = vsub.s32 0, %v9254_v45  ;;  %v6102_v29 = vsub.s32 1, %v9254_v45  ;;  %v6106_v27 = vsub.s32 2, %v9254_v45  ;;  %v6110_v46 = vsub.s32 3, %v9254_v45 }
 0x2d3   :  { %v6099_v20 = vrot.slane %v9262_v26, %v6098_v25  ;;  %v6103_v36 = vrot.slane %v9262_v26, %v6102_v29  ;;  %v6118_v25 = vsub.s32 5, %v9254_v45 }
 0x2d4   :  { %6693 = vmatmul.mubr.msk.bf16.gmra.mrb[12].mxu1 %vm73_vm3, %v7353_v49  ;;  %v6114_v49 = vsub.s32 4, %v9254_v45  ;;  %v9312_v45 = vrot.slane %v9262_v26, %v6110_v46  ;;  %vm6296_vm3 = vcmask 1047888  }
 0x38c   :  { %v5873_v38 = vpop.f32.mrb[0].mxu0 }
 0x38d   :  { %v6699_v60 = vadd.f32 %v5873_v38, %v8965_v15  ;;  %v5875_v18 = vpop.f32.mrb[1].mxu0 }
 0x38e   :  { %v6700_v47 = vadd.f32 %v5875_v18, %v8967_v1  ;;  %v5877_v17 = vpop.f32.mrb[2].mxu0 }
 0x38f   :  { %v6701_v37 = vadd.f32 %v5877_v17, %v8974_v5  ;;  %v5879_v14 = vpop.f32.mrb[3].mxu0  ;;  %v6046_v2 = vadd.f32 %v6699_v60, %v9257_v35 }
 0x390   :  { %v6702_v39 = vadd.f32 %v5879_v14, %v8976_v51  ;;  %v6047_v53 = vadd.f32 %v6700_v47, %v9257_v35 }
 0x391   :  { %v6070_v15 = vmax.f32 %v6046_v2, 0.0  ;;  %v6052_v43 = vadd.f32 %v6701_v37, %v9267_v54 }
 0x392   :  { %v6071_v1 = vmax.f32 %v6047_v53, 0.0  ;;  %v6053_v24 = vadd.f32 %v6702_v39, %v9267_v54 }
 0x393   :  { %v6126_v57 = vmul.f32 %v6099_v20, %v6070_v15  ;;  %v6076_v41 = vmax.f32 %v6052_v43, 0.0 }
 0x394   :  { %v5883_v5 = vpop.f32.mrb[12].mxu0  ;;  %v6127_v63 = vmul.f32 %v6103_v36, %v6071_v1  ;;  %v6077_v52 = vmax.f32 %v6053_v24, 0.0 }
 0x395   :  { %v6703_v33 = vadd.f32 %v5883_v5, %v9091_v44  ;;  %v5885_v51 = vpop.f32.mrb[13].mxu0  ;;  %6203 = vrot.lane.b32.xlu1 %v6126_v57, %s7386_s3  ;;  %v6132_v21 = vmul.f32 %v6099_v20, %v6076_v41 }
 0x396   :  { %v6704_v55 = vadd.f32 %v5885_v51, %v9093_v0  ;;  %v5887_v48 = vpop.f32.mrb[14].mxu0  ;;  %6205 = vrot.lane.b32.xlu0 %v6127_v63, %s7386_s3  ;;  %v6133_v44 = vmul.f32 %v6103_v36, %v6077_v52 }
 0x397   :  { %v6705_v56 = vadd.f32 %v5887_v48, %v9100_v62  ;;  %v5889_v11 = vpop.f32.mrb[15].mxu0  ;;  %v6058_v9 = vadd.f32 %v6703_v33, %v9277_v12 }
 0x398   :  { %v6706_v19 = vadd.f32 %v5889_v11, %v9102_v6  ;;  %v6059_v58 = vadd.f32 %v6704_v55, %v9277_v12 }
 0x399   :  { %6215 = vrot.lane.b32.xlu1 %v6132_v21, %s7386_s3  ;;  %v6082_v13 = vmax.f32 %v6058_v9, 0.0  ;;  %v6064_v0 = vadd.f32 %v6705_v56, %v9286_v22 }
 0x39a   :  { %6217 = vrot.lane.b32.xlu0 %v6133_v44, %s7386_s3  ;;  %v6083_v8 = vmax.f32 %v6059_v58, 0.0  ;;  %v6065_v62 = vadd.f32 %v6706_v19, %v9286_v22 }
 0x39b   :  { %v6138_v50 = vmul.f32 %v6099_v20, %v6082_v13  ;;  %v6088_v4 = vmax.f32 %v6064_v0, 0.0 }
 0x39c   :  { %v5979_v6 = vpop.f32.mrb[4].mxu0  ;;  %v6139_v31 = vmul.f32 %v6103_v36, %v6083_v8  ;;  %v6089_v59 = vmax.f32 %v6065_v62, 0.0 }
 0x39d   :  { %v6707_v10 = vadd.f32 %v5979_v6, %v9045_v16  ;;  %v5981_v7 = vpop.f32.mrb[5].mxu0  ;;  %6227 = vrot.lane.b32.xlu1 %v6138_v50, %s7386_s3  ;;  %v9303_v16 = vrot.slane %v9262_v26, %v6106_v27  ;;  %v6144_v18 = vmul.f32 %v6099_v20, %v6088_v4 }
 0x39e   :  { %v6708_v42 = vadd.f32 %v5981_v7, %v9047_v40  ;;  %v5983_v61 = vpop.f32.mrb[6].mxu0  ;;  %6229 = vrot.lane.b32.xlu0 %v6139_v31, %s7386_s3  ;;  %v6145_v14 = vmul.f32 %v6103_v36, %v6089_v59  ;;  %v9319_v36 = vrot.slane %v9262_v26, %v6118_v25 }
 0x39f   :  { %v6709_v38 = vadd.f32 %v5983_v61, %v9053_v23  ;;  %v5985_v29 = vpop.f32.mrb[7].mxu0  ;;  %v5926_v60 = vpop.f32.mrb[8].mxu1  ;;  %v6050_v47 = vadd.f32 %v6707_v10, %v9257_v35 }
 0x3a0   :  { %v6710_v17 = vadd.f32 %v5985_v29, %v9055_v3  ;;  %v6048_v37 = vadd.f32 %v9257_v35, %v5926_v60  ;;  %v5928_v40 = vpop.f32.mrb[9].mxu1  ;;  %v6051_v2 = vadd.f32 %v6708_v42, %v9257_v35  ;;  %v9316_v3 = vrot.slane %v9262_v26, %v6114_v49 }
 0x3a1   :  { %6239 = vrot.lane.b32.xlu1 %v6144_v18, %s7386_s3  ;;  %v6049_v23 = vadd.f32 %v9257_v35, %v5928_v40  ;;  %v5930_v39 = vpop.f32.mrb[10].mxu1  ;;  %v6074_v43 = vmax.f32 %v6050_v47, 0.0  ;;  %v6056_v11 = vadd.f32 %v6709_v38, %v9267_v54 }
 0x3a2   :  { %v6072_v53 = vmax.f32 %v6048_v37, 0.0  ;;  %6241 = vrot.lane.b32.xlu0 %v6145_v14, %s7386_s3  ;;  %v5932_v20 = vpop.f32.mrb[11].mxu1  ;;  %v6054_v35 = vadd.f32 %v9267_v54, %v5930_v39  ;;  %v6075_v57 = vmax.f32 %v6051_v2, 0.0 }
 0x3a3   :  { %v6073_v15 = vmax.f32 %v6049_v23, 0.0  ;;  %v6055_v5 = vadd.f32 %v9267_v54, %v5932_v20  ;;  %v6130_v56 = vmul.f32 %v9316_v3, %v6074_v43  ;;  %v6080_v13 = vmax.f32 %v6056_v11, 0.0 }
 0x3a4   :  { %v6128_v1 = vmul.f32 %v9303_v16, %v6072_v53  ;;  %v5989_v24 = vpop.f32.mrb[8].mxu0  ;;  %v6078_v21 = vmax.f32 %v6054_v35, 0.0  ;;  %v6131_v19 = vmul.f32 %v9319_v36, %v6075_v57 }
 0x3a5   :  { %v6129_v41 = vmul.f32 %v9312_v45, %v6073_v15  ;;  %v6711_v63 = vadd.f32 %v5989_v24, %v9066_v28  ;;  %v5991_v52 = vpop.f32.mrb[9].mxu0  ;;  %v6079_v44 = vmax.f32 %v6055_v5, 0.0 }
 0x3a6   :  { %v6712_v33 = vadd.f32 %v5991_v52, %v9068_v32  ;;  %v5993_v51 = vpop.f32.mrb[10].mxu0  ;;  %6207 = vrot.lane.b32.xlu1 %v6128_v1, %s7386_s3  ;;  %v6057_v32 = vadd.f32 %v6710_v17, %v9267_v54  ;;  %v6134_v0 = vmul.f32 %v9303_v16, %v6078_v21  ;;  %v6136_v54 = vmul.f32 %v9316_v3, %v6080_v13 }
 0x3a7   :  { %v6713_v26 = vadd.f32 %v5993_v51, %v9072_v34  ;;  %v5995_v55 = vpop.f32.mrb[11].mxu0  ;;  %6209 = vrot.lane.b32.xlu0 %v6129_v41, %s7386_s3  ;;  %v5936_v48 = vpop.f32.mrb[12].mxu1  ;;  %v6062_v27 = vadd.f32 %v6711_v63, %v9277_v12 }
 0x3a8   :  { %v6714_v9 = vadd.f32 %v5995_v55, %v9074_v30  ;;  %v5938_v28 = vpop.f32.mrb[13].mxu1  ;;  %v6060_v8 = vadd.f32 %v9277_v12, %v5936_v48  ;;  %v6081_v62 = vmax.f32 %v6057_v32, 0.0  ;;  %v6135_v30 = vmul.f32 %v9312_v45, %v6079_v44 }
 0x3a9   :  { %v5940_v58 = vpop.f32.mrb[14].mxu1  ;;  %v6061_v50 = vadd.f32 %v9277_v12, %v5938_v28  ;;  %v6063_v31 = vadd.f32 %v6712_v33, %v9277_v12  ;;  %v6086_v10 = vmax.f32 %v6062_v27, 0.0  ;;  %v6068_v25 = vadd.f32 %v6713_v26, %v9286_v22 }
 0x3aa   :  { %6211 = vrot.lane.b32.xlu1 %v6130_v56, %s7386_s3  ;;  %v5942_v34 = vpop.f32.mrb[15].mxu1  ;;  %v6084_v4 = vmax.f32 %v6060_v8, 0.0  ;;  %v6137_v6 = vmul.f32 %v9319_v36, %v6081_v62  ;;  %v6066_v46 = vadd.f32 %v9286_v22, %v5940_v58  ;;  %v6069_v60 = vadd.f32 %v6714_v9, %v9286_v22 }
 0x3ab   :  { %6213 = vrot.lane.b32.xlu0 %v6131_v19, %s7386_s3  ;;  %v6085_v59 = vmax.f32 %v6061_v50, 0.0  ;;  %v6087_v49 = vmax.f32 %v6063_v31, 0.0  ;;  %v6067_v61 = vadd.f32 %v9286_v22, %v5942_v34  ;;  %v6142_v12 = vmul.f32 %v9316_v3, %v6086_v10 }
 0x3ac   :  { %v6140_v7 = vmul.f32 %v9303_v16, %v6084_v4  ;;  %v6090_v38 = vmax.f32 %v6066_v46, 0.0  ;;  %v6092_v47 = vmax.f32 %v6068_v25, 0.0  ;;  %v6093_v37 = vmax.f32 %v6069_v60, 0.0 }
 0x3ad   :  { %v6141_v42 = vmul.f32 %v9312_v45, %v6085_v59  ;;  %v6143_v29 = vmul.f32 %v9319_v36, %v6087_v49  ;;  %v6091_v18 = vmax.f32 %v6067_v61, 0.0 }
 0x3ae   :  { %6219 = vrot.lane.b32.xlu1 %v6134_v0, %s7386_s3  ;;  %v6146_v17 = vmul.f32 %v9303_v16, %v6090_v38  ;;  %v6148_v14 = vmul.f32 %v9316_v3, %v6092_v47  ;;  %v6149_v2 = vmul.f32 %v9319_v36, %v6093_v37 }
 0x3af   :  { %6221 = vrot.lane.b32.xlu0 %v6135_v30, %s7386_s3  ;;  %v6147_v40 = vmul.f32 %v9312_v45, %v6091_v18 }
 0x3b2   :  { %6223 = vrot.lane.b32.xlu1 %v6136_v54, %s7386_s3 }
 0x3b3   :  { %6225 = vrot.lane.b32.xlu0 %v6137_v6, %s7386_s3 }
 0x3b6   :  { %6231 = vrot.lane.b32.xlu1 %v6140_v7, %s7386_s3 }
 0x3b7   :  { %6233 = vrot.lane.b32.xlu0 %v6141_v42, %s7386_s3 }
 0x3ba   :  { %6235 = vrot.lane.b32.xlu1 %v6142_v12, %s7386_s3 }
 0x3bb   :  { %6237 = vrot.lane.b32.xlu0 %v6143_v29, %s7386_s3 }
 0x3be   :  { %6243 = vrot.lane.b32.xlu1 %v6146_v17, %s7386_s3 }
 0x3bf   :  { %6245 = vrot.lane.b32.xlu0 %v6147_v40, %s7386_s3 }
 0x3c2   :  { %6247 = vrot.lane.b32.xlu1 %v6148_v14, %s7386_s3 }
 0x3c3   :  { %6249 = vrot.lane.b32.xlu0 %v6149_v2, %s7386_s3 }
 0x407   :  { %v6204_v22 = vpop.permute.xlu1 %6203 }
 0x408   :  { %6297 = vst.msk [vmem:[%s9472_s4] sm:$0xff] %vm6296_vm3, %v6204_v22  ;;  %v6206_v16 = vpop.permute.xlu0 %6205 }
 0x409   :  { %v6252_v23 = vsel %vm6251_vm10, %v6204_v22, %v6206_v16 }
 0x40a   :  { %6298 = vst [vmem:[%s9472_s4 + $0x8] sm:$0xff] %v6252_v23 }
 0x40b   :  { %v6216_v45 = vpop.permute.xlu1 %6215 }
 0x40c   :  { %6304 = vst.msk [vmem:[%s9472_s4 + $0x38] sm:$0xff] %vm6296_vm3, %v6216_v45  ;;  %v6218_v39 = vpop.permute.xlu0 %6217 }
 0x40d   :  { %v6257_v53 = vsel %vm6251_vm10, %v6216_v45, %v6218_v39 }
 0x40e   :  { %6305 = vst [vmem:[%s9472_s4 + $0x40] sm:$0xff] %v6257_v53 }
 0x40f   :  { %v6228_v20 = vpop.permute.xlu1 %6227 }
 0x410   :  { %6310 = vst.msk [vmem:[%s9472_s4 + $0x70] sm:$0xff] %vm6296_vm3, %v6228_v20  ;;  %v6230_v3 = vpop.permute.xlu0 %6229 }
 0x411   :  { %v6262_v15 = vsel %vm6251_vm10, %v6228_v20, %v6230_v3 }
 0x412   :  { %6311 = vst [vmem:[%s9472_s4 + $0x78] sm:$0xff] %v6262_v15 }
 0x413   :  { %v6240_v43 = vpop.permute.xlu1 %6239 }
 0x414   :  { %6316 = vst.msk [vmem:[%s9472_s4 + $0xa8] sm:$0xff] %vm6296_vm3, %v6240_v43  ;;  %v6242_v36 = vpop.permute.xlu0 %6241 }
 0x415   :  { %v6267_v1 = vsel %vm6251_vm10, %v6240_v43, %v6242_v36 }
 0x416   :  { %6317 = vst [vmem:[%s9472_s4 + $0xb0] sm:$0xff] %v6267_v1 }
 0x418   :  { %v6208_v35 = vpop.permute.xlu1 %6207 }
 0x419   :  { %v6253_v24 = vsel %vm6251_vm10, %v6206_v16, %v6208_v35  ;;  %v6210_v57 = vpop.permute.xlu0 %6209 }
 0x41a   :  { %6299 = vst [vmem:[%s9472_s4 + $0x10] sm:$0xff] %v6253_v24  ;;  %v6254_v41 = vsel %vm6251_vm10, %v6208_v35, %v6210_v57 }
 0x41b   :  { %6300 = vst [vmem:[%s9472_s4 + $0x18] sm:$0xff] %v6254_v41 }
 0x41c   :  { %v6212_v5 = vpop.permute.xlu1 %6211 }
 0x41d   :  { %v6255_v63 = vsel %vm6251_vm10, %v6210_v57, %v6212_v5  ;;  %v6214_v52 = vpop.permute.xlu0 %6213 }
 0x41e   :  { %6301 = vst [vmem:[%s9472_s4 + $0x20] sm:$0xff] %v6255_v63  ;;  %v6256_v33 = vsel %vm6251_vm10, %v6212_v5, %v6214_v52 }
 0x41f   :  { %6303 = vst.msk [vmem:[%s9472_s4 + $0x28] sm:$0xff] %vm6302_vm11, %v6256_v33 }
 0x420   :  { %v6220_v51 = vpop.permute.xlu1 %6219 }
 0x421   :  { %v6258_v26 = vsel %vm6251_vm10, %v6218_v39, %v6220_v51  ;;  %v6222_v55 = vpop.permute.xlu0 %6221 }
 0x422   :  { %6306 = vst [vmem:[%s9472_s4 + $0x48] sm:$0xff] %v6258_v26  ;;  %v6259_v48 = vsel %vm6251_vm10, %v6220_v51, %v6222_v55 }
 0x423   :  { %6307 = vst [vmem:[%s9472_s4 + $0x50] sm:$0xff] %v6259_v48 }
 0x424   :  { %v6224_v56 = vpop.permute.xlu1 %6223 }
 0x425   :  { %v6260_v11 = vsel %vm6251_vm10, %v6222_v55, %v6224_v56  ;;  %v6226_v21 = vpop.permute.xlu0 %6225 }
 0x426   :  { %6308 = vst [vmem:[%s9472_s4 + $0x58] sm:$0xff] %v6260_v11  ;;  %v6261_v9 = vsel %vm6251_vm10, %v6224_v56, %v6226_v21 }
 0x427   :  { %6309 = vst.msk [vmem:[%s9472_s4 + $0x60] sm:$0xff] %vm6302_vm11, %v6261_v9 }
 0x428   :  { %v6232_v28 = vpop.permute.xlu1 %6231 }
 0x429   :  { %v6263_v19 = vsel %vm6251_vm10, %v6230_v3, %v6232_v28  ;;  %v6234_v32 = vpop.permute.xlu0 %6233 }
 0x42a   :  { %6312 = vst [vmem:[%s9472_s4 + $0x80] sm:$0xff] %v6263_v19  ;;  %v6264_v44 = vsel %vm6251_vm10, %v6232_v28, %v6234_v32 }
 0x42b   :  { %6313 = vst [vmem:[%s9472_s4 + $0x88] sm:$0xff] %v6264_v44 }
 0x42c   :  { %v6236_v58 = vpop.permute.xlu1 %6235 }
 0x42d   :  { %v6265_v34 = vsel %vm6251_vm10, %v6234_v32, %v6236_v58  ;;  %v6238_v13 = vpop.permute.xlu0 %6237 }
 0x42e   :  { %6314 = vst [vmem:[%s9472_s4 + $0x90] sm:$0xff] %v6265_v34  ;;  %v6266_v0 = vsel %vm6251_vm10, %v6236_v58, %v6238_v13 }
 0x42f   :  { %6315 = vst.msk [vmem:[%s9472_s4 + $0x98] sm:$0xff] %vm6302_vm11, %v6266_v0 }
 0x430   :  { %v6244_v8 = vpop.permute.xlu1 %6243 }
 0x431   :  { %v6268_v62 = vsel %vm6251_vm10, %v6242_v36, %v6244_v8  ;;  %v6246_v30 = vpop.permute.xlu0 %6245 }
 0x432   :  { %6318 = vst [vmem:[%s9472_s4 + $0xb8] sm:$0xff] %v6268_v62  ;;  %v6269_v50 = vsel %vm6251_vm10, %v6244_v8, %v6246_v30 }
 0x433   :  { %6319 = vst [vmem:[%s9472_s4 + $0xc0] sm:$0xff] %v6269_v50 }
 0x434   :  { %v6248_v54 = vpop.permute.xlu1 %6247 }
 0x435   :  { %v6270_v27 = vsel %vm6251_vm10, %v6246_v30, %v6248_v54  ;;  %v6250_v4 = vpop.permute.xlu0 %6249 }
 0x436   :  { %6320 = vst [vmem:[%s9472_s4 + $0xc8] sm:$0xff] %v6270_v27  ;;  %v6271_v6 = vsel %vm6251_vm10, %v6248_v54, %v6250_v4 }
 0x437   :  { %6321 = vst.msk [vmem:[%s9472_s4 + $0xd0] sm:$0xff] %vm6302_vm11, %v6271_v6 }

// kernel: eblock_forward.5
= control target key start
LH: loop header
LB: loop body
LE: loop exit
PB: predicated region body
PF: predicated region fallthrough
CT: control target
= control target key end

     0   :  { %vm139_vm0 = vcmask 261120   ;;  %s15153_s13 = smov 127   ;;  %v15154_v11 = vmov 0   ;;  %s15155_s23 = smov 126   ;;  %vm116_vm1 = vcmask 1039360   ;;  %vm519_vm2 = vcmask 1031168   ;;  %s19498_s0 = inlined_call_operand.vmem [shape: f32[32,800], index: 0, kind: input, shape index: {}]   ;;  %s19499_s1 = inlined_call_operand.vmem [shape: bf16[25,32,32], index: 1, kind: input, shape index: {}]   ;;  %s19500_s2 = inlined_call_operand.vmem [shape: f32[32,1], index: 2, kind: input, shape index: {}]   ;;  %s19501_s5 = inlined_call_operand.vmem [shape: f32[1,716], index: 5, kind: input, shape index: {}]   ;;  %s19502_s3 = inlined_call_operand.vmem [shape: bf16[25,32,32], index: 3, kind: input, shape index: {}]   ;;  %s19503_s4 = inlined_call_operand.vmem [shape: f32[32,1], index: 4, kind: input, shape index: {}]   ;;  %s19504_s6 = inlined_call_operand.vmem [shape: f32[32,800], index: 6, kind: output, shape index: {}]  }
   0x1   :  { %v26_v0 = vld [vmem:[%s19498_s0 + $0x8] sm:$0xff]  ;;  %v32_v1 = vld [vmem:[%s19498_s0 + $0x40] sm:$0xff]  ;;  %v31_v4 = vld [vmem:[%s19498_s0 + $0x38] sm:$0xff]  ;;  %178 = vmatprep.mubr.bf16.mxu0 %v15154_v11  ;;  %6496 = vst [vmem:[#allocation2] sm:$0xff] %v15154_v11  ;;  %15043 = vset.pattern.permute.xlu0 %v15154_v11  ;;  %s15156_s24 = smov 125   ;;  %s15157_s25 = smov 124  }
   0x2   :  { %v25_v2 = vld [vmem:[%s19498_s0] sm:$0xff]  ;;  %v15224_v3 = vpack.c.bf16 %v32_v1, %v26_v0  ;;  %v27_v5 = vld [vmem:[%s19498_s0 + $0x10] sm:$0xff]  ;;  %v33_v6 = vld [vmem:[%s19498_s0 + $0x48] sm:$0xff]  ;;  %6501 = vst [vmem:[#allocation2 + $0x28] sm:$0xff] %v15154_v11  ;;  %15044 = vset.pattern.permute.xlu1 %v15154_v11  ;;  %6722 = vmatprep.mubr.bf16.mxu1 %v15154_v11  ;;  %s15158_s26 = smov 108   ;;  %s15159_s7 = smov 107  }
   0x3   :  { %v15235_v7 = vpack.c.bf16 %v31_v4, %v25_v2  ;;  %v38_v8 = vld [vmem:[%s19498_s0 + $0x78] sm:$0xff]  ;;  %v44_v9 = vld [vmem:[%s19498_s0 + $0xb0] sm:$0xff]  ;;  %v15245_v10 = vpack.c.bf16 %v33_v6, %v27_v5  ;;  %6503 = vst [vmem:[#allocation2 + $0x38] sm:$0xff] %v15154_v11  ;;  %6508 = vst [vmem:[#allocation2 + $0x60] sm:$0xff] %v15154_v11  ;;  %s15160_s12 = smov 106   ;;  %vm770_vm3 = vcmask 1022976  }
   0x4   :  { %94 = vrot.lane.b32.xlu0 %v15224_v3, %s15153_s13  ;;  %6502 = vst.msk [vmem:[#allocation2 + $0x30] sm:$0xff] %vm139_vm0, %v15154_v11  ;;  %6509 = vst.msk [vmem:[#allocation2 + $0x68] sm:$0xff] %vm139_vm0, %v15154_v11  ;;  %v15258_v12 = vpack.c.bf16 %v44_v9, %v38_v8  ;;  %v39_v13 = vld [vmem:[%s19498_s0 + $0x80] sm:$0xff]  ;;  %v45_v14 = vld [vmem:[%s19498_s0 + $0xb8] sm:$0xff]  ;;  %s15161_s18 = smov 105   ;;  %vm1021_vm4 = vcmask 1014784  }
   0x5   :  { %92 = vrot.lane.b32.xlu1 %v15235_v7, %s15153_s13  ;;  %v37_v15 = vld [vmem:[%s19498_s0 + $0x70] sm:$0xff]  ;;  %v43_v16 = vld [vmem:[%s19498_s0 + $0xa8] sm:$0xff]  ;;  %v15277_v17 = vpack.c.bf16 %v45_v14, %v39_v13  ;;  %v28_v18 = vld [vmem:[%s19498_s0 + $0x18] sm:$0xff]  ;;  %s15162_s27 = smov 104   ;;  %vm1272_vm5 = vcmask 883712   ;;  %s15163_s9 = smov 88  }
   0x6   :  { %v34_v19 = vld [vmem:[%s19498_s0 + $0x50] sm:$0xff]  ;;  %v15287_v20 = vpack.c.bf16 %v43_v16, %v37_v15  ;;  %v29_v21 = vld [vmem:[%s19498_s0 + $0x20] sm:$0xff]  ;;  %v35_v22 = vld [vmem:[%s19498_s0 + $0x58] sm:$0xff]  ;;  %vm1523_vm6 = vcmask 875520   ;;  %s15164_s16 = smov 87   ;;  %vm1774_vm7 = vcmask 867328  }
   0x7   :  { %v40_v23 = vld [vmem:[%s19498_s0 + $0x88] sm:$0xff]  ;;  %v46_v24 = vld [vmem:[%s19498_s0 + $0xc0] sm:$0xff]  ;;  %v15303_v25 = vpack.c.bf16 %v34_v19, %v28_v18  ;;  %v41_v26 = vld [vmem:[%s19498_s0 + $0x90] sm:$0xff]  ;;  %v15313_v28 = vpack.c.bf16 %v35_v22, %v29_v21  ;;  %s15165_s22 = smov 86   ;;  %vm2025_vm8 = vcmask 859136   ;;  %s15166_s10 = smov 85  }
   0x8   :  { %96 = vrot.lane.b32.xlu0 %v15245_v10, %s15153_s13  ;;  %v47_v27 = vld [vmem:[%s19498_s0 + $0xc8] sm:$0xff]  ;;  %v36_v30 = vld [vmem:[%s19498_s0 + $0x60] sm:$0xff]  ;;  %v15323_v31 = vpack.c.bf16 %v46_v24, %v40_v23  ;;  %v42_v32 = vld [vmem:[%s19498_s0 + $0x98] sm:$0xff]  ;;  %vm2276_vm9 = vcmask 850944   ;;  %s19505_s19 = smov 84   ;;  %vm2527_vm10 = vcmask 719872  }
   0x9   :  { %106 = vrot.lane.b32.xlu1 %v15258_v12, %s15153_s13  ;;  %v30_v29 = vld [vmem:[%s19498_s0 + $0x28] sm:$0xff]  ;;  %v48_v33 = vld [vmem:[%s19498_s0 + $0xd0] sm:$0xff]  ;;  %v15333_v34 = vpack.c.bf16 %v47_v27, %v41_v26  ;;  %v15046_v56 = vld [vmem:[%s19499_s1 + $0x18] sm:$0xff]   ;;  %s15168_s15 = smov 68   ;;  %vm2778_vm11 = vcmask 711680   ;;  %s15169_s14 = smov 67  }
   0xa   :  { %v15337_v35 = vpack.c.bf16 %v36_v30, %v30_v29  ;;  %v15341_v36 = vpack.c.bf16 %v48_v33, %v42_v32  ;;  %v15045_v47 = vld [vmem:[%s19499_s1 + $0x10] sm:$0xff]   ;;  %v15047_v61 = vld [vmem:[%s19499_s1] sm:$0xff]   ;;  %v15048_v62 = vld [vmem:[%s19499_s1 + $0x8] sm:$0xff]   ;;  %vm3029_vm12 = vcmask 703488   ;;  %s15170_s29 = smov 66   ;;  %vm3280_vm13 = vcmask 695296  }
   0xb   :  { %v15049_v18 = vld [vmem:[%s19499_s1 + $0x20] sm:$0xff]   ;;  %v15050_v26 = vld [vmem:[%s19499_s1 + $0x28] sm:$0xff]   ;;  %s19526_s17 = smov 65   ;;  %vm19507_vm14 = vcmask 687104   ;;  %s19524_s30 = smov 64   ;;  %vm19508_vm15 = vcmask 556032  }
   0xc   :  { %108 = vrot.lane.b32.xlu0 %v15277_v17, %s15153_s13  ;;  %s19522_s28 = smov 48   ;;  %s19520_s21 = smov 47  }
   0xd   :  { %104 = vrot.lane.b32.xlu1 %v15287_v20, %s15153_s13  ;;  %s19511_s11 = smov 45   ;;  %s19516_s20 = smov 44  }
  0x10   :  { %98 = vrot.lane.b32.xlu0 %v15303_v25, %s15153_s13 }
  0x11   :  { %100 = vrot.lane.b32.xlu1 %v15313_v28, %s15153_s13 }
  0x14   :  { %110 = vrot.lane.b32.xlu0 %v15323_v31, %s15153_s13 }
  0x15   :  { %112 = vrot.lane.b32.xlu1 %v15333_v34, %s15153_s13 }
  0x18   :  { %102 = vrot.lane.b32.xlu0 %v15337_v35, %s15153_s13 }
  0x19   :  { %114 = vrot.lane.b32.xlu1 %v15341_v36, %s15153_s13 }
  0x1c   :  { %497 = vrot.lane.b32.xlu0 %v15224_v3, %s15155_s23 }
  0x1d   :  { %499 = vrot.lane.b32.xlu1 %v15245_v10, %s15155_s23 }
  0x20   :  { %495 = vrot.lane.b32.xlu0 %v15235_v7, %s15155_s23 }
  0x21   :  { %509 = vrot.lane.b32.xlu1 %v15258_v12, %s15155_s23 }
  0x24   :  { %511 = vrot.lane.b32.xlu0 %v15277_v17, %s15155_s23 }
  0x25   :  { %507 = vrot.lane.b32.xlu1 %v15287_v20, %s15155_s23 }
  0x28   :  { %501 = vrot.lane.b32.xlu0 %v15303_v25, %s15155_s23 }
  0x29   :  { %503 = vrot.lane.b32.xlu1 %v15313_v28, %s15155_s23 }
  0x2c   :  { %513 = vrot.lane.b32.xlu0 %v15323_v31, %s15155_s23 }
  0x2d   :  { %515 = vrot.lane.b32.xlu1 %v15333_v34, %s15155_s23 }
  0x30   :  { %505 = vrot.lane.b32.xlu0 %v15337_v35, %s15155_s23 }
  0x31   :  { %517 = vrot.lane.b32.xlu1 %v15341_v36, %s15155_s23 }
  0x34   :  { %748 = vrot.lane.b32.xlu0 %v15224_v3, %s15156_s24 }
  0x35   :  { %750 = vrot.lane.b32.xlu1 %v15245_v10, %s15156_s24 }
  0x38   :  { %746 = vrot.lane.b32.xlu0 %v15235_v7, %s15156_s24 }
  0x39   :  { %760 = vrot.lane.b32.xlu1 %v15258_v12, %s15156_s24 }
  0x3c   :  { %762 = vrot.lane.b32.xlu0 %v15277_v17, %s15156_s24 }
  0x3d   :  { %758 = vrot.lane.b32.xlu1 %v15287_v20, %s15156_s24 }
  0x40   :  { %752 = vrot.lane.b32.xlu0 %v15303_v25, %s15156_s24 }
  0x41   :  { %754 = vrot.lane.b32.xlu1 %v15313_v28, %s15156_s24 }
  0x44   :  { %764 = vrot.lane.b32.xlu0 %v15323_v31, %s15156_s24 }
  0x45   :  { %766 = vrot.lane.b32.xlu1 %v15333_v34, %s15156_s24 }
  0x48   :  { %756 = vrot.lane.b32.xlu0 %v15337_v35, %s15156_s24 }
  0x49   :  { %768 = vrot.lane.b32.xlu1 %v15341_v36, %s15156_s24 }
  0x4c   :  { %999 = vrot.lane.b32.xlu0 %v15224_v3, %s15157_s25 }
  0x4d   :  { %1001 = vrot.lane.b32.xlu1 %v15245_v10, %s15157_s25 }
  0x50   :  { %997 = vrot.lane.b32.xlu0 %v15235_v7, %s15157_s25 }
  0x51   :  { %1011 = vrot.lane.b32.xlu1 %v15258_v12, %s15157_s25 }
  0x54   :  { %1013 = vrot.lane.b32.xlu0 %v15277_v17, %s15157_s25 }
  0x55   :  { %1009 = vrot.lane.b32.xlu1 %v15287_v20, %s15157_s25 }
  0x58   :  { %1003 = vrot.lane.b32.xlu0 %v15303_v25, %s15157_s25 }
  0x59   :  { %1005 = vrot.lane.b32.xlu1 %v15313_v28, %s15157_s25 }
  0x5c   :  { %1015 = vrot.lane.b32.xlu0 %v15323_v31, %s15157_s25 }
  0x5d   :  { %1017 = vrot.lane.b32.xlu1 %v15333_v34, %s15157_s25 }
  0x60   :  { %1007 = vrot.lane.b32.xlu0 %v15337_v35, %s15157_s25 }
  0x61   :  { %1019 = vrot.lane.b32.xlu1 %v15341_v36, %s15157_s25 }
  0x64   :  { %1250 = vrot.lane.b32.xlu0 %v15224_v3, %s15158_s26 }
  0x65   :  { %1252 = vrot.lane.b32.xlu1 %v15245_v10, %s15158_s26 }
  0x68   :  { %1248 = vrot.lane.b32.xlu0 %v15235_v7, %s15158_s26 }
  0x69   :  { %1262 = vrot.lane.b32.xlu1 %v15258_v12, %s15158_s26 }
  0x6c   :  { %1264 = vrot.lane.b32.xlu0 %v15277_v17, %s15158_s26 }
  0x6d   :  { %1260 = vrot.lane.b32.xlu1 %v15287_v20, %s15158_s26 }
  0x70   :  { %1254 = vrot.lane.b32.xlu0 %v15303_v25, %s15158_s26 }
  0x71   :  { %1256 = vrot.lane.b32.xlu1 %v15313_v28, %s15158_s26 }
  0x74   :  { %1266 = vrot.lane.b32.xlu0 %v15323_v31, %s15158_s26 }
  0x75   :  { %1268 = vrot.lane.b32.xlu1 %v15333_v34, %s15158_s26 }
  0x76   :  { %v95_v37 = vpop.permute.xlu0 %94 }
  0x77   :  { %v93_v38 = vpop.permute.xlu1 %92 }
  0x78   :  { %1258 = vrot.lane.b32.xlu0 %v15337_v35, %s15158_s26  ;;  %v117_v42 = vsel %vm116_vm1, %v93_v38, %v95_v37 }
  0x79   :  { %1270 = vrot.lane.b32.xlu1 %v15341_v36, %s15158_s26 }
  0x7a   :  { %v97_v39 = vpop.permute.xlu0 %96 }
  0x7b   :  { %v107_v40 = vpop.permute.xlu1 %106  ;;  %v118_v41 = vsel %vm116_vm1, %v95_v37, %v97_v39 }
  0x7c   :  { %146 = vmatprep.subr.bf16.mxu0 %v118_v41  ;;  %1501 = vrot.lane.b32.xlu0 %v15224_v3, %s15159_s7 }
  0x7d   :  { %147 = vmatpush1.bf16.msra.mxu0 %v117_v42  ;;  %1503 = vrot.lane.b32.xlu1 %v15245_v10, %s15159_s7 }
  0x7e   :  { %v109_v43 = vpop.permute.xlu0 %108 }
  0x7f   :  { %v105_v44 = vpop.permute.xlu1 %104  ;;  %v123_v45 = vsel %vm116_vm1, %v107_v40, %v109_v43 }
  0x80   :  { %148 = vmatprep.subr.bf16.mxu0 %v123_v45  ;;  %v122_v46 = vsel %vm116_vm1, %v105_v44, %v107_v40  ;;  %1499 = vrot.lane.b32.xlu0 %v15235_v7, %s15159_s7 }
  0x81   :  { %149 = vmatpush1.bf16.msra.mxu0 %v122_v46  ;;  %1513 = vrot.lane.b32.xlu1 %v15258_v12, %s15159_s7 }
  0x82   :  { %v99_v48 = vpop.permute.xlu0 %98 }
  0x83   :  { %v101_v49 = vpop.permute.xlu1 %100  ;;  %v119_v50 = vsel %vm116_vm1, %v97_v39, %v99_v48 }
  0x84   :  { %13278 = vmatmul.mubr.msk.bf16.vlgmr.msra.gmra.mrb[0].mxu0 %vm139_vm0, %v15045_v47  ;;  %v120_v51 = vsel %vm116_vm1, %v99_v48, %v101_v49  ;;  %1515 = vrot.lane.b32.xlu0 %v15277_v17, %s15159_s7 }
  0x85   :  { %199 = vmatprep.subr.bf16.mxu0 %v120_v51  ;;  %188 = vmatprep.mubr.bf16.mxu0 %v15154_v11 }
  0x86   :  { %200 = vmatpush1.bf16.msra.mxu0 %v119_v50  ;;  %v111_v52 = vpop.permute.xlu0 %110  ;;  %1511 = vrot.lane.b32.xlu1 %v15287_v20, %s15159_s7 }
  0x87   :  { %v113_v53 = vpop.permute.xlu1 %112  ;;  %v124_v54 = vsel %vm116_vm1, %v109_v43, %v111_v52 }
  0x88   :  { %v125_v55 = vsel %vm116_vm1, %v111_v52, %v113_v53  ;;  %1505 = vrot.lane.b32.xlu0 %v15303_v25, %s15159_s7 }
  0x89   :  { %201 = vmatprep.subr.bf16.mxu0 %v125_v55  ;;  %v15052_v55 = vld [vmem:[%s19499_s1 + $0x38] sm:$0xff]  }
  0x8a   :  { %202 = vmatpush1.bf16.msra.mxu0 %v124_v54  ;;  %v103_v57 = vpop.permute.xlu0 %102  ;;  %1507 = vrot.lane.b32.xlu1 %v15313_v28, %s15159_s7 }
  0x8b   :  { %252 = vmatprep.subr.bf16.mxu0 %v103_v57  ;;  %v121_v58 = vsel %vm116_vm1, %v101_v49, %v103_v57  ;;  %v115_v59 = vpop.permute.xlu1 %114  ;;  %v15051_v49 = vld [vmem:[%s19499_s1 + $0x30] sm:$0xff]  }
  0x8c   :  { %13279 = vmatmul.mubr.msk.bf16.gmra.mrb[4].mxu0 %vm139_vm0, %v15046_v56  ;;  %v126_v60 = vsel %vm116_vm1, %v113_v53, %v115_v59  ;;  %1517 = vrot.lane.b32.xlu0 %v15323_v31, %s15159_s7 }
  0x8d   :  { %231 = vmatprep.mubr.bf16.mxu0 %v15154_v11 }
  0x8e   :  { %1519 = vrot.lane.b32.xlu1 %v15333_v34, %s15159_s7  ;;  %v498_v63 = vpop.permute.xlu0 %497 }
  0x8f   :  { %v500_v0 = vpop.permute.xlu1 %499 }
  0x90   :  { %1509 = vrot.lane.b32.xlu0 %v15337_v35, %s15159_s7  ;;  %v521_v1 = vsel %vm519_vm2, %v498_v63, %v500_v0 }
  0x92   :  { %1521 = vrot.lane.b32.xlu1 %v15341_v36, %s15159_s7  ;;  %v496_v2 = vpop.permute.xlu0 %495 }
  0x93   :  { %v510_v4 = vpop.permute.xlu1 %509  ;;  %v520_v8 = vsel %vm519_vm2, %v496_v2, %v498_v63 }
  0x94   :  { %13280 = vmatmul.mubr.msk.bf16.vlgmr.msra.gmra.mrb[8].mxu0 %vm139_vm0, %v15045_v47  ;;  %1752 = vrot.lane.b32.xlu0 %v15224_v3, %s15160_s12 }
  0x95   :  { %253 = vmatpush1.bf16.msra.mxu0 %v121_v58  ;;  %241 = vmatprep.mubr.bf16.mxu0 %v15154_v11 }
  0x96   :  { %254 = vmatprep.subr.bf16.mxu0 %v115_v59  ;;  %1754 = vrot.lane.b32.xlu1 %v15245_v10, %s15160_s12  ;;  %v512_v5 = vpop.permute.xlu0 %511 }
  0x97   :  { %v508_v6 = vpop.permute.xlu1 %507  ;;  %v526_v9 = vsel %vm519_vm2, %v510_v4, %v512_v5 }
  0x98   :  { %1750 = vrot.lane.b32.xlu0 %v15235_v7, %s15160_s12  ;;  %v525_v15 = vsel %vm519_vm2, %v508_v6, %v510_v4 }
  0x99   :  { %255 = vmatpush1.bf16.msra.mxu0 %v126_v60 }
  0x9a   :  { %321 = vmatprep.subr.bf16.mxu0 %v15224_v3  ;;  %1764 = vrot.lane.b32.xlu1 %v15258_v12, %s15160_s12  ;;  %v502_v14 = vpop.permute.xlu0 %501 }
  0x9b   :  { %v504_v13 = vpop.permute.xlu1 %503  ;;  %v522_v23 = vsel %vm519_vm2, %v500_v0, %v502_v14 }
  0x9c   :  { %13281 = vmatmul.mubr.msk.bf16.gmra.mrb[12].mxu0 %vm139_vm0, %v15046_v56  ;;  %1766 = vrot.lane.b32.xlu0 %v15277_v17, %s15160_s12  ;;  %v523_v16 = vsel %vm519_vm2, %v502_v14, %v504_v13  ;;  %v15053_v14 = vld [vmem:[%s19499_s1 + $0x40] sm:$0xff]  }
  0x9d   :  { %284 = vmatprep.mubr.bf16.mxu0 %v15154_v11 }
  0x9e   :  { %1762 = vrot.lane.b32.xlu1 %v15287_v20, %s15160_s12  ;;  %v514_v21 = vpop.permute.xlu0 %513 }
  0x9f   :  { %v516_v19 = vpop.permute.xlu1 %515  ;;  %v527_v24 = vsel %vm519_vm2, %v512_v5, %v514_v21 }
  0xa0   :  { %1756 = vrot.lane.b32.xlu0 %v15303_v25, %s15160_s12  ;;  %v528_v22 = vsel %vm519_vm2, %v514_v21, %v516_v19 }
  0xa2   :  { %1758 = vrot.lane.b32.xlu1 %v15313_v28, %s15160_s12  ;;  %v506_v27 = vpop.permute.xlu0 %505 }
  0xa3   :  { %v518_v29 = vpop.permute.xlu1 %517  ;;  %v524_v30 = vsel %vm519_vm2, %v504_v13, %v506_v27 }
  0xa4   :  { %13282 = vmatmul.mubr.msk.bf16.vlgmr.msra.gmra.mrb[16].mxu0 %vm139_vm0, %v15045_v47  ;;  %1768 = vrot.lane.b32.xlu0 %v15323_v31, %s15160_s12  ;;  %v529_v38 = vsel %vm519_vm2, %v516_v19, %v518_v29 }
  0xa5   :  { %322 = vmatpush1.bf16.msra.mxu0 %v15235_v7  ;;  %294 = vmatprep.mubr.bf16.mxu0 %v15154_v11 }
  0xa6   :  { %323 = vmatprep.subr.bf16.mxu0 %v15258_v12  ;;  %1770 = vrot.lane.b32.xlu1 %v15333_v34, %s15160_s12  ;;  %v749_v32 = vpop.permute.xlu0 %748 }
  0xa7   :  { %v751_v33 = vpop.permute.xlu1 %750 }
  0xa8   :  { %1760 = vrot.lane.b32.xlu0 %v15337_v35, %s15160_s12  ;;  %v772_v37 = vsel %vm770_vm3, %v749_v32, %v751_v33 }
  0xa9   :  { %324 = vmatpush1.bf16.msra.mxu0 %v15287_v20 }
  0xaa   :  { %374 = vmatprep.subr.bf16.mxu0 %v15303_v25  ;;  %1772 = vrot.lane.b32.xlu1 %v15341_v36, %s15160_s12  ;;  %v747_v39 = vpop.permute.xlu0 %746 }
  0xab   :  { %v761_v40 = vpop.permute.xlu1 %760  ;;  %v771_v43 = vsel %vm770_vm3, %v747_v39, %v749_v32 }
  0xac   :  { %13283 = vmatmul.mubr.msk.bf16.gmra.mrb[20].mxu0 %vm139_vm0, %v15046_v56  ;;  %2003 = vrot.lane.b32.xlu0 %v15224_v3, %s15161_s18 }
  0xad   :  { %353 = vmatprep.mubr.bf16.mxu0 %v15154_v11 }
  0xae   :  { %2005 = vrot.lane.b32.xlu1 %v15245_v10, %s15161_s18  ;;  %v763_v41 = vpop.permute.xlu0 %762 }
  0xaf   :  { %v759_v42 = vpop.permute.xlu1 %758  ;;  %v777_v44 = vsel %vm770_vm3, %v761_v40, %v763_v41 }
  0xb0   :  { %2001 = vrot.lane.b32.xlu0 %v15235_v7, %s15161_s18  ;;  %v776_v47 = vsel %vm770_vm3, %v759_v42, %v761_v40 }
  0xb2   :  { %2015 = vrot.lane.b32.xlu1 %v15258_v12, %s15161_s18  ;;  %v753_v46 = vpop.permute.xlu0 %752 }
  0xb3   :  { %v755_v45 = vpop.permute.xlu1 %754  ;;  %v773_v53 = vsel %vm770_vm3, %v751_v33, %v753_v46 }
  0xb4   :  { %13286 = vmatmul.mubr.msk.bf16.vlgmr.msra.gmra.mrb[0].mxu0 %vm139_vm0, %v15047_v61  ;;  %2017 = vrot.lane.b32.xlu0 %v15277_v17, %s15161_s18  ;;  %v774_v48 = vsel %vm770_vm3, %v753_v46, %v755_v45  ;;  %v15055_v46 = vld [vmem:[%s19499_s1 + $0x50] sm:$0xff]  }
  0xb5   :  { %375 = vmatpush1.bf16.msra.mxu0 %v15245_v10  ;;  %363 = vmatprep.mubr.bf16.mxu0 %v15154_v11 }
  0xb6   :  { %376 = vmatprep.subr.bf16.mxu0 %v15323_v31  ;;  %2013 = vrot.lane.b32.xlu1 %v15287_v20, %s15161_s18  ;;  %v765_v51 = vpop.permute.xlu0 %764 }
  0xb7   :  { %v767_v50 = vpop.permute.xlu1 %766  ;;  %v778_v54 = vsel %vm770_vm3, %v763_v41, %v765_v51 }
  0xb8   :  { %2007 = vrot.lane.b32.xlu0 %v15303_v25, %s15161_s18  ;;  %v779_v52 = vsel %vm770_vm3, %v765_v51, %v767_v50 }
  0xb9   :  { %377 = vmatpush1.bf16.msra.mxu0 %v15277_v17 }
  0xba   :  { %427 = vmatprep.subr.bf16.mxu0 %v15337_v35  ;;  %2009 = vrot.lane.b32.xlu1 %v15313_v28, %s15161_s18  ;;  %v757_v56 = vpop.permute.xlu0 %756 }
  0xbb   :  { %v769_v57 = vpop.permute.xlu1 %768  ;;  %v775_v58 = vsel %vm770_vm3, %v755_v45, %v757_v56 }
  0xbc   :  { %13287 = vmatmul.mubr.msk.bf16.gmra.mrb[4].mxu0 %vm139_vm0, %v15048_v62  ;;  %2019 = vrot.lane.b32.xlu0 %v15323_v31, %s15161_s18 }
  0xbd   :  { %406 = vmatprep.mubr.bf16.mxu0 %v15154_v11 }
  0xbe   :  { %2021 = vrot.lane.b32.xlu1 %v15333_v34, %s15161_s18  ;;  %v1000_v59 = vpop.permute.xlu0 %999 }
  0xbf   :  { %v1002_v60 = vpop.permute.xlu1 %1001 }
  0xc0   :  { %2011 = vrot.lane.b32.xlu0 %v15337_v35, %s15161_s18 }
  0xc2   :  { %2023 = vrot.lane.b32.xlu1 %v15341_v36, %s15161_s18  ;;  %v998_v63 = vpop.permute.xlu0 %997 }
  0xc3   :  { %v1012_v0 = vpop.permute.xlu1 %1011  ;;  %v1022_v4 = vsel %vm1021_vm4, %v998_v63, %v1000_v59 }
  0xc4   :  { %13288 = vmatmul.mubr.msk.bf16.vlgmr.msra.gmra.mrb[8].mxu0 %vm139_vm0, %v15047_v61  ;;  %2254 = vrot.lane.b32.xlu0 %v15224_v3, %s15162_s27 }
  0xc5   :  { %428 = vmatpush1.bf16.msra.mxu0 %v15313_v28  ;;  %416 = vmatprep.mubr.bf16.mxu0 %v15154_v11 }
  0xc6   :  { %429 = vmatprep.subr.bf16.mxu0 %v15341_v36  ;;  %2256 = vrot.lane.b32.xlu1 %v15245_v10, %s15162_s27 }
  0xc7   :  { %v1010_v2 = vpop.permute.xlu1 %1009 }
  0xc8   :  { %2252 = vrot.lane.b32.xlu0 %v15235_v7, %s15162_s27 }
  0xc9   :  { %430 = vmatpush1.bf16.msra.mxu0 %v15333_v34 }
  0xca   :  { %548 = vmatprep.subr.bf16.mxu0 %v521_v1  ;;  %2266 = vrot.lane.b32.xlu1 %v15258_v12, %s15162_s27  ;;  %v1014_v1 = vpop.permute.xlu0 %1013 }
  0xcb   :  { %v1028_v5 = vsel %vm1021_vm4, %v1012_v0, %v1014_v1  ;;  %v1006_v6 = vpop.permute.xlu1 %1005 }
  0xcc   :  { %13289 = vmatmul.mubr.msk.bf16.gmra.mrb[12].mxu0 %vm139_vm0, %v15048_v62  ;;  %2268 = vrot.lane.b32.xlu0 %v15277_v17, %s15162_s27 }
  0xcd   :  { %459 = vmatprep.mubr.bf16.mxu0 %v15154_v11 }
  0xce   :  { %2264 = vrot.lane.b32.xlu1 %v15287_v20, %s15162_s27 }
  0xd0   :  { %2258 = vrot.lane.b32.xlu0 %v15303_v25, %s15162_s27 }
  0xd2   :  { %2260 = vrot.lane.b32.xlu1 %v15313_v28, %s15162_s27 }
  0xd4   :  { %13290 = vmatmul.mubr.msk.bf16.vlgmr.msra.gmra.mrb[16].mxu0 %vm139_vm0, %v15047_v61  ;;  %v1023_v61 = vsel %vm1021_vm4, %v1000_v59, %v1002_v60  ;;  %2270 = vrot.lane.b32.xlu0 %v15323_v31, %s15162_s27 }
  0xd5   :  { %549 = vmatpush1.bf16.msra.mxu0 %v520_v8  ;;  %469 = vmatprep.mubr.bf16.mxu0 %v15154_v11  ;;  %v1004_v8 = vpop.permute.xlu0 %1003 }
  0xd6   :  { %550 = vmatprep.subr.bf16.mxu0 %v526_v9  ;;  %v1027_v9 = vsel %vm1021_vm4, %v1010_v2, %v1012_v0  ;;  %v1025_v13 = vsel %vm1021_vm4, %v1004_v8, %v1006_v6  ;;  %2272 = vrot.lane.b32.xlu1 %v15333_v34, %s15162_s27  ;;  %v1024_v19 = vsel %vm1021_vm4, %v1002_v60, %v1004_v8  ;;  %v15057_v8 = vld [vmem:[%s19499_s1 + $0x60] sm:$0xff]  }
  0xd8   :  { %2262 = vrot.lane.b32.xlu0 %v15337_v35, %s15162_s27 }
  0xd9   :  { %551 = vmatpush1.bf16.msra.mxu0 %v525_v15  ;;  %v1018_v15 = vpop.permute.xlu1 %1017 }
  0xda   :  { %601 = vmatprep.subr.bf16.mxu0 %v523_v16  ;;  %2274 = vrot.lane.b32.xlu1 %v15341_v36, %s15162_s27  ;;  %v1016_v16 = vpop.permute.xlu0 %1015 }
  0xdb   :  { %v1029_v21 = vsel %vm1021_vm4, %v1014_v1, %v1016_v16 }
  0xdc   :  { %13291 = vmatmul.mubr.msk.bf16.gmra.mrb[20].mxu0 %vm139_vm0, %v15048_v62  ;;  %v780_v62 = vsel %vm770_vm3, %v767_v50, %v769_v57  ;;  %2505 = vrot.lane.b32.xlu0 %v15224_v3, %s15163_s9 }
  0xdd   :  { %580 = vmatprep.mubr.bf16.mxu0 %v15154_v11 }
  0xde   :  { %2507 = vrot.lane.b32.xlu1 %v15245_v10, %s15163_s9 }
  0xe0   :  { %2503 = vrot.lane.b32.xlu0 %v15235_v7, %s15163_s9 }
  0xe2   :  { %2517 = vrot.lane.b32.xlu1 %v15258_v12, %s15163_s9 }
  0xe4   :  { %13298 = vmatmul.mubr.msk.bf16.vlgmr.msra.gmra.mrb[0].mxu0 %vm139_vm0, %v15049_v18  ;;  %2519 = vrot.lane.b32.xlu0 %v15277_v17, %s15163_s9 }
  0xe5   :  { %602 = vmatpush1.bf16.msra.mxu0 %v522_v23  ;;  %590 = vmatprep.mubr.bf16.mxu0 %v15154_v11  ;;  %v1008_v23 = vpop.permute.xlu0 %1007 }
  0xe6   :  { %603 = vmatprep.subr.bf16.mxu0 %v528_v22  ;;  %v15054_v22 = vld [vmem:[%s19499_s1 + $0x48] sm:$0xff]   ;;  %2515 = vrot.lane.b32.xlu1 %v15287_v20, %s15163_s9 }
  0xe8   :  { %2509 = vrot.lane.b32.xlu0 %v15303_v25, %s15163_s9 }
  0xe9   :  { %604 = vmatpush1.bf16.msra.mxu0 %v527_v24  ;;  %v1020_v24 = vpop.permute.xlu1 %1019 }
  0xea   :  { %654 = vmatprep.subr.bf16.mxu0 %v506_v27  ;;  %v1251_v27 = vpop.permute.xlu0 %1250  ;;  %v1031_v32 = vsel %vm1021_vm4, %v1018_v15, %v1020_v24  ;;  %2511 = vrot.lane.b32.xlu1 %v15313_v28, %s15163_s9 }
  0xec   :  { %13299 = vmatmul.mubr.msk.bf16.gmra.mrb[4].mxu0 %vm139_vm0, %v15050_v26  ;;  %2521 = vrot.lane.b32.xlu0 %v15323_v31, %s15163_s9 }
  0xed   :  { %633 = vmatprep.mubr.bf16.mxu0 %v15154_v11 }
  0xee   :  { %v1249_v33 = vpop.permute.xlu0 %1248  ;;  %2523 = vrot.lane.b32.xlu1 %v15333_v34, %s15163_s9 }
  0xef   :  { %v1273_v40 = vsel %vm1272_vm5, %v1249_v33, %v1251_v27 }
  0xf0   :  { %2513 = vrot.lane.b32.xlu0 %v15337_v35, %s15163_s9 }
  0xf2   :  { %2525 = vrot.lane.b32.xlu1 %v15341_v36, %s15163_s9 }
  0xf4   :  { %13300 = vmatmul.mubr.msk.bf16.vlgmr.msra.gmra.mrb[8].mxu0 %vm139_vm0, %v15049_v18  ;;  %2756 = vrot.lane.b32.xlu0 %v15224_v3, %s15164_s16 }
  0xf5   :  { %655 = vmatpush1.bf16.msra.mxu0 %v524_v30  ;;  %643 = vmatprep.mubr.bf16.mxu0 %v15154_v11 }
  0xf6   :  { %656 = vmatprep.subr.bf16.mxu0 %v518_v29  ;;  %v1253_v29 = vpop.permute.xlu1 %1252  ;;  %2758 = vrot.lane.b32.xlu1 %v15245_v10, %s15164_s16 }
  0xf7   :  { %v1274_v30 = vsel %vm1272_vm5, %v1251_v27, %v1253_v29 }
  0xf8   :  { %2754 = vrot.lane.b32.xlu0 %v15235_v7, %s15164_s16 }
  0xf9   :  { %657 = vmatpush1.bf16.msra.mxu0 %v529_v38  ;;  %v1265_v38 = vpop.permute.xlu0 %1264 }
  0xfa   :  { %799 = vmatprep.subr.bf16.mxu0 %v772_v37  ;;  %v1263_v37 = vpop.permute.xlu1 %1262  ;;  %2768 = vrot.lane.b32.xlu1 %v15258_v12, %s15164_s16 }
  0xfb   :  { %v1279_v41 = vsel %vm1272_vm5, %v1263_v37, %v1265_v38 }
  0xfc   :  { %13301 = vmatmul.mubr.msk.bf16.gmra.mrb[12].mxu0 %vm139_vm0, %v15050_v26  ;;  %2770 = vrot.lane.b32.xlu0 %v15277_v17, %s15164_s16 }
  0xfd   :  { %686 = vmatprep.mubr.bf16.mxu0 %v15154_v11 }
  0xfe   :  { %v1261_v39 = vpop.permute.xlu1 %1260  ;;  %2766 = vrot.lane.b32.xlu1 %v15287_v20, %s15164_s16 }
 0x100   :  { %2760 = vrot.lane.b32.xlu0 %v15303_v25, %s15164_s16 }
 0x102   :  { %v1257_v42 = vpop.permute.xlu1 %1256  ;;  %2762 = vrot.lane.b32.xlu1 %v15313_v28, %s15164_s16 }
 0x104   :  { %13302 = vmatmul.mubr.msk.bf16.vlgmr.msra.gmra.mrb[16].mxu0 %vm139_vm0, %v15049_v18  ;;  %v1030_v18 = vsel %vm1021_vm4, %v1016_v16, %v1018_v15  ;;  %2772 = vrot.lane.b32.xlu0 %v15323_v31, %s15164_s16 }
 0x105   :  { %800 = vmatpush1.bf16.msra.mxu0 %v771_v43  ;;  %696 = vmatprep.mubr.bf16.mxu0 %v15154_v11  ;;  %v1255_v43 = vpop.permute.xlu0 %1254 }
 0x106   :  { %801 = vmatprep.subr.bf16.mxu0 %v777_v44  ;;  %v1278_v44 = vsel %vm1272_vm5, %v1261_v39, %v1263_v37  ;;  %v1276_v45 = vsel %vm1272_vm5, %v1255_v43, %v1257_v42  ;;  %v1275_v50 = vsel %vm1272_vm5, %v1253_v29, %v1255_v43  ;;  %2774 = vrot.lane.b32.xlu1 %v15333_v34, %s15164_s16  ;;  %v15059_v43 = vld [vmem:[%s19499_s1 + $0x70] sm:$0xff]  }
 0x108   :  { %2764 = vrot.lane.b32.xlu0 %v15337_v35, %s15164_s16 }
 0x109   :  { %802 = vmatpush1.bf16.msra.mxu0 %v776_v47  ;;  %v1269_v47 = vpop.permute.xlu1 %1268 }
 0x10a   :  { %852 = vmatprep.subr.bf16.mxu0 %v774_v48  ;;  %v1267_v48 = vpop.permute.xlu0 %1266  ;;  %2776 = vrot.lane.b32.xlu1 %v15341_v36, %s15164_s16 }
 0x10b   :  { %v1280_v51 = vsel %vm1272_vm5, %v1265_v38, %v1267_v48 }
 0x10c   :  { %13303 = vmatmul.mubr.msk.bf16.gmra.mrb[20].mxu0 %vm139_vm0, %v15050_v26  ;;  %v1026_v26 = vsel %vm1021_vm4, %v1006_v6, %v1008_v23  ;;  %3007 = vrot.lane.b32.xlu0 %v15224_v3, %s15165_s22 }
 0x10d   :  { %831 = vmatprep.mubr.bf16.mxu0 %v15154_v11 }
 0x10e   :  { %3009 = vrot.lane.b32.xlu1 %v15245_v10, %s15165_s22 }
 0x110   :  { %3005 = vrot.lane.b32.xlu0 %v15235_v7, %s15165_s22 }
 0x112   :  { %3019 = vrot.lane.b32.xlu1 %v15258_v12, %s15165_s22 }
 0x114   :  { %13310 = vmatmul.mubr.msk.bf16.vlgmr.msra.gmra.mrb[0].mxu0 %vm139_vm0, %v15051_v49  ;;  %3021 = vrot.lane.b32.xlu0 %v15277_v17, %s15165_s22 }
 0x115   :  { %853 = vmatpush1.bf16.msra.mxu0 %v773_v53  ;;  %841 = vmatprep.mubr.bf16.mxu0 %v15154_v11  ;;  %v1259_v53 = vpop.permute.xlu0 %1258 }
 0x116   :  { %854 = vmatprep.subr.bf16.mxu0 %v779_v52  ;;  %v15056_v52 = vld [vmem:[%s19499_s1 + $0x58] sm:$0xff]   ;;  %3017 = vrot.lane.b32.xlu1 %v15287_v20, %s15165_s22 }
 0x118   :  { %3011 = vrot.lane.b32.xlu0 %v15303_v25, %s15165_s22 }
 0x119   :  { %855 = vmatpush1.bf16.msra.mxu0 %v778_v54  ;;  %v15722_v54 = vld [vmem:[#allocation2] sm:$0xff] }
 0x11a   :  { %905 = vmatprep.subr.bf16.mxu0 %v757_v56  ;;  %v1502_v56 = vpop.permute.xlu0 %1501  ;;  %3013 = vrot.lane.b32.xlu1 %v15313_v28, %s15165_s22 }
 0x11c   :  { %13311 = vmatmul.mubr.msk.bf16.gmra.mrb[4].mxu0 %vm139_vm0, %v15052_v55  ;;  %3023 = vrot.lane.b32.xlu0 %v15323_v31, %s15165_s22 }
 0x11d   :  { %884 = vmatprep.mubr.bf16.mxu0 %v15154_v11 }
 0x11e   :  { %v1500_v60 = vpop.permute.xlu0 %1499  ;;  %3025 = vrot.lane.b32.xlu1 %v15333_v34, %s15165_s22 }
 0x11f   :  { %v1524_v0 = vsel %vm1523_vm6, %v1500_v60, %v1502_v56 }
 0x120   :  { %3015 = vrot.lane.b32.xlu0 %v15337_v35, %s15165_s22 }
 0x122   :  { %3027 = vrot.lane.b32.xlu1 %v15341_v36, %s15165_s22 }
 0x124   :  { %13312 = vmatmul.mubr.msk.bf16.vlgmr.msra.gmra.mrb[8].mxu0 %vm139_vm0, %v15051_v49  ;;  %3258 = vrot.lane.b32.xlu0 %v15224_v3, %s15166_s10 }
 0x125   :  { %906 = vmatpush1.bf16.msra.mxu0 %v775_v58  ;;  %894 = vmatprep.mubr.bf16.mxu0 %v15154_v11 }
 0x126   :  { %907 = vmatprep.subr.bf16.mxu0 %v769_v57  ;;  %3260 = vrot.lane.b32.xlu1 %v15245_v10, %s15166_s10 }
 0x128   :  { %3256 = vrot.lane.b32.xlu0 %v15235_v7, %s15166_s10 }
 0x129   :  { %908 = vmatpush1.bf16.msra.mxu0 %v780_v62  ;;  %v1516_v62 = vpop.permute.xlu0 %1515 }
 0x12a   :  { %1050 = vmatprep.subr.bf16.mxu0 %v1023_v61  ;;  %3270 = vrot.lane.b32.xlu1 %v15258_v12, %s15166_s10 }
 0x12c   :  { %13313 = vmatmul.mubr.msk.bf16.gmra.mrb[12].mxu0 %vm139_vm0, %v15052_v55  ;;  %3272 = vrot.lane.b32.xlu0 %v15277_v17, %s15166_s10 }
 0x12d   :  { %937 = vmatprep.mubr.bf16.mxu0 %v15154_v11 }
 0x12e   :  { %3268 = vrot.lane.b32.xlu1 %v15287_v20, %s15166_s10 }
 0x130   :  { %3262 = vrot.lane.b32.xlu0 %v15303_v25, %s15166_s10 }
 0x132   :  { %3264 = vrot.lane.b32.xlu1 %v15313_v28, %s15166_s10 }
 0x134   :  { %13314 = vmatmul.mubr.msk.bf16.vlgmr.msra.gmra.mrb[16].mxu0 %vm139_vm0, %v15051_v49  ;;  %v1281_v49 = vsel %vm1272_vm5, %v1267_v48, %v1269_v47  ;;  %3274 = vrot.lane.b32.xlu0 %v15323_v31, %s15166_s10 }
 0x135   :  { %1051 = vmatpush1.bf16.msra.mxu0 %v1022_v4  ;;  %947 = vmatprep.mubr.bf16.mxu0 %v15154_v11  ;;  %v1506_v4 = vpop.permute.xlu0 %1505 }
 0x136   :  { %1052 = vmatprep.subr.bf16.mxu0 %v1028_v5  ;;  %3276 = vrot.lane.b32.xlu1 %v15333_v34, %s15166_s10 }
 0x138   :  { %3266 = vrot.lane.b32.xlu0 %v15337_v35, %s15166_s10 }
 0x139   :  { %1053 = vmatpush1.bf16.msra.mxu0 %v1027_v9 }
 0x13a   :  { %1103 = vmatprep.subr.bf16.mxu0 %v1025_v13  ;;  %v1518_v13 = vpop.permute.xlu0 %1517  ;;  %3278 = vrot.lane.b32.xlu1 %v15341_v36, %s15166_s10 }
 0x13b   :  { %v1531_v16 = vsel %vm1523_vm6, %v1516_v62, %v1518_v13 }
 0x13c   :  { %13315 = vmatmul.mubr.msk.bf16.gmra.mrb[20].mxu0 %vm139_vm0, %v15052_v55  ;;  %v1271_v55 = vpop.permute.xlu1 %1270  ;;  %3509 = vrot.lane.b32.xlu0 %v15224_v3, %s19505_s19 }
 0x13d   :  { %1082 = vmatprep.mubr.bf16.mxu0 %v15154_v11  ;;  %v1282_v59 = vsel %vm1272_vm5, %v1269_v47, %v1271_v55 }
 0x13e   :  { %3511 = vrot.lane.b32.xlu1 %v15245_v10, %s19505_s19 }
 0x140   :  { %v1504_v57 = vpop.permute.xlu1 %1503  ;;  %3507 = vrot.lane.b32.xlu0 %v15235_v7, %s19505_s19 }
 0x141   :  { %v1525_v58 = vsel %vm1523_vm6, %v1502_v56, %v1504_v57  ;;  %v1526_v15 = vsel %vm1523_vm6, %v1504_v57, %v1506_v4 }
 0x142   :  { %3521 = vrot.lane.b32.xlu1 %v15258_v12, %s19505_s19 }
 0x144   :  { %13322 = vmatmul.mubr.msk.bf16.vlgmr.msra.gmra.mrb[0].mxu0 %vm139_vm0, %v15053_v14  ;;  %v1514_v61 = vpop.permute.xlu1 %1513  ;;  %3523 = vrot.lane.b32.xlu0 %v15277_v17, %s19505_s19 }
 0x145   :  { %1104 = vmatpush1.bf16.msra.mxu0 %v1024_v19  ;;  %1092 = vmatprep.mubr.bf16.mxu0 %v15154_v11  ;;  %v1530_v1 = vsel %vm1523_vm6, %v1514_v61, %v1516_v62  ;;  %v1510_v19 = vpop.permute.xlu0 %1509 }
 0x146   :  { %1105 = vmatprep.subr.bf16.mxu0 %v1030_v18  ;;  %v15058_v18 = vld [vmem:[%s19499_s1 + $0x68] sm:$0xff]   ;;  %3519 = vrot.lane.b32.xlu1 %v15287_v20, %s19505_s19 }
 0x148   :  { %v1512_v63 = vpop.permute.xlu1 %1511  ;;  %3513 = vrot.lane.b32.xlu0 %v15303_v25, %s19505_s19  ;;  %v15063_v25 = vld [vmem:[%s19499_s1 + $0x90] sm:$0xff]  }
 0x149   :  { %1106 = vmatpush1.bf16.msra.mxu0 %v1029_v21  ;;  %v1529_v5 = vsel %vm1523_vm6, %v1512_v63, %v1514_v61 }
 0x14a   :  { %1156 = vmatprep.subr.bf16.mxu0 %v1008_v23  ;;  %v1753_v23 = vpop.permute.xlu0 %1752  ;;  %3515 = vrot.lane.b32.xlu1 %v15313_v28, %s19505_s19 }
 0x14c   :  { %13323 = vmatmul.mubr.msk.bf16.gmra.mrb[4].mxu0 %vm139_vm0, %v15054_v22  ;;  %v1508_v2 = vpop.permute.xlu1 %1507  ;;  %3525 = vrot.lane.b32.xlu0 %v15323_v31, %s19505_s19 }
 0x14d   :  { %1135 = vmatprep.mubr.bf16.mxu0 %v15154_v11  ;;  %v1527_v6 = vsel %vm1523_vm6, %v1506_v4, %v1508_v2  ;;  %v15061_v4 = vld [vmem:[%s19499_s1 + $0x80] sm:$0xff]  }
 0x14e   :  { %v1751_v29 = vpop.permute.xlu0 %1750  ;;  %3527 = vrot.lane.b32.xlu1 %v15333_v34, %s19505_s19 }
 0x14f   :  { %v1775_v37 = vsel %vm1774_vm7, %v1751_v29, %v1753_v23 }
 0x150   :  { %v1520_v9 = vpop.permute.xlu1 %1519  ;;  %3517 = vrot.lane.b32.xlu0 %v15337_v35, %s19505_s19 }
 0x152   :  { %3529 = vrot.lane.b32.xlu1 %v15341_v36, %s19505_s19  ;;  %v15931_v36 = vld [vmem:[%s19499_s1 + $0x98] sm:$0xff]   ;;  %s19518_s19 = smov 46  }
 0x154   :  { %13324 = vmatmul.mubr.msk.bf16.vlgmr.msra.gmra.mrb[8].mxu0 %vm139_vm0, %v15053_v14  ;;  %v1522_v21 = vpop.permute.xlu1 %1521 }
 0x155   :  { %1157 = vmatpush1.bf16.msra.mxu0 %v1026_v26  ;;  %1145 = vmatprep.mubr.bf16.mxu0 %v15154_v11  ;;  %v1533_v27 = vsel %vm1523_vm6, %v1520_v9, %v1522_v21 }
 0x156   :  { %1158 = vmatprep.subr.bf16.mxu0 %v1020_v24 }
 0x158   :  { %v1755_v24 = vpop.permute.xlu1 %1754 }
 0x159   :  { %1159 = vmatpush1.bf16.msra.mxu0 %v1031_v32  ;;  %v1776_v26 = vsel %vm1774_vm7, %v1753_v23, %v1755_v24  ;;  %v1767_v32 = vpop.permute.xlu0 %1766 }
 0x15a   :  { %1301 = vmatprep.subr.bf16.mxu0 %v1274_v30 }
 0x15c   :  { %13325 = vmatmul.mubr.msk.bf16.gmra.mrb[12].mxu0 %vm139_vm0, %v15054_v22  ;;  %v1765_v30 = vpop.permute.xlu1 %1764 }
 0x15d   :  { %1188 = vmatprep.mubr.bf16.mxu0 %v15154_v11  ;;  %v1781_v38 = vsel %vm1774_vm7, %v1765_v30, %v1767_v32 }
 0x160   :  { %v1763_v33 = vpop.permute.xlu1 %1762 }
 0x164   :  { %13326 = vmatmul.mubr.msk.bf16.vlgmr.msra.gmra.mrb[16].mxu0 %vm139_vm0, %v15053_v14  ;;  %v1532_v14 = vsel %vm1523_vm6, %v1518_v13, %v1520_v9  ;;  %v1759_v39 = vpop.permute.xlu1 %1758 }
 0x165   :  { %1302 = vmatpush1.bf16.msra.mxu0 %v1273_v40  ;;  %1198 = vmatprep.mubr.bf16.mxu0 %v15154_v11  ;;  %v1757_v40 = vpop.permute.xlu0 %1756 }
 0x166   :  { %1303 = vmatprep.subr.bf16.mxu0 %v1279_v41  ;;  %v1780_v41 = vsel %vm1774_vm7, %v1763_v33, %v1765_v30  ;;  %v1777_v47 = vsel %vm1774_vm7, %v1755_v24, %v1757_v40 }
 0x169   :  { %1304 = vmatpush1.bf16.msra.mxu0 %v1278_v44  ;;  %v1771_v44 = vpop.permute.xlu1 %1770 }
 0x16a   :  { %1354 = vmatprep.subr.bf16.mxu0 %v1276_v45  ;;  %v1769_v45 = vpop.permute.xlu0 %1768 }
 0x16b   :  { %v1782_v48 = vsel %vm1774_vm7, %v1767_v32, %v1769_v45 }
 0x16c   :  { %13327 = vmatmul.mubr.msk.bf16.gmra.mrb[20].mxu0 %vm139_vm0, %v15054_v22  ;;  %v1528_v22 = vsel %vm1523_vm6, %v1508_v2, %v1510_v19 }
 0x16d   :  { %1333 = vmatprep.mubr.bf16.mxu0 %v15154_v11 }
 0x174   :  { %13334 = vmatmul.mubr.msk.bf16.vlgmr.msra.gmra.mrb[0].mxu0 %vm139_vm0, %v15055_v46 }
 0x175   :  { %1355 = vmatpush1.bf16.msra.mxu0 %v1275_v50  ;;  %1343 = vmatprep.mubr.bf16.mxu0 %v15154_v11  ;;  %v1277_v11 = vsel %vm1272_vm5, %v1257_v42, %v1259_v53  ;;  %v1778_v42 = vsel %vm1774_vm7, %v1757_v40, %v1759_v39  ;;  %v1761_v50 = vpop.permute.xlu0 %1760  ;;  %v3744_v40 = vld [vmem:[%s19498_s0 + $0x8] sm:$0xff] }
 0x176   :  { %1356 = vmatprep.subr.bf16.mxu0 %v1281_v49  ;;  %v15060_v49 = vld [vmem:[%s19499_s1 + $0x78] sm:$0xff]  }
 0x179   :  { %1357 = vmatpush1.bf16.msra.mxu0 %v1280_v51  ;;  %v1773_v51 = vpop.permute.xlu1 %1772 }
 0x17a   :  { %1407 = vmatprep.subr.bf16.mxu0 %v1259_v53  ;;  %v2004_v53 = vpop.permute.xlu0 %2003  ;;  %v1784_v56 = vsel %vm1774_vm7, %v1771_v44, %v1773_v51 }
 0x17c   :  { %13335 = vmatmul.mubr.msk.bf16.gmra.mrb[4].mxu0 %vm139_vm0, %v15056_v52 }
 0x17d   :  { %1386 = vmatprep.mubr.bf16.mxu0 %v15722_v54 }
 0x17e   :  { %v2002_v57 = vpop.permute.xlu0 %2001 }
 0x17f   :  { %v2026_v61 = vsel %vm2025_vm8, %v2002_v57, %v2004_v53  ;;  %v3753_v57 = vld [vmem:[%s19498_s0 + $0x50] sm:$0xff] }
 0x184   :  { %13336 = vmatmul.mubr.msk.bf16.vlgmr.msra.gmra.mrb[8].mxu0 %vm139_vm0, %v15055_v46 }
 0x185   :  { %1408 = vmatpush1.bf16.msra.mxu0 %v1277_v11  ;;  %1396 = vmatprep.mubr.bf16.mxu0 %v15722_v54 }
 0x186   :  { %1409 = vmatprep.subr.bf16.mxu0 %v1271_v55  ;;  %v2006_v55 = vpop.permute.xlu1 %2005 }
 0x187   :  { %v2027_v11 = vsel %vm2025_vm8, %v2004_v53, %v2006_v55 }
 0x189   :  { %1410 = vmatpush1.bf16.msra.mxu0 %v1282_v59  ;;  %v2018_v59 = vpop.permute.xlu0 %2017 }
 0x18a   :  { %1552 = vmatprep.subr.bf16.mxu0 %v1525_v58  ;;  %v2016_v58 = vpop.permute.xlu1 %2015 }
 0x18b   :  { %v2032_v62 = vsel %vm2025_vm8, %v2016_v58, %v2018_v59 }
 0x18c   :  { %13337 = vmatmul.mubr.msk.bf16.gmra.mrb[12].mxu0 %vm139_vm0, %v15056_v52 }
 0x18d   :  { %1439 = vmatprep.mubr.bf16.mxu0 %v15722_v54 }
 0x18e   :  { %v2014_v60 = vpop.permute.xlu1 %2013 }
 0x192   :  { %v2010_v63 = vpop.permute.xlu1 %2009 }
 0x194   :  { %13338 = vmatmul.mubr.msk.bf16.vlgmr.msra.gmra.mrb[16].mxu0 %vm139_vm0, %v15055_v46  ;;  %v1783_v46 = vsel %vm1774_vm7, %v1769_v45, %v1771_v44  ;;  %v3743_v45 = vld [vmem:[%s19498_s0] sm:$0xff] }
 0x195   :  { %1553 = vmatpush1.bf16.msra.mxu0 %v1524_v0  ;;  %1449 = vmatprep.mubr.bf16.mxu0 %v15722_v54  ;;  %v2008_v0 = vpop.permute.xlu0 %2007 }
 0x196   :  { %1554 = vmatprep.subr.bf16.mxu0 %v1530_v1  ;;  %v2031_v1 = vsel %vm2025_vm8, %v2014_v60, %v2016_v58  ;;  %v2029_v2 = vsel %vm2025_vm8, %v2008_v0, %v2010_v63  ;;  %v2028_v9 = vsel %vm2025_vm8, %v2006_v55, %v2008_v0  ;;  %v3752_v55 = vld [vmem:[%s19498_s0 + $0x48] sm:$0xff]  ;;  %v3765_v0 = vld [vmem:[%s19498_s0 + $0xb0] sm:$0xff] }
 0x199   :  { %1555 = vmatpush1.bf16.msra.mxu0 %v1529_v5  ;;  %v2022_v5 = vpop.permute.xlu1 %2021 }
 0x19a   :  { %1605 = vmatprep.subr.bf16.mxu0 %v1527_v6  ;;  %v2020_v6 = vpop.permute.xlu0 %2019 }
 0x19b   :  { %v2033_v13 = vsel %vm2025_vm8, %v2018_v59, %v2020_v6 }
 0x19c   :  { %13339 = vmatmul.mubr.msk.bf16.gmra.mrb[20].mxu0 %vm139_vm0, %v15056_v52  ;;  %v1779_v52 = vsel %vm1774_vm7, %v1759_v39, %v1761_v50 }
 0x19d   :  { %1584 = vmatprep.mubr.bf16.mxu0 %v15722_v54 }
 0x1a4   :  { %13346 = vmatmul.mubr.msk.bf16.vlgmr.msra.gmra.mrb[0].mxu0 %vm139_vm0, %v15057_v8 }
 0x1a5   :  { %1606 = vmatpush1.bf16.msra.mxu0 %v1526_v15  ;;  %1594 = vmatprep.mubr.bf16.mxu0 %v15722_v54  ;;  %v2012_v15 = vpop.permute.xlu0 %2011 }
 0x1a6   :  { %1607 = vmatprep.subr.bf16.mxu0 %v1532_v14  ;;  %v15062_v14 = vld [vmem:[%s19499_s1 + $0x88] sm:$0xff]  }
 0x1a9   :  { %1608 = vmatpush1.bf16.msra.mxu0 %v1531_v16  ;;  %v2024_v16 = vpop.permute.xlu1 %2023 }
 0x1aa   :  { %1658 = vmatprep.subr.bf16.mxu0 %v1510_v19  ;;  %v2255_v19 = vpop.permute.xlu0 %2254  ;;  %v2035_v23 = vsel %vm2025_vm8, %v2022_v5, %v2024_v16 }
 0x1ac   :  { %13347 = vmatmul.mubr.msk.bf16.gmra.mrb[4].mxu0 %vm139_vm0, %v15058_v18 }
 0x1ad   :  { %1637 = vmatprep.mubr.bf16.mxu0 %v15722_v54 }
 0x1ae   :  { %v2253_v24 = vpop.permute.xlu0 %2252 }
 0x1b2   :  { %v2269_v3 = vpop.permute.xlu0 %2268 }
 0x1b4   :  { %13348 = vmatmul.mubr.msk.bf16.vlgmr.msra.gmra.mrb[8].mxu0 %vm139_vm0, %v15057_v8 }
 0x1b5   :  { %1659 = vmatpush1.bf16.msra.mxu0 %v1528_v22  ;;  %1647 = vmatprep.mubr.bf16.mxu0 %v15722_v54 }
 0x1b6   :  { %1660 = vmatprep.subr.bf16.mxu0 %v1522_v21  ;;  %v2257_v21 = vpop.permute.xlu1 %2256  ;;  %v2259_v12 = vpop.permute.xlu0 %2258 }
 0x1b7   :  { %v2278_v22 = vsel %vm2276_vm9, %v2255_v19, %v2257_v21  ;;  %v2279_v30 = vsel %vm2276_vm9, %v2257_v21, %v2259_v12  ;;  %v3761_v21 = vld [vmem:[%s19498_s0 + $0x90] sm:$0xff] }
 0x1b9   :  { %1661 = vmatpush1.bf16.msra.mxu0 %v1533_v27  ;;  %v2277_v27 = vsel %vm2276_vm9, %v2253_v24, %v2255_v19  ;;  %v3754_v19 = vld [vmem:[%s19498_s0 + $0x58] sm:$0xff]  ;;  %v3748_v24 = vld [vmem:[%s19498_s0 + $0x28] sm:$0xff] }
 0x1ba   :  { %1803 = vmatprep.subr.bf16.mxu0 %v1776_v26  ;;  %v2267_v26 = vpop.permute.xlu1 %2266  ;;  %v2271_v31 = vpop.permute.xlu0 %2270 }
 0x1bb   :  { %v2283_v29 = vsel %vm2276_vm9, %v2267_v26, %v2269_v3  ;;  %v2284_v35 = vsel %vm2276_vm9, %v2269_v3, %v2271_v31 }
 0x1bc   :  { %13349 = vmatmul.mubr.msk.bf16.gmra.mrb[12].mxu0 %vm139_vm0, %v15058_v18 }
 0x1bd   :  { %1690 = vmatprep.mubr.bf16.mxu0 %v15722_v54 }
 0x1be   :  { %v2265_v10 = vpop.permute.xlu1 %2264  ;;  %v2263_v32 = vpop.permute.xlu0 %2262 }
 0x1bf   :  { %v2282_v17 = vsel %vm2276_vm9, %v2265_v10, %v2267_v26  ;;  %v3755_v26 = vld [vmem:[%s19498_s0 + $0x60] sm:$0xff] }
 0x1c0   :  { %v16059_v3 = vpack.c.bf16 %v3755_v26, %v3748_v24 }
 0x1c2   :  { %v2261_v7 = vpop.permute.xlu1 %2260 }
 0x1c3   :  { %v2280_v20 = vsel %vm2276_vm9, %v2259_v12, %v2261_v7 }
 0x1c4   :  { %13350 = vmatmul.mubr.msk.bf16.vlgmr.msra.gmra.mrb[16].mxu0 %vm139_vm0, %v15057_v8  ;;  %v2034_v8 = vsel %vm2025_vm8, %v2020_v6, %v2022_v5 }
 0x1c5   :  { %1804 = vmatpush1.bf16.msra.mxu0 %v1775_v37  ;;  %1700 = vmatprep.mubr.bf16.mxu0 %v15722_v54  ;;  %v2281_v37 = vsel %vm2276_vm9, %v2261_v7, %v2263_v32 }
 0x1c6   :  { %1805 = vmatprep.subr.bf16.mxu0 %v1781_v38  ;;  %v2273_v28 = vpop.permute.xlu1 %2272  ;;  %v2506_v38 = vpop.permute.xlu0 %2505 }
 0x1c7   :  { %v2285_v34 = vsel %vm2276_vm9, %v2271_v31, %v2273_v28 }
 0x1c9   :  { %1806 = vmatpush1.bf16.msra.mxu0 %v1780_v41  ;;  %v3751_v41 = vld [vmem:[%s19498_s0 + $0x40] sm:$0xff] }
 0x1ca   :  { %1856 = vmatprep.subr.bf16.mxu0 %v1778_v42  ;;  %v2275_v33 = vpop.permute.xlu1 %2274 }
 0x1cb   :  { %v2286_v44 = vsel %vm2276_vm9, %v2273_v28, %v2275_v33 }
 0x1cc   :  { %13351 = vmatmul.mubr.msk.bf16.gmra.mrb[20].mxu0 %vm139_vm0, %v15058_v18  ;;  %v2030_v18 = vsel %vm2025_vm8, %v2010_v63, %v2012_v15  ;;  %v3758_v63 = vld [vmem:[%s19498_s0 + $0x78] sm:$0xff] }
 0x1cd   :  { %1835 = vmatprep.mubr.bf16.mxu0 %v15722_v54 }
 0x1ce   :  { %v15938_v39 = vpop.permute.xlu1 %2507 }
 0x1cf   :  { %v2529_v42 = vsel %vm2527_vm10, %v2506_v38, %v15938_v39 }
 0x1d4   :  { %13358 = vmatmul.mubr.msk.bf16.vlgmr.msra.gmra.mrb[0].mxu0 %vm139_vm0, %v15059_v43 }
 0x1d5   :  { %1857 = vmatpush1.bf16.msra.mxu0 %v1777_v47  ;;  %1845 = vmatprep.mubr.bf16.mxu0 %v15722_v54  ;;  %v2504_v47 = vpop.permute.xlu0 %2503 }
 0x1d6   :  { %1858 = vmatprep.subr.bf16.mxu0 %v1783_v46  ;;  %v3750_v46 = vld [vmem:[%s19498_s0 + $0x38] sm:$0xff]  ;;  %v2528_v60 = vsel %vm2527_vm10, %v2504_v47, %v2506_v38 }
 0x1d9   :  { %1859 = vmatpush1.bf16.msra.mxu0 %v1782_v48  ;;  %v2518_v48 = vpop.permute.xlu1 %2517  ;;  %v2520_v58 = vpop.permute.xlu0 %2519 }
 0x1da   :  { %1909 = vmatprep.subr.bf16.mxu0 %v1761_v50  ;;  %v3759_v50 = vld [vmem:[%s19498_s0 + $0x80] sm:$0xff] }
 0x1dc   :  { %13359 = vmatmul.mubr.msk.bf16.gmra.mrb[4].mxu0 %vm139_vm0, %v15060_v49 }
 0x1dd   :  { %1888 = vmatprep.mubr.bf16.mxu0 %v15722_v54  ;;  %v2516_v59 = vpop.permute.xlu1 %2515 }
 0x1de   :  { %v2533_v5 = vsel %vm2527_vm10, %v2516_v59, %v2518_v48  ;;  %v15067_v59 = vld [vmem:[%s19499_s1 + $0xb0] sm:$0xff]  }
 0x1e4   :  { %13360 = vmatmul.mubr.msk.bf16.vlgmr.msra.gmra.mrb[8].mxu0 %vm139_vm0, %v15059_v43 }
 0x1e5   :  { %1910 = vmatpush1.bf16.msra.mxu0 %v1779_v52  ;;  %1898 = vmatprep.mubr.bf16.mxu0 %v15722_v54  ;;  %v3745_v52 = vld [vmem:[%s19498_s0 + $0x10] sm:$0xff] }
 0x1e6   :  { %1911 = vmatprep.subr.bf16.mxu0 %v1773_v51  ;;  %v3766_v51 = vld [vmem:[%s19498_s0 + $0xb8] sm:$0xff] }
 0x1e7   :  { %v15976_v53 = vpack.c.bf16 %v3766_v51, %v3759_v50 }
 0x1e9   :  { %1912 = vmatpush1.bf16.msra.mxu0 %v1784_v56  ;;  %v3746_v56 = vld [vmem:[%s19498_s0 + $0x18] sm:$0xff] }
 0x1ea   :  { %2054 = vmatprep.subr.bf16.mxu0 %v2027_v11  ;;  %v15981_v11 = vpack.c.bf16 %v3752_v55, %v3745_v52 }
 0x1ec   :  { %13361 = vmatmul.mubr.msk.bf16.gmra.mrb[12].mxu0 %vm139_vm0, %v15060_v49  ;;  %3818 = vrot.lane.b32.xlu1 %v15981_v11, %s15168_s15 }
 0x1ed   :  { %1941 = vmatprep.mubr.bf16.mxu0 %v15722_v54 }
 0x1f4   :  { %13362 = vmatmul.mubr.msk.bf16.vlgmr.msra.gmra.mrb[16].mxu0 %vm139_vm0, %v15059_v43  ;;  %v15949_v43 = vpack.c.bf16 %v3751_v41, %v3744_v40 }
 0x1f5   :  { %2055 = vmatpush1.bf16.msra.mxu0 %v2026_v61  ;;  %1951 = vmatprep.mubr.bf16.mxu0 %v15722_v54  ;;  %v15994_v61 = vpack.c.bf16 %v3753_v57, %v3746_v56 }
 0x1f6   :  { %2056 = vmatprep.subr.bf16.mxu0 %v2032_v62  ;;  %3816 = vrot.lane.b32.xlu0 %v15949_v43, %s15168_s15  ;;  %v2534_v62 = vsel %vm2527_vm10, %v2518_v48, %v2520_v58 }
 0x1f9   :  { %2057 = vmatpush1.bf16.msra.mxu0 %v2031_v1  ;;  %v16004_v1 = vpop.permute.xlu1 %2511 }
 0x1fa   :  { %2107 = vmatprep.subr.bf16.mxu0 %v2029_v2  ;;  %v16006_v2 = vpack.c.bf16 %v3765_v0, %v3758_v63 }
 0x1fc   :  { %13363 = vmatmul.mubr.msk.bf16.gmra.mrb[20].mxu0 %vm139_vm0, %v15060_v49  ;;  %v15960_v49 = vpack.c.bf16 %v3750_v46, %v3743_v45  ;;  %3830 = vrot.lane.b32.xlu1 %v16006_v2, %s15168_s15 }
 0x1fd   :  { %2086 = vmatprep.mubr.bf16.mxu0 %v15722_v54 }
 0x1fe   :  { %3814 = vrot.lane.b32.xlu0 %v15960_v49, %s15168_s15 }
 0x202   :  { %3832 = vrot.lane.b32.xlu0 %v15976_v53, %s15168_s15 }
 0x204   :  { %13370 = vmatmul.mubr.msk.bf16.vlgmr.msra.gmra.mrb[0].mxu0 %vm139_vm0, %v15061_v4 }
 0x205   :  { %2108 = vmatpush1.bf16.msra.mxu0 %v2028_v9  ;;  %2096 = vmatprep.mubr.bf16.mxu0 %v15722_v54  ;;  %v3764_v9 = vld [vmem:[%s19498_s0 + $0xa8] sm:$0xff] }
 0x206   :  { %2109 = vmatprep.subr.bf16.mxu0 %v2034_v8  ;;  %3820 = vrot.lane.b32.xlu0 %v15994_v61, %s15168_s15  ;;  %v3757_v8 = vld [vmem:[%s19498_s0 + $0x70] sm:$0xff] }
 0x209   :  { %2110 = vmatpush1.bf16.msra.mxu0 %v2033_v13  ;;  %v16022_v13 = vpack.c.bf16 %v3764_v9, %v3757_v8 }
 0x20a   :  { %2160 = vmatprep.subr.bf16.mxu0 %v2012_v15  ;;  %v3767_v15 = vld [vmem:[%s19498_s0 + $0xc0] sm:$0xff] }
 0x20b   :  { %3828 = vrot.lane.b32.xlu1 %v16022_v13, %s15168_s15 }
 0x20c   :  { %13371 = vmatmul.mubr.msk.bf16.gmra.mrb[4].mxu0 %vm139_vm0, %v15062_v14 }
 0x20d   :  { %2139 = vmatprep.mubr.bf16.mxu0 %v15722_v54 }
 0x214   :  { %13372 = vmatmul.mubr.msk.bf16.vlgmr.msra.gmra.mrb[8].mxu0 %vm139_vm0, %v15061_v4 }
 0x215   :  { %2161 = vmatpush1.bf16.msra.mxu0 %v2030_v18  ;;  %2149 = vmatprep.mubr.bf16.mxu0 %v15722_v54  ;;  %v3747_v18 = vld [vmem:[%s19498_s0 + $0x20] sm:$0xff] }
 0x216   :  { %2162 = vmatprep.subr.bf16.mxu0 %v2024_v16 }
 0x219   :  { %2163 = vmatpush1.bf16.msra.mxu0 %v2035_v23  ;;  %v3768_v23 = vld [vmem:[%s19498_s0 + $0xc8] sm:$0xff] }
 0x21a   :  { %2305 = vmatprep.subr.bf16.mxu0 %v2278_v22  ;;  %v16048_v22 = vpack.c.bf16 %v3754_v19, %v3747_v18  ;;  %v16063_v10 = vpack.c.bf16 %v3768_v23, %v3761_v21 }
 0x21c   :  { %13373 = vmatmul.mubr.msk.bf16.gmra.mrb[12].mxu0 %vm139_vm0, %v15062_v14  ;;  %3822 = vrot.lane.b32.xlu1 %v16048_v22, %s15168_s15 }
 0x21d   :  { %2192 = vmatprep.mubr.bf16.mxu0 %v15722_v54 }
 0x220   :  { %3836 = vrot.lane.b32.xlu1 %v16063_v10, %s15168_s15 }
 0x224   :  { %13374 = vmatmul.mubr.msk.bf16.vlgmr.msra.gmra.mrb[16].mxu0 %vm139_vm0, %v15061_v4  ;;  %v2510_v4 = vpop.permute.xlu0 %2509 }
 0x225   :  { %2306 = vmatpush1.bf16.msra.mxu0 %v2277_v27  ;;  %2202 = vmatprep.mubr.bf16.mxu0 %v15722_v54  ;;  %v2531_v6 = vsel %vm2527_vm10, %v2510_v4, %v16004_v1  ;;  %v15065_v27 = vld [vmem:[%s19499_s1 + $0xa0] sm:$0xff]  }
 0x226   :  { %2307 = vmatprep.subr.bf16.mxu0 %v2283_v29  ;;  %v2524_v29 = vpop.permute.xlu1 %2523 }
 0x228   :  { %v2522_v7 = vpop.permute.xlu0 %2521 }
 0x229   :  { %2308 = vmatpush1.bf16.msra.mxu0 %v2282_v17  ;;  %v2536_v12 = vsel %vm2527_vm10, %v2522_v7, %v2524_v29  ;;  %v2530_v17 = vsel %vm2527_vm10, %v15938_v39, %v2510_v4  ;;  %v2535_v31 = vsel %vm2527_vm10, %v2520_v58, %v2522_v7  ;;  %v15068_v4 = vld [vmem:[%s19499_s1 + $0xb8] sm:$0xff]  }
 0x22a   :  { %2358 = vmatprep.subr.bf16.mxu0 %v2280_v20  ;;  %v3762_v20 = vld [vmem:[%s19498_s0 + $0x98] sm:$0xff]  ;;  %v2526_v39 = vpop.permute.xlu1 %2525 }
 0x22b   :  { %v2537_v45 = vsel %vm2527_vm10, %v2524_v29, %v2526_v39 }
 0x22c   :  { %13375 = vmatmul.mubr.msk.bf16.gmra.mrb[20].mxu0 %vm139_vm0, %v15062_v14  ;;  %v3760_v14 = vld [vmem:[%s19498_s0 + $0x88] sm:$0xff] }
 0x22d   :  { %2337 = vmatprep.mubr.bf16.mxu0 %v15722_v54  ;;  %v16030_v16 = vpack.c.bf16 %v3767_v15, %v3760_v14 }
 0x22f   :  { %3834 = vrot.lane.b32.xlu0 %v16030_v16, %s15168_s15 }
 0x233   :  { %3824 = vrot.lane.b32.xlu0 %v16059_v3, %s15168_s15 }
 0x234   :  { %13382 = vmatmul.mubr.msk.bf16.vlgmr.msra.gmra.mrb[0].mxu0 %vm139_vm0, %v15063_v25 }
 0x235   :  { %2359 = vmatpush1.bf16.msra.mxu0 %v2279_v30  ;;  %2347 = vmatprep.mubr.bf16.mxu0 %v15722_v54  ;;  %v2514_v30 = vpop.permute.xlu0 %2513 }
 0x236   :  { %2360 = vmatprep.subr.bf16.mxu0 %v2285_v34  ;;  %v15066_v34 = vld [vmem:[%s19499_s1 + $0xa8] sm:$0xff]   ;;  %v2532_v40 = vsel %vm2527_vm10, %v16004_v1, %v2514_v30 }
 0x239   :  { %2361 = vmatpush1.bf16.msra.mxu0 %v2284_v35  ;;  %v3749_v35 = vld [vmem:[%s19498_s0 + $0x30] sm:$0xff]  ;;  %v2757_v41 = vpop.permute.xlu0 %2756 }
 0x23a   :  { %2411 = vmatprep.subr.bf16.mxu0 %v2263_v32  ;;  %v3763_v32 = vld [vmem:[%s19498_s0 + $0xa0] sm:$0xff] }
 0x23c   :  { %13383 = vmatmul.mubr.msk.bf16.gmra.mrb[4].mxu0 %vm139_vm0, %v15931_v36 }
 0x23d   :  { %2390 = vmatprep.mubr.bf16.mxu0 %v15722_v54  ;;  %v2755_v46 = vpop.permute.xlu0 %2754 }
 0x23e   :  { %v2779_v51 = vsel %vm2778_vm11, %v2755_v46, %v2757_v41 }
 0x241   :  { %v2771_v48 = vpop.permute.xlu0 %2770 }
 0x244   :  { %13384 = vmatmul.mubr.msk.bf16.vlgmr.msra.gmra.mrb[8].mxu0 %vm139_vm0, %v15063_v25 }
 0x245   :  { %2412 = vmatpush1.bf16.msra.mxu0 %v2281_v37  ;;  %2400 = vmatprep.mubr.bf16.mxu0 %v15722_v54  ;;  %v3770_v37 = vld [vmem:[%s19498_s0 + $0xd8] sm:$0xff]  ;;  %v2761_v56 = vpop.permute.xlu0 %2760 }
 0x246   :  { %2413 = vmatprep.subr.bf16.mxu0 %v2275_v33  ;;  %v16109_v38 = vpack.c.bf16 %v3770_v37, %v3763_v32 }
 0x249   :  { %2414 = vmatpush1.bf16.msra.mxu0 %v2286_v44 }
 0x24a   :  { %2556 = vmatprep.subr.bf16.mxu0 %v2529_v42  ;;  %v2759_v42 = vpop.permute.xlu1 %2758 }
 0x24b   :  { %v2780_v44 = vsel %vm2778_vm11, %v2757_v41, %v2759_v42  ;;  %v2781_v0 = vsel %vm2778_vm11, %v2759_v42, %v2761_v56 }
 0x24c   :  { %13385 = vmatmul.mubr.msk.bf16.gmra.mrb[12].mxu0 %vm139_vm0, %v15931_v36 }
 0x24d   :  { %2443 = vmatprep.mubr.bf16.mxu0 %v15722_v54 }
 0x24e   :  { %v2769_v47 = vpop.permute.xlu1 %2768 }
 0x24f   :  { %v2785_v52 = vsel %vm2778_vm11, %v2769_v47, %v2771_v48 }
 0x252   :  { %v2767_v50 = vpop.permute.xlu1 %2766 }
 0x253   :  { %v2784_v57 = vsel %vm2778_vm11, %v2767_v50, %v2769_v47 }
 0x254   :  { %13386 = vmatmul.mubr.msk.bf16.vlgmr.msra.gmra.mrb[16].mxu0 %vm139_vm0, %v15063_v25  ;;  %v3769_v25 = vld [vmem:[%s19498_s0 + $0xd0] sm:$0xff] }
 0x255   :  { %2557 = vmatpush1.bf16.msra.mxu0 %v2528_v60  ;;  %2453 = vmatprep.mubr.bf16.mxu0 %v15722_v54  ;;  %v16083_v28 = vpack.c.bf16 %v3769_v25, %v3762_v20  ;;  %v15069_v20 = vld [vmem:[%s19499_s1 + $0xc0] sm:$0xff]  }
 0x256   :  { %2558 = vmatprep.subr.bf16.mxu0 %v2534_v62  ;;  %v2763_v55 = vpop.permute.xlu1 %2762  ;;  %v2773_v62 = vpop.permute.xlu0 %2772 }
 0x257   :  { %3838 = vrot.lane.b32.xlu0 %v16083_v28, %s15168_s15  ;;  %v2782_v58 = vsel %vm2778_vm11, %v2761_v56, %v2763_v55  ;;  %v2786_v1 = vsel %vm2778_vm11, %v2771_v48, %v2773_v62 }
 0x259   :  { %2559 = vmatpush1.bf16.msra.mxu0 %v2533_v5 }
 0x25a   :  { %2609 = vmatprep.subr.bf16.mxu0 %v2531_v6  ;;  %v2775_v60 = vpop.permute.xlu1 %2774  ;;  %v2765_v5 = vpop.permute.xlu0 %2764 }
 0x25b   :  { %4073 = vrot.lane.b32.xlu0 %v15949_v43, %s15169_s14  ;;  %v2787_v63 = vsel %vm2778_vm11, %v2773_v62, %v2775_v60  ;;  %v2783_v8 = vsel %vm2778_vm11, %v2763_v55, %v2765_v5 }
 0x25c   :  { %13387 = vmatmul.mubr.msk.bf16.gmra.mrb[20].mxu0 %vm139_vm0, %v15931_v36  ;;  %v3756_v36 = vld [vmem:[%s19498_s0 + $0x68] sm:$0xff] }
 0x25d   :  { %2588 = vmatprep.mubr.bf16.mxu0 %v15722_v54  ;;  %v16102_v33 = vpack.c.bf16 %v3756_v36, %v3749_v35  ;;  %v15070_v36 = vld [vmem:[%s19499_s1 + $0xc8] sm:$0xff]  }
 0x25e   :  { %v2777_v6 = vpop.permute.xlu1 %2776  ;;  %v3008_v9 = vpop.permute.xlu0 %3007 }
 0x25f   :  { %3826 = vrot.lane.b32.xlu1 %v16102_v33, %s15168_s15  ;;  %4071 = vrot.lane.b32.xlu0 %v15960_v49, %s15169_s14  ;;  %v2788_v18 = vsel %vm2778_vm11, %v2775_v60, %v2777_v6 }
 0x262   :  { %v3010_v14 = vpop.permute.xlu1 %3009  ;;  %v3006_v19 = vpop.permute.xlu0 %3005 }
 0x263   :  { %3840 = vrot.lane.b32.xlu1 %v16109_v38, %s15168_s15  ;;  %4089 = vrot.lane.b32.xlu0 %v15976_v53, %s15169_s14  ;;  %v3031_v15 = vsel %vm3029_vm12, %v3008_v9, %v3010_v14  ;;  %v3030_v26 = vsel %vm3029_vm12, %v3006_v19, %v3008_v9 }
 0x264   :  { %13394 = vmatmul.mubr.msk.bf16.vlgmr.msra.gmra.mrb[0].mxu0 %vm139_vm0, %v15065_v27 }
 0x265   :  { %2610 = vmatpush1.bf16.msra.mxu0 %v2530_v17  ;;  %2598 = vmatprep.mubr.bf16.mxu0 %v15722_v54 }
 0x266   :  { %2611 = vmatprep.subr.bf16.mxu0 %v2536_v12  ;;  %v3020_v21 = vpop.permute.xlu1 %3019  ;;  %v3022_v23 = vpop.permute.xlu0 %3021 }
 0x267   :  { %4075 = vrot.lane.b32.xlu1 %v15981_v11, %s15169_s14  ;;  %4077 = vrot.lane.b32.xlu0 %v15994_v61, %s15169_s14 }
 0x269   :  { %2612 = vmatpush1.bf16.msra.mxu0 %v2535_v31 }
 0x26a   :  { %2662 = vmatprep.subr.bf16.mxu0 %v2514_v30  ;;  %v3018_v24 = vpop.permute.xlu1 %3017  ;;  %v3012_v7 = vpop.permute.xlu0 %3011 }
 0x26b   :  { %4087 = vrot.lane.b32.xlu1 %v16006_v2, %s15169_s14  ;;  %4091 = vrot.lane.b32.xlu0 %v16030_v16, %s15169_s14  ;;  %v3035_v12 = vsel %vm3029_vm12, %v3018_v24, %v3020_v21  ;;  %v3032_v30 = vsel %vm3029_vm12, %v3010_v14, %v3012_v7 }
 0x26c   :  { %13395 = vmatmul.mubr.msk.bf16.gmra.mrb[4].mxu0 %vm139_vm0, %v15066_v34 }
 0x26d   :  { %2641 = vmatprep.mubr.bf16.mxu0 %v15722_v54 }
 0x26e   :  { %v3014_v29 = vpop.permute.xlu1 %3013  ;;  %v3024_v31 = vpop.permute.xlu0 %3023 }
 0x26f   :  { %4085 = vrot.lane.b32.xlu1 %v16022_v13, %s15169_s14  ;;  %4081 = vrot.lane.b32.xlu0 %v16059_v3, %s15169_s14  ;;  %v3033_v17 = vsel %vm3029_vm12, %v3012_v7, %v3014_v29  ;;  %v3037_v35 = vsel %vm3029_vm12, %v3022_v23, %v3024_v31 }
 0x272   :  { %v3026_v25 = vpop.permute.xlu1 %3025  ;;  %v3016_v32 = vpop.permute.xlu0 %3015 }
 0x273   :  { %4079 = vrot.lane.b32.xlu1 %v16048_v22, %s15169_s14  ;;  %4095 = vrot.lane.b32.xlu0 %v16083_v28, %s15169_s14 }
 0x274   :  { %13396 = vmatmul.mubr.msk.bf16.vlgmr.msra.gmra.mrb[8].mxu0 %vm139_vm0, %v15065_v27 }
 0x275   :  { %2663 = vmatpush1.bf16.msra.mxu0 %v2532_v40  ;;  %2651 = vmatprep.mubr.bf16.mxu0 %v15722_v54 }
 0x276   :  { %2664 = vmatprep.subr.bf16.mxu0 %v2526_v39  ;;  %v3028_v37 = vpop.permute.xlu1 %3027  ;;  %v3034_v39 = vsel %vm3029_vm12, %v3014_v29, %v3016_v32  ;;  %v3259_v40 = vpop.permute.xlu0 %3258 }
 0x277   :  { %4093 = vrot.lane.b32.xlu1 %v16063_v10, %s15169_s14  ;;  %4330 = vrot.lane.b32.xlu0 %v15949_v43, %s15170_s29 }
 0x279   :  { %2665 = vmatpush1.bf16.msra.mxu0 %v2537_v45 }
 0x27a   :  { %2807 = vmatprep.subr.bf16.mxu0 %v2780_v44  ;;  %v3261_v41 = vpop.permute.xlu1 %3260  ;;  %v3039_v44 = vsel %vm3029_vm12, %v3026_v25, %v3028_v37  ;;  %v3257_v45 = vpop.permute.xlu0 %3256 }
 0x27b   :  { %4083 = vrot.lane.b32.xlu1 %v16102_v33, %s15169_s14  ;;  %4328 = vrot.lane.b32.xlu0 %v15960_v49, %s15170_s29  ;;  %v3282_v42 = vsel %vm3280_vm13, %v3259_v40, %v3261_v41  ;;  %v3281_v50 = vsel %vm3280_vm13, %v3257_v45, %v3259_v40 }
 0x27c   :  { %13397 = vmatmul.mubr.msk.bf16.gmra.mrb[12].mxu0 %vm139_vm0, %v15066_v34 }
 0x27d   :  { %2694 = vmatprep.mubr.bf16.mxu0 %v15722_v54 }
 0x27e   :  { %v3271_v46 = vpop.permute.xlu1 %3270  ;;  %v3273_v47 = vpop.permute.xlu0 %3272 }
 0x27f   :  { %4097 = vrot.lane.b32.xlu1 %v16109_v38, %s15169_s14  ;;  %4346 = vrot.lane.b32.xlu0 %v15976_v53, %s15170_s29 }
 0x282   :  { %v3269_v48 = vpop.permute.xlu1 %3268  ;;  %v3263_v55 = vpop.permute.xlu0 %3262 }
 0x283   :  { %4332 = vrot.lane.b32.xlu1 %v15981_v11, %s15170_s29  ;;  %4334 = vrot.lane.b32.xlu0 %v15994_v61, %s15170_s29  ;;  %v3286_v56 = vsel %vm3280_vm13, %v3269_v48, %v3271_v46 }
 0x284   :  { %13398 = vmatmul.mubr.msk.bf16.vlgmr.msra.gmra.mrb[16].mxu0 %vm139_vm0, %v15065_v27  ;;  %v3036_v27 = vsel %vm3029_vm12, %v3020_v21, %v3022_v23 }
 0x285   :  { %2808 = vmatpush1.bf16.msra.mxu0 %v2779_v51  ;;  %2704 = vmatprep.mubr.bf16.mxu0 %v15722_v54  ;;  %v3287_v51 = vsel %vm3280_vm13, %v3271_v46, %v3273_v47 }
 0x286   :  { %2809 = vmatprep.subr.bf16.mxu0 %v2785_v52  ;;  %v16252_v52 = vld [vmem:[#allocation2] sm:$0xff]  ;;  %v3275_v60 = vpop.permute.xlu0 %3274 }
 0x287   :  { %4344 = vrot.lane.b32.xlu1 %v16006_v2, %s15170_s29  ;;  %4348 = vrot.lane.b32.xlu0 %v16030_v16, %s15170_s29 }
 0x289   :  { %2810 = vmatpush1.bf16.msra.mxu0 %v2784_v57 }
 0x28a   :  { %2860 = vmatprep.subr.bf16.mxu0 %v2782_v58  ;;  %v15071_v58 = vld [vmem:[%s19499_s1 + $0xd0] sm:$0xff]  }
 0x28b   :  { %4342 = vrot.lane.b32.xlu1 %v16022_v13, %s15170_s29  ;;  %4338 = vrot.lane.b32.xlu0 %v16059_v3, %s15170_s29 }
 0x28c   :  { %13399 = vmatmul.mubr.msk.bf16.gmra.mrb[20].mxu0 %vm139_vm0, %v15066_v34  ;;  %v3038_v34 = vsel %vm3029_vm12, %v3024_v31, %v3026_v25 }
 0x28d   :  { %2839 = vmatprep.mubr.bf16.mxu0 %v15722_v54 }
 0x28f   :  { %4336 = vrot.lane.b32.xlu1 %v16048_v22, %s15170_s29  ;;  %4352 = vrot.lane.b32.xlu0 %v16083_v28, %s15170_s29 }
 0x293   :  { %4350 = vrot.lane.b32.xlu1 %v16063_v10, %s15170_s29  ;;  %4587 = vrot.lane.b32.xlu0 %v15949_v43, %s19526_s17 }
 0x294   :  { %13406 = vmatmul.mubr.msk.bf16.vlgmr.msra.gmra.mrb[0].mxu0 %vm139_vm0, %v15067_v59 }
 0x295   :  { %2861 = vmatpush1.bf16.msra.mxu0 %v2781_v0  ;;  %2849 = vmatprep.mubr.bf16.mxu0 %v15722_v54  ;;  %v3288_v0 = vsel %vm3280_vm13, %v3273_v47, %v3275_v60 }
 0x296   :  { %2862 = vmatprep.subr.bf16.mxu0 %v2787_v63  ;;  %v3283_v63 = vsel %vm3280_vm13, %v3261_v41, %v3263_v55 }
 0x297   :  { %4340 = vrot.lane.b32.xlu1 %v16102_v33, %s15170_s29  ;;  %4585 = vrot.lane.b32.xlu0 %v15960_v49, %s19526_s17 }
 0x299   :  { %2863 = vmatpush1.bf16.msra.mxu0 %v2786_v1  ;;  %v15072_v1 = vld [vmem:[%s19499_s1 + $0xd8] sm:$0xff]  }
 0x29a   :  { %2913 = vmatprep.subr.bf16.mxu0 %v2765_v5 }
 0x29b   :  { %4354 = vrot.lane.b32.xlu1 %v16109_v38, %s15170_s29  ;;  %4603 = vrot.lane.b32.xlu0 %v15976_v53, %s19526_s17 }
 0x29c   :  { %13407 = vmatmul.mubr.msk.bf16.gmra.mrb[4].mxu0 %vm139_vm0, %v15068_v4 }
 0x29d   :  { %2892 = vmatprep.mubr.bf16.mxu0 %v15722_v54 }
 0x29f   :  { %4589 = vrot.lane.b32.xlu1 %v15981_v11, %s19526_s17  ;;  %4591 = vrot.lane.b32.xlu0 %v15994_v61, %s19526_s17 }
 0x2a3   :  { %4601 = vrot.lane.b32.xlu1 %v16006_v2, %s19526_s17  ;;  %4605 = vrot.lane.b32.xlu0 %v16030_v16, %s19526_s17 }
 0x2a4   :  { %13408 = vmatmul.mubr.msk.bf16.vlgmr.msra.gmra.mrb[8].mxu0 %vm139_vm0, %v15067_v59 }
 0x2a5   :  { %2914 = vmatpush1.bf16.msra.mxu0 %v2783_v8  ;;  %2902 = vmatprep.mubr.bf16.mxu0 %v15722_v54 }
 0x2a6   :  { %2915 = vmatprep.subr.bf16.mxu0 %v2777_v6 }
 0x2a7   :  { %4599 = vrot.lane.b32.xlu1 %v16022_v13, %s19526_s17  ;;  %4595 = vrot.lane.b32.xlu0 %v16059_v3, %s19526_s17 }
 0x2a9   :  { %2916 = vmatpush1.bf16.msra.mxu0 %v2788_v18 }
 0x2aa   :  { %3058 = vmatprep.subr.bf16.mxu0 %v3031_v15 }
 0x2ab   :  { %4593 = vrot.lane.b32.xlu1 %v16048_v22, %s19526_s17  ;;  %4609 = vrot.lane.b32.xlu0 %v16083_v28, %s19526_s17 }
 0x2ac   :  { %13409 = vmatmul.mubr.msk.bf16.gmra.mrb[12].mxu0 %vm139_vm0, %v15068_v4 }
 0x2ad   :  { %2945 = vmatprep.mubr.bf16.mxu0 %v15722_v54 }
 0x2af   :  { %4607 = vrot.lane.b32.xlu1 %v16063_v10, %s19526_s17  ;;  %4844 = vrot.lane.b32.xlu0 %v15949_v43, %s19524_s30 }
 0x2b3   :  { %4597 = vrot.lane.b32.xlu1 %v16102_v33, %s19526_s17  ;;  %4842 = vrot.lane.b32.xlu0 %v15960_v49, %s19524_s30 }
 0x2b4   :  { %13410 = vmatmul.mubr.msk.bf16.vlgmr.msra.gmra.mrb[16].mxu0 %vm139_vm0, %v15067_v59 }
 0x2b5   :  { %3059 = vmatpush1.bf16.msra.mxu0 %v3030_v26  ;;  %2955 = vmatprep.mubr.bf16.mxu0 %v15722_v54 }
 0x2b6   :  { %3060 = vmatprep.subr.bf16.mxu0 %v3036_v27 }
 0x2b7   :  { %4611 = vrot.lane.b32.xlu1 %v16109_v38, %s19526_s17  ;;  %4860 = vrot.lane.b32.xlu0 %v15976_v53, %s19524_s30 }
 0x2b9   :  { %3061 = vmatpush1.bf16.msra.mxu0 %v3035_v12 }
 0x2ba   :  { %3111 = vmatprep.subr.bf16.mxu0 %v3033_v17  ;;  %v15073_v17 = vld [vmem:[%s19499_s1 + $0xe0] sm:$0xff]  }
 0x2bb   :  { %4846 = vrot.lane.b32.xlu1 %v15981_v11, %s19524_s30  ;;  %4848 = vrot.lane.b32.xlu0 %v15994_v61, %s19524_s30 }
 0x2bc   :  { %13411 = vmatmul.mubr.msk.bf16.gmra.mrb[20].mxu0 %vm139_vm0, %v15068_v4  ;;  %v3267_v4 = vpop.permute.xlu0 %3266 }
 0x2bd   :  { %3090 = vmatprep.mubr.bf16.mxu0 %v15722_v54 }
 0x2bf   :  { %4858 = vrot.lane.b32.xlu1 %v16006_v2, %s19524_s30  ;;  %4862 = vrot.lane.b32.xlu0 %v16030_v16, %s19524_s30 }
 0x2c0   :  { %v3510_v8 = vpop.permute.xlu0 %3509 }
 0x2c3   :  { %4856 = vrot.lane.b32.xlu1 %v16022_v13, %s19524_s30  ;;  %4852 = vrot.lane.b32.xlu0 %v16059_v3, %s19524_s30 }
 0x2c4   :  { %13418 = vmatmul.mubr.msk.bf16.vlgmr.msra.gmra.mrb[0].mxu0 %vm139_vm0, %v15069_v20  ;;  %v3508_v18 = vpop.permute.xlu0 %3507 }
 0x2c5   :  { %3112 = vmatpush1.bf16.msra.mxu0 %v3032_v30  ;;  %3100 = vmatprep.mubr.bf16.mxu0 %v15722_v54  ;;  %v3532_v24 = vsel %vm19507_vm14, %v3508_v18, %v3510_v8 }
 0x2c6   :  { %3113 = vmatprep.subr.bf16.mxu0 %v3038_v34 }
 0x2c7   :  { %4850 = vrot.lane.b32.xlu1 %v16048_v22, %s19524_s30  ;;  %4866 = vrot.lane.b32.xlu0 %v16083_v28, %s19524_s30 }
 0x2c8   :  { %v3524_v21 = vpop.permute.xlu0 %3523 }
 0x2c9   :  { %3114 = vmatpush1.bf16.msra.mxu0 %v3037_v35  ;;  %v15074_v35 = vld [vmem:[%s19499_s1 + $0xe8] sm:$0xff]  }
 0x2ca   :  { %3164 = vmatprep.subr.bf16.mxu0 %v3016_v32 }
 0x2cb   :  { %4864 = vrot.lane.b32.xlu1 %v16063_v10, %s19524_s30  ;;  %5101 = vrot.lane.b32.xlu0 %v15949_v43, %s19522_s28 }
 0x2cc   :  { %13419 = vmatmul.mubr.msk.bf16.gmra.mrb[4].mxu0 %vm139_vm0, %v15070_v36  ;;  %v3514_v29 = vpop.permute.xlu0 %3513 }
 0x2cd   :  { %3143 = vmatprep.mubr.bf16.mxu0 %v15722_v54 }
 0x2cf   :  { %4854 = vrot.lane.b32.xlu1 %v16102_v33, %s19524_s30  ;;  %5099 = vrot.lane.b32.xlu0 %v15960_v49, %s19522_s28 }
 0x2d0   :  { %v3526_v25 = vpop.permute.xlu0 %3525 }
 0x2d1   :  { %v3539_v30 = vsel %vm19507_vm14, %v3524_v21, %v3526_v25 }
 0x2d3   :  { %4868 = vrot.lane.b32.xlu1 %v16109_v38, %s19524_s30  ;;  %5117 = vrot.lane.b32.xlu0 %v15976_v53, %s19522_s28  ;;  %s19663_s30 = smov 48  }
 0x2d4   :  { %13420 = vmatmul.mubr.msk.bf16.vlgmr.msra.gmra.mrb[8].mxu0 %vm139_vm0, %v15069_v20 }
 0x2d5   :  { %3165 = vmatpush1.bf16.msra.mxu0 %v3034_v39  ;;  %3153 = vmatprep.mubr.bf16.mxu0 %v15722_v54 }
 0x2d6   :  { %3166 = vmatprep.subr.bf16.mxu0 %v3028_v37 }
 0x2d7   :  { %5103 = vrot.lane.b32.xlu1 %v15981_v11, %s19522_s28  ;;  %5105 = vrot.lane.b32.xlu0 %v15994_v61, %s19522_s28 }
 0x2d9   :  { %3167 = vmatpush1.bf16.msra.mxu0 %v3039_v44 }
 0x2da   :  { %3309 = vmatprep.subr.bf16.mxu0 %v3282_v42 }
 0x2db   :  { %5115 = vrot.lane.b32.xlu1 %v16006_v2, %s19522_s28  ;;  %5119 = vrot.lane.b32.xlu0 %v16030_v16, %s19522_s28 }
 0x2dc   :  { %13421 = vmatmul.mubr.msk.bf16.gmra.mrb[12].mxu0 %vm139_vm0, %v15070_v36 }
 0x2dd   :  { %3196 = vmatprep.mubr.bf16.mxu0 %v15722_v54  ;;  %v3265_v54 = vpop.permute.xlu1 %3264 }
 0x2de   :  { %v3284_v57 = vsel %vm3280_vm13, %v3263_v55, %v3265_v54  ;;  %v3285_v6 = vsel %vm3280_vm13, %v3265_v54, %v3267_v4 }
 0x2df   :  { %5113 = vrot.lane.b32.xlu1 %v16022_v13, %s19522_s28  ;;  %5109 = vrot.lane.b32.xlu0 %v16059_v3, %s19522_s28 }
 0x2e1   :  { %v3277_v59 = vpop.permute.xlu1 %3276 }
 0x2e2   :  { %v3289_v62 = vsel %vm3280_vm13, %v3275_v60, %v3277_v59 }
 0x2e3   :  { %5107 = vrot.lane.b32.xlu1 %v16048_v22, %s19522_s28  ;;  %5123 = vrot.lane.b32.xlu0 %v16083_v28, %s19522_s28 }
 0x2e4   :  { %13422 = vmatmul.mubr.msk.bf16.vlgmr.msra.gmra.mrb[16].mxu0 %vm139_vm0, %v15069_v20 }
 0x2e5   :  { %3310 = vmatpush1.bf16.msra.mxu0 %v3281_v50  ;;  %3206 = vmatprep.mubr.bf16.mxu0 %v16252_v52  ;;  %v3279_v5 = vpop.permute.xlu1 %3278 }
 0x2e6   :  { %3311 = vmatprep.subr.bf16.mxu0 %v3287_v51  ;;  %v3290_v15 = vsel %vm3280_vm13, %v3277_v59, %v3279_v5 }
 0x2e7   :  { %5121 = vrot.lane.b32.xlu1 %v16063_v10, %s19522_s28  ;;  %5358 = vrot.lane.b32.xlu0 %v15949_v43, %s19520_s21 }
 0x2e9   :  { %3312 = vmatpush1.bf16.msra.mxu0 %v3286_v56  ;;  %v3512_v9 = vpop.permute.xlu1 %3511 }
 0x2ea   :  { %3362 = vmatprep.subr.bf16.mxu0 %v3284_v57  ;;  %v3533_v14 = vsel %vm19507_vm14, %v3510_v8, %v3512_v9  ;;  %v3534_v34 = vsel %vm19507_vm14, %v3512_v9, %v3514_v29  ;;  %v15075_v57 = vld [vmem:[%s19499_s1 + $0xf0] sm:$0xff]  }
 0x2eb   :  { %5111 = vrot.lane.b32.xlu1 %v16102_v33, %s19522_s28  ;;  %5356 = vrot.lane.b32.xlu0 %v15960_v49, %s19520_s21 }
 0x2ec   :  { %13423 = vmatmul.mubr.msk.bf16.gmra.mrb[20].mxu0 %vm139_vm0, %v15070_v36  ;;  %v3518_v36 = vpop.permute.xlu0 %3517 }
 0x2ed   :  { %3341 = vmatprep.mubr.bf16.mxu0 %v16252_v52  ;;  %v3522_v19 = vpop.permute.xlu1 %3521 }
 0x2ee   :  { %v3538_v26 = vsel %vm19507_vm14, %v3522_v19, %v3524_v21 }
 0x2ef   :  { %5125 = vrot.lane.b32.xlu1 %v16109_v38, %s19522_s28  ;;  %5374 = vrot.lane.b32.xlu0 %v15976_v53, %s19520_s21  ;;  %s19666_s28 = smov 47  }
 0x2f0   :  { %v3817_v39 = vpop.permute.xlu0 %3816 }
 0x2f1   :  { %v3520_v23 = vpop.permute.xlu1 %3519 }
 0x2f2   :  { %v3537_v7 = vsel %vm19507_vm14, %v3520_v23, %v3522_v19 }
 0x2f3   :  { %5360 = vrot.lane.b32.xlu1 %v15981_v11, %s19520_s21  ;;  %5362 = vrot.lane.b32.xlu0 %v15994_v61, %s19520_s21 }
 0x2f4   :  { %13430 = vmatmul.mubr.msk.bf16.vlgmr.msra.gmra.mrb[0].mxu0 %vm139_vm0, %v15071_v58  ;;  %v3815_v44 = vpop.permute.xlu0 %3814 }
 0x2f5   :  { %3363 = vmatpush1.bf16.msra.mxu0 %v3283_v63  ;;  %3351 = vmatprep.mubr.bf16.mxu0 %v16252_v52  ;;  %v3516_v27 = vpop.permute.xlu1 %3515  ;;  %v3843_v48 = vsel %vm19508_vm15, %v3815_v44, %v3817_v39 }
 0x2f6   :  { %3364 = vmatprep.subr.bf16.mxu0 %v3289_v62  ;;  %v3535_v12 = vsel %vm19507_vm14, %v3514_v29, %v3516_v27  ;;  %v3536_v37 = vsel %vm19507_vm14, %v3516_v27, %v3518_v36 }
 0x2f7   :  { %5372 = vrot.lane.b32.xlu1 %v16006_v2, %s19520_s21  ;;  %5376 = vrot.lane.b32.xlu0 %v16030_v16, %s19520_s21 }
 0x2f8   :  { %v3833_v46 = vpop.permute.xlu0 %3832 }
 0x2f9   :  { %3365 = vmatpush1.bf16.msra.mxu0 %v3288_v0  ;;  %v3528_v20 = vpop.permute.xlu1 %3527 }
 0x2fa   :  { %3415 = vmatprep.subr.bf16.mxu0 %v3267_v4  ;;  %v3540_v31 = vsel %vm19507_vm14, %v3526_v25, %v3528_v20 }
 0x2fb   :  { %5370 = vrot.lane.b32.xlu1 %v16022_v13, %s19520_s21  ;;  %5366 = vrot.lane.b32.xlu0 %v16059_v3, %s19520_s21 }
 0x2fc   :  { %13431 = vmatmul.mubr.msk.bf16.gmra.mrb[4].mxu0 %vm139_vm0, %v15072_v1  ;;  %v3821_v54 = vpop.permute.xlu0 %3820 }
 0x2fd   :  { %3394 = vmatprep.mubr.bf16.mxu0 %v16252_v52  ;;  %v3530_v32 = vpop.permute.xlu1 %3529 }
 0x2fe   :  { %v3541_v42 = vsel %vm19507_vm14, %v3528_v20, %v3530_v32  ;;  %vm19509_vm14 = vcmask 547840  }
 0x2ff   :  { %5364 = vrot.lane.b32.xlu1 %v16048_v22, %s19520_s21  ;;  %5380 = vrot.lane.b32.xlu0 %v16083_v28, %s19520_s21 }
 0x300   :  { %v3835_v59 = vpop.permute.xlu0 %3834 }
 0x301   :  { %v3819_v40 = vpop.permute.xlu1 %3818  ;;  %v3851_v4 = vsel %vm19508_vm15, %v3833_v46, %v3835_v59 }
 0x302   :  { %v3844_v41 = vsel %vm19508_vm15, %v3817_v39, %v3819_v40  ;;  %v3845_v62 = vsel %vm19508_vm15, %v3819_v40, %v3821_v54 }
 0x303   :  { %5378 = vrot.lane.b32.xlu1 %v16063_v10, %s19520_s21  ;;  %5615 = vrot.lane.b32.xlu0 %v15949_v43, %s19518_s19 }
 0x304   :  { %13432 = vmatmul.mubr.msk.bf16.vlgmr.msra.gmra.mrb[8].mxu0 %vm139_vm0, %v15071_v58  ;;  %v3825_v0 = vpop.permute.xlu0 %3824 }
 0x305   :  { %3416 = vmatpush1.bf16.msra.mxu0 %v3285_v6  ;;  %3404 = vmatprep.mubr.bf16.mxu0 %v16252_v52  ;;  %v3831_v45 = vpop.permute.xlu1 %3830 }
 0x306   :  { %3417 = vmatprep.subr.bf16.mxu0 %v3279_v5  ;;  %v3850_v50 = vsel %vm19508_vm15, %v3831_v45, %v3833_v46  ;;  %v15076_v5 = vld [vmem:[%s19499_s1 + $0xf8] sm:$0xff]  }
 0x307   :  { %5368 = vrot.lane.b32.xlu1 %v16102_v33, %s19520_s21  ;;  %5613 = vrot.lane.b32.xlu0 %v15960_v49, %s19518_s19 }
 0x308   :  { %v3839_v6 = vpop.permute.xlu0 %3838 }
 0x309   :  { %3418 = vmatpush1.bf16.msra.mxu0 %v3290_v15  ;;  %v3829_v47 = vpop.permute.xlu1 %3828 }
 0x30a   :  { %3560 = vmatprep.subr.bf16.mxu0 %v3533_v14  ;;  %v3849_v55 = vsel %vm19508_vm15, %v3829_v47, %v3831_v45 }
 0x30b   :  { %5382 = vrot.lane.b32.xlu1 %v16109_v38, %s19520_s21  ;;  %5631 = vrot.lane.b32.xlu0 %v15976_v53, %s19518_s19 }
 0x30c   :  { %13433 = vmatmul.mubr.msk.bf16.gmra.mrb[12].mxu0 %vm139_vm0, %v15072_v1  ;;  %v4074_v15 = vpop.permute.xlu0 %4073 }
 0x30d   :  { %3447 = vmatprep.mubr.bf16.mxu0 %v16252_v52  ;;  %v3823_v51 = vpop.permute.xlu1 %3822 }
 0x30e   :  { %v3846_v56 = vsel %vm19508_vm15, %v3821_v54, %v3823_v51  ;;  %v3847_v14 = vsel %vm19508_vm15, %v3823_v51, %v3825_v0 }
 0x30f   :  { %5617 = vrot.lane.b32.xlu1 %v15981_v11, %s19518_s19  ;;  %5619 = vrot.lane.b32.xlu0 %v15994_v61, %s19518_s19 }
 0x310   :  { %v4072_v23 = vpop.permute.xlu0 %4071 }
 0x311   :  { %v4100_v29 = vsel %vm19509_vm14, %v4072_v23, %v4074_v15 }
 0x313   :  { %5629 = vrot.lane.b32.xlu1 %v16006_v2, %s19518_s19  ;;  %5633 = vrot.lane.b32.xlu0 %v16030_v16, %s19518_s19 }
 0x314   :  { %13434 = vmatmul.mubr.msk.bf16.vlgmr.msra.gmra.mrb[16].mxu0 %vm139_vm0, %v15071_v58  ;;  %v3837_v58 = vpop.permute.xlu1 %3836 }
 0x315   :  { %3561 = vmatpush1.bf16.msra.mxu0 %v3532_v24  ;;  %3457 = vmatprep.mubr.bf16.mxu0 %v16252_v52  ;;  %v3852_v60 = vsel %vm19508_vm15, %v3835_v59, %v3837_v58  ;;  %v3853_v21 = vsel %vm19508_vm15, %v3837_v58, %v3839_v6 }
 0x316   :  { %3562 = vmatprep.subr.bf16.mxu0 %v3538_v26  ;;  %v4090_v26 = vpop.permute.xlu0 %4089 }
 0x317   :  { %5627 = vrot.lane.b32.xlu1 %v16022_v13, %s19518_s19  ;;  %5623 = vrot.lane.b32.xlu0 %v16059_v3, %s19518_s19 }
 0x318   :  { %v3827_v63 = vpop.permute.xlu1 %3826 }
 0x319   :  { %3563 = vmatpush1.bf16.msra.mxu0 %v3537_v7 }
 0x31a   :  { %3613 = vmatprep.subr.bf16.mxu0 %v3535_v12 }
 0x31b   :  { %5621 = vrot.lane.b32.xlu1 %v16048_v22, %s19518_s19  ;;  %5637 = vrot.lane.b32.xlu0 %v16083_v28, %s19518_s19 }
 0x31c   :  { %13435 = vmatmul.mubr.msk.bf16.gmra.mrb[20].mxu0 %vm139_vm0, %v15072_v1  ;;  %v3848_v1 = vsel %vm19508_vm15, %v3825_v0, %v3827_v63  ;;  %v3841_v8 = vpop.permute.xlu1 %3840 }
 0x31d   :  { %3592 = vmatprep.mubr.bf16.mxu0 %v16252_v52  ;;  %v3854_v9 = vsel %vm19508_vm15, %v3839_v6, %v3841_v8  ;;  %vm19510_vm15 = vcmask 539648  }
 0x31f   :  { %5635 = vrot.lane.b32.xlu1 %v16063_v10, %s19518_s19  ;;  %5872 = vrot.lane.b32.xlu0 %v15949_v43, %s19511_s11 }
 0x320   :  { %v4076_v18 = vpop.permute.xlu1 %4075 }
 0x321   :  { %v4101_v19 = vsel %vm19509_vm14, %v4074_v15, %v4076_v18 }
 0x323   :  { %5625 = vrot.lane.b32.xlu1 %v16102_v33, %s19518_s19  ;;  %5870 = vrot.lane.b32.xlu0 %v15960_v49, %s19511_s11 }
 0x324   :  { %13442 = vmatmul.mubr.msk.bf16.vlgmr.msra.gmra.mrb[0].mxu0 %vm139_vm0, %v15073_v17  ;;  %v4088_v24 = vpop.permute.xlu1 %4087 }
 0x325   :  { %3614 = vmatpush1.bf16.msra.mxu0 %v3534_v34  ;;  %3602 = vmatprep.mubr.bf16.mxu0 %v16252_v52  ;;  %v4107_v7 = vsel %vm19509_vm14, %v4088_v24, %v4090_v26 }
 0x326   :  { %3615 = vmatprep.subr.bf16.mxu0 %v3540_v31  ;;  %v15077_v31 = vld [vmem:[%s19499_s1 + $0x100] sm:$0xff]  }
 0x327   :  { %5639 = vrot.lane.b32.xlu1 %v16109_v38, %s19518_s19  ;;  %5888 = vrot.lane.b32.xlu0 %v15976_v53, %s19511_s11 }
 0x328   :  { %v4086_v27 = vpop.permute.xlu1 %4085 }
 0x329   :  { %3616 = vmatpush1.bf16.msra.mxu0 %v3539_v30  ;;  %v4106_v20 = vsel %vm19509_vm14, %v4086_v27, %v4088_v24 }
 0x32a   :  { %3666 = vmatprep.subr.bf16.mxu0 %v3518_v36 }
 0x32b   :  { %5874 = vrot.lane.b32.xlu1 %v15981_v11, %s19511_s11 }
 0x32c   :  { %13443 = vmatmul.mubr.msk.bf16.gmra.mrb[4].mxu0 %vm139_vm0, %v15074_v35  ;;  %v4080_v12 = vpop.permute.xlu1 %4079 }
 0x32d   :  { %3645 = vmatprep.mubr.bf16.mxu0 %v16252_v52 }
 0x32f   :  { %5886 = vrot.lane.b32.xlu1 %v16006_v2, %s19511_s11 }
 0x330   :  { %v4094_v34 = vpop.permute.xlu1 %4093 }
 0x333   :  { %5884 = vrot.lane.b32.xlu1 %v16022_v13, %s19511_s11 }
 0x334   :  { %13444 = vmatmul.mubr.msk.bf16.vlgmr.msra.gmra.mrb[8].mxu0 %vm139_vm0, %v15073_v17 }
 0x335   :  { %3667 = vmatpush1.bf16.msra.mxu0 %v3536_v37  ;;  %3655 = vmatprep.mubr.bf16.mxu0 %v16252_v52 }
 0x336   :  { %3668 = vmatprep.subr.bf16.mxu0 %v3530_v32  ;;  %v4084_v32 = vpop.permute.xlu1 %4083 }
 0x337   :  { %5878 = vrot.lane.b32.xlu1 %v16048_v22, %s19511_s11 }
 0x339   :  { %3669 = vmatpush1.bf16.msra.mxu0 %v3541_v42 }
 0x33a   :  { %3873 = vmatprep.subr.bf16.mxu0 %v3844_v41  ;;  %v15078_v41 = vld [vmem:[%s19499_s1 + $0x108] sm:$0xff]   ;;  %v4098_v44 = vpop.permute.xlu1 %4097 }
 0x33b   :  { %5892 = vrot.lane.b32.xlu1 %v16063_v10, %s19511_s11 }
 0x33c   :  { %13445 = vmatmul.mubr.msk.bf16.gmra.mrb[12].mxu0 %vm139_vm0, %v15074_v35 }
 0x33d   :  { %3698 = vmatprep.mubr.bf16.mxu0 %v16252_v52 }
 0x33f   :  { %5882 = vrot.lane.b32.xlu1 %v16102_v33, %s19511_s11 }
 0x343   :  { %5896 = vrot.lane.b32.xlu1 %v16109_v38, %s19511_s11 }
 0x344   :  { %13446 = vmatmul.mubr.msk.bf16.vlgmr.msra.gmra.mrb[16].mxu0 %vm139_vm0, %v15073_v17  ;;  %v4078_v17 = vpop.permute.xlu0 %4077  ;;  %5876 = vrot.lane.b32.xlu0 %v15994_v61, %s19511_s11 }
 0x345   :  { %3874 = vmatpush1.bf16.msra.mxu0 %v3843_v48  ;;  %3708 = vmatprep.mubr.bf16.mxu0 %v16252_v52  ;;  %v4103_v25 = vsel %vm19509_vm14, %v4078_v17, %v4080_v12  ;;  %v4102_v36 = vsel %vm19509_vm14, %v4076_v18, %v4078_v17  ;;  %v4333_v48 = vpop.permute.xlu1 %4332 }
 0x346   :  { %3875 = vmatprep.subr.bf16.mxu0 %v3850_v50 }
 0x347   :  { %6131 = vrot.lane.b32.xlu1 %v15981_v11, %s19516_s20 }
 0x348   :  { %v4092_v30 = vpop.permute.xlu0 %4091  ;;  %5890 = vrot.lane.b32.xlu0 %v16030_v16, %s19511_s11 }
 0x349   :  { %3876 = vmatpush1.bf16.msra.mxu0 %v3849_v55  ;;  %v4108_v40 = vsel %vm19509_vm14, %v4090_v26, %v4092_v30  ;;  %v4345_v55 = vpop.permute.xlu1 %4344 }
 0x34a   :  { %3926 = vmatprep.subr.bf16.mxu0 %v3846_v56 }
 0x34b   :  { %6143 = vrot.lane.b32.xlu1 %v16006_v2, %s19516_s20 }
 0x34c   :  { %13447 = vmatmul.mubr.msk.bf16.gmra.mrb[20].mxu0 %vm139_vm0, %v15074_v35  ;;  %v4109_v35 = vsel %vm19509_vm14, %v4092_v30, %v4094_v34  ;;  %v4082_v37 = vpop.permute.xlu0 %4081  ;;  %5880 = vrot.lane.b32.xlu0 %v16059_v3, %s19511_s11 }
 0x34d   :  { %3905 = vmatprep.mubr.bf16.mxu0 %v16252_v52  ;;  %v4105_v39 = vsel %vm19509_vm14, %v4082_v37, %v4084_v32  ;;  %v4104_v46 = vsel %vm19509_vm14, %v4080_v12, %v4082_v37 }
 0x350   :  { %v4096_v42 = vpop.permute.xlu0 %4095  ;;  %5894 = vrot.lane.b32.xlu0 %v16083_v28, %s19511_s11 }
 0x351   :  { %v4111_v45 = vsel %vm19509_vm14, %v4096_v42, %v4098_v44  ;;  %v4110_v51 = vsel %vm19509_vm14, %v4094_v34, %v4096_v42  ;;  %vm19513_vm14 = vcmask 531456  }
 0x354   :  { %13454 = vmatmul.mubr.msk.bf16.vlgmr.msra.gmra.mrb[0].mxu0 %vm139_vm0, %v15075_v57  ;;  %v4331_v47 = vpop.permute.xlu0 %4330  ;;  %6129 = vrot.lane.b32.xlu0 %v15949_v43, %s19516_s20 }
 0x355   :  { %3927 = vmatpush1.bf16.msra.mxu0 %v3845_v62  ;;  %3915 = vmatprep.mubr.bf16.mxu0 %v16252_v52  ;;  %v4358_v50 = vsel %vm19510_vm15, %v4331_v47, %v4333_v48 }
 0x356   :  { %3928 = vmatprep.subr.bf16.mxu0 %v3852_v60 }
 0x358   :  { %v4329_v54 = vpop.permute.xlu0 %4328  ;;  %6127 = vrot.lane.b32.xlu0 %v15960_v49, %s19516_s20 }
 0x359   :  { %3929 = vmatpush1.bf16.msra.mxu0 %v3851_v4  ;;  %v4357_v58 = vsel %vm19510_vm15, %v4329_v54, %v4331_v47 }
 0x35a   :  { %3979 = vmatprep.subr.bf16.mxu0 %v3848_v1  ;;  %v15079_v1 = vld [vmem:[%s19499_s1 + $0x110] sm:$0xff]  }
 0x35c   :  { %13455 = vmatmul.mubr.msk.bf16.gmra.mrb[4].mxu0 %vm139_vm0, %v15076_v5  ;;  %v4347_v56 = vpop.permute.xlu0 %4346  ;;  %6145 = vrot.lane.b32.xlu0 %v15976_v53, %s19516_s20 }
 0x35d   :  { %3958 = vmatprep.mubr.bf16.mxu0 %v16252_v52  ;;  %v4364_v59 = vsel %vm19510_vm15, %v4345_v55, %v4347_v56 }
 0x360   :  { %v4335_v62 = vpop.permute.xlu0 %4334  ;;  %6133 = vrot.lane.b32.xlu0 %v15994_v61, %s19516_s20  ;;  %v15083_v61 = vld [vmem:[%s19499_s1 + $0x130] sm:$0xff]  }
 0x361   :  { %v4359_v8 = vsel %vm19510_vm15, %v4333_v48, %v4335_v62 }
 0x364   :  { %13456 = vmatmul.mubr.msk.bf16.vlgmr.msra.gmra.mrb[8].mxu0 %vm139_vm0, %v15075_v57 }
 0x365   :  { %3980 = vmatpush1.bf16.msra.mxu0 %v3847_v14  ;;  %3968 = vmatprep.mubr.bf16.mxu0 %v16252_v52 }
 0x366   :  { %3981 = vmatprep.subr.bf16.mxu0 %v3854_v9 }
 0x369   :  { %3982 = vmatpush1.bf16.msra.mxu0 %v3853_v21 }
 0x36a   :  { %4130 = vmatprep.subr.bf16.mxu0 %v4101_v19  ;;  %v15080_v19 = vld [vmem:[%s19499_s1 + $0x118] sm:$0xff]  }
 0x36c   :  { %13457 = vmatmul.mubr.msk.bf16.gmra.mrb[12].mxu0 %vm139_vm0, %v15076_v5 }
 0x36d   :  { %4011 = vmatprep.mubr.bf16.mxu0 %v16252_v52 }
 0x374   :  { %13458 = vmatmul.mubr.msk.bf16.vlgmr.msra.gmra.mrb[16].mxu0 %vm139_vm0, %v15075_v57  ;;  %v4343_v57 = vpop.permute.xlu1 %4342  ;;  %6141 = vrot.lane.b32.xlu1 %v16022_v13, %s19516_s20 }
 0x375   :  { %4131 = vmatpush1.bf16.msra.mxu0 %v4100_v29  ;;  %4021 = vmatprep.mubr.bf16.mxu0 %v16252_v52  ;;  %v4363_v63 = vsel %vm19510_vm15, %v4343_v57, %v4345_v55 }
 0x376   :  { %4132 = vmatprep.subr.bf16.mxu0 %v4107_v7 }
 0x378   :  { %v4337_v60 = vpop.permute.xlu1 %4336  ;;  %6135 = vrot.lane.b32.xlu1 %v16048_v22, %s19516_s20 }
 0x379   :  { %4133 = vmatpush1.bf16.msra.mxu0 %v4106_v20  ;;  %v4360_v0 = vsel %vm19510_vm15, %v4335_v62, %v4337_v60 }
 0x37a   :  { %4183 = vmatprep.subr.bf16.mxu0 %v4103_v25 }
 0x37c   :  { %13459 = vmatmul.mubr.msk.bf16.gmra.mrb[20].mxu0 %vm139_vm0, %v15076_v5  ;;  %v4351_v4 = vpop.permute.xlu1 %4350  ;;  %v4349_v5 = vpop.permute.xlu0 %4348  ;;  %6147 = vrot.lane.b32.xlu0 %v16030_v16, %s19516_s20 }
 0x37d   :  { %4162 = vmatprep.mubr.bf16.mxu0 %v16252_v52  ;;  %v4366_v6 = vsel %vm19510_vm15, %v4349_v5, %v4351_v4  ;;  %v4365_v18 = vsel %vm19510_vm15, %v4347_v56, %v4349_v5  ;;  %6149 = vrot.lane.b32.xlu1 %v16063_v10, %s19516_s20  ;;  %v15084_v5 = vld [vmem:[%s19499_s1 + $0x138] sm:$0xff]  }
 0x380   :  { %v4341_v9 = vpop.permute.xlu1 %4340  ;;  %v4339_v14 = vpop.permute.xlu0 %4338  ;;  %6137 = vrot.lane.b32.xlu0 %v16059_v3, %s19516_s20 }
 0x381   :  { %v4362_v15 = vsel %vm19510_vm15, %v4339_v14, %v4341_v9  ;;  %v4361_v26 = vsel %vm19510_vm15, %v4337_v60, %v4339_v14  ;;  %6139 = vrot.lane.b32.xlu1 %v16102_v33, %s19516_s20 }
 0x384   :  { %13466 = vmatmul.mubr.msk.bf16.vlgmr.msra.gmra.mrb[0].mxu0 %vm139_vm0, %v15077_v31  ;;  %v4353_v21 = vpop.permute.xlu0 %4352  ;;  %v4355_v23 = vpop.permute.xlu1 %4354  ;;  %6151 = vrot.lane.b32.xlu0 %v16083_v28, %s19516_s20 }
 0x385   :  { %4184 = vmatpush1.bf16.msra.mxu0 %v4102_v36  ;;  %4172 = vmatprep.mubr.bf16.mxu0 %v16252_v52  ;;  %v4368_v24 = vsel %vm19510_vm15, %v4353_v21, %v4355_v23  ;;  %v4367_v12 = vsel %vm19510_vm15, %v4351_v4, %v4353_v21  ;;  %vm19514_vm15 = vcmask 523264  }
 0x386   :  { %4185 = vmatprep.subr.bf16.mxu0 %v4109_v35  ;;  %6153 = vrot.lane.b32.xlu1 %v16109_v38, %s19516_s20 }
 0x388   :  { %v4588_v27 = vpop.permute.xlu0 %4587  ;;  %v4590_v29 = vpop.permute.xlu1 %4589 }
 0x389   :  { %4186 = vmatpush1.bf16.msra.mxu0 %v4108_v40  ;;  %v4615_v7 = vsel %vm19513_vm14, %v4588_v27, %v4590_v29 }
 0x38a   :  { %4236 = vmatprep.subr.bf16.mxu0 %v4105_v39  ;;  %v15081_v39 = vld [vmem:[%s19499_s1 + $0x120] sm:$0xff]  }
 0x38c   :  { %13467 = vmatmul.mubr.msk.bf16.gmra.mrb[4].mxu0 %vm139_vm0, %v15078_v41  ;;  %v4586_v17 = vpop.permute.xlu0 %4585  ;;  %v4602_v20 = vpop.permute.xlu1 %4601 }
 0x38d   :  { %4215 = vmatprep.mubr.bf16.mxu0 %v16252_v52  ;;  %v4614_v34 = vsel %vm19513_vm14, %v4586_v17, %v4588_v27 }
 0x390   :  { %v4604_v25 = vpop.permute.xlu0 %4603 }
 0x391   :  { %v4621_v30 = vsel %vm19513_vm14, %v4602_v20, %v4604_v25 }
 0x394   :  { %13468 = vmatmul.mubr.msk.bf16.vlgmr.msra.gmra.mrb[8].mxu0 %vm139_vm0, %v15077_v31  ;;  %v4592_v36 = vpop.permute.xlu0 %4591 }
 0x395   :  { %4237 = vmatpush1.bf16.msra.mxu0 %v4104_v46  ;;  %4225 = vmatprep.mubr.bf16.mxu0 %v16252_v52  ;;  %v4616_v44 = vsel %vm19513_vm14, %v4590_v29, %v4592_v36 }
 0x396   :  { %4238 = vmatprep.subr.bf16.mxu0 %v4111_v45 }
 0x399   :  { %4239 = vmatpush1.bf16.msra.mxu0 %v4110_v51 }
 0x39a   :  { %4387 = vmatprep.subr.bf16.mxu0 %v4358_v50  ;;  %v15082_v50 = vld [vmem:[%s19499_s1 + $0x128] sm:$0xff]  }
 0x39c   :  { %13469 = vmatmul.mubr.msk.bf16.gmra.mrb[12].mxu0 %vm139_vm0, %v15078_v41 }
 0x39d   :  { %4268 = vmatprep.mubr.bf16.mxu0 %v16252_v52 }
 0x3a4   :  { %13470 = vmatmul.mubr.msk.bf16.vlgmr.msra.gmra.mrb[16].mxu0 %vm139_vm0, %v15077_v31  ;;  %v4600_v31 = vpop.permute.xlu1 %4599 }
 0x3a5   :  { %4388 = vmatpush1.bf16.msra.mxu0 %v4357_v58  ;;  %4278 = vmatprep.mubr.bf16.mxu0 %v16252_v52  ;;  %v4620_v32 = vsel %vm19513_vm14, %v4600_v31, %v4602_v20  ;;  %v15085_v31 = vld [vmem:[%s19499_s1 + $0x140] sm:$0xff]  }
 0x3a6   :  { %4389 = vmatprep.subr.bf16.mxu0 %v4364_v59 }
 0x3a8   :  { %v4594_v35 = vpop.permute.xlu1 %4593 }
 0x3a9   :  { %4390 = vmatpush1.bf16.msra.mxu0 %v4363_v63  ;;  %v4617_v37 = vsel %vm19513_vm14, %v4592_v36, %v4594_v35 }
 0x3aa   :  { %4440 = vmatprep.subr.bf16.mxu0 %v4360_v0 }
 0x3ac   :  { %13471 = vmatmul.mubr.msk.bf16.gmra.mrb[20].mxu0 %vm139_vm0, %v15078_v41  ;;  %v4608_v40 = vpop.permute.xlu1 %4607  ;;  %v4606_v41 = vpop.permute.xlu0 %4605 }
 0x3ad   :  { %4419 = vmatprep.mubr.bf16.mxu0 %v16252_v52  ;;  %v4623_v42 = vsel %vm19513_vm14, %v4606_v41, %v4608_v40  ;;  %v4622_v48 = vsel %vm19513_vm14, %v4604_v25, %v4606_v41  ;;  %v15086_v41 = vld [vmem:[%s19499_s1 + $0x148] sm:$0xff]  }
 0x3b0   :  { %v4598_v45 = vpop.permute.xlu1 %4597  ;;  %v4596_v46 = vpop.permute.xlu0 %4595 }
 0x3b1   :  { %v4619_v47 = vsel %vm19513_vm14, %v4596_v46, %v4598_v45  ;;  %v4618_v56 = vsel %vm19513_vm14, %v4594_v35, %v4596_v46 }
 0x3b4   :  { %13478 = vmatmul.mubr.msk.bf16.vlgmr.msra.gmra.mrb[0].mxu0 %vm139_vm0, %v15079_v1  ;;  %v4610_v51 = vpop.permute.xlu0 %4609  ;;  %v4612_v54 = vpop.permute.xlu1 %4611 }
 0x3b5   :  { %4441 = vmatpush1.bf16.msra.mxu0 %v4359_v8  ;;  %4429 = vmatprep.mubr.bf16.mxu0 %v16252_v52  ;;  %v4625_v55 = vsel %vm19513_vm14, %v4610_v51, %v4612_v54  ;;  %v4624_v60 = vsel %vm19513_vm14, %v4608_v40, %v4610_v51  ;;  %vm19515_vm14 = vcmask 392192  }
 0x3b6   :  { %4442 = vmatprep.subr.bf16.mxu0 %v4366_v6 }
 0x3b8   :  { %v4845_v57 = vpop.permute.xlu0 %4844  ;;  %v4847_v58 = vpop.permute.xlu1 %4846 }
 0x3b9   :  { %4443 = vmatpush1.bf16.msra.mxu0 %v4365_v18  ;;  %v4872_v59 = vsel %vm19514_vm15, %v4845_v57, %v4847_v58 }
 0x3ba   :  { %4493 = vmatprep.subr.bf16.mxu0 %v4362_v15 }
 0x3bc   :  { %13479 = vmatmul.mubr.msk.bf16.gmra.mrb[4].mxu0 %vm139_vm0, %v15080_v19  ;;  %v4843_v62 = vpop.permute.xlu0 %4842  ;;  %v4859_v63 = vpop.permute.xlu1 %4858 }
 0x3bd   :  { %4472 = vmatprep.mubr.bf16.mxu0 %v16252_v52  ;;  %v4871_v0 = vsel %vm19514_vm15, %v4843_v62, %v4845_v57  ;;  %v16670_v62 = vld [vmem:[#allocation2] sm:$0xff] }
 0x3c0   :  { %v4861_v43 = vpop.permute.xlu0 %4860  ;;  %v4857_v11 = vpop.permute.xlu1 %4856 }
 0x3c1   :  { %v4877_v2 = vsel %vm19514_vm15, %v4857_v11, %v4859_v63  ;;  %v15087_v11 = vld [vmem:[%s19499_s1 + $0x150] sm:$0xff]  }
 0x3c4   :  { %13480 = vmatmul.mubr.msk.bf16.vlgmr.msra.gmra.mrb[8].mxu0 %vm139_vm0, %v15079_v1  ;;  %v4851_v49 = vpop.permute.xlu1 %4850  ;;  %v4849_v53 = vpop.permute.xlu0 %4848 }
 0x3c5   :  { %4494 = vmatpush1.bf16.msra.mxu0 %v4361_v26  ;;  %4482 = vmatprep.mubr.bf16.mxu0 %v16252_v52  ;;  %v4874_v13 = vsel %vm19514_vm15, %v4849_v53, %v4851_v49  ;;  %v4873_v10 = vsel %vm19514_vm15, %v4847_v58, %v4849_v53 }
 0x3c6   :  { %4495 = vmatprep.subr.bf16.mxu0 %v4368_v24 }
 0x3c8   :  { %v4865_v16 = vpop.permute.xlu1 %4864  ;;  %v4863_v22 = vpop.permute.xlu0 %4862 }
 0x3c9   :  { %4496 = vmatpush1.bf16.msra.mxu0 %v4367_v12  ;;  %v4880_v3 = vsel %vm19514_vm15, %v4863_v22, %v4865_v16  ;;  %v4879_v4 = vsel %vm19514_vm15, %v4861_v43, %v4863_v22  ;;  %v15088_v22 = vld [vmem:[%s19499_s1 + $0x158] sm:$0xff]  }
 0x3ca   :  { %4644 = vmatprep.subr.bf16.mxu0 %v4615_v7 }
 0x3cc   :  { %13481 = vmatmul.mubr.msk.bf16.gmra.mrb[12].mxu0 %vm139_vm0, %v15080_v19  ;;  %v4855_v33 = vpop.permute.xlu1 %4854  ;;  %v4853_v28 = vpop.permute.xlu0 %4852 }
 0x3cd   :  { %4525 = vmatprep.mubr.bf16.mxu0 %v16252_v52  ;;  %v4876_v38 = vsel %vm19514_vm15, %v4853_v28, %v4855_v33  ;;  %v4875_v14 = vsel %vm19514_vm15, %v4851_v49, %v4853_v28 }
 0x3d0   :  { %v4867_v6 = vpop.permute.xlu0 %4866  ;;  %v4869_v8 = vpop.permute.xlu1 %4868 }
 0x3d1   :  { %v4882_v9 = vsel %vm19514_vm15, %v4867_v6, %v4869_v8  ;;  %v4881_v21 = vsel %vm19514_vm15, %v4865_v16, %v4867_v6 }
 0x3d4   :  { %13482 = vmatmul.mubr.msk.bf16.vlgmr.msra.gmra.mrb[16].mxu0 %vm139_vm0, %v15079_v1  ;;  %v4878_v1 = vsel %vm19514_vm15, %v4859_v63, %v4861_v43  ;;  %v5102_v15 = vpop.permute.xlu0 %5101  ;;  %v5104_v18 = vpop.permute.xlu1 %5103  ;;  %vm19528_vm15 = vcmask 384000  }
 0x3d5   :  { %4645 = vmatpush1.bf16.msra.mxu0 %v4614_v34  ;;  %4535 = vmatprep.mubr.bf16.mxu0 %v16252_v52 }
 0x3d6   :  { %4646 = vmatprep.subr.bf16.mxu0 %v4621_v30 }
 0x3d8   :  { %v5100_v23 = vpop.permute.xlu0 %5099  ;;  %v5116_v24 = vpop.permute.xlu1 %5115 }
 0x3d9   :  { %4647 = vmatpush1.bf16.msra.mxu0 %v4620_v32  ;;  %v5128_v29 = vsel %vm19515_vm14, %v5100_v23, %v5102_v15 }
 0x3da   :  { %4697 = vmatprep.subr.bf16.mxu0 %v4617_v37 }
 0x3dc   :  { %13483 = vmatmul.mubr.msk.bf16.gmra.mrb[20].mxu0 %vm139_vm0, %v15080_v19  ;;  %v5129_v19 = vsel %vm19515_vm14, %v5102_v15, %v5104_v18  ;;  %v5118_v26 = vpop.permute.xlu0 %5117  ;;  %v5114_v27 = vpop.permute.xlu1 %5113 }
 0x3dd   :  { %4676 = vmatprep.mubr.bf16.mxu0 %v16252_v52  ;;  %v5135_v7 = vsel %vm19515_vm14, %v5116_v24, %v5118_v26  ;;  %v5134_v20 = vsel %vm19515_vm14, %v5114_v27, %v5116_v24  ;;  %v15089_v27 = vld [vmem:[%s19499_s1 + $0x160] sm:$0xff]  }
 0x3e0   :  { %v5108_v12 = vpop.permute.xlu1 %5107  ;;  %v5106_v17 = vpop.permute.xlu0 %5105 }
 0x3e1   :  { %v5131_v25 = vsel %vm19515_vm14, %v5106_v17, %v5108_v12  ;;  %v5130_v36 = vsel %vm19515_vm14, %v5104_v18, %v5106_v17 }
 0x3e4   :  { %13490 = vmatmul.mubr.msk.bf16.vlgmr.msra.gmra.mrb[0].mxu0 %vm139_vm0, %v15081_v39  ;;  %v5122_v34 = vpop.permute.xlu1 %5121  ;;  %v5120_v30 = vpop.permute.xlu0 %5119 }
 0x3e5   :  { %4698 = vmatpush1.bf16.msra.mxu0 %v4616_v44  ;;  %4686 = vmatprep.mubr.bf16.mxu0 %v16252_v52  ;;  %v5137_v35 = vsel %vm19515_vm14, %v5120_v30, %v5122_v34  ;;  %v5136_v40 = vsel %vm19515_vm14, %v5118_v26, %v5120_v30  ;;  %v15090_v30 = vld [vmem:[%s19499_s1 + $0x168] sm:$0xff]  }
 0x3e6   :  { %4699 = vmatprep.subr.bf16.mxu0 %v4623_v42 }
 0x3e8   :  { %v5112_v32 = vpop.permute.xlu1 %5111  ;;  %v5110_v37 = vpop.permute.xlu0 %5109 }
 0x3e9   :  { %4700 = vmatpush1.bf16.msra.mxu0 %v4622_v48  ;;  %v5132_v46 = vsel %vm19515_vm14, %v5108_v12, %v5110_v37 }
 0x3ea   :  { %4750 = vmatprep.subr.bf16.mxu0 %v4619_v47 }
 0x3ec   :  { %13491 = vmatmul.mubr.msk.bf16.gmra.mrb[4].mxu0 %vm139_vm0, %v15082_v50  ;;  %v5124_v42 = vpop.permute.xlu0 %5123  ;;  %v5126_v44 = vpop.permute.xlu1 %5125 }
 0x3ed   :  { %4729 = vmatprep.mubr.bf16.mxu0 %v16252_v52  ;;  %v5139_v45 = vsel %vm19515_vm14, %v5124_v42, %v5126_v44  ;;  %v5138_v51 = vsel %vm19515_vm14, %v5122_v34, %v5124_v42 }
 0x3f0   :  { %v5359_v47 = vpop.permute.xlu0 %5358  ;;  %v5361_v48 = vpop.permute.xlu1 %5360 }
 0x3f4   :  { %13492 = vmatmul.mubr.msk.bf16.vlgmr.msra.gmra.mrb[8].mxu0 %vm139_vm0, %v15081_v39  ;;  %v5357_v54 = vpop.permute.xlu0 %5356 }
 0x3f5   :  { %4751 = vmatpush1.bf16.msra.mxu0 %v4618_v56  ;;  %4739 = vmatprep.mubr.bf16.mxu0 %v16252_v52  ;;  %v5385_v58 = vsel %vm19528_vm15, %v5357_v54, %v5359_v47 }
 0x3f6   :  { %4752 = vmatprep.subr.bf16.mxu0 %v4625_v55  ;;  %v5373_v55 = vpop.permute.xlu1 %5372 }
 0x3f8   :  { %v5375_v56 = vpop.permute.xlu0 %5374 }
 0x3f9   :  { %4753 = vmatpush1.bf16.msra.mxu0 %v4624_v60 }
 0x3fa   :  { %4901 = vmatprep.subr.bf16.mxu0 %v4872_v59  ;;  %v5371_v57 = vpop.permute.xlu1 %5370  ;;  %v5392_v59 = vsel %vm19528_vm15, %v5373_v55, %v5375_v56 }
 0x3fb   :  { %v5391_v43 = vsel %vm19528_vm15, %v5371_v57, %v5373_v55 }
 0x3fc   :  { %13493 = vmatmul.mubr.msk.bf16.gmra.mrb[12].mxu0 %vm139_vm0, %v15082_v50  ;;  %v5363_v63 = vpop.permute.xlu0 %5362 }
 0x3fd   :  { %4782 = vmatprep.mubr.bf16.mxu0 %v16252_v52  ;;  %v5387_v53 = vsel %vm19528_vm15, %v5361_v48, %v5363_v63 }
 0x3fe   :  { %v5365_v60 = vpop.permute.xlu1 %5364 }
 0x404   :  { %13494 = vmatmul.mubr.msk.bf16.vlgmr.msra.gmra.mrb[16].mxu0 %vm139_vm0, %v15081_v39  ;;  %v5133_v39 = vsel %vm19515_vm14, %v5110_v37, %v5112_v32  ;;  %vm19529_vm14 = vcmask 375808   ;;  %v6371_v32 = vld [vmem:[%s19500_s2 + $0x10] sm:$0xff]  ;;  %v6372_v37 = vld [vmem:[%s19500_s2 + $0x18] sm:$0xff] }
 0x405   :  { %4902 = vmatpush1.bf16.msra.mxu0 %v4871_v0  ;;  %4792 = vmatprep.mubr.bf16.mxu0 %v16252_v52  ;;  %v5379_v0 = vpop.permute.xlu1 %5378 }
 0x406   :  { %4903 = vmatprep.subr.bf16.mxu0 %v4878_v1  ;;  %v5377_v1 = vpop.permute.xlu0 %5376 }
 0x407   :  { %v5394_v49 = vsel %vm19528_vm15, %v5377_v1, %v5379_v0  ;;  %v5393_v16 = vsel %vm19528_vm15, %v5375_v56, %v5377_v1 }
 0x409   :  { %4904 = vmatpush1.bf16.msra.mxu0 %v4877_v2  ;;  %v5369_v2 = vpop.permute.xlu1 %5368 }
 0x40a   :  { %4954 = vmatprep.subr.bf16.mxu0 %v4874_v13  ;;  %v5367_v13 = vpop.permute.xlu0 %5366 }
 0x40b   :  { %v5389_v28 = vsel %vm19528_vm15, %v5365_v60, %v5367_v13 }
 0x40c   :  { %13495 = vmatmul.mubr.msk.bf16.gmra.mrb[20].mxu0 %vm139_vm0, %v15082_v50  ;;  %v5386_v50 = vsel %vm19528_vm15, %v5359_v47, %v5361_v48 }
 0x40d   :  { %4933 = vmatprep.mubr.bf16.mxu0 %v16252_v52 }
 0x414   :  { %13502 = vmatmul.mubr.msk.bf16.vlgmr.msra.gmra.mrb[0].mxu0 %vm139_vm0, %v15083_v61 }
 0x415   :  { %4955 = vmatpush1.bf16.msra.mxu0 %v4873_v10  ;;  %4943 = vmatprep.mubr.bf16.mxu0 %v16252_v52  ;;  %v5383_v10 = vpop.permute.xlu1 %5382 }
 0x416   :  { %4956 = vmatprep.subr.bf16.mxu0 %v4880_v3  ;;  %v5381_v3 = vpop.permute.xlu0 %5380 }
 0x417   :  { %v5396_v33 = vsel %vm19528_vm15, %v5381_v3, %v5383_v10  ;;  %v5395_v6 = vsel %vm19528_vm15, %v5379_v0, %v5381_v3 }
 0x419   :  { %4957 = vmatpush1.bf16.msra.mxu0 %v4879_v4  ;;  %v5618_v4 = vpop.permute.xlu1 %5617 }
 0x41a   :  { %5007 = vmatprep.subr.bf16.mxu0 %v4876_v38  ;;  %v5616_v38 = vpop.permute.xlu0 %5615 }
 0x41c   :  { %13503 = vmatmul.mubr.msk.bf16.gmra.mrb[4].mxu0 %vm139_vm0, %v15084_v5 }
 0x41d   :  { %4986 = vmatprep.mubr.bf16.mxu0 %v16252_v52 }
 0x41e   :  { %v5614_v8 = vpop.permute.xlu0 %5613 }
 0x41f   :  { %v5642_v18 = vsel %vm19529_vm14, %v5614_v8, %v5616_v38 }
 0x424   :  { %13504 = vmatmul.mubr.msk.bf16.vlgmr.msra.gmra.mrb[8].mxu0 %vm139_vm0, %v15083_v61 }
 0x425   :  { %5008 = vmatpush1.bf16.msra.mxu0 %v4875_v14  ;;  %4996 = vmatprep.mubr.bf16.mxu0 %v16252_v52  ;;  %v5632_v14 = vpop.permute.xlu0 %5631 }
 0x426   :  { %5009 = vmatprep.subr.bf16.mxu0 %v4882_v9  ;;  %v5630_v9 = vpop.permute.xlu1 %5629 }
 0x429   :  { %5010 = vmatpush1.bf16.msra.mxu0 %v4881_v21  ;;  %v5620_v23 = vpop.permute.xlu0 %5619 }
 0x42a   :  { %5158 = vmatprep.subr.bf16.mxu0 %v5129_v19  ;;  %v5628_v15 = vpop.permute.xlu1 %5627  ;;  %v5649_v19 = vsel %vm19529_vm14, %v5630_v9, %v5632_v14  ;;  %v5644_v17 = vsel %vm19529_vm14, %v5618_v4, %v5620_v23 }
 0x42b   :  { %v5648_v24 = vsel %vm19529_vm14, %v5628_v15, %v5630_v9 }
 0x42c   :  { %13505 = vmatmul.mubr.msk.bf16.gmra.mrb[12].mxu0 %vm139_vm0, %v15084_v5 }
 0x42d   :  { %5039 = vmatprep.mubr.bf16.mxu0 %v16252_v52 }
 0x42e   :  { %v5622_v21 = vpop.permute.xlu1 %5621 }
 0x42f   :  { %v5645_v26 = vsel %vm19529_vm14, %v5620_v23, %v5622_v21  ;;  %v15093_v23 = vld [vmem:[%s19499_s1 + $0x180] sm:$0xff]  }
 0x434   :  { %13506 = vmatmul.mubr.msk.bf16.vlgmr.msra.gmra.mrb[16].mxu0 %vm139_vm0, %v15083_v61  ;;  %v5390_v61 = vsel %vm19528_vm15, %v5367_v13, %v5369_v2  ;;  %v15092_v13 = vld [vmem:[%s19499_s1 + $0x178] sm:$0xff]  }
 0x435   :  { %5159 = vmatpush1.bf16.msra.mxu0 %v5128_v29  ;;  %5049 = vmatprep.mubr.bf16.mxu0 %v16252_v52  ;;  %v5636_v29 = vpop.permute.xlu1 %5635 }
 0x436   :  { %5160 = vmatprep.subr.bf16.mxu0 %v5135_v7  ;;  %v5634_v7 = vpop.permute.xlu0 %5633 }
 0x437   :  { %v5651_v12 = vsel %vm19529_vm14, %v5634_v7, %v5636_v29  ;;  %v5650_v34 = vsel %vm19529_vm14, %v5632_v14, %v5634_v7 }
 0x439   :  { %5161 = vmatpush1.bf16.msra.mxu0 %v5134_v20  ;;  %v5626_v20 = vpop.permute.xlu1 %5625 }
 0x43a   :  { %5211 = vmatprep.subr.bf16.mxu0 %v5131_v25  ;;  %v5624_v25 = vpop.permute.xlu0 %5623 }
 0x43b   :  { %v5646_v42 = vsel %vm19529_vm14, %v5622_v21, %v5624_v25 }
 0x43c   :  { %13507 = vmatmul.mubr.msk.bf16.gmra.mrb[20].mxu0 %vm139_vm0, %v15084_v5  ;;  %v5643_v5 = vsel %vm19529_vm14, %v5616_v38, %v5618_v4 }
 0x43d   :  { %5190 = vmatprep.mubr.bf16.mxu0 %v16252_v52 }
 0x444   :  { %13514 = vmatmul.mubr.msk.bf16.vlgmr.msra.gmra.mrb[0].mxu0 %vm139_vm0, %v15085_v31 }
 0x445   :  { %5212 = vmatpush1.bf16.msra.mxu0 %v5130_v36  ;;  %5200 = vmatprep.mubr.bf16.mxu0 %v16252_v52  ;;  %v6370_v36 = vld [vmem:[%s19500_s2 + $0x8] sm:$0xff] }
 0x446   :  { %5213 = vmatprep.subr.bf16.mxu0 %v5137_v35  ;;  %v6369_v35 = vld [vmem:[%s19500_s2] sm:$0xff]  ;;  %6380 = vperm.xlu1 %15044, %v6370_v36  }
 0x447   :  { %6375 = vperm.xlu0 %15043, %v6369_v35  }
 0x449   :  { %5214 = vmatpush1.bf16.msra.mxu0 %v5136_v40  ;;  %v5640_v40 = vpop.permute.xlu1 %5639 }
 0x44a   :  { %5264 = vmatprep.subr.bf16.mxu0 %v5133_v39  ;;  %v5638_v39 = vpop.permute.xlu0 %5637  ;;  %6385 = vperm.xlu1 %15044, %v6371_v32   ;;  %v6442_v32 = vlaneseq }
 0x44b   :  { %6390 = vperm.xlu0 %15043, %v6372_v37   ;;  %v5652_v47 = vsel %vm19529_vm14, %v5636_v29, %v5638_v39 }
 0x44c   :  { %13515 = vmatmul.mubr.msk.bf16.gmra.mrb[4].mxu0 %vm139_vm0, %v15086_v41  ;;  %v16803_v37 = vshrl.u32 %v6442_v32, 7 }
 0x44d   :  { %5243 = vmatprep.mubr.bf16.mxu0 %v16252_v52 }
 0x44e   :  { %v5873_v44 = vpop.permute.xlu0 %5872 }
 0x452   :  { %v5871_v48 = vpop.permute.xlu0 %5870 }
 0x454   :  { %13516 = vmatmul.mubr.msk.bf16.vlgmr.msra.gmra.mrb[8].mxu0 %vm139_vm0, %v15085_v31 }
 0x455   :  { %5265 = vmatpush1.bf16.msra.mxu0 %v5132_v46  ;;  %5253 = vmatprep.mubr.bf16.mxu0 %v16252_v52 }
 0x456   :  { %5266 = vmatprep.subr.bf16.mxu0 %v5139_v45  ;;  %v5875_v45 = vpop.permute.xlu1 %5874 }
 0x459   :  { %5267 = vmatpush1.bf16.msra.mxu0 %v5138_v51  ;;  %v5889_v51 = vpop.permute.xlu0 %5888 }
 0x45a   :  { %5415 = vmatprep.subr.bf16.mxu0 %v5386_v50  ;;  %v5887_v50 = vpop.permute.xlu1 %5886 }
 0x45c   :  { %13517 = vmatmul.mubr.msk.bf16.gmra.mrb[12].mxu0 %vm139_vm0, %v15086_v41 }
 0x45d   :  { %5296 = vmatprep.mubr.bf16.mxu0 %v16252_v52  ;;  %v5388_v52 = vsel %vm19528_vm15, %v5363_v63, %v5365_v60  ;;  %vm19531_vm15 = vcmask 367616   ;;  %v15091_v63 = vld [vmem:[%s19499_s1 + $0x170] sm:$0xff]  }
 0x45e   :  { %v5900_v46 = vsel %vm19531_vm15, %v5873_v44, %v5875_v45  ;;  %v5885_v54 = vpop.permute.xlu1 %5884  ;;  %v5899_v55 = vsel %vm19531_vm15, %v5871_v48, %v5873_v44  ;;  %v5906_v56 = vsel %vm19531_vm15, %v5887_v50, %v5889_v51  ;;  %v6448_v44 = vsub.s32 1, %v16803_v37 }
 0x462   :  { %v5879_v57 = vpop.permute.xlu1 %5878 }
 0x464   :  { %13518 = vmatmul.mubr.msk.bf16.vlgmr.msra.gmra.mrb[16].mxu0 %vm139_vm0, %v15085_v31  ;;  %v5647_v31 = vsel %vm19529_vm14, %v5624_v25, %v5626_v20  ;;  %v15094_v25 = vld [vmem:[%s19499_s1 + $0x188] sm:$0xff]   ;;  %s19682_s1 = smov 45  }
 0x465   :  { %5416 = vmatpush1.bf16.msra.mxu0 %v5385_v58  ;;  %5306 = vmatprep.mubr.bf16.mxu0 %v16670_v62  ;;  %v5877_v58 = vpop.permute.xlu0 %5876 }
 0x466   :  { %5417 = vmatprep.subr.bf16.mxu0 %v5392_v59  ;;  %v5905_v59 = vsel %vm19531_vm15, %v5885_v54, %v5887_v50  ;;  %v5902_v60 = vsel %vm19531_vm15, %v5877_v58, %v5879_v57  ;;  %v5901_v0 = vsel %vm19531_vm15, %v5875_v45, %v5877_v58 }
 0x469   :  { %5418 = vmatpush1.bf16.msra.mxu0 %v5391_v43  ;;  %v5893_v43 = vpop.permute.xlu1 %5892 }
 0x46a   :  { %5468 = vmatprep.subr.bf16.mxu0 %v5388_v52  ;;  %v5891_v52 = vpop.permute.xlu0 %5890 }
 0x46b   :  { %v5907_v2 = vsel %vm19531_vm15, %v5889_v51, %v5891_v52 }
 0x46c   :  { %13519 = vmatmul.mubr.msk.bf16.gmra.mrb[20].mxu0 %vm139_vm0, %v15086_v41  ;;  %v5653_v41 = vsel %vm19529_vm14, %v5638_v39, %v5640_v40  ;;  %vm19530_vm14 = vcmask 359424   ;;  %v6444_v40 = vsub.s32 0, %v16803_v37 }
 0x46d   :  { %5447 = vmatprep.mubr.bf16.mxu0 %v16670_v62  ;;  %v5883_v1 = vpop.permute.xlu1 %5882 }
 0x474   :  { %13526 = vmatmul.mubr.msk.bf16.vlgmr.msra.gmra.mrb[0].mxu0 %vm139_vm0, %v15087_v11 }
 0x475   :  { %5469 = vmatpush1.bf16.msra.mxu0 %v5387_v53  ;;  %5457 = vmatprep.mubr.bf16.mxu0 %v16670_v62 }
 0x476   :  { %5470 = vmatprep.subr.bf16.mxu0 %v5394_v49  ;;  %v5881_v49 = vpop.permute.xlu0 %5880 }
 0x477   :  { %v5904_v53 = vsel %vm19531_vm15, %v5881_v49, %v5883_v1  ;;  %v5903_v3 = vsel %vm19531_vm15, %v5879_v57, %v5881_v49 }
 0x479   :  { %5471 = vmatpush1.bf16.msra.mxu0 %v5393_v16  ;;  %v5897_v16 = vpop.permute.xlu1 %5896 }
 0x47a   :  { %5521 = vmatprep.subr.bf16.mxu0 %v5390_v61  ;;  %v5895_v61 = vpop.permute.xlu0 %5894 }
 0x47b   :  { %v5909_v38 = vsel %vm19531_vm15, %v5893_v43, %v5895_v61 }
 0x47c   :  { %13527 = vmatmul.mubr.msk.bf16.gmra.mrb[4].mxu0 %vm139_vm0, %v15088_v22 }
 0x47d   :  { %5500 = vmatprep.mubr.bf16.mxu0 %v16670_v62 }
 0x47e   :  { %v6130_v10 = vpop.permute.xlu0 %6129 }
 0x482   :  { %v6128_v4 = vpop.permute.xlu0 %6127 }
 0x483   :  { %v6156_v9 = vsel %vm19530_vm14, %v6128_v4, %v6130_v10 }
 0x484   :  { %13528 = vmatmul.mubr.msk.bf16.vlgmr.msra.gmra.mrb[8].mxu0 %vm139_vm0, %v15087_v11 }
 0x485   :  { %5522 = vmatpush1.bf16.msra.mxu0 %v5389_v28  ;;  %5510 = vmatprep.mubr.bf16.mxu0 %v16670_v62 }
 0x486   :  { %5523 = vmatprep.subr.bf16.mxu0 %v5396_v33  ;;  %v6132_v33 = vpop.permute.xlu1 %6131 }
 0x487   :  { %v6157_v28 = vsel %vm19530_vm14, %v6130_v10, %v6132_v33 }
 0x489   :  { %5524 = vmatpush1.bf16.msra.mxu0 %v5395_v6  ;;  %v6146_v6 = vpop.permute.xlu0 %6145 }
 0x48a   :  { %5672 = vmatprep.subr.bf16.mxu0 %v5643_v5  ;;  %v6144_v5 = vpop.permute.xlu1 %6143 }
 0x48b   :  { %v6163_v14 = vsel %vm19530_vm14, %v6144_v5, %v6146_v6 }
 0x48c   :  { %13529 = vmatmul.mubr.msk.bf16.gmra.mrb[12].mxu0 %vm139_vm0, %v15088_v22 }
 0x48d   :  { %5553 = vmatprep.mubr.bf16.mxu0 %v16670_v62 }
 0x48e   :  { %v6142_v8 = vpop.permute.xlu1 %6141 }
 0x492   :  { %v6136_v15 = vpop.permute.xlu1 %6135 }
 0x494   :  { %13530 = vmatmul.mubr.msk.bf16.vlgmr.msra.gmra.mrb[16].mxu0 %vm139_vm0, %v15087_v11  ;;  %v5908_v11 = vsel %vm19531_vm15, %v5891_v52, %v5893_v43 }
 0x495   :  { %5673 = vmatpush1.bf16.msra.mxu0 %v5642_v18  ;;  %5563 = vmatprep.mubr.bf16.mxu0 %v16670_v62  ;;  %v6134_v18 = vpop.permute.xlu0 %6133 }
 0x496   :  { %5674 = vmatprep.subr.bf16.mxu0 %v5649_v19  ;;  %v6162_v19 = vsel %vm19530_vm14, %v6142_v8, %v6144_v5  ;;  %v6159_v21 = vsel %vm19530_vm14, %v6134_v18, %v6136_v15  ;;  %v6158_v29 = vsel %vm19530_vm14, %v6132_v33, %v6134_v18 }
 0x499   :  { %5675 = vmatpush1.bf16.msra.mxu0 %v5648_v24  ;;  %v6150_v24 = vpop.permute.xlu1 %6149 }
 0x49a   :  { %5725 = vmatprep.subr.bf16.mxu0 %v5645_v26  ;;  %v6148_v26 = vpop.permute.xlu0 %6147 }
 0x49b   :  { %v6164_v20 = vsel %vm19530_vm14, %v6146_v6, %v6148_v26 }
 0x49c   :  { %13531 = vmatmul.mubr.msk.bf16.gmra.mrb[20].mxu0 %vm139_vm0, %v15088_v22  ;;  %v5910_v22 = vsel %vm19531_vm15, %v5895_v61, %v5897_v16  ;;  %vm6558_vm15 = vcmask 343040  }
 0x49d   :  { %5704 = vmatprep.mubr.bf16.mxu0 %v16670_v62  ;;  %v6140_v7 = vpop.permute.xlu1 %6139 }
 0x4a4   :  { %13538 = vmatmul.mubr.msk.bf16.vlgmr.msra.gmra.mrb[0].mxu0 %vm139_vm0, %v15089_v27 }
 0x4a5   :  { %5726 = vmatpush1.bf16.msra.mxu0 %v5644_v17  ;;  %5714 = vmatprep.mubr.bf16.mxu0 %v16670_v62 }
 0x4a6   :  { %5727 = vmatprep.subr.bf16.mxu0 %v5651_v12  ;;  %v6138_v12 = vpop.permute.xlu0 %6137 }
 0x4a7   :  { %v6161_v17 = vsel %vm19530_vm14, %v6138_v12, %v6140_v7  ;;  %v6160_v35 = vsel %vm19530_vm14, %v6136_v15, %v6138_v12 }
 0x4a9   :  { %5728 = vmatpush1.bf16.msra.mxu0 %v5650_v34 }
 0x4aa   :  { %5778 = vmatprep.subr.bf16.mxu0 %v5647_v31  ;;  %v6154_v31 = vpop.permute.xlu1 %6153  ;;  %v6152_v34 = vpop.permute.xlu0 %6151 }
 0x4ab   :  { %v6166_v36 = vsel %vm19530_vm14, %v6150_v24, %v6152_v34 }
 0x4ac   :  { %13539 = vmatmul.mubr.msk.bf16.gmra.mrb[4].mxu0 %vm139_vm0, %v15090_v30 }
 0x4ad   :  { %5757 = vmatprep.mubr.bf16.mxu0 %v16670_v62 }
 0x4b4   :  { %13540 = vmatmul.mubr.msk.bf16.vlgmr.msra.gmra.mrb[8].mxu0 %vm139_vm0, %v15089_v27 }
 0x4b5   :  { %5779 = vmatpush1.bf16.msra.mxu0 %v5646_v42  ;;  %5767 = vmatprep.mubr.bf16.mxu0 %v16670_v62 }
 0x4b6   :  { %5780 = vmatprep.subr.bf16.mxu0 %v5653_v41  ;;  %v16811_v41 = vld [vmem:[%s19501_s5] sm:$0x3f]  ;;  %s15178_s5 = smov 42  }
 0x4b7   :  { %v16819_v54 = vrot.slane %v16811_v41, %v6444_v40  ;;  %v16823_v58 = vrot.slane %v16811_v41, %v6448_v44 }
 0x4b9   :  { %5781 = vmatpush1.bf16.msra.mxu0 %v5652_v47  ;;  %19601 = vst [vmem:[#allocation3_spill] sm:$0xff] %v16819_v54  ;;  %19602 = vst [vmem:[#allocation4_spill] sm:$0xff] %v16823_v58 }
 0x4ba   :  { %5929 = vmatprep.subr.bf16.mxu0 %v5900_v46 }
 0x4bc   :  { %13541 = vmatmul.mubr.msk.bf16.gmra.mrb[12].mxu0 %vm139_vm0, %v15090_v30 }
 0x4bd   :  { %5810 = vmatprep.mubr.bf16.mxu0 %v16670_v62 }
 0x4c4   :  { %13542 = vmatmul.mubr.msk.bf16.vlgmr.msra.gmra.mrb[16].mxu0 %vm139_vm0, %v15089_v27  ;;  %v6165_v27 = vsel %vm19530_vm14, %v6148_v26, %v6150_v24 }
 0x4c5   :  { %5930 = vmatpush1.bf16.msra.mxu0 %v5899_v55  ;;  %5820 = vmatprep.mubr.bf16.mxu0 %v16670_v62  ;;  %v16814_v45 = vpop.permute.xlu1 %6380 }
 0x4c6   :  { %5931 = vmatprep.subr.bf16.mxu0 %v5906_v56  ;;  %v16805_v39 = vpop.permute.xlu0 %6375 }
 0x4c9   :  { %5932 = vmatpush1.bf16.msra.mxu0 %v5905_v59  ;;  %v16826_v43 = vpop.permute.xlu1 %6385 }
 0x4ca   :  { %5982 = vmatprep.subr.bf16.mxu0 %v5902_v60 }
 0x4cc   :  { %13543 = vmatmul.mubr.msk.bf16.gmra.mrb[20].mxu0 %vm139_vm0, %v15090_v30  ;;  %v6167_v30 = vsel %vm19530_vm14, %v6152_v34, %v6154_v31  ;;  %vm19532_vm14 = vcmask 1047888  }
 0x4cd   :  { %5961 = vmatprep.mubr.bf16.mxu0 %v16670_v62 }
 0x4d4   :  { %13550 = vmatmul.mubr.msk.bf16.vlgmr.msra.gmra.mrb[0].mxu0 %vm139_vm0, %v15091_v63 }
 0x4d5   :  { %5983 = vmatpush1.bf16.msra.mxu0 %v5901_v0  ;;  %5971 = vmatprep.mubr.bf16.mxu0 %v16670_v62 }
 0x4d6   :  { %5984 = vmatprep.subr.bf16.mxu0 %v5908_v11 }
 0x4d9   :  { %5985 = vmatpush1.bf16.msra.mxu0 %v5907_v2 }
 0x4da   :  { %6035 = vmatprep.subr.bf16.mxu0 %v5904_v53  ;;  %v16832_v53 = vpop.permute.xlu0 %6390 }
 0x4dc   :  { %13551 = vmatmul.mubr.msk.bf16.gmra.mrb[4].mxu0 %vm139_vm0, %v15092_v13 }
 0x4dd   :  { %6014 = vmatprep.mubr.bf16.mxu0 %v16670_v62 }
 0x4e4   :  { %13552 = vmatmul.mubr.msk.bf16.vlgmr.msra.gmra.mrb[8].mxu0 %vm139_vm0, %v15091_v63 }
 0x4e5   :  { %6036 = vmatpush1.bf16.msra.mxu0 %v5903_v3  ;;  %6024 = vmatprep.mubr.bf16.mxu0 %v16670_v62 }
 0x4e6   :  { %6037 = vmatprep.subr.bf16.mxu0 %v5910_v22 }
 0x4e9   :  { %6038 = vmatpush1.bf16.msra.mxu0 %v5909_v38 }
 0x4ea   :  { %6186 = vmatprep.subr.bf16.mxu0 %v6157_v28 }
 0x4ec   :  { %13553 = vmatmul.mubr.msk.bf16.gmra.mrb[12].mxu0 %vm139_vm0, %v15092_v13 }
 0x4ed   :  { %6067 = vmatprep.mubr.bf16.mxu0 %v16670_v62 }
 0x4f4   :  { %13554 = vmatmul.mubr.msk.bf16.vlgmr.msra.gmra.mrb[16].mxu0 %vm139_vm0, %v15091_v63 }
 0x4f5   :  { %6187 = vmatpush1.bf16.msra.mxu0 %v6156_v9  ;;  %6077 = vmatprep.mubr.bf16.mxu0 %v16670_v62 }
 0x4f6   :  { %6188 = vmatprep.subr.bf16.mxu0 %v6163_v14  ;;  %v6452_v14 = vsub.s32 2, %v16803_v37 }
 0x4f9   :  { %6189 = vmatpush1.bf16.msra.mxu0 %v6162_v19 }
 0x4fa   :  { %6239 = vmatprep.subr.bf16.mxu0 %v6159_v21  ;;  %v6456_v21 = vsub.s32 3, %v16803_v37 }
 0x4fc   :  { %13555 = vmatmul.mubr.msk.bf16.gmra.mrb[20].mxu0 %vm139_vm0, %v15092_v13  ;;  %v16854_v34 = vrot.slane %v16811_v41, %v6456_v21 }
 0x4fd   :  { %6218 = vmatprep.mubr.bf16.mxu0 %v16670_v62 }
 0x4fe   :  { %19604 = vst [vmem:[#allocation6_spill] sm:$0xff] %v16854_v34 }
 0x504   :  { %13562 = vmatmul.mubr.msk.bf16.vlgmr.msra.gmra.mrb[0].mxu0 %vm139_vm0, %v15093_v23 }
 0x505   :  { %6240 = vmatpush1.bf16.msra.mxu0 %v6158_v29  ;;  %6228 = vmatprep.mubr.bf16.mxu0 %v16670_v62 }
 0x506   :  { %6241 = vmatprep.subr.bf16.mxu0 %v6165_v27 }
 0x509   :  { %6242 = vmatpush1.bf16.msra.mxu0 %v6164_v20 }
 0x50a   :  { %6292 = vmatprep.subr.bf16.mxu0 %v6161_v17  ;;  %v16849_v17 = vrot.slane %v16811_v41, %v6452_v14 }
 0x50c   :  { %13563 = vmatmul.mubr.msk.bf16.gmra.mrb[4].mxu0 %vm139_vm0, %v15094_v25  ;;  %19603 = vst [vmem:[#allocation5_spill] sm:$0xff] %v16849_v17 }
 0x50d   :  { %6271 = vmatprep.mubr.bf16.mxu0 %v16670_v62 }
 0x514   :  { %13564 = vmatmul.mubr.msk.bf16.vlgmr.msra.gmra.mrb[8].mxu0 %vm139_vm0, %v15093_v23 }
 0x515   :  { %6293 = vmatpush1.bf16.msra.mxu0 %v6160_v35  ;;  %6281 = vmatprep.mubr.bf16.mxu0 %v16670_v62 }
 0x516   :  { %6294 = vmatprep.subr.bf16.mxu0 %v6167_v30 }
 0x519   :  { %6295 = vmatpush1.bf16.msra.mxu0 %v6166_v36 }
 0x51c   :  { %13565 = vmatmul.mubr.msk.bf16.gmra.mrb[12].mxu0 %vm139_vm0, %v15094_v25 }
 0x51d   :  { %6324 = vmatprep.mubr.bf16.mxu0 %v16670_v62 }
 0x524   :  { %13566 = vmatmul.mubr.msk.bf16.vlgmr.msra.gmra.mrb[16].mxu0 %vm139_vm0, %v15093_v23 }
 0x525   :  { %6334 = vmatprep.mubr.bf16.mxu0 %v16670_v62 }
 0x52c   :  { %13567 = vmatmul.mubr.msk.bf16.gmra.mrb[20].mxu0 %vm139_vm0, %v15094_v25 }
 0x5d7   :  { %v6220_v42 = vpop.f32.mrb[0].mxu0 }
 0x5d8   :  { %v6393_v46 = vadd.f32 %v16805_v39, %v6220_v42  ;;  %v6222_v47 = vpop.f32.mrb[1].mxu0 }
 0x5d9   :  { %v6394_v48 = vadd.f32 %v16805_v39, %v6222_v47  ;;  %v6224_v50 = vpop.f32.mrb[2].mxu0 }
 0x5da   :  { %v6417_v51 = vmax.f32 %v6393_v46, 0.0  ;;  %v6226_v55 = vpop.f32.mrb[3].mxu0  ;;  %v6399_v56 = vadd.f32 %v16814_v45, %v6224_v50 }
 0x5db   :  { %v6418_v57 = vmax.f32 %v6394_v48, 0.0  ;;  %v6400_v59 = vadd.f32 %v16814_v45, %v6226_v55 }
 0x5dc   :  { %v6423_v60 = vmax.f32 %v6399_v56, 0.0  ;;  %v6472_v52 = vmul.f32 %v16819_v54, %v6417_v51 }
 0x5dd   :  { %v6424_v63 = vmax.f32 %v6400_v59, 0.0  ;;  %v6473_v0 = vmul.f32 %v16823_v58, %v6418_v57 }
 0x5de   :  { %v6478_v11 = vmul.f32 %v16819_v54, %v6423_v60 }
 0x5df   :  { %v6479_v1 = vmul.f32 %v16823_v58, %v6424_v63  ;;  %v6230_v49 = vpop.f32.mrb[4].mxu0 }
 0x5e0   :  { %v6232_v2 = vpop.f32.mrb[5].mxu0  ;;  %v6405_v13 = vadd.f32 %v16826_v43, %v6230_v49  ;;  %v6510_v61 = vpack.c.bf16 %v6478_v11, %v6472_v52 }
 0x5e1   :  { %v6511_v16 = vpack.c.bf16 %v6479_v1, %v6473_v0  ;;  %v6406_v22 = vadd.f32 %v16826_v43, %v6232_v2  ;;  %v6234_v3 = vpop.f32.mrb[6].mxu0  ;;  %v6460_v2 = vsub.s32 4, %v16803_v37 }
 0x5e2   :  { %v6411_v10 = vadd.f32 %v16832_v53, %v6234_v3  ;;  %v6429_v33 = vmax.f32 %v6405_v13, 0.0  ;;  %v6236_v28 = vpop.f32.mrb[7].mxu0  ;;  %6534 = vrot.lane.b32.xlu1 %v6510_v61, %s15178_s5 }
 0x5e3   :  { %v6430_v38 = vmax.f32 %v6406_v22, 0.0  ;;  %v6412_v4 = vadd.f32 %v16832_v53, %v6236_v28  ;;  %6536 = vrot.lane.b32.xlu0 %v6511_v16, %s15178_s5  ;;  %v6464_v22 = vsub.s32 5, %v16803_v37 }
 0x5e4   :  { %v6435_v5 = vmax.f32 %v6411_v10, 0.0  ;;  %v6484_v8 = vmul.f32 %v16819_v54, %v6429_v33 }
 0x5e5   :  { %v6436_v6 = vmax.f32 %v6412_v4, 0.0  ;;  %v6485_v15 = vmul.f32 %v16823_v58, %v6430_v38  ;;  %v16882_v14 = vrot.slane %v16811_v41, %v6464_v22 }
 0x5e6   :  { %v6490_v9 = vmul.f32 %v16819_v54, %v6435_v5 }
 0x5e7   :  { %v6491_v18 = vmul.f32 %v16823_v58, %v6436_v6  ;;  %v6273_v19 = vpop.f32.mrb[8].mxu0  ;;  %v16876_v6 = vrot.slane %v16811_v41, %v6460_v2  ;;  %19606 = vst [vmem:[#allocation8_spill] sm:$0xff] %v16882_v14 }
 0x5e8   :  { %v6516_v23 = vpack.c.bf16 %v6490_v9, %v6484_v8  ;;  %v6395_v24 = vadd.f32 %v16805_v39, %v6273_v19  ;;  %v6275_v26 = vpop.f32.mrb[9].mxu0 }
 0x5e9   :  { %v6517_v27 = vpack.c.bf16 %v6491_v18, %v6485_v15  ;;  %v6396_v29 = vadd.f32 %v16805_v39, %v6275_v26  ;;  %v6277_v7 = vpop.f32.mrb[10].mxu0  ;;  %19605 = vst [vmem:[#allocation7_spill] sm:$0xff] %v16876_v6 }
 0x5ea   :  { %v6419_v12 = vmax.f32 %v6395_v24, 0.0  ;;  %v6401_v20 = vadd.f32 %v16814_v45, %v6277_v7  ;;  %v6279_v25 = vpop.f32.mrb[11].mxu0  ;;  %6546 = vrot.lane.b32.xlu0 %v6516_v23, %s15178_s5 }
 0x5eb   :  { %v6420_v31 = vmax.f32 %v6396_v29, 0.0  ;;  %v6402_v30 = vadd.f32 %v16814_v45, %v6279_v25 }
 0x5ec   :  { %v6425_v35 = vmax.f32 %v6401_v20, 0.0  ;;  %v6474_v32 = vmul.f32 %v16849_v17, %v6419_v12 }
 0x5ed   :  { %v6426_v36 = vmax.f32 %v6402_v30, 0.0  ;;  %v6475_v42 = vmul.f32 %v16854_v34, %v6420_v31 }
 0x5ee   :  { %v6480_v40 = vmul.f32 %v16849_v17, %v6425_v35 }
 0x5ef   :  { %v6481_v44 = vmul.f32 %v16854_v34, %v6426_v36  ;;  %v6283_v46 = vpop.f32.mrb[12].mxu0 }
 0x5f0   :  { %v6512_v47 = vpack.c.bf16 %v6480_v40, %v6474_v32  ;;  %v6407_v48 = vadd.f32 %v16826_v43, %v6283_v46  ;;  %v6285_v50 = vpop.f32.mrb[13].mxu0 }
 0x5f1   :  { %v6513_v51 = vpack.c.bf16 %v6481_v44, %v6475_v42  ;;  %v6408_v55 = vadd.f32 %v16826_v43, %v6285_v50  ;;  %v6287_v56 = vpop.f32.mrb[14].mxu0 }
 0x5f2   :  { %v6431_v57 = vmax.f32 %v6407_v48, 0.0  ;;  %v6413_v59 = vadd.f32 %v16832_v53, %v6287_v56  ;;  %v6289_v60 = vpop.f32.mrb[15].mxu0  ;;  %6538 = vrot.lane.b32.xlu1 %v6512_v47, %s15178_s5 }
 0x5f3   :  { %v6432_v63 = vmax.f32 %v6408_v55, 0.0  ;;  %v6414_v52 = vadd.f32 %v16832_v53, %v6289_v60 }
 0x5f4   :  { %v6437_v11 = vmax.f32 %v6413_v59, 0.0  ;;  %v6486_v1 = vmul.f32 %v16849_v17, %v6431_v57 }
 0x5f5   :  { %v6438_v0 = vmax.f32 %v6414_v52, 0.0  ;;  %v6487_v13 = vmul.f32 %v16854_v34, %v6432_v63 }
 0x5f6   :  { %v6492_v49 = vmul.f32 %v16849_v17, %v6437_v11  ;;  %6548 = vrot.lane.b32.xlu1 %v6517_v27, %s15178_s5 }
 0x5f7   :  { %v6493_v61 = vmul.f32 %v16854_v34, %v6438_v0  ;;  %v6326_v16 = vpop.f32.mrb[16].mxu0 }
 0x5f8   :  { %v6518_v3 = vpack.c.bf16 %v6492_v49, %v6486_v1  ;;  %v6397_v10 = vadd.f32 %v16805_v39, %v6326_v16  ;;  %v6328_v33 = vpop.f32.mrb[17].mxu0 }
 0x5f9   :  { %v6519_v28 = vpack.c.bf16 %v6493_v61, %v6487_v13  ;;  %v6398_v38 = vadd.f32 %v16805_v39, %v6328_v33  ;;  %v6330_v4 = vpop.f32.mrb[18].mxu0 }
 0x5fa   :  { %v6421_v5 = vmax.f32 %v6397_v10, 0.0  ;;  %v6403_v8 = vadd.f32 %v16814_v45, %v6330_v4  ;;  %v6332_v9 = vpop.f32.mrb[19].mxu0  ;;  %6540 = vrot.lane.b32.xlu1 %v6513_v51, %s15178_s5  ;;  %6550 = vrot.lane.b32.xlu0 %v6518_v3, %s15178_s5 }
 0x5fb   :  { %v6422_v37 = vmax.f32 %v6398_v38, 0.0  ;;  %v6404_v15 = vadd.f32 %v16814_v45, %v6332_v9 }
 0x5fc   :  { %v6427_v18 = vmax.f32 %v6403_v8, 0.0  ;;  %v6476_v19 = vmul.f32 %v16876_v6, %v6421_v5 }
 0x5fd   :  { %v6428_v39 = vmax.f32 %v6404_v15, 0.0  ;;  %v6477_v23 = vmul.f32 %v16882_v14, %v6422_v37 }
 0x5fe   :  { %v6482_v21 = vmul.f32 %v16876_v6, %v6427_v18  ;;  %6552 = vrot.lane.b32.xlu1 %v6519_v28, %s15178_s5 }
 0x5ff   :  { %v6483_v24 = vmul.f32 %v16882_v14, %v6428_v39  ;;  %v6336_v26 = vpop.f32.mrb[20].mxu0 }
 0x600   :  { %v6514_v27 = vpack.c.bf16 %v6482_v21, %v6476_v19  ;;  %v6409_v29 = vadd.f32 %v16826_v43, %v6336_v26  ;;  %v6338_v41 = vpop.f32.mrb[21].mxu0 }
 0x601   :  { %v6515_v7 = vpack.c.bf16 %v6483_v24, %v6477_v23  ;;  %v6410_v45 = vadd.f32 %v16826_v43, %v6338_v41  ;;  %v6340_v12 = vpop.f32.mrb[22].mxu0  ;;  %v15095_v24 = vld [vmem:[%s19502_s3 + $0x10] sm:$0xff]  }
 0x602   :  { %v6433_v20 = vmax.f32 %v6409_v29, 0.0  ;;  %v6415_v25 = vadd.f32 %v16832_v53, %v6340_v12  ;;  %v6342_v31 = vpop.f32.mrb[23].mxu0  ;;  %6542 = vrot.lane.b32.xlu0 %v6514_v27, %s15178_s5 }
 0x603   :  { %v6434_v30 = vmax.f32 %v6410_v45, 0.0  ;;  %v6416_v35 = vadd.f32 %v16832_v53, %v6342_v31  ;;  %6544 = vrot.lane.b32.xlu1 %v6515_v7, %s15178_s5  ;;  %v15096_v7 = vld [vmem:[%s19502_s3 + $0x18] sm:$0xff]  }
 0x604   :  { %v6439_v36 = vmax.f32 %v6415_v25, 0.0  ;;  %v6488_v40 = vmul.f32 %v16876_v6, %v6433_v20 }
 0x605   :  { %v6440_v32 = vmax.f32 %v6416_v35, 0.0  ;;  %v6489_v43 = vmul.f32 %v16882_v14, %v6434_v30 }
 0x606   :  { %v6494_v42 = vmul.f32 %v16876_v6, %v6439_v36 }
 0x607   :  { %v6495_v44 = vmul.f32 %v16882_v14, %v6440_v32 }
 0x608   :  { %v6520_v46 = vpack.c.bf16 %v6494_v42, %v6488_v40 }
 0x609   :  { %v6521_v47 = vpack.c.bf16 %v6495_v44, %v6489_v43 }
 0x60a   :  { %6554 = vrot.lane.b32.xlu0 %v6520_v46, %s15178_s5 }
 0x60e   :  { %6556 = vrot.lane.b32.xlu0 %v6521_v47, %s15178_s5 }
 0x654   :  { %v6535_v53 = vpop.permute.xlu1 %6534 }
 0x655   :  { %6582 = vst.msk [vmem:[#allocation2] sm:$0xff] %vm19532_vm14, %v6535_v53  ;;  %v6537_v48 = vpop.permute.xlu0 %6536 }
 0x656   :  { %v16904_v50 = vsel %vm6558_vm15, %v6535_v53, %v6537_v48 }
 0x657   :  { %6583 = vst [vmem:[#allocation2 + $0x8] sm:$0xff] %v16904_v50 }
 0x65c   :  { %v16907_v51 = vld [vmem:[#allocation2] sm:$0xff]  ;;  %v6547_v55 = vpop.permute.xlu0 %6546 }
 0x65d   :  { %6589 = vst.msk [vmem:[#allocation2 + $0x38] sm:$0xff] %vm19532_vm14, %v6547_v55  ;;  %6638 = vrot.lane.b32.xlu1 %v16907_v51, %s15153_s13  ;;  %vm6587_vm14 = vcmask 965632  }
 0x661   :  { %6640 = vrot.lane.b32.xlu1 %v16904_v50, %s15153_s13 }
 0x664   :  { %v6539_v56 = vpop.permute.xlu1 %6538  ;;  %v16926_v11 = vld [vmem:[#allocation2 + $0x38] sm:$0xff] }
 0x665   :  { %v16915_v57 = vsel %vm6558_vm15, %v6537_v48, %v6539_v56 }
 0x666   :  { %6584 = vst [vmem:[#allocation2 + $0x10] sm:$0xff] %v16915_v57  ;;  %6642 = vrot.lane.b32.xlu0 %v16915_v57, %s15153_s13 }
 0x668   :  { %v6549_v59 = vpop.permute.xlu1 %6548 }
 0x669   :  { %v16921_v60 = vsel %vm6558_vm15, %v6547_v55, %v6549_v59 }
 0x66a   :  { %6590 = vst [vmem:[#allocation2 + $0x40] sm:$0xff] %v16921_v60  ;;  %6652 = vrot.lane.b32.xlu0 %v16921_v60, %s15153_s13 }
 0x66c   :  { %v6551_v63 = vpop.permute.xlu0 %6550  ;;  %v6541_v52 = vpop.permute.xlu1 %6540 }
 0x66d   :  { %v16929_v0 = vsel %vm6558_vm15, %v6549_v59, %v6551_v63  ;;  %v16932_v1 = vsel %vm6558_vm15, %v6539_v56, %v6541_v52 }
 0x66e   :  { %6591 = vst [vmem:[#allocation2 + $0x48] sm:$0xff] %v16929_v0  ;;  %6585 = vst [vmem:[#allocation2 + $0x18] sm:$0xff] %v16932_v1  ;;  %6654 = vrot.lane.b32.xlu1 %v16929_v0, %s15153_s13  ;;  %6650 = vrot.lane.b32.xlu0 %v16926_v11, %s15153_s13 }
 0x670   :  { %v6553_v49 = vpop.permute.xlu1 %6552 }
 0x671   :  { %v16941_v2 = vsel %vm6558_vm15, %v6551_v63, %v6553_v49 }
 0x672   :  { %6592 = vst [vmem:[#allocation2 + $0x50] sm:$0xff] %v16941_v2  ;;  %6644 = vrot.lane.b32.xlu1 %v16932_v1, %s15153_s13 }
 0x674   :  { %v6543_v13 = vpop.permute.xlu0 %6542 }
 0x675   :  { %v16947_v61 = vsel %vm6558_vm15, %v6541_v52, %v6543_v13  ;;  %v6545_v16 = vpop.permute.xlu1 %6544 }
 0x676   :  { %6586 = vst [vmem:[#allocation2 + $0x20] sm:$0xff] %v16947_v61  ;;  %v6563_v22 = vsel %vm6558_vm15, %v6543_v13, %v6545_v16  ;;  %6646 = vrot.lane.b32.xlu0 %v16947_v61, %s15153_s13  ;;  %6656 = vrot.lane.b32.xlu1 %v16941_v2, %s15153_s13 }
 0x677   :  { %6588 = vst.msk [vmem:[#allocation2 + $0x28] sm:$0xff] %vm6587_vm14, %v6563_v22 }
 0x67c   :  { %v6555_v3 = vpop.permute.xlu0 %6554 }
 0x67d   :  { %v16957_v10 = vsel %vm6558_vm15, %v6553_v49, %v6555_v3  ;;  %v15097_v49 = vld [vmem:[%s19502_s3] sm:$0xff]  }
 0x67e   :  { %v16959_v33 = vld [vmem:[#allocation2 + $0x28] sm:$0xff]  ;;  %6593 = vst [vmem:[#allocation2 + $0x58] sm:$0xff] %v16957_v10  ;;  %6658 = vrot.lane.b32.xlu0 %v16957_v10, %s15153_s13 }
 0x67f   :  { %6648 = vrot.lane.b32.xlu1 %v16959_v33, %s15153_s13 }
 0x680   :  { %v6557_v28 = vpop.permute.xlu0 %6556 }
 0x681   :  { %v6568_v38 = vsel %vm6558_vm15, %v6555_v3, %v6557_v28  ;;  %v15098_v28 = vld [vmem:[%s19502_s3 + $0x8] sm:$0xff]  }
 0x682   :  { %6594 = vst.msk [vmem:[#allocation2 + $0x60] sm:$0xff] %vm6587_vm14, %v6568_v38 }
 0x683   :  { %7041 = vrot.lane.b32.xlu1 %v16904_v50, %s15155_s23 }
 0x687   :  { %7039 = vrot.lane.b32.xlu1 %v16907_v51, %s15155_s23 }
 0x689   :  { %v16972_v4 = vld [vmem:[#allocation2 + $0x60] sm:$0xff] }
 0x68a   :  { %6660 = vrot.lane.b32.xlu0 %v16972_v4, %s15153_s13  ;;  %s19694_s13 = smov 44  }
 0x68b   :  { %7055 = vrot.lane.b32.xlu1 %v16929_v0, %s15155_s23 }
 0x68e   :  { %7043 = vrot.lane.b32.xlu0 %v16915_v57, %s15155_s23 }
 0x68f   :  { %7045 = vrot.lane.b32.xlu1 %v16932_v1, %s15155_s23 }
 0x692   :  { %7053 = vrot.lane.b32.xlu0 %v16921_v60, %s15155_s23 }
 0x693   :  { %7057 = vrot.lane.b32.xlu1 %v16941_v2, %s15155_s23 }
 0x696   :  { %7051 = vrot.lane.b32.xlu0 %v16926_v11, %s15155_s23 }
 0x697   :  { %7049 = vrot.lane.b32.xlu1 %v16959_v33, %s15155_s23 }
 0x69a   :  { %7047 = vrot.lane.b32.xlu0 %v16947_v61, %s15155_s23 }
 0x69b   :  { %7291 = vrot.lane.b32.xlu1 %v16904_v50, %s15156_s24 }
 0x69e   :  { %7059 = vrot.lane.b32.xlu0 %v16957_v10, %s15155_s23 }
 0x69f   :  { %7289 = vrot.lane.b32.xlu1 %v16907_v51, %s15156_s24 }
 0x6a2   :  { %7061 = vrot.lane.b32.xlu0 %v16972_v4, %s15155_s23 }
 0x6a3   :  { %7305 = vrot.lane.b32.xlu1 %v16929_v0, %s15156_s24 }
 0x6a6   :  { %7293 = vrot.lane.b32.xlu0 %v16915_v57, %s15156_s24 }
 0x6a7   :  { %7295 = vrot.lane.b32.xlu1 %v16932_v1, %s15156_s24 }
 0x6aa   :  { %7303 = vrot.lane.b32.xlu0 %v16921_v60, %s15156_s24 }
 0x6ab   :  { %7307 = vrot.lane.b32.xlu1 %v16941_v2, %s15156_s24 }
 0x6ae   :  { %7301 = vrot.lane.b32.xlu0 %v16926_v11, %s15156_s24 }
 0x6af   :  { %7299 = vrot.lane.b32.xlu1 %v16959_v33, %s15156_s24 }
 0x6b2   :  { %7297 = vrot.lane.b32.xlu0 %v16947_v61, %s15156_s24 }
 0x6b3   :  { %7541 = vrot.lane.b32.xlu1 %v16904_v50, %s15157_s25 }
 0x6b6   :  { %7309 = vrot.lane.b32.xlu0 %v16957_v10, %s15156_s24 }
 0x6b7   :  { %7539 = vrot.lane.b32.xlu1 %v16907_v51, %s15157_s25 }
 0x6ba   :  { %7311 = vrot.lane.b32.xlu0 %v16972_v4, %s15156_s24 }
 0x6bb   :  { %7555 = vrot.lane.b32.xlu1 %v16929_v0, %s15157_s25 }
 0x6be   :  { %7543 = vrot.lane.b32.xlu0 %v16915_v57, %s15157_s25 }
 0x6bf   :  { %7545 = vrot.lane.b32.xlu1 %v16932_v1, %s15157_s25 }
 0x6c2   :  { %7553 = vrot.lane.b32.xlu0 %v16921_v60, %s15157_s25 }
 0x6c3   :  { %7557 = vrot.lane.b32.xlu1 %v16941_v2, %s15157_s25 }
 0x6c6   :  { %7551 = vrot.lane.b32.xlu0 %v16926_v11, %s15157_s25 }
 0x6c7   :  { %7549 = vrot.lane.b32.xlu1 %v16959_v33, %s15157_s25 }
 0x6ca   :  { %7547 = vrot.lane.b32.xlu0 %v16947_v61, %s15157_s25 }
 0x6cb   :  { %7791 = vrot.lane.b32.xlu1 %v16904_v50, %s15158_s26 }
 0x6ce   :  { %7559 = vrot.lane.b32.xlu0 %v16957_v10, %s15157_s25 }
 0x6cf   :  { %7789 = vrot.lane.b32.xlu1 %v16907_v51, %s15158_s26  ;;  %v6639_v5 = vpop.permute.xlu1 %6638 }
 0x6d2   :  { %7561 = vrot.lane.b32.xlu0 %v16972_v4, %s15157_s25 }
 0x6d3   :  { %7805 = vrot.lane.b32.xlu1 %v16929_v0, %s15158_s26  ;;  %v6641_v8 = vpop.permute.xlu1 %6640 }
 0x6d4   :  { %v6662_v15 = vsel %vm116_vm1, %v6639_v5, %v6641_v8 }
 0x6d6   :  { %7793 = vrot.lane.b32.xlu0 %v16915_v57, %s15158_s26 }
 0x6d7   :  { %7795 = vrot.lane.b32.xlu1 %v16932_v1, %s15158_s26 }
 0x6d8   :  { %v6643_v9 = vpop.permute.xlu0 %6642 }
 0x6d9   :  { %v6663_v37 = vsel %vm116_vm1, %v6641_v8, %v6643_v9 }
 0x6da   :  { %7803 = vrot.lane.b32.xlu0 %v16921_v60, %s15158_s26  ;;  %6690 = vmatprep.subr.bf16.mxu1 %v6663_v37 }
 0x6db   :  { %7807 = vrot.lane.b32.xlu1 %v16941_v2, %s15158_s26  ;;  %6691 = vmatpush1.bf16.msra.mxu1 %v6662_v15 }
 0x6dc   :  { %v6653_v18 = vpop.permute.xlu0 %6652 }
 0x6de   :  { %7801 = vrot.lane.b32.xlu0 %v16926_v11, %s15158_s26 }
 0x6df   :  { %7799 = vrot.lane.b32.xlu1 %v16959_v33, %s15158_s26 }
 0x6e0   :  { %v6651_v39 = vpop.permute.xlu0 %6650  ;;  %v6655_v19 = vpop.permute.xlu1 %6654 }
 0x6e1   :  { %v6668_v21 = vsel %vm116_vm1, %v6653_v18, %v6655_v19  ;;  %v6667_v23 = vsel %vm116_vm1, %v6651_v39, %v6653_v18 }
 0x6e2   :  { %7797 = vrot.lane.b32.xlu0 %v16947_v61, %s15158_s26  ;;  %6692 = vmatprep.subr.bf16.mxu1 %v6668_v21 }
 0x6e3   :  { %8041 = vrot.lane.b32.xlu1 %v16904_v50, %s15159_s7  ;;  %6693 = vmatpush1.bf16.msra.mxu1 %v6667_v23 }
 0x6e4   :  { %v6645_v26 = vpop.permute.xlu1 %6644 }
 0x6e5   :  { %v6664_v41 = vsel %vm116_vm1, %v6643_v9, %v6645_v26 }
 0x6e6   :  { %7809 = vrot.lane.b32.xlu0 %v16957_v10, %s15158_s26  ;;  %13574 = vmatmul.mubr.msk.bf16.vlgmr.msra.gmra.mrb[0].mxu1 %vm139_vm0, %v15095_v24 }
 0x6e7   :  { %8039 = vrot.lane.b32.xlu1 %v16907_v51, %s15159_s7  ;;  %6732 = vmatprep.mubr.bf16.mxu1 %v16670_v62 }
 0x6e8   :  { %v6647_v27 = vpop.permute.xlu0 %6646  ;;  %v6657_v45 = vpop.permute.xlu1 %6656 }
 0x6e9   :  { %v6665_v29 = vsel %vm116_vm1, %v6645_v26, %v6647_v27  ;;  %v6669_v31 = vsel %vm116_vm1, %v6655_v19, %v6657_v45 }
 0x6ea   :  { %7811 = vrot.lane.b32.xlu0 %v16972_v4, %s15158_s26  ;;  %6743 = vmatprep.subr.bf16.mxu1 %v6665_v29 }
 0x6eb   :  { %8055 = vrot.lane.b32.xlu1 %v16929_v0, %s15159_s7  ;;  %6744 = vmatpush1.bf16.msra.mxu1 %v6664_v41 }
 0x6ee   :  { %8043 = vrot.lane.b32.xlu0 %v16915_v57, %s15159_s7  ;;  %13575 = vmatmul.mubr.msk.bf16.gmra.mrb[4].mxu1 %vm139_vm0, %v15096_v7 }
 0x6ef   :  { %8045 = vrot.lane.b32.xlu1 %v16932_v1, %s15159_s7  ;;  %6775 = vmatprep.mubr.bf16.mxu1 %v16670_v62 }
 0x6f0   :  { %v6659_v12 = vpop.permute.xlu0 %6658 }
 0x6f1   :  { %v6649_v20 = vpop.permute.xlu1 %6648  ;;  %v6670_v25 = vsel %vm116_vm1, %v6657_v45, %v6659_v12 }
 0x6f2   :  { %8053 = vrot.lane.b32.xlu0 %v16921_v60, %s15159_s7  ;;  %6745 = vmatprep.subr.bf16.mxu1 %v6670_v25  ;;  %v6666_v35 = vsel %vm116_vm1, %v6647_v27, %v6649_v20 }
 0x6f3   :  { %8057 = vrot.lane.b32.xlu1 %v16941_v2, %s15159_s7  ;;  %6746 = vmatpush1.bf16.msra.mxu1 %v6669_v31 }
 0x6f4   :  { %6796 = vmatprep.subr.bf16.mxu1 %v6649_v20 }
 0x6f5   :  { %v17100_v30 = vpop.permute.xlu1 %7041 }
 0x6f6   :  { %8051 = vrot.lane.b32.xlu0 %v16926_v11, %s15159_s7  ;;  %13576 = vmatmul.mubr.msk.bf16.vlgmr.msra.gmra.mrb[8].mxu1 %vm139_vm0, %v15095_v24 }
 0x6f7   :  { %8049 = vrot.lane.b32.xlu1 %v16959_v33, %s15159_s7  ;;  %6797 = vmatpush1.bf16.msra.mxu1 %v6666_v35 }
 0x6f8   :  { %6785 = vmatprep.mubr.bf16.mxu1 %v16670_v62 }
 0x6f9   :  { %v17109_v36 = vpop.permute.xlu1 %7039 }
 0x6fa   :  { %8047 = vrot.lane.b32.xlu0 %v16947_v61, %s15159_s7  ;;  %v7063_v29 = vsel %vm519_vm2, %v17109_v36, %v17100_v30 }
 0x6fb   :  { %8291 = vrot.lane.b32.xlu1 %v16904_v50, %s15160_s12 }
 0x6fc   :  { %v6661_v32 = vpop.permute.xlu0 %6660 }
 0x6fd   :  { %6798 = vmatprep.subr.bf16.mxu1 %v6661_v32  ;;  %v17115_v40 = vpop.permute.xlu1 %7055  ;;  %v6671_v42 = vsel %vm116_vm1, %v6659_v12, %v6661_v32  ;;  %v15099_v32 = vld [vmem:[%s19502_s3 + $0x20] sm:$0xff]   ;;  %vm19725_vm1 = vcmask 687104  }
 0x6fe   :  { %8059 = vrot.lane.b32.xlu0 %v16957_v10, %s15159_s7  ;;  %6799 = vmatpush1.bf16.msra.mxu1 %v6671_v42 }
 0x6ff   :  { %8289 = vrot.lane.b32.xlu1 %v16907_v51, %s15160_s12  ;;  %6865 = vmatprep.subr.bf16.mxu1 %v16904_v50 }
 0x700   :  { %v17123_v43 = vpop.permute.xlu0 %7043  ;;  %13577 = vmatmul.mubr.msk.bf16.gmra.mrb[12].mxu1 %vm139_vm0, %v15096_v7 }
 0x701   :  { %v17126_v44 = vpop.permute.xlu1 %7045  ;;  %6828 = vmatprep.mubr.bf16.mxu1 %v16670_v62  ;;  %v7064_v21 = vsel %vm519_vm2, %v17100_v30, %v17123_v43 }
 0x702   :  { %8061 = vrot.lane.b32.xlu0 %v16972_v4, %s15159_s7  ;;  %s19643_s7 = smov 65  }
 0x703   :  { %8305 = vrot.lane.b32.xlu1 %v16929_v0, %s15160_s12 }
 0x704   :  { %v17133_v46 = vpop.permute.xlu0 %7053 }
 0x705   :  { %v17135_v47 = vpop.permute.xlu1 %7057  ;;  %v7069_v45 = vsel %vm519_vm2, %v17133_v46, %v17115_v40 }
 0x706   :  { %8293 = vrot.lane.b32.xlu0 %v16915_v57, %s15160_s12 }
 0x707   :  { %8295 = vrot.lane.b32.xlu1 %v16932_v1, %s15160_s12 }
 0x708   :  { %v17141_v53 = vpop.permute.xlu0 %7051  ;;  %13578 = vmatmul.mubr.msk.bf16.vlgmr.msra.gmra.mrb[16].mxu1 %vm139_vm0, %v15095_v24 }
 0x709   :  { %v17144_v48 = vpop.permute.xlu1 %7049  ;;  %6866 = vmatpush1.bf16.msra.mxu1 %v16907_v51  ;;  %6838 = vmatprep.mubr.bf16.mxu1 %v16670_v62  ;;  %v7068_v12 = vsel %vm519_vm2, %v17141_v53, %v17133_v46  ;;  %v7065_v53 = vsel %vm519_vm2, %v17123_v43, %v17126_v44  ;;  %v7070_v43 = vsel %vm519_vm2, %v17115_v40, %v17135_v47 }
 0x70a   :  { %8303 = vrot.lane.b32.xlu0 %v16921_v60, %s15160_s12  ;;  %6867 = vmatprep.subr.bf16.mxu1 %v16921_v60 }
 0x70b   :  { %8307 = vrot.lane.b32.xlu1 %v16941_v2, %s15160_s12 }
 0x70c   :  { %v17153_v55 = vpop.permute.xlu0 %7047 }
 0x70d   :  { %v17155_v56 = vpop.permute.xlu1 %7291  ;;  %6868 = vmatpush1.bf16.msra.mxu1 %v16926_v11  ;;  %v7066_v31 = vsel %vm519_vm2, %v17126_v44, %v17153_v55  ;;  %v15100_v44 = vld [vmem:[%s19502_s3 + $0x28] sm:$0xff]  }
 0x70e   :  { %8301 = vrot.lane.b32.xlu0 %v16926_v11, %s15160_s12  ;;  %6918 = vmatprep.subr.bf16.mxu1 %v16932_v1 }
 0x70f   :  { %8299 = vrot.lane.b32.xlu1 %v16959_v33, %s15160_s12 }
 0x710   :  { %v17163_v59 = vpop.permute.xlu0 %7059  ;;  %13579 = vmatmul.mubr.msk.bf16.gmra.mrb[20].mxu1 %vm139_vm0, %v15096_v7 }
 0x711   :  { %v17166_v63 = vpop.permute.xlu1 %7289  ;;  %6897 = vmatprep.mubr.bf16.mxu1 %v16670_v62 }
 0x712   :  { %8297 = vrot.lane.b32.xlu0 %v16947_v61, %s15160_s12 }
 0x713   :  { %8541 = vrot.lane.b32.xlu1 %v16904_v50, %s15161_s18 }
 0x714   :  { %v17173_v52 = vpop.permute.xlu0 %7061 }
 0x715   :  { %v17178_v13 = vpop.permute.xlu1 %7305  ;;  %v7072_v14 = vsel %vm519_vm2, %v17163_v59, %v17173_v52 }
 0x716   :  { %8309 = vrot.lane.b32.xlu0 %v16957_v10, %s15160_s12 }
 0x717   :  { %8539 = vrot.lane.b32.xlu1 %v16907_v51, %s15161_s18 }
 0x718   :  { %v17184_v16 = vpop.permute.xlu0 %7293  ;;  %13582 = vmatmul.mubr.msk.bf16.vlgmr.msra.gmra.mrb[0].mxu1 %vm139_vm0, %v15097_v49 }
 0x719   :  { %v17187_v22 = vpop.permute.xlu1 %7295  ;;  %6919 = vmatpush1.bf16.msra.mxu1 %v16915_v57  ;;  %6907 = vmatprep.mubr.bf16.mxu1 %v16670_v62 }
 0x71a   :  { %8311 = vrot.lane.b32.xlu0 %v16972_v4, %s15160_s12  ;;  %6920 = vmatprep.subr.bf16.mxu1 %v16941_v2  ;;  %v7315_v58 = vsel %vm770_vm3, %v17184_v16, %v17187_v22 }
 0x71b   :  { %8555 = vrot.lane.b32.xlu1 %v16929_v0, %s15161_s18 }
 0x71c   :  { %v17196_v3 = vpop.permute.xlu0 %7303 }
 0x71d   :  { %v17201_v38 = vpop.permute.xlu1 %7307  ;;  %6921 = vmatpush1.bf16.msra.mxu1 %v16929_v0  ;;  %v7319_v17 = vsel %vm770_vm3, %v17196_v3, %v17178_v13 }
 0x71e   :  { %8543 = vrot.lane.b32.xlu0 %v16915_v57, %s15161_s18  ;;  %6971 = vmatprep.subr.bf16.mxu1 %v16959_v33 }
 0x71f   :  { %8545 = vrot.lane.b32.xlu1 %v16932_v1, %s15161_s18 }
 0x720   :  { %v17209_v5 = vpop.permute.xlu0 %7301  ;;  %13583 = vmatmul.mubr.msk.bf16.gmra.mrb[4].mxu1 %vm139_vm0, %v15098_v28 }
 0x721   :  { %v17212_v8 = vpop.permute.xlu1 %7299  ;;  %6950 = vmatprep.mubr.bf16.mxu1 %v16670_v62 }
 0x722   :  { %8553 = vrot.lane.b32.xlu0 %v16921_v60, %s15161_s18 }
 0x723   :  { %8557 = vrot.lane.b32.xlu1 %v16941_v2, %s15161_s18 }
 0x724   :  { %v17219_v9 = vpop.permute.xlu0 %7297 }
 0x725   :  { %v17221_v37 = vpop.permute.xlu1 %7541 }
 0x726   :  { %8551 = vrot.lane.b32.xlu0 %v16926_v11, %s15161_s18 }
 0x727   :  { %8549 = vrot.lane.b32.xlu1 %v16959_v33, %s15161_s18 }
 0x728   :  { %v17227_v15 = vpop.permute.xlu0 %7309  ;;  %13584 = vmatmul.mubr.msk.bf16.vlgmr.msra.gmra.mrb[8].mxu1 %vm139_vm0, %v15097_v49 }
 0x729   :  { %v17230_v18 = vpop.permute.xlu1 %7539  ;;  %6972 = vmatpush1.bf16.msra.mxu1 %v16947_v61  ;;  %6960 = vmatprep.mubr.bf16.mxu1 %v16670_v62 }
 0x72a   :  { %8547 = vrot.lane.b32.xlu0 %v16947_v61, %s15161_s18  ;;  %6973 = vmatprep.subr.bf16.mxu1 %v16972_v4 }
 0x72b   :  { %8791 = vrot.lane.b32.xlu1 %v16904_v50, %s15162_s27 }
 0x72c   :  { %v17239_v39 = vpop.permute.xlu0 %7311 }
 0x72d   :  { %v17241_v19 = vpop.permute.xlu1 %7555  ;;  %6974 = vmatpush1.bf16.msra.mxu1 %v16957_v10 }
 0x72e   :  { %8559 = vrot.lane.b32.xlu0 %v16957_v10, %s15161_s18  ;;  %7091 = vmatprep.subr.bf16.mxu1 %v7064_v21 }
 0x72f   :  { %8789 = vrot.lane.b32.xlu1 %v16907_v51, %s15162_s27 }
 0x730   :  { %v17251_v23 = vpop.permute.xlu0 %7543  ;;  %13585 = vmatmul.mubr.msk.bf16.gmra.mrb[12].mxu1 %vm139_vm0, %v15098_v28 }
 0x731   :  { %v17254_v24 = vpop.permute.xlu1 %7545  ;;  %7003 = vmatprep.mubr.bf16.mxu1 %v16670_v62 }
 0x732   :  { %8561 = vrot.lane.b32.xlu0 %v16972_v4, %s15161_s18 }
 0x733   :  { %8805 = vrot.lane.b32.xlu1 %v16929_v0, %s15162_s27 }
 0x734   :  { %v17261_v26 = vpop.permute.xlu0 %7553 }
 0x735   :  { %v17263_v27 = vpop.permute.xlu1 %7557 }
 0x736   :  { %8793 = vrot.lane.b32.xlu0 %v16915_v57, %s15162_s27 }
 0x737   :  { %8795 = vrot.lane.b32.xlu1 %v16932_v1, %s15162_s27 }
 0x738   :  { %v17272_v41 = vpop.permute.xlu0 %7551  ;;  %13586 = vmatmul.mubr.msk.bf16.vlgmr.msra.gmra.mrb[16].mxu1 %vm139_vm0, %v15097_v49 }
 0x739   :  { %v17275_v7 = vpop.permute.xlu1 %7549  ;;  %7092 = vmatpush1.bf16.msra.mxu1 %v7063_v29  ;;  %7013 = vmatprep.mubr.bf16.mxu1 %v16670_v62 }
 0x73a   :  { %8803 = vrot.lane.b32.xlu0 %v16921_v60, %s15162_s27  ;;  %7093 = vmatprep.subr.bf16.mxu1 %v7069_v45 }
 0x73b   :  { %8807 = vrot.lane.b32.xlu1 %v16941_v2, %s15162_s27 }
 0x73c   :  { %v17288_v20 = vpop.permute.xlu0 %7547 }
 0x73d   :  { %v17290_v25 = vpop.permute.xlu1 %7791  ;;  %7094 = vmatpush1.bf16.msra.mxu1 %v7068_v12 }
 0x73e   :  { %8801 = vrot.lane.b32.xlu0 %v16926_v11, %s15162_s27  ;;  %7144 = vmatprep.subr.bf16.mxu1 %v7066_v31 }
 0x73f   :  { %8799 = vrot.lane.b32.xlu1 %v16959_v33, %s15162_s27 }
 0x740   :  { %v17299_v30 = vpop.permute.xlu0 %7559  ;;  %13587 = vmatmul.mubr.msk.bf16.gmra.mrb[20].mxu1 %vm139_vm0, %v15098_v28  ;;  %v7071_v28 = vsel %vm519_vm2, %v17135_v47, %v17163_v59 }
 0x741   :  { %v17302_v35 = vpop.permute.xlu1 %7789  ;;  %7123 = vmatprep.mubr.bf16.mxu1 %v16670_v62 }
 0x742   :  { %8797 = vrot.lane.b32.xlu0 %v16947_v61, %s15162_s27 }
 0x743   :  { %9041 = vrot.lane.b32.xlu1 %v16904_v50, %s15163_s9 }
 0x744   :  { %v17309_v36 = vpop.permute.xlu0 %7561 }
 0x745   :  { %v17314_v42 = vpop.permute.xlu1 %7805 }
 0x746   :  { %8809 = vrot.lane.b32.xlu0 %v16957_v10, %s15162_s27 }
 0x747   :  { %9039 = vrot.lane.b32.xlu1 %v16907_v51, %s15163_s9 }
 0x748   :  { %v17320_v46 = vpop.permute.xlu0 %7793  ;;  %13594 = vmatmul.mubr.msk.bf16.vlgmr.msra.gmra.mrb[0].mxu1 %vm139_vm0, %v15099_v32 }
 0x749   :  { %v17326_v49 = vpop.permute.xlu1 %7795  ;;  %7145 = vmatpush1.bf16.msra.mxu1 %v7065_v53  ;;  %7133 = vmatprep.mubr.bf16.mxu1 %v16670_v62  ;;  %v7067_v53 = vsel %vm519_vm2, %v17153_v55, %v17144_v48  ;;  %v7314_v55 = vsel %vm770_vm3, %v17155_v56, %v17184_v16  ;;  %v7320_v16 = vsel %vm770_vm3, %v17178_v13, %v17201_v38  ;;  %vm19727_vm2 = vmmov %vm19725_vm1 }
 0x74a   :  { %8811 = vrot.lane.b32.xlu0 %v16972_v4, %s15162_s27  ;;  %7146 = vmatprep.subr.bf16.mxu1 %v7071_v28 }
 0x74b   :  { %9055 = vrot.lane.b32.xlu1 %v16929_v0, %s15163_s9 }
 0x74c   :  { %v17336_v21 = vpop.permute.xlu0 %7803 }
 0x74d   :  { %v17344_v29 = vpop.permute.xlu1 %7807  ;;  %7147 = vmatpush1.bf16.msra.mxu1 %v7070_v43 }
 0x74e   :  { %9043 = vrot.lane.b32.xlu0 %v16915_v57, %s15163_s9  ;;  %7197 = vmatprep.subr.bf16.mxu1 %v17144_v48 }
 0x74f   :  { %9045 = vrot.lane.b32.xlu1 %v16932_v1, %s15163_s9 }
 0x750   :  { %v17351_v45 = vpop.permute.xlu0 %7801  ;;  %13595 = vmatmul.mubr.msk.bf16.gmra.mrb[4].mxu1 %vm139_vm0, %v15100_v44 }
 0x751   :  { %v17354_v40 = vpop.permute.xlu1 %7799  ;;  %7176 = vmatprep.mubr.bf16.mxu1 %v16670_v62 }
 0x752   :  { %9053 = vrot.lane.b32.xlu0 %v16921_v60, %s15163_s9 }
 0x753   :  { %9057 = vrot.lane.b32.xlu1 %v16941_v2, %s15163_s9 }
 0x754   :  { %v17361_v47 = vpop.permute.xlu0 %7797 }
 0x755   :  { %v17363_v12 = vpop.permute.xlu1 %8041 }
 0x756   :  { %9051 = vrot.lane.b32.xlu0 %v16926_v11, %s15163_s9 }
 0x757   :  { %9049 = vrot.lane.b32.xlu1 %v16959_v33, %s15163_s9 }
 0x758   :  { %v17369_v31 = vpop.permute.xlu0 %7809  ;;  %13596 = vmatmul.mubr.msk.bf16.vlgmr.msra.gmra.mrb[8].mxu1 %vm139_vm0, %v15099_v32 }
 0x759   :  { %v17375_v28 = vpop.permute.xlu1 %8039  ;;  %7198 = vmatpush1.bf16.msra.mxu1 %v7067_v53  ;;  %7186 = vmatprep.mubr.bf16.mxu1 %v16670_v62 }
 0x75a   :  { %9047 = vrot.lane.b32.xlu0 %v16947_v61, %s15163_s9  ;;  %7199 = vmatprep.subr.bf16.mxu1 %v17173_v52  ;;  %v7313_v52 = vsel %vm770_vm3, %v17166_v63, %v17155_v56  ;;  %v7318_v56 = vsel %vm770_vm3, %v17209_v5, %v17196_v3 }
 0x75b   :  { %9291 = vrot.lane.b32.xlu1 %v16904_v50, %s15164_s16 }
 0x75c   :  { %v17383_v43 = vpop.permute.xlu0 %7811 }
 0x75d   :  { %v17388_v48 = vpop.permute.xlu1 %8055  ;;  %7200 = vmatpush1.bf16.msra.mxu1 %v7072_v14 }
 0x75e   :  { %9059 = vrot.lane.b32.xlu0 %v16957_v10, %s15163_s9  ;;  %7341 = vmatprep.subr.bf16.mxu1 %v7314_v55 }
 0x75f   :  { %9289 = vrot.lane.b32.xlu1 %v16907_v51, %s15164_s16 }
 0x760   :  { %v17397_v53 = vpop.permute.xlu0 %8043  ;;  %13597 = vmatmul.mubr.msk.bf16.gmra.mrb[12].mxu1 %vm139_vm0, %v15100_v44 }
 0x761   :  { %v17400_v6 = vpop.permute.xlu1 %8045  ;;  %7229 = vmatprep.mubr.bf16.mxu1 %v16670_v62 }
 0x762   :  { %9061 = vrot.lane.b32.xlu0 %v16972_v4, %s15163_s9 }
 0x763   :  { %9305 = vrot.lane.b32.xlu1 %v16929_v0, %s15164_s16 }
 0x764   :  { %v17407_v14 = vpop.permute.xlu0 %8053 }
 0x765   :  { %v17409_v59 = vpop.permute.xlu1 %8057 }
 0x766   :  { %9293 = vrot.lane.b32.xlu0 %v16915_v57, %s15164_s16 }
 0x767   :  { %9295 = vrot.lane.b32.xlu1 %v16932_v1, %s15164_s16 }
 0x768   :  { %v17418_v55 = vpop.permute.xlu0 %8051  ;;  %13598 = vmatmul.mubr.msk.bf16.vlgmr.msra.gmra.mrb[16].mxu1 %vm139_vm0, %v15099_v32 }
 0x769   :  { %v17421_v34 = vpop.permute.xlu1 %8049  ;;  %7342 = vmatpush1.bf16.msra.mxu1 %v7313_v52  ;;  %7239 = vmatprep.mubr.bf16.mxu1 %v16670_v62  ;;  %v7316_v52 = vsel %vm770_vm3, %v17187_v22, %v17219_v9 }
 0x76a   :  { %9303 = vrot.lane.b32.xlu0 %v16921_v60, %s15164_s16  ;;  %7343 = vmatprep.subr.bf16.mxu1 %v7319_v17 }
 0x76b   :  { %9307 = vrot.lane.b32.xlu1 %v16941_v2, %s15164_s16 }
 0x76c   :  { %v17434_v63 = vpop.permute.xlu0 %8047 }
 0x76d   :  { %v17436_v32 = vpop.permute.xlu1 %8291  ;;  %7344 = vmatpush1.bf16.msra.mxu1 %v7318_v56  ;;  %v15101_v56 = vld [vmem:[%s19502_s3 + $0x30] sm:$0xff]  }
 0x76e   :  { %9301 = vrot.lane.b32.xlu0 %v16926_v11, %s15164_s16  ;;  %7394 = vmatprep.subr.bf16.mxu1 %v7316_v52 }
 0x76f   :  { %9299 = vrot.lane.b32.xlu1 %v16959_v33, %s15164_s16 }
 0x770   :  { %v17445_v17 = vpop.permute.xlu0 %8059  ;;  %13599 = vmatmul.mubr.msk.bf16.gmra.mrb[20].mxu1 %vm139_vm0, %v15100_v44 }
 0x771   :  { %v17448_v3 = vpop.permute.xlu1 %8289  ;;  %7373 = vmatprep.mubr.bf16.mxu1 %v16670_v62 }
 0x772   :  { %19607 = vst [vmem:[#allocation9_spill] sm:$0xff] %v17448_v3  ;;  %9297 = vrot.lane.b32.xlu0 %v16947_v61, %s15164_s16 }
 0x773   :  { %9541 = vrot.lane.b32.xlu1 %v16904_v50, %s15165_s22 }
 0x774   :  { %v17455_v5 = vpop.permute.xlu0 %8061 }
 0x775   :  { %v17460_v52 = vpop.permute.xlu1 %8305 }
 0x776   :  { %19608 = vst [vmem:[#allocation10_spill] sm:$0xff] %v17460_v52  ;;  %9309 = vrot.lane.b32.xlu0 %v16957_v10, %s15164_s16  ;;  %v7321_v52 = vsel %vm770_vm3, %v17201_v38, %v17227_v15 }
 0x777   :  { %9539 = vrot.lane.b32.xlu1 %v16907_v51, %s15165_s22 }
 0x778   :  { %v17466_v44 = vpop.permute.xlu0 %8293  ;;  %13606 = vmatmul.mubr.msk.bf16.vlgmr.msra.gmra.mrb[0].mxu1 %vm139_vm0, %v15101_v56 }
 0x779   :  { %v17472_v54 = vpop.permute.xlu1 %8295  ;;  %7395 = vmatpush1.bf16.msra.mxu1 %v7315_v58  ;;  %7383 = vmatprep.mubr.bf16.mxu1 %v16670_v62  ;;  %v15102_v58 = vld [vmem:[%s19502_s3 + $0x38] sm:$0xff]  }
 0x77a   :  { %19609 = vst [vmem:[#allocation11_spill] sm:$0xff] %v17472_v54  ;;  %9311 = vrot.lane.b32.xlu0 %v16972_v4, %s15164_s16  ;;  %7396 = vmatprep.subr.bf16.mxu1 %v7321_v52  ;;  %s19616_s16 = smov 84  }
 0x77b   :  { %9555 = vrot.lane.b32.xlu1 %v16929_v0, %s15165_s22 }
 0x77c   :  { %v17482_v3 = vpop.permute.xlu0 %8303 }
 0x77d   :  { %v17490_v22 = vpop.permute.xlu1 %8307  ;;  %7397 = vmatpush1.bf16.msra.mxu1 %v7320_v16 }
 0x77e   :  { %19610 = vst [vmem:[#allocation12_spill] sm:$0xff] %v17490_v22  ;;  %9543 = vrot.lane.b32.xlu0 %v16915_v57, %s15165_s22  ;;  %7447 = vmatprep.subr.bf16.mxu1 %v17212_v8 }
 0x77f   :  { %9545 = vrot.lane.b32.xlu1 %v16932_v1, %s15165_s22 }
 0x780   :  { %v17497_v52 = vpop.permute.xlu0 %8301  ;;  %13607 = vmatmul.mubr.msk.bf16.gmra.mrb[4].mxu1 %vm139_vm0, %v15102_v58 }
 0x781   :  { %v17500_v13 = vpop.permute.xlu1 %8299  ;;  %7426 = vmatprep.mubr.bf16.mxu1 %v16670_v62 }
 0x782   :  { %19611 = vst [vmem:[#allocation13_spill] sm:$0xff] %v17500_v13  ;;  %9553 = vrot.lane.b32.xlu0 %v16921_v60, %s15165_s22  ;;  %v7317_v13 = vsel %vm770_vm3, %v17219_v9, %v17212_v8  ;;  %v7564_v9 = vsel %vm1021_vm4, %v17221_v37, %v17251_v23 }
 0x783   :  { %9557 = vrot.lane.b32.xlu1 %v16941_v2, %s15165_s22 }
 0x784   :  { %v17507_v38 = vpop.permute.xlu0 %8297 }
 0x785   :  { %v17509_v16 = vpop.permute.xlu1 %8541 }
 0x786   :  { %19612 = vst [vmem:[#allocation14_spill] sm:$0xff] %v17509_v16  ;;  %9551 = vrot.lane.b32.xlu0 %v16926_v11, %s15165_s22 }
 0x787   :  { %9549 = vrot.lane.b32.xlu1 %v16959_v33, %s15165_s22 }
 0x788   :  { %v17515_v22 = vpop.permute.xlu0 %8309  ;;  %13608 = vmatmul.mubr.msk.bf16.vlgmr.msra.gmra.mrb[8].mxu1 %vm139_vm0, %v15101_v56 }
 0x789   :  { %19613 = vst [vmem:[#allocation15_spill] sm:$0xff] %v17515_v22  ;;  %v17521_v54 = vpop.permute.xlu1 %8539  ;;  %7448 = vmatpush1.bf16.msra.mxu1 %v7317_v13  ;;  %7436 = vmatprep.mubr.bf16.mxu1 %v16670_v62  ;;  %v7322_v22 = vsel %vm770_vm3, %v17227_v15, %v17239_v39  ;;  %vm19729_vm3 = vmmov %vm19725_vm1 }
 0x78a   :  { %9547 = vrot.lane.b32.xlu0 %v16947_v61, %s15165_s22  ;;  %7449 = vmatprep.subr.bf16.mxu1 %v17239_v39 }
 0x78b   :  { %9791 = vrot.lane.b32.xlu1 %v16904_v50, %s15166_s10 }
 0x78c   :  { %v17529_v16 = vpop.permute.xlu0 %8311 }
 0x78d   :  { %v17534_v8 = vpop.permute.xlu1 %8555  ;;  %7450 = vmatpush1.bf16.msra.mxu1 %v7322_v22 }
 0x78e   :  { %9559 = vrot.lane.b32.xlu0 %v16957_v10, %s15165_s22  ;;  %7591 = vmatprep.subr.bf16.mxu1 %v7564_v9 }
 0x78f   :  { %9789 = vrot.lane.b32.xlu1 %v16907_v51, %s15166_s10  ;;  %v7563_v51 = vsel %vm1021_vm4, %v17230_v18, %v17221_v37 }
 0x790   :  { %v17543_v50 = vpop.permute.xlu0 %8543  ;;  %13609 = vmatmul.mubr.msk.bf16.gmra.mrb[12].mxu1 %vm139_vm0, %v15102_v58 }
 0x791   :  { %v17546_v13 = vpop.permute.xlu1 %8545  ;;  %7479 = vmatprep.mubr.bf16.mxu1 %v16670_v62 }
 0x792   :  { %9561 = vrot.lane.b32.xlu0 %v16972_v4, %s15165_s22 }
 0x793   :  { %9805 = vrot.lane.b32.xlu1 %v16929_v0, %s15166_s10 }
 0x794   :  { %v17553_v15 = vpop.permute.xlu0 %8553 }
 0x795   :  { %v17555_v39 = vpop.permute.xlu1 %8557 }
 0x796   :  { %19614 = vst [vmem:[#allocation16_spill] sm:$0xff] %v17555_v39  ;;  %9793 = vrot.lane.b32.xlu0 %v16915_v57, %s15166_s10  ;;  %v7569_v39 = vsel %vm1021_vm4, %v17261_v26, %v17241_v19  ;;  %v7568_v57 = vsel %vm1021_vm4, %v17272_v41, %v17261_v26  ;;  %v17599_v41 = vld [vmem:[#allocation2 + $0x8] sm:$0xff] }
 0x797   :  { %9795 = vrot.lane.b32.xlu1 %v16932_v1, %s15166_s10 }
 0x798   :  { %v17564_v22 = vpop.permute.xlu0 %8551  ;;  %13610 = vmatmul.mubr.msk.bf16.vlgmr.msra.gmra.mrb[16].mxu1 %vm139_vm0, %v15101_v56  ;;  %v7566_v56 = vsel %vm1021_vm4, %v17254_v24, %v17288_v20 }
 0x799   :  { %v17567_v9 = vpop.permute.xlu1 %8549  ;;  %7592 = vmatpush1.bf16.msra.mxu1 %v7563_v51  ;;  %7489 = vmatprep.mubr.bf16.mxu1 %v16670_v62  ;;  %v15149_v51 = vld [vmem:[#allocation2] sm:$0xff] }
 0x79a   :  { %9803 = vrot.lane.b32.xlu0 %v16921_v60, %s15166_s10  ;;  %7593 = vmatprep.subr.bf16.mxu1 %v7569_v39  ;;  %v17608_v39 = vld [vmem:[%s19502_s3 + $0x40] sm:$0xff]  }
 0x79b   :  { %9807 = vrot.lane.b32.xlu1 %v16941_v2, %s15166_s10 }
 0x79c   :  { %v17580_v37 = vpop.permute.xlu0 %8547 }
 0x79d   :  { %v17582_v18 = vpop.permute.xlu1 %8791  ;;  %7594 = vmatpush1.bf16.msra.mxu1 %v7568_v57 }
 0x79e   :  { %9801 = vrot.lane.b32.xlu0 %v16926_v11, %s15166_s10  ;;  %7644 = vmatprep.subr.bf16.mxu1 %v7566_v56  ;;  %v7565_v56 = vsel %vm1021_vm4, %v17251_v23, %v17254_v24  ;;  %v7570_v23 = vsel %vm1021_vm4, %v17241_v19, %v17263_v27  ;;  %v17640_v24 = vld [vmem:[%s19502_s3 + $0x48] sm:$0xff]  }
 0x79f   :  { %9799 = vrot.lane.b32.xlu1 %v16959_v33, %s15166_s10 }
 0x7a0   :  { %v17591_v60 = vpop.permute.xlu0 %8559  ;;  %13611 = vmatmul.mubr.msk.bf16.gmra.mrb[20].mxu1 %vm139_vm0, %v15102_v58 }
 0x7a1   :  { %v17594_v26 = vpop.permute.xlu1 %8789  ;;  %7623 = vmatprep.mubr.bf16.mxu1 %v16670_v62 }
 0x7a2   :  { %19615 = vst [vmem:[#allocation17_spill] sm:$0xff] %v17594_v26  ;;  %9797 = vrot.lane.b32.xlu0 %v16947_v61, %s15166_s10 }
 0x7a3   :  { %10041 = vrot.lane.b32.xlu1 %v17599_v41, %s19616_s16 }
 0x7a4   :  { %v17603_v11 = vpop.permute.xlu0 %8561 }
 0x7a5   :  { %v17610_v58 = vpop.permute.xlu1 %8805 }
 0x7a6   :  { %19617 = vst [vmem:[#allocation18_spill] sm:$0xff] %v17610_v58  ;;  %9809 = vrot.lane.b32.xlu0 %v16957_v10, %s15166_s10  ;;  %v7571_v58 = vsel %vm1021_vm4, %v17263_v27, %v17299_v30  ;;  %v15151_v27 = vld [vmem:[#allocation2 + $0x40] sm:$0xff] }
 0x7a7   :  { %10039 = vrot.lane.b32.xlu1 %v15149_v51, %s19616_s16 }
 0x7a8   :  { %v17615_v57 = vpop.permute.xlu0 %8793  ;;  %13618 = vmatmul.mubr.msk.bf16.vlgmr.msra.gmra.mrb[0].mxu1 %vm139_vm0, %v17608_v39 }
 0x7a9   :  { %v17622_v26 = vpop.permute.xlu1 %8795  ;;  %7645 = vmatpush1.bf16.msra.mxu1 %v7565_v56  ;;  %7633 = vmatprep.mubr.bf16.mxu1 %v16670_v62 }
 0x7aa   :  { %19618 = vst [vmem:[#allocation19_spill] sm:$0xff] %v17622_v26  ;;  %9811 = vrot.lane.b32.xlu0 %v16972_v4, %s15166_s10  ;;  %7646 = vmatprep.subr.bf16.mxu1 %v7571_v58  ;;  %v15150_v26 = vld [vmem:[#allocation2 + $0x10] sm:$0xff] }
 0x7ab   :  { %10055 = vrot.lane.b32.xlu1 %v16929_v0, %s19616_s16 }
 0x7ac   :  { %v17632_v51 = vpop.permute.xlu0 %8803 }
 0x7ad   :  { %v17642_v56 = vpop.permute.xlu1 %8807  ;;  %7647 = vmatpush1.bf16.msra.mxu1 %v7570_v23 }
 0x7ae   :  { %10043 = vrot.lane.b32.xlu0 %v15150_v26, %s19616_s16  ;;  %7697 = vmatprep.subr.bf16.mxu1 %v17275_v7 }
 0x7af   :  { %10045 = vrot.lane.b32.xlu1 %v16932_v1, %s19616_s16  ;;  %v15152_v1 = vld [vmem:[#allocation2 + $0x38] sm:$0xff] }
 0x7b0   :  { %v17648_v0 = vpop.permute.xlu0 %8801  ;;  %13619 = vmatmul.mubr.msk.bf16.gmra.mrb[4].mxu1 %vm139_vm0, %v17640_v24 }
 0x7b1   :  { %v17652_v19 = vpop.permute.xlu1 %8799  ;;  %7676 = vmatprep.mubr.bf16.mxu1 %v16670_v62 }
 0x7b2   :  { %10053 = vrot.lane.b32.xlu0 %v15151_v27, %s19616_s16  ;;  %v7567_v27 = vsel %vm1021_vm4, %v17288_v20, %v17275_v7  ;;  %v7814_v20 = vsel %vm1272_vm5, %v17290_v25, %v17320_v46 }
 0x7b3   :  { %10057 = vrot.lane.b32.xlu1 %v16941_v2, %s19616_s16 }
 0x7b4   :  { %v17658_v26 = vpop.permute.xlu0 %8797 }
 0x7b5   :  { %v17660_v58 = vpop.permute.xlu1 %9041 }
 0x7b6   :  { %19619 = vst [vmem:[#allocation20_spill] sm:$0xff] %v17660_v58  ;;  %10051 = vrot.lane.b32.xlu0 %v15152_v1, %s19616_s16  ;;  %v7572_v1 = vsel %vm1021_vm4, %v17299_v30, %v17309_v36  ;;  %vm19731_vm4 = vmmov %vm19725_vm1 }
 0x7b7   :  { %10049 = vrot.lane.b32.xlu1 %v16959_v33, %s19616_s16 }
 0x7b8   :  { %v17665_v23 = vpop.permute.xlu0 %8809  ;;  %13620 = vmatmul.mubr.msk.bf16.vlgmr.msra.gmra.mrb[8].mxu1 %vm139_vm0, %v17608_v39 }
 0x7b9   :  { %v17672_v2 = vpop.permute.xlu1 %9039  ;;  %7698 = vmatpush1.bf16.msra.mxu1 %v7567_v27  ;;  %7686 = vmatprep.mubr.bf16.mxu1 %v16670_v62 }
 0x7ba   :  { %19620 = vst [vmem:[#allocation21_spill] sm:$0xff] %v17672_v2  ;;  %10047 = vrot.lane.b32.xlu0 %v16947_v61, %s19616_s16  ;;  %7699 = vmatprep.subr.bf16.mxu1 %v17309_v36  ;;  %v17692_v61 = vld [vmem:[#allocation2] sm:$0xff]  ;;  %v17705_v36 = vld [vmem:[#allocation2 + $0x48] sm:$0xff]  ;;  %v7819_v2 = vsel %vm1272_vm5, %v17336_v21, %v17314_v42 }
 0x7bb   :  { %10319 = vrot.lane.b32.xlu1 %v17599_v41, %s15168_s15 }
 0x7bc   :  { %v17680_v33 = vpop.permute.xlu0 %8811 }
 0x7bd   :  { %19621 = vst [vmem:[#allocation22_spill] sm:$0xff] %v17680_v33  ;;  %v17685_v7 = vpop.permute.xlu1 %9055  ;;  %7700 = vmatpush1.bf16.msra.mxu1 %v7572_v1  ;;  %v17711_v1 = vld [vmem:[#allocation2 + $0x10] sm:$0xff] }
 0x7be   :  { %19622 = vst [vmem:[#allocation23_spill] sm:$0xff] %v17685_v7  ;;  %10059 = vrot.lane.b32.xlu0 %v16957_v10, %s19616_s16  ;;  %7841 = vmatprep.subr.bf16.mxu1 %v7814_v20 }
 0x7bf   :  { %10317 = vrot.lane.b32.xlu1 %v17692_v61, %s15168_s15 }
 0x7c0   :  { %v17696_v27 = vpop.permute.xlu0 %9043  ;;  %13621 = vmatmul.mubr.msk.bf16.gmra.mrb[12].mxu1 %vm139_vm0, %v17640_v24 }
 0x7c1   :  { %19623 = vst [vmem:[#allocation24_spill] sm:$0xff] %v17696_v27  ;;  %v17700_v30 = vpop.permute.xlu1 %9045  ;;  %7729 = vmatprep.mubr.bf16.mxu1 %v16670_v62 }
 0x7c2   :  { %19624 = vst [vmem:[#allocation25_spill] sm:$0xff] %v17700_v30  ;;  %10061 = vrot.lane.b32.xlu0 %v16972_v4, %s19616_s16  ;;  %v17717_v30 = vld [vmem:[#allocation2 + $0x18] sm:$0xff]  ;;  %v7813_v4 = vsel %vm1272_vm5, %v17302_v35, %v17290_v25  ;;  %v17738_v25 = vld [vmem:[#allocation2 + $0x50] sm:$0xff]  ;;  %v7818_v35 = vsel %vm1272_vm5, %v17351_v45, %v17336_v21  ;;  %v17764_v45 = vld [vmem:[#allocation2 + $0x20] sm:$0xff]  ;;  %s19674_s16 = smov 46  }
 0x7c3   :  { %10335 = vrot.lane.b32.xlu1 %v17705_v36, %s15168_s15 }
 0x7c4   :  { %v17709_v10 = vpop.permute.xlu0 %9053 }
 0x7c5   :  { %19625 = vst [vmem:[#allocation26_spill] sm:$0xff] %v17709_v10  ;;  %v17713_v20 = vpop.permute.xlu1 %9057  ;;  %v17728_v10 = vld [vmem:[#allocation2 + $0x40] sm:$0xff] }
 0x7c6   :  { %19626 = vst [vmem:[#allocation27_spill] sm:$0xff] %v17713_v20  ;;  %10321 = vrot.lane.b32.xlu0 %v17711_v1, %s15168_s15 }
 0x7c7   :  { %10323 = vrot.lane.b32.xlu1 %v17717_v30, %s15168_s15 }
 0x7c8   :  { %v17724_v7 = vpop.permute.xlu0 %9051  ;;  %13622 = vmatmul.mubr.msk.bf16.vlgmr.msra.gmra.mrb[16].mxu1 %vm139_vm0, %v17608_v39 }
 0x7c9   :  { %19627 = vst [vmem:[#allocation28_spill] sm:$0xff] %v17724_v7  ;;  %v17730_v20 = vpop.permute.xlu1 %9049  ;;  %7842 = vmatpush1.bf16.msra.mxu1 %v7813_v4  ;;  %7739 = vmatprep.mubr.bf16.mxu1 %v16670_v62  ;;  %v17747_v4 = vld [vmem:[#allocation2 + $0x38] sm:$0xff]  ;;  %v7816_v7 = vsel %vm1272_vm5, %v17326_v49, %v17361_v47 }
 0x7ca   :  { %19628 = vst [vmem:[#allocation29_spill] sm:$0xff] %v17730_v20  ;;  %10333 = vrot.lane.b32.xlu0 %v17728_v10, %s15168_s15  ;;  %7843 = vmatprep.subr.bf16.mxu1 %v7819_v2  ;;  %v17756_v2 = vld [vmem:[#allocation2 + $0x28] sm:$0xff] }
 0x7cb   :  { %10337 = vrot.lane.b32.xlu1 %v17738_v25, %s15168_s15 }
 0x7cc   :  { %v17745_v39 = vpop.permute.xlu0 %9047 }
 0x7cd   :  { %19629 = vst [vmem:[#allocation30_spill] sm:$0xff] %v17745_v39  ;;  %v17749_v20 = vpop.permute.xlu1 %9291  ;;  %7844 = vmatpush1.bf16.msra.mxu1 %v7818_v35 }
 0x7ce   :  { %19630 = vst [vmem:[#allocation31_spill] sm:$0xff] %v17749_v20  ;;  %10331 = vrot.lane.b32.xlu0 %v17747_v4, %s15168_s15  ;;  %7894 = vmatprep.subr.bf16.mxu1 %v7816_v7  ;;  %v17771_v20 = vld [vmem:[#allocation2 + $0x60] sm:$0xff] }
 0x7cf   :  { %10327 = vrot.lane.b32.xlu1 %v17756_v2, %s15168_s15 }
 0x7d0   :  { %v17760_v21 = vpop.permute.xlu0 %9059  ;;  %13623 = vmatmul.mubr.msk.bf16.gmra.mrb[20].mxu1 %vm139_vm0, %v17640_v24  ;;  %v15105_v24 = vld [vmem:[%s19502_s3 + $0x50] sm:$0xff]  }
 0x7d1   :  { %19631 = vst [vmem:[#allocation32_spill] sm:$0xff] %v17760_v21  ;;  %v17766_v35 = vpop.permute.xlu1 %9289  ;;  %7873 = vmatprep.mubr.bf16.mxu1 %v16670_v62  ;;  %v17780_v21 = vld [vmem:[#allocation2 + $0x58] sm:$0xff] }
 0x7d2   :  { %19632 = vst [vmem:[#allocation33_spill] sm:$0xff] %v17766_v35  ;;  %10325 = vrot.lane.b32.xlu0 %v17764_v45, %s15168_s15  ;;  %v17786_v35 = vld [vmem:[#allocation2 + $0x30] sm:$0xff] }
 0x7d3   :  { %10341 = vrot.lane.b32.xlu1 %v17771_v20, %s15168_s15 }
 0x7d4   :  { %v17775_v7 = vpop.permute.xlu0 %9061 }
 0x7d5   :  { %19633 = vst [vmem:[#allocation34_spill] sm:$0xff] %v17775_v7  ;;  %v17782_v39 = vpop.permute.xlu1 %9305  ;;  %v7815_v7 = vsel %vm1272_vm5, %v17320_v46, %v17326_v49  ;;  %v7820_v46 = vsel %vm1272_vm5, %v17314_v42, %v17344_v29  ;;  %v15106_v49 = vld [vmem:[%s19502_s3 + $0x58] sm:$0xff]  }
 0x7d6   :  { %19634 = vst [vmem:[#allocation35_spill] sm:$0xff] %v17782_v39  ;;  %10339 = vrot.lane.b32.xlu0 %v17780_v21, %s15168_s15  ;;  %v7821_v39 = vsel %vm1272_vm5, %v17344_v29, %v17369_v31 }
 0x7d7   :  { %10575 = vrot.lane.b32.xlu1 %v17599_v41, %s15169_s14 }
 0x7d8   :  { %v17790_v58 = vpop.permute.xlu0 %9293  ;;  %13630 = vmatmul.mubr.msk.bf16.vlgmr.msra.gmra.mrb[0].mxu1 %vm139_vm0, %v15105_v24 }
 0x7d9   :  { %19635 = vst [vmem:[#allocation36_spill] sm:$0xff] %v17790_v58  ;;  %v17796_v27 = vpop.permute.xlu1 %9295  ;;  %7895 = vmatpush1.bf16.msra.mxu1 %v7815_v7  ;;  %7883 = vmatprep.mubr.bf16.mxu1 %v16670_v62  ;;  %v17804_v58 = vld [vmem:[#allocation2 + $0x68] sm:$0xff] }
 0x7da   :  { %19636 = vst [vmem:[#allocation37_spill] sm:$0xff] %v17796_v27  ;;  %10329 = vrot.lane.b32.xlu0 %v17786_v35, %s15168_s15  ;;  %7896 = vmatprep.subr.bf16.mxu1 %v7821_v39 }
 0x7db   :  { %10573 = vrot.lane.b32.xlu1 %v17692_v61, %s15169_s14 }
 0x7dc   :  { %v17808_v33 = vpop.permute.xlu0 %9303 }
 0x7dd   :  { %v17816_v7 = vpop.permute.xlu1 %9307  ;;  %7897 = vmatpush1.bf16.msra.mxu1 %v7820_v46 }
 0x7de   :  { %19637 = vst [vmem:[#allocation38_spill] sm:$0xff] %v17816_v7  ;;  %10343 = vrot.lane.b32.xlu0 %v17804_v58, %s15168_s15  ;;  %7947 = vmatprep.subr.bf16.mxu1 %v17354_v40 }
 0x7df   :  { %10591 = vrot.lane.b32.xlu1 %v17705_v36, %s15169_s14 }
 0x7e0   :  { %v17823_v39 = vpop.permute.xlu0 %9301  ;;  %13631 = vmatmul.mubr.msk.bf16.gmra.mrb[4].mxu1 %vm139_vm0, %v15106_v49 }
 0x7e1   :  { %v17826_v42 = vpop.permute.xlu1 %9299  ;;  %7926 = vmatprep.mubr.bf16.mxu1 %v16670_v62 }
 0x7e2   :  { %19638 = vst [vmem:[#allocation39_spill] sm:$0xff] %v17826_v42  ;;  %10577 = vrot.lane.b32.xlu0 %v17711_v1, %s15169_s14  ;;  %v7817_v42 = vsel %vm1272_vm5, %v17361_v47, %v17354_v40  ;;  %v8064_v40 = vsel %vm1523_vm6, %v17363_v12, %v17397_v53 }
 0x7e3   :  { %10579 = vrot.lane.b32.xlu1 %v17717_v30, %s15169_s14 }
 0x7e4   :  { %v17833_v29 = vpop.permute.xlu0 %9297 }
 0x7e5   :  { %v17837_v46 = vpop.permute.xlu1 %9541 }
 0x7e6   :  { %10589 = vrot.lane.b32.xlu0 %v17728_v10, %s15169_s14  ;;  %19639 = vst [vmem:[#allocation40_spill] sm:$0xff] %v17837_v46 }
 0x7e7   :  { %10593 = vrot.lane.b32.xlu1 %v17738_v25, %s15169_s14 }
 0x7e8   :  { %v17841_v7 = vpop.permute.xlu0 %9309  ;;  %13632 = vmatmul.mubr.msk.bf16.vlgmr.msra.gmra.mrb[8].mxu1 %vm139_vm0, %v15105_v24 }
 0x7e9   :  { %19640 = vst [vmem:[#allocation41_spill] sm:$0xff] %v17841_v7  ;;  %7948 = vmatpush1.bf16.msra.mxu1 %v7817_v42  ;;  %7936 = vmatprep.mubr.bf16.mxu1 %v16670_v62  ;;  %v7822_v7 = vsel %vm1272_vm5, %v17369_v31, %v17383_v43  ;;  %v17858_v27 = vpop.permute.xlu1 %9539  ;;  %vm19733_vm5 = vmmov %vm19725_vm1 }
 0x7ea   :  { %10587 = vrot.lane.b32.xlu0 %v17747_v4, %s15169_s14  ;;  %7949 = vmatprep.subr.bf16.mxu1 %v17383_v43  ;;  %v8063_v43 = vsel %vm1523_vm6, %v17375_v28, %v17363_v12  ;;  %v8068_v12 = vsel %vm1523_vm6, %v17418_v55, %v17407_v14  ;;  %v8066_v28 = vsel %vm1523_vm6, %v17400_v6, %v17434_v63  ;;  %v15107_v55 = vld [vmem:[%s19502_s3 + $0x60] sm:$0xff]  }
 0x7eb   :  { %10583 = vrot.lane.b32.xlu1 %v17756_v2, %s15169_s14 }
 0x7ec   :  { %v17853_v46 = vpop.permute.xlu0 %9311 }
 0x7ed   :  { %7950 = vmatpush1.bf16.msra.mxu1 %v7822_v7  ;;  %v17873_v31 = vpop.permute.xlu1 %9555 }
 0x7ee   :  { %10581 = vrot.lane.b32.xlu0 %v17764_v45, %s15169_s14  ;;  %8091 = vmatprep.subr.bf16.mxu1 %v8064_v40  ;;  %v8069_v40 = vsel %vm1523_vm6, %v17407_v14, %v17388_v48 }
 0x7ef   :  { %10597 = vrot.lane.b32.xlu1 %v17771_v20, %s15169_s14 }
 0x7f0   :  { %13633 = vmatmul.mubr.msk.bf16.gmra.mrb[12].mxu1 %vm139_vm0, %v15106_v49  ;;  %v17869_v47 = vpop.permute.xlu0 %9543 }
 0x7f1   :  { %7979 = vmatprep.mubr.bf16.mxu1 %v16670_v62  ;;  %v17887_v42 = vpop.permute.xlu1 %9545 }
 0x7f2   :  { %10595 = vrot.lane.b32.xlu0 %v17780_v21, %s15169_s14 }
 0x7f3   :  { %10831 = vrot.lane.b32.xlu1 %v17599_v41, %s15170_s29 }
 0x7f4   :  { %v17884_v7 = vpop.permute.xlu0 %9553 }
 0x7f6   :  { %10585 = vrot.lane.b32.xlu0 %v17786_v35, %s15169_s14 }
 0x7f7   :  { %10829 = vrot.lane.b32.xlu1 %v17692_v61, %s15170_s29 }
 0x7f8   :  { %13634 = vmatmul.mubr.msk.bf16.vlgmr.msra.gmra.mrb[16].mxu1 %vm139_vm0, %v15105_v24  ;;  %v17903_v24 = vpop.permute.xlu0 %9551 }
 0x7f9   :  { %8092 = vmatpush1.bf16.msra.mxu1 %v8063_v43  ;;  %7989 = vmatprep.mubr.bf16.mxu1 %v16670_v62  ;;  %v17907_v43 = vpop.permute.xlu1 %9557 }
 0x7fa   :  { %10599 = vrot.lane.b32.xlu0 %v17804_v58, %s15169_s14  ;;  %8093 = vmatprep.subr.bf16.mxu1 %v8069_v40 }
 0x7fb   :  { %10847 = vrot.lane.b32.xlu1 %v17705_v36, %s15170_s29 }
 0x7fc   :  { %v17917_v14 = vpop.permute.xlu0 %9547 }
 0x7fd   :  { %8094 = vmatpush1.bf16.msra.mxu1 %v8068_v12  ;;  %v17922_v40 = vpop.permute.xlu1 %9549  ;;  %v8071_v12 = vsel %vm1523_vm6, %v17409_v59, %v17445_v17 }
 0x7fe   :  { %10833 = vrot.lane.b32.xlu0 %v17711_v1, %s15170_s29  ;;  %8144 = vmatprep.subr.bf16.mxu1 %v8066_v28  ;;  %19641 = vst [vmem:[#allocation42_spill] sm:$0xff] %v17922_v40 }
 0x7ff   :  { %10835 = vrot.lane.b32.xlu1 %v17717_v30, %s15170_s29 }
 0x800   :  { %13635 = vmatmul.mubr.msk.bf16.gmra.mrb[20].mxu1 %vm139_vm0, %v15106_v49  ;;  %v8065_v49 = vsel %vm1523_vm6, %v17397_v53, %v17400_v6  ;;  %v17936_v28 = vpop.permute.xlu0 %9559  ;;  %v8070_v6 = vsel %vm1523_vm6, %v17388_v48, %v17409_v59  ;;  %v15108_v53 = vld [vmem:[%s19502_s3 + $0x68] sm:$0xff]  }
 0x801   :  { %8123 = vmatprep.mubr.bf16.mxu1 %v16670_v62  ;;  %v17940_v40 = vpop.permute.xlu1 %9791 }
 0x802   :  { %10845 = vrot.lane.b32.xlu0 %v17728_v10, %s15170_s29  ;;  %19642 = vst [vmem:[#allocation43_spill] sm:$0xff] %v17940_v40 }
 0x803   :  { %10849 = vrot.lane.b32.xlu1 %v17738_v25, %s15170_s29 }
 0x806   :  { %10843 = vrot.lane.b32.xlu0 %v17747_v4, %s15170_s29 }
 0x807   :  { %10839 = vrot.lane.b32.xlu1 %v17756_v2, %s15170_s29 }
 0x808   :  { %13642 = vmatmul.mubr.msk.bf16.vlgmr.msra.gmra.mrb[0].mxu1 %vm139_vm0, %v15107_v55 }
 0x809   :  { %8145 = vmatpush1.bf16.msra.mxu1 %v8065_v49  ;;  %8133 = vmatprep.mubr.bf16.mxu1 %v16670_v62  ;;  %v17955_v49 = vpop.permute.xlu0 %9561 }
 0x80a   :  { %10837 = vrot.lane.b32.xlu0 %v17764_v45, %s15170_s29  ;;  %8146 = vmatprep.subr.bf16.mxu1 %v8071_v12  ;;  %v17958_v12 = vpop.permute.xlu1 %9789 }
 0x80b   :  { %10853 = vrot.lane.b32.xlu1 %v17771_v20, %s15170_s29  ;;  %19644 = vst [vmem:[#allocation44_spill] sm:$0xff] %v17958_v12  ;;  %v8072_v12 = vsel %vm1523_vm6, %v17445_v17, %v17455_v5 }
 0x80d   :  { %8147 = vmatpush1.bf16.msra.mxu1 %v8070_v6  ;;  %v17965_v48 = vpop.permute.xlu0 %9793  ;;  %v8067_v6 = vsel %vm1523_vm6, %v17434_v63, %v17421_v34  ;;  %vm19734_vm6 = vmmov %vm19725_vm1 }
 0x80e   :  { %10851 = vrot.lane.b32.xlu0 %v17780_v21, %s15170_s29  ;;  %8197 = vmatprep.subr.bf16.mxu1 %v17421_v34  ;;  %v17969_v59 = vpop.permute.xlu1 %9805  ;;  %v8314_v34 = vsel %vm1774_vm7, %v17436_v32, %v17466_v44 }
 0x80f   :  { %11087 = vrot.lane.b32.xlu1 %v17599_v41, %s19643_s7  ;;  %19645 = vst [vmem:[#allocation45_spill] sm:$0xff] %v17969_v59 }
 0x810   :  { %13643 = vmatmul.mubr.msk.bf16.gmra.mrb[4].mxu1 %vm139_vm0, %v15108_v53 }
 0x811   :  { %8176 = vmatprep.mubr.bf16.mxu1 %v16670_v62  ;;  %v17983_v59 = vpop.permute.xlu0 %9803 }
 0x812   :  { %10841 = vrot.lane.b32.xlu0 %v17786_v35, %s15170_s29  ;;  %v17988_v40 = vpop.permute.xlu1 %9795 }
 0x813   :  { %11085 = vrot.lane.b32.xlu1 %v17692_v61, %s19643_s7  ;;  %19646 = vst [vmem:[#allocation46_spill] sm:$0xff] %v17988_v40 }
 0x815   :  { %v17999_v63 = vpop.permute.xlu0 %9801 }
 0x816   :  { %10855 = vrot.lane.b32.xlu0 %v17804_v58, %s15170_s29  ;;  %v18003_v17 = vpop.permute.xlu1 %9807  ;;  %s19651_s29 = smov 64  }
 0x817   :  { %11103 = vrot.lane.b32.xlu1 %v17705_v36, %s19643_s7  ;;  %19647 = vst [vmem:[#allocation47_spill] sm:$0xff] %v18003_v17  ;;  %v19650_v17 = vld [vmem:[#allocation10_spill] sm:$0xff] }
 0x818   :  { %13644 = vmatmul.mubr.msk.bf16.vlgmr.msra.gmra.mrb[8].mxu1 %vm139_vm0, %v15107_v55  ;;  %v8319_v40 = vsel %vm1774_vm7, %v17482_v3, %v19650_v17 }
 0x819   :  { %8198 = vmatpush1.bf16.msra.mxu1 %v8067_v6  ;;  %8186 = vmatprep.mubr.bf16.mxu1 %v16670_v62  ;;  %v18014_v6 = vpop.permute.xlu0 %9797 }
 0x81a   :  { %11089 = vrot.lane.b32.xlu0 %v17711_v1, %s19643_s7  ;;  %8199 = vmatprep.subr.bf16.mxu1 %v17455_v5  ;;  %v19648_v5 = vld [vmem:[#allocation9_spill] sm:$0xff] }
 0x81b   :  { %11091 = vrot.lane.b32.xlu1 %v17717_v30, %s19643_s7 }
 0x81d   :  { %8200 = vmatpush1.bf16.msra.mxu1 %v8072_v12  ;;  %v8313_v12 = vsel %vm1774_vm7, %v19648_v5, %v17436_v32  ;;  %v8318_v32 = vsel %vm1774_vm7, %v17497_v52, %v17482_v3  ;;  %v15109_v52 = vld [vmem:[%s19502_s3 + $0x70] sm:$0xff]  }
 0x81e   :  { %11101 = vrot.lane.b32.xlu0 %v17728_v10, %s19643_s7  ;;  %8341 = vmatprep.subr.bf16.mxu1 %v8314_v34  ;;  %v18017_v34 = vpop.permute.xlu1 %9799 }
 0x81f   :  { %11105 = vrot.lane.b32.xlu1 %v17738_v25, %s19643_s7  ;;  %19649 = vst [vmem:[#allocation9_spill] sm:$0xff] %v18017_v34 }
 0x820   :  { %13645 = vmatmul.mubr.msk.bf16.gmra.mrb[12].mxu1 %vm139_vm0, %v15108_v53 }
 0x821   :  { %8229 = vmatprep.mubr.bf16.mxu1 %v16670_v62 }
 0x822   :  { %11099 = vrot.lane.b32.xlu0 %v17747_v4, %s19643_s7  ;;  %v18037_v34 = vpop.permute.xlu1 %10041 }
 0x823   :  { %11095 = vrot.lane.b32.xlu1 %v17756_v2, %s19643_s7  ;;  %19653 = vst [vmem:[#allocation10_spill] sm:$0xff] %v18037_v34 }
 0x826   :  { %11093 = vrot.lane.b32.xlu0 %v17764_v45, %s19643_s7 }
 0x827   :  { %11109 = vrot.lane.b32.xlu1 %v17771_v20, %s19643_s7 }
 0x828   :  { %13646 = vmatmul.mubr.msk.bf16.vlgmr.msra.gmra.mrb[16].mxu1 %vm139_vm0, %v15107_v55  ;;  %v19652_v55 = vld [vmem:[#allocation11_spill] sm:$0xff] }
 0x829   :  { %8342 = vmatpush1.bf16.msra.mxu1 %v8313_v12  ;;  %8239 = vmatprep.mubr.bf16.mxu1 %v16670_v62  ;;  %v8316_v5 = vsel %vm1774_vm7, %v19652_v55, %v17507_v38  ;;  %v18033_v12 = vpop.permute.xlu0 %9809 }
 0x82a   :  { %11107 = vrot.lane.b32.xlu0 %v17780_v21, %s19643_s7  ;;  %8343 = vmatprep.subr.bf16.mxu1 %v8319_v40  ;;  %v18052_v40 = vpop.permute.xlu1 %10039 }
 0x82b   :  { %11343 = vrot.lane.b32.xlu1 %v17599_v41, %s19651_s29  ;;  %19655 = vst [vmem:[#allocation48_spill] sm:$0xff] %v18052_v40 }
 0x82d   :  { %8344 = vmatpush1.bf16.msra.mxu1 %v8318_v32  ;;  %v18047_v3 = vpop.permute.xlu0 %9811  ;;  %v19656_v32 = vld [vmem:[#allocation15_spill] sm:$0xff] }
 0x82e   :  { %11097 = vrot.lane.b32.xlu0 %v17786_v35, %s19643_s7  ;;  %8394 = vmatprep.subr.bf16.mxu1 %v8316_v5  ;;  %19654 = vst [vmem:[#allocation11_spill] sm:$0xff] %v18047_v3  ;;  %v19657_v5 = vld [vmem:[#allocation12_spill] sm:$0xff]  ;;  %v18070_v3 = vpop.permute.xlu1 %10055 }
 0x82f   :  { %11341 = vrot.lane.b32.xlu1 %v17692_v61, %s19651_s29  ;;  %v8321_v34 = vsel %vm1774_vm7, %v19657_v5, %v19656_v32  ;;  %19658 = vst [vmem:[#allocation15_spill] sm:$0xff] %v18070_v3 }
 0x830   :  { %13647 = vmatmul.mubr.msk.bf16.gmra.mrb[20].mxu1 %vm139_vm0, %v15108_v53  ;;  %v8315_v53 = vsel %vm1774_vm7, %v17466_v44, %v19652_v55  ;;  %v8320_v44 = vsel %vm1774_vm7, %v19650_v17, %v19657_v5  ;;  %v15110_v55 = vld [vmem:[%s19502_s3 + $0x78] sm:$0xff]  }
 0x831   :  { %8373 = vmatprep.mubr.bf16.mxu1 %v16670_v62  ;;  %v18066_v40 = vpop.permute.xlu0 %10043 }
 0x832   :  { %11111 = vrot.lane.b32.xlu0 %v17804_v58, %s19643_s7  ;;  %v18088_v3 = vpop.permute.xlu1 %10045 }
 0x833   :  { %11359 = vrot.lane.b32.xlu1 %v17705_v36, %s19651_s29  ;;  %19660 = vst [vmem:[#allocation12_spill] sm:$0xff] %v18088_v3  ;;  %v8322_v3 = vsel %vm1774_vm7, %v19656_v32, %v17529_v16 }
 0x836   :  { %11345 = vrot.lane.b32.xlu0 %v17711_v1, %s19651_s29  ;;  %v18099_v5 = vpop.permute.xlu1 %10057 }
 0x837   :  { %11347 = vrot.lane.b32.xlu1 %v17717_v30, %s19651_s29  ;;  %19662 = vst [vmem:[#allocation49_spill] sm:$0xff] %v18099_v5 }
 0x838   :  { %13654 = vmatmul.mubr.msk.bf16.vlgmr.msra.gmra.mrb[0].mxu1 %vm139_vm0, %v15109_v52 }
 0x839   :  { %8395 = vmatpush1.bf16.msra.mxu1 %v8315_v53  ;;  %8383 = vmatprep.mubr.bf16.mxu1 %v16670_v62  ;;  %v19659_v53 = vld [vmem:[#allocation13_spill] sm:$0xff] }
 0x83a   :  { %11357 = vrot.lane.b32.xlu0 %v17728_v10, %s19651_s29  ;;  %8396 = vmatprep.subr.bf16.mxu1 %v8321_v34  ;;  %v18085_v34 = vpop.permute.xlu0 %10053 }
 0x83b   :  { %11361 = vrot.lane.b32.xlu1 %v17738_v25, %s19651_s29 }
 0x83d   :  { %8397 = vmatpush1.bf16.msra.mxu1 %v8320_v44  ;;  %v8317_v44 = vsel %vm1774_vm7, %v17507_v38, %v19659_v53  ;;  %v19664_v38 = vld [vmem:[#allocation14_spill] sm:$0xff]  ;;  %vm19736_vm7 = vmmov %vm19725_vm1 }
 0x83e   :  { %11355 = vrot.lane.b32.xlu0 %v17747_v4, %s19651_s29  ;;  %8447 = vmatprep.subr.bf16.mxu1 %v19659_v53  ;;  %v18095_v17 = vpop.permute.xlu0 %10051  ;;  %v8564_v53 = vsel %vm2025_vm8, %v19664_v38, %v17543_v50 }
 0x83f   :  { %11351 = vrot.lane.b32.xlu1 %v17756_v2, %s19651_s29  ;;  %19661 = vst [vmem:[#allocation13_spill] sm:$0xff] %v18095_v17  ;;  %v18118_v17 = vpop.permute.xlu1 %10049 }
 0x840   :  { %13655 = vmatmul.mubr.msk.bf16.gmra.mrb[4].mxu1 %vm139_vm0, %v15110_v55 }
 0x841   :  { %8426 = vmatprep.mubr.bf16.mxu1 %v16670_v62 }
 0x842   :  { %11349 = vrot.lane.b32.xlu0 %v17764_v45, %s19651_s29  ;;  %v18113_v5 = vpop.permute.xlu0 %10047 }
 0x843   :  { %11365 = vrot.lane.b32.xlu1 %v17771_v20, %s19651_s29 }
 0x846   :  { %11363 = vrot.lane.b32.xlu0 %v17780_v21, %s19651_s29 }
 0x847   :  { %11599 = vrot.lane.b32.xlu1 %v17599_v41, %s19663_s30 }
 0x848   :  { %13656 = vmatmul.mubr.msk.bf16.vlgmr.msra.gmra.mrb[8].mxu1 %vm139_vm0, %v15109_v52 }
 0x849   :  { %8448 = vmatpush1.bf16.msra.mxu1 %v8317_v44  ;;  %8436 = vmatprep.mubr.bf16.mxu1 %v16670_v62  ;;  %v18129_v44 = vpop.permute.xlu0 %10059 }
 0x84a   :  { %11353 = vrot.lane.b32.xlu0 %v17786_v35, %s19651_s29  ;;  %8449 = vmatprep.subr.bf16.mxu1 %v17529_v16  ;;  %v18133_v16 = vpop.permute.xlu1 %10319 }
 0x84b   :  { %11597 = vrot.lane.b32.xlu1 %v17692_v61, %s19663_s30  ;;  %19665 = vst [vmem:[#allocation14_spill] sm:$0xff] %v18133_v16  ;;  %v8569_v16 = vsel %vm2025_vm8, %v17553_v15, %v17534_v8 }
 0x84d   :  { %8450 = vmatpush1.bf16.msra.mxu1 %v8322_v3  ;;  %v8563_v3 = vsel %vm2025_vm8, %v17521_v54, %v19664_v38  ;;  %v18144_v32 = vpop.permute.xlu0 %10061  ;;  %v8568_v54 = vsel %vm2025_vm8, %v17564_v22, %v17553_v15  ;;  %v15111_v22 = vld [vmem:[%s19502_s3 + $0x80] sm:$0xff]  }
 0x84e   :  { %11367 = vrot.lane.b32.xlu0 %v17804_v58, %s19651_s29  ;;  %8591 = vmatprep.subr.bf16.mxu1 %v8564_v53  ;;  %v18147_v53 = vpop.permute.xlu1 %10317 }
 0x84f   :  { %11615 = vrot.lane.b32.xlu1 %v17705_v36, %s19663_s30 }
 0x850   :  { %13657 = vmatmul.mubr.msk.bf16.gmra.mrb[12].mxu1 %vm139_vm0, %v15110_v55 }
 0x851   :  { %8479 = vmatprep.mubr.bf16.mxu1 %v16670_v62  ;;  %v18163_v38 = vpop.permute.xlu0 %10321 }
 0x852   :  { %11601 = vrot.lane.b32.xlu0 %v17711_v1, %s19663_s30 }
 0x853   :  { %11603 = vrot.lane.b32.xlu1 %v17717_v30, %s19663_s30 }
 0x855   :  { %v18177_v15 = vpop.permute.xlu0 %10333 }
 0x856   :  { %11613 = vrot.lane.b32.xlu0 %v17728_v10, %s19663_s30  ;;  %19667 = vst [vmem:[#allocation50_spill] sm:$0xff] %v18177_v15 }
 0x857   :  { %11617 = vrot.lane.b32.xlu1 %v17738_v25, %s19663_s30 }
 0x858   :  { %13658 = vmatmul.mubr.msk.bf16.vlgmr.msra.gmra.mrb[16].mxu1 %vm139_vm0, %v15109_v52  ;;  %v8566_v52 = vsel %vm2025_vm8, %v17546_v13, %v17580_v37 }
 0x859   :  { %8592 = vmatpush1.bf16.msra.mxu1 %v8563_v3  ;;  %8489 = vmatprep.mubr.bf16.mxu1 %v16670_v62  ;;  %v18167_v3 = vpop.permute.xlu1 %10335 }
 0x85a   :  { %11611 = vrot.lane.b32.xlu0 %v17747_v4, %s19663_s30  ;;  %8593 = vmatprep.subr.bf16.mxu1 %v8569_v16 }
 0x85b   :  { %11607 = vrot.lane.b32.xlu1 %v17756_v2, %s19663_s30 }
 0x85d   :  { %8594 = vmatpush1.bf16.msra.mxu1 %v8568_v54  ;;  %v18182_v16 = vpop.permute.xlu1 %10323  ;;  %v19669_v54 = vld [vmem:[#allocation16_spill] sm:$0xff] }
 0x85e   :  { %11605 = vrot.lane.b32.xlu0 %v17764_v45, %s19663_s30  ;;  %8644 = vmatprep.subr.bf16.mxu1 %v8566_v52  ;;  %19668 = vst [vmem:[#allocation51_spill] sm:$0xff] %v18182_v16  ;;  %v8571_v52 = vsel %vm2025_vm8, %v19669_v54, %v17591_v60  ;;  %v18196_v16 = vpop.permute.xlu0 %10331 }
 0x85f   :  { %11621 = vrot.lane.b32.xlu1 %v17771_v20, %s19663_s30 }
 0x860   :  { %13659 = vmatmul.mubr.msk.bf16.gmra.mrb[20].mxu1 %vm139_vm0, %v15110_v55  ;;  %v8565_v55 = vsel %vm2025_vm8, %v17543_v50, %v17546_v13  ;;  %v8570_v50 = vsel %vm2025_vm8, %v17534_v8, %v19669_v54  ;;  %v15112_v13 = vld [vmem:[%s19502_s3 + $0x88] sm:$0xff]  }
 0x861   :  { %8623 = vmatprep.mubr.bf16.mxu1 %v16670_v62  ;;  %v18200_v15 = vpop.permute.xlu1 %10337 }
 0x862   :  { %11619 = vrot.lane.b32.xlu0 %v17780_v21, %s19663_s30  ;;  %19670 = vst [vmem:[#allocation16_spill] sm:$0xff] %v18200_v15 }
 0x863   :  { %11855 = vrot.lane.b32.xlu1 %v17599_v41, %s19666_s28 }
 0x866   :  { %11609 = vrot.lane.b32.xlu0 %v17786_v35, %s19663_s30 }
 0x867   :  { %11853 = vrot.lane.b32.xlu1 %v17692_v61, %s19666_s28 }
 0x868   :  { %13666 = vmatmul.mubr.msk.bf16.vlgmr.msra.gmra.mrb[0].mxu1 %vm139_vm0, %v15111_v22 }
 0x869   :  { %8645 = vmatpush1.bf16.msra.mxu1 %v8565_v55  ;;  %8633 = vmatprep.mubr.bf16.mxu1 %v16670_v62  ;;  %v18215_v55 = vpop.permute.xlu0 %10325 }
 0x86a   :  { %11623 = vrot.lane.b32.xlu0 %v17804_v58, %s19663_s30  ;;  %8646 = vmatprep.subr.bf16.mxu1 %v8571_v52  ;;  %v18218_v52 = vpop.permute.xlu1 %10327 }
 0x86b   :  { %11871 = vrot.lane.b32.xlu1 %v17705_v36, %s19666_s28  ;;  %19671 = vst [vmem:[#allocation52_spill] sm:$0xff] %v18218_v52  ;;  %v8572_v52 = vsel %vm2025_vm8, %v17591_v60, %v17603_v11 }
 0x86d   :  { %8647 = vmatpush1.bf16.msra.mxu1 %v8570_v50  ;;  %v18225_v8 = vpop.permute.xlu0 %10339  ;;  %v8567_v50 = vsel %vm2025_vm8, %v17580_v37, %v17567_v9  ;;  %vm19737_vm8 = vmmov %vm19725_vm1 }
 0x86e   :  { %11857 = vrot.lane.b32.xlu0 %v17711_v1, %s19666_s28  ;;  %8697 = vmatprep.subr.bf16.mxu1 %v17567_v9  ;;  %v18229_v54 = vpop.permute.xlu1 %10341  ;;  %v8814_v9 = vsel %vm2276_vm9, %v17582_v18, %v17615_v57 }
 0x86f   :  { %11859 = vrot.lane.b32.xlu1 %v17717_v30, %s19666_s28  ;;  %19672 = vst [vmem:[#allocation53_spill] sm:$0xff] %v18229_v54 }
 0x870   :  { %13667 = vmatmul.mubr.msk.bf16.gmra.mrb[4].mxu1 %vm139_vm0, %v15112_v13 }
 0x871   :  { %8676 = vmatprep.mubr.bf16.mxu1 %v16670_v62  ;;  %v18243_v54 = vpop.permute.xlu0 %10329 }
 0x872   :  { %11869 = vrot.lane.b32.xlu0 %v17728_v10, %s19666_s28  ;;  %v18248_v15 = vpop.permute.xlu1 %10575 }
 0x873   :  { %11873 = vrot.lane.b32.xlu1 %v17738_v25, %s19666_s28  ;;  %19673 = vst [vmem:[#allocation54_spill] sm:$0xff] %v18248_v15 }
 0x875   :  { %v18259_v37 = vpop.permute.xlu0 %10343 }
 0x876   :  { %11867 = vrot.lane.b32.xlu0 %v17747_v4, %s19666_s28  ;;  %v18263_v60 = vpop.permute.xlu1 %10573 }
 0x877   :  { %11863 = vrot.lane.b32.xlu1 %v17756_v2, %s19666_s28  ;;  %19675 = vst [vmem:[#allocation55_spill] sm:$0xff] %v18263_v60  ;;  %v19678_v60 = vld [vmem:[#allocation18_spill] sm:$0xff] }
 0x878   :  { %13668 = vmatmul.mubr.msk.bf16.vlgmr.msra.gmra.mrb[8].mxu1 %vm139_vm0, %v15111_v22  ;;  %v8819_v15 = vsel %vm2276_vm9, %v17632_v51, %v19678_v60 }
 0x879   :  { %8698 = vmatpush1.bf16.msra.mxu1 %v8567_v50  ;;  %8686 = vmatprep.mubr.bf16.mxu1 %v16670_v62  ;;  %v18274_v50 = vpop.permute.xlu0 %10577 }
 0x87a   :  { %11861 = vrot.lane.b32.xlu0 %v17764_v45, %s19666_s28  ;;  %8699 = vmatprep.subr.bf16.mxu1 %v17603_v11  ;;  %v19676_v11 = vld [vmem:[#allocation17_spill] sm:$0xff] }
 0x87b   :  { %11877 = vrot.lane.b32.xlu1 %v17771_v20, %s19666_s28 }
 0x87d   :  { %8700 = vmatpush1.bf16.msra.mxu1 %v8572_v52  ;;  %v8813_v52 = vsel %vm2276_vm9, %v19676_v11, %v17582_v18  ;;  %v8818_v18 = vsel %vm2276_vm9, %v17648_v0, %v17632_v51  ;;  %v15113_v0 = vld [vmem:[%s19502_s3 + $0x90] sm:$0xff]  }
 0x87e   :  { %11875 = vrot.lane.b32.xlu0 %v17780_v21, %s19666_s28  ;;  %8841 = vmatprep.subr.bf16.mxu1 %v8814_v9  ;;  %v18277_v9 = vpop.permute.xlu1 %10591 }
 0x87f   :  { %12111 = vrot.lane.b32.xlu1 %v17599_v41, %s19674_s16  ;;  %19677 = vst [vmem:[#allocation17_spill] sm:$0xff] %v18277_v9 }
 0x880   :  { %13669 = vmatmul.mubr.msk.bf16.gmra.mrb[12].mxu1 %vm139_vm0, %v15112_v13 }
 0x881   :  { %8729 = vmatprep.mubr.bf16.mxu1 %v16670_v62 }
 0x882   :  { %11865 = vrot.lane.b32.xlu0 %v17786_v35, %s19666_s28  ;;  %v18297_v9 = vpop.permute.xlu1 %10579 }
 0x883   :  { %12109 = vrot.lane.b32.xlu1 %v17692_v61, %s19674_s16 }
 0x886   :  { %11879 = vrot.lane.b32.xlu0 %v17804_v58, %s19666_s28 }
 0x887   :  { %12127 = vrot.lane.b32.xlu1 %v17705_v36, %s19674_s16 }
 0x888   :  { %13670 = vmatmul.mubr.msk.bf16.vlgmr.msra.gmra.mrb[16].mxu1 %vm139_vm0, %v15111_v22  ;;  %v19679_v22 = vld [vmem:[#allocation19_spill] sm:$0xff] }
 0x889   :  { %8842 = vmatpush1.bf16.msra.mxu1 %v8813_v52  ;;  %8739 = vmatprep.mubr.bf16.mxu1 %v16670_v62  ;;  %v8816_v11 = vsel %vm2276_vm9, %v19679_v22, %v17658_v26  ;;  %v18293_v52 = vpop.permute.xlu0 %10589 }
 0x88a   :  { %12113 = vrot.lane.b32.xlu0 %v17711_v1, %s19674_s16  ;;  %8843 = vmatprep.subr.bf16.mxu1 %v8819_v15  ;;  %v18312_v15 = vpop.permute.xlu1 %10593 }
 0x88b   :  { %12115 = vrot.lane.b32.xlu1 %v17717_v30, %s19674_s16  ;;  %19680 = vst [vmem:[#allocation18_spill] sm:$0xff] %v18312_v15 }
 0x88d   :  { %8844 = vmatpush1.bf16.msra.mxu1 %v8818_v18  ;;  %v18307_v51 = vpop.permute.xlu0 %10587  ;;  %v8821_v18 = vsel %vm2276_vm9, %v17642_v56, %v17665_v23 }
 0x88e   :  { %12125 = vrot.lane.b32.xlu0 %v17728_v10, %s19674_s16  ;;  %8894 = vmatprep.subr.bf16.mxu1 %v8816_v11  ;;  %v18330_v15 = vpop.permute.xlu1 %10583 }
 0x88f   :  { %12129 = vrot.lane.b32.xlu1 %v17738_v25, %s19674_s16  ;;  %19681 = vst [vmem:[#allocation19_spill] sm:$0xff] %v18330_v15 }
 0x890   :  { %13671 = vmatmul.mubr.msk.bf16.gmra.mrb[20].mxu1 %vm139_vm0, %v15112_v13  ;;  %v8815_v13 = vsel %vm2276_vm9, %v17615_v57, %v19679_v22  ;;  %v8820_v57 = vsel %vm2276_vm9, %v19678_v60, %v17642_v56  ;;  %v15114_v22 = vld [vmem:[%s19502_s3 + $0x98] sm:$0xff]  }
 0x891   :  { %8873 = vmatprep.mubr.bf16.mxu1 %v16670_v62  ;;  %v18326_v11 = vpop.permute.xlu0 %10581 }
 0x892   :  { %12123 = vrot.lane.b32.xlu0 %v17747_v4, %s19674_s16 }
 0x893   :  { %12119 = vrot.lane.b32.xlu1 %v17756_v2, %s19674_s16 }
 0x896   :  { %12117 = vrot.lane.b32.xlu0 %v17764_v45, %s19674_s16 }
 0x897   :  { %12133 = vrot.lane.b32.xlu1 %v17771_v20, %s19674_s16 }
 0x898   :  { %13678 = vmatmul.mubr.msk.bf16.vlgmr.msra.gmra.mrb[0].mxu1 %vm139_vm0, %v15113_v0 }
 0x899   :  { %8895 = vmatpush1.bf16.msra.mxu1 %v8815_v13  ;;  %8883 = vmatprep.mubr.bf16.mxu1 %v16670_v62  ;;  %v18345_v13 = vpop.permute.xlu0 %10595 }
 0x89a   :  { %12131 = vrot.lane.b32.xlu0 %v17780_v21, %s19674_s16  ;;  %8896 = vmatprep.subr.bf16.mxu1 %v8821_v18  ;;  %19683 = vst [vmem:[#allocation56_spill] sm:$0xff] %v18345_v13  ;;  %v18348_v18 = vpop.permute.xlu1 %10597 }
 0x89b   :  { %12367 = vrot.lane.b32.xlu1 %v17599_v41, %s19682_s1  ;;  %19684 = vst [vmem:[#allocation57_spill] sm:$0xff] %v18348_v18  ;;  %v19687_v18 = vld [vmem:[#allocation22_spill] sm:$0xff] }
 0x89c   :  { %v8822_v15 = vsel %vm2276_vm9, %v17665_v23, %v19687_v18 }
 0x89d   :  { %8897 = vmatpush1.bf16.msra.mxu1 %v8820_v57  ;;  %v18355_v56 = vpop.permute.xlu0 %10585  ;;  %v8817_v57 = vsel %vm2276_vm9, %v17658_v26, %v17652_v19  ;;  %v19691_v26 = vld [vmem:[#allocation20_spill] sm:$0xff]  ;;  %vm19738_vm9 = vmmov %vm19725_vm1 }
 0x89e   :  { %12121 = vrot.lane.b32.xlu0 %v17786_v35, %s19674_s16  ;;  %8947 = vmatprep.subr.bf16.mxu1 %v17652_v19  ;;  %19685 = vst [vmem:[#allocation58_spill] sm:$0xff] %v18355_v56  ;;  %v18359_v60 = vpop.permute.xlu1 %10831  ;;  %v19690_v19 = vld [vmem:[#allocation24_spill] sm:$0xff] }
 0x89f   :  { %12365 = vrot.lane.b32.xlu1 %v17692_v61, %s19682_s1  ;;  %19686 = vst [vmem:[#allocation59_spill] sm:$0xff] %v18359_v60 }
 0x8a0   :  { %13679 = vmatmul.mubr.msk.bf16.gmra.mrb[4].mxu1 %vm139_vm0, %v15114_v22 }
 0x8a1   :  { %8926 = vmatprep.mubr.bf16.mxu1 %v16670_v62  ;;  %v18373_v60 = vpop.permute.xlu0 %10599 }
 0x8a2   :  { %12135 = vrot.lane.b32.xlu0 %v17804_v58, %s19674_s16  ;;  %19688 = vst [vmem:[#allocation22_spill] sm:$0xff] %v18373_v60  ;;  %v18378_v56 = vpop.permute.xlu1 %10829 }
 0x8a3   :  { %12383 = vrot.lane.b32.xlu1 %v17705_v36, %s19682_s1  ;;  %19689 = vst [vmem:[#allocation60_spill] sm:$0xff] %v18378_v56 }
 0x8a5   :  { %v18389_v60 = vpop.permute.xlu0 %10833 }
 0x8a6   :  { %12369 = vrot.lane.b32.xlu0 %v17711_v1, %s19682_s1  ;;  %19692 = vst [vmem:[#allocation24_spill] sm:$0xff] %v18389_v60  ;;  %v18393_v23 = vpop.permute.xlu1 %10847  ;;  %v19699_v60 = vld [vmem:[#allocation26_spill] sm:$0xff] }
 0x8a7   :  { %12371 = vrot.lane.b32.xlu1 %v17717_v30, %s19682_s1  ;;  %19693 = vst [vmem:[#allocation20_spill] sm:$0xff] %v18393_v23  ;;  %v19698_v23 = vld [vmem:[#allocation23_spill] sm:$0xff] }
 0x8a8   :  { %13680 = vmatmul.mubr.msk.bf16.vlgmr.msra.gmra.mrb[8].mxu1 %vm139_vm0, %v15113_v0  ;;  %v9069_v13 = vsel %vm2527_vm10, %v19699_v60, %v19698_v23 }
 0x8a9   :  { %8948 = vmatpush1.bf16.msra.mxu1 %v8817_v57  ;;  %8936 = vmatprep.mubr.bf16.mxu1 %v16670_v62  ;;  %v9064_v57 = vsel %vm2527_vm10, %v19691_v26, %v19690_v19 }
 0x8aa   :  { %12381 = vrot.lane.b32.xlu0 %v17728_v10, %s19682_s1  ;;  %8949 = vmatprep.subr.bf16.mxu1 %v19687_v18  ;;  %v18407_v56 = vpop.permute.xlu1 %10835 }
 0x8ab   :  { %12385 = vrot.lane.b32.xlu1 %v17738_v25, %s19682_s1  ;;  %19697 = vst [vmem:[#allocation61_spill] sm:$0xff] %v18407_v56 }
 0x8ad   :  { %8950 = vmatpush1.bf16.msra.mxu1 %v8822_v15  ;;  %v19695_v15 = vld [vmem:[#allocation21_spill] sm:$0xff] }
 0x8ae   :  { %12379 = vrot.lane.b32.xlu0 %v17747_v4, %s19682_s1  ;;  %9091 = vmatprep.subr.bf16.mxu1 %v9064_v57  ;;  %v9063_v18 = vsel %vm2527_vm10, %v19695_v15, %v19691_v26  ;;  %v18404_v57 = vpop.permute.xlu0 %10845  ;;  %v19701_v26 = vld [vmem:[#allocation30_spill] sm:$0xff]  ;;  %v19702_v15 = vld [vmem:[#allocation25_spill] sm:$0xff] }
 0x8af   :  { %12375 = vrot.lane.b32.xlu1 %v17756_v2, %s19682_s1  ;;  %19696 = vst [vmem:[#allocation21_spill] sm:$0xff] %v18404_v57  ;;  %v18427_v57 = vpop.permute.xlu1 %10849 }
 0x8b0   :  { %13681 = vmatmul.mubr.msk.bf16.gmra.mrb[12].mxu1 %vm139_vm0, %v15114_v22 }
 0x8b1   :  { %8979 = vmatprep.mubr.bf16.mxu1 %v16670_v62 }
 0x8b2   :  { %12373 = vrot.lane.b32.xlu0 %v17764_v45, %s19682_s1  ;;  %v18423_v56 = vpop.permute.xlu0 %10843 }
 0x8b3   :  { %12389 = vrot.lane.b32.xlu1 %v17771_v20, %s19682_s1 }
 0x8b6   :  { %12387 = vrot.lane.b32.xlu0 %v17780_v21, %s19682_s1 }
 0x8b7   :  { %12623 = vrot.lane.b32.xlu1 %v17599_v41, %s19694_s13  ;;  %v19700_v41 = vld [vmem:[#allocation28_spill] sm:$0xff] }
 0x8b8   :  { %13682 = vmatmul.mubr.msk.bf16.vlgmr.msra.gmra.mrb[16].mxu1 %vm139_vm0, %v15113_v0  ;;  %v9068_v0 = vsel %vm2527_vm10, %v19700_v41, %v19699_v60  ;;  %v18442_v60 = vpop.permute.xlu1 %10839 }
 0x8b9   :  { %9092 = vmatpush1.bf16.msra.mxu1 %v9063_v18  ;;  %8989 = vmatprep.mubr.bf16.mxu1 %v16670_v62  ;;  %v9066_v18 = vsel %vm2527_vm10, %v19702_v15, %v19701_v26 }
 0x8ba   :  { %12377 = vrot.lane.b32.xlu0 %v17786_v35, %s19682_s1  ;;  %9093 = vmatprep.subr.bf16.mxu1 %v9069_v13  ;;  %v15115_v13 = vld [vmem:[%s19502_s3 + $0xa0] sm:$0xff]  }
 0x8bb   :  { %12621 = vrot.lane.b32.xlu1 %v17692_v61, %s19694_s13  ;;  %v18437_v61 = vpop.permute.xlu0 %10837 }
 0x8bd   :  { %9094 = vmatpush1.bf16.msra.mxu1 %v9068_v0  ;;  %v19705_v0 = vld [vmem:[#allocation29_spill] sm:$0xff] }
 0x8be   :  { %12391 = vrot.lane.b32.xlu0 %v17804_v58, %s19682_s1  ;;  %9144 = vmatprep.subr.bf16.mxu1 %v9066_v18  ;;  %v9067_v18 = vsel %vm2527_vm10, %v19701_v26, %v19705_v0  ;;  %v19707_v26 = vld [vmem:[#allocation36_spill] sm:$0xff] }
 0x8bf   :  { %12639 = vrot.lane.b32.xlu1 %v17705_v36, %s19694_s13  ;;  %v19703_v36 = vld [vmem:[#allocation32_spill] sm:$0xff]  ;;  %v18456_v41 = vpop.permute.xlu0 %10851 }
 0x8c0   :  { %13683 = vmatmul.mubr.msk.bf16.gmra.mrb[20].mxu1 %vm139_vm0, %v15114_v22 }
 0x8c1   :  { %9123 = vmatprep.mubr.bf16.mxu1 %v16670_v62 }
 0x8c2   :  { %12625 = vrot.lane.b32.xlu0 %v17711_v1, %s19694_s13  ;;  %v19704_v1 = vld [vmem:[#allocation27_spill] sm:$0xff] }
 0x8c3   :  { %12627 = vrot.lane.b32.xlu1 %v17717_v30, %s19694_s13  ;;  %v9065_v30 = vsel %vm2527_vm10, %v19690_v19, %v19702_v15  ;;  %v9071_v22 = vsel %vm2527_vm10, %v19704_v1, %v19703_v36  ;;  %v15116_v19 = vld [vmem:[%s19502_s3 + $0xa8] sm:$0xff]  }
 0x8c6   :  { %12637 = vrot.lane.b32.xlu0 %v17728_v10, %s19694_s13  ;;  %v18460_v10 = vpop.permute.xlu1 %10853 }
 0x8c7   :  { %12641 = vrot.lane.b32.xlu1 %v17738_v25, %s19694_s13  ;;  %v9070_v25 = vsel %vm2527_vm10, %v19698_v23, %v19704_v1 }
 0x8c8   :  { %13690 = vmatmul.mubr.msk.bf16.vlgmr.msra.gmra.mrb[0].mxu1 %vm139_vm0, %v15115_v13 }
 0x8c9   :  { %9145 = vmatpush1.bf16.msra.mxu1 %v9065_v30  ;;  %9133 = vmatprep.mubr.bf16.mxu1 %v16670_v62 }
 0x8ca   :  { %12635 = vrot.lane.b32.xlu0 %v17747_v4, %s19694_s13  ;;  %9146 = vmatprep.subr.bf16.mxu1 %v9071_v22  ;;  %v18475_v4 = vpop.permute.xlu0 %10841  ;;  %v18481_v23 = vpop.permute.xlu1 %11087  ;;  %v19708_v22 = vld [vmem:[#allocation31_spill] sm:$0xff] }
 0x8cb   :  { %12631 = vrot.lane.b32.xlu1 %v17756_v2, %s19694_s13  ;;  %v12862_v2 = vld [vmem:[%s19503_s4] sm:$0xff] }
 0x8cd   :  { %9147 = vmatpush1.bf16.msra.mxu1 %v9070_v25  ;;  %v9314_v25 = vsel %vm2778_vm11, %v19708_v22, %v19707_v26 }
 0x8ce   :  { %12629 = vrot.lane.b32.xlu0 %v17764_v45, %s19694_s13  ;;  %9197 = vmatprep.subr.bf16.mxu1 %v19705_v0  ;;  %v18489_v45 = vpop.permute.xlu0 %10855  ;;  %v18493_v15 = vpop.permute.xlu1 %11085 }
 0x8cf   :  { %12645 = vrot.lane.b32.xlu1 %v17771_v20, %s19694_s13  ;;  %v12864_v20 = vld [vmem:[%s19503_s4 + $0x10] sm:$0xff] }
 0x8d0   :  { %13691 = vmatmul.mubr.msk.bf16.gmra.mrb[4].mxu1 %vm139_vm0, %v15116_v19 }
 0x8d1   :  { %9176 = vmatprep.mubr.bf16.mxu1 %v16670_v62 }
 0x8d2   :  { %12643 = vrot.lane.b32.xlu0 %v17780_v21, %s19694_s13  ;;  %v19706_v21 = vld [vmem:[#allocation34_spill] sm:$0xff]  ;;  %v18506_v30 = vpop.permute.xlu0 %11089 }
 0x8d3   :  { %12868 = vperm.xlu1 %15044, %v12862_v2   ;;  %v9072_v1 = vsel %vm2527_vm10, %v19703_v36, %v19706_v21  ;;  %v19709_v36 = vld [vmem:[#allocation33_spill] sm:$0xff]  ;;  %vm19739_vm10 = vmmov %vm19725_vm1 }
 0x8d4   :  { %v9313_v2 = vsel %vm2778_vm11, %v19709_v36, %v19708_v22  ;;  %v19713_v22 = vld [vmem:[#allocation38_spill] sm:$0xff]  ;;  %v19714_v36 = vld [vmem:[#allocation39_spill] sm:$0xff] }
 0x8d6   :  { %12633 = vrot.lane.b32.xlu0 %v17786_v35, %s19694_s13  ;;  %v12863_v35 = vld [vmem:[%s19503_s4 + $0x8] sm:$0xff]  ;;  %v18519_v0 = vpop.permute.xlu0 %11101 }
 0x8d7   :  { %12878 = vperm.xlu1 %15044, %v12864_v20   ;;  %v19710_v20 = vld [vmem:[#allocation35_spill] sm:$0xff] }
 0x8d8   :  { %13692 = vmatmul.mubr.msk.bf16.vlgmr.msra.gmra.mrb[8].mxu1 %vm139_vm0, %v15115_v13 }
 0x8d9   :  { %9198 = vmatpush1.bf16.msra.mxu1 %v9067_v18  ;;  %9186 = vmatprep.mubr.bf16.mxu1 %v16670_v62  ;;  %v9319_v18 = vsel %vm2778_vm11, %v17808_v33, %v19710_v20 }
 0x8da   :  { %12647 = vrot.lane.b32.xlu0 %v17804_v58, %s19694_s13  ;;  %9199 = vmatprep.subr.bf16.mxu1 %v19706_v21  ;;  %v12865_v58 = vld [vmem:[%s19503_s4 + $0x18] sm:$0xff]  ;;  %v9318_v21 = vsel %vm2778_vm11, %v17823_v39, %v17808_v33  ;;  %v19712_v39 = vld [vmem:[#allocation41_spill] sm:$0xff] }
 0x8dd   :  { %9200 = vmatpush1.bf16.msra.mxu1 %v9072_v1 }
 0x8de   :  { %12873 = vperm.xlu0 %15043, %v12863_v35   ;;  %9341 = vmatprep.subr.bf16.mxu1 %v9314_v25  ;;  %v19711_v35 = vld [vmem:[#allocation37_spill] sm:$0xff]  ;;  %v9321_v25 = vsel %vm2778_vm11, %v19713_v22, %v19712_v39 }
 0x8df   :  { %v9316_v1 = vsel %vm2778_vm11, %v19711_v35, %v17833_v29  ;;  %v9315_v33 = vsel %vm2778_vm11, %v19707_v26, %v19711_v35  ;;  %v9317_v26 = vsel %vm2778_vm11, %v17833_v29, %v19714_v36  ;;  %v9566_v35 = vsel %vm3029_vm12, %v17887_v42, %v17917_v14 }
 0x8e0   :  { %13693 = vmatmul.mubr.msk.bf16.gmra.mrb[12].mxu1 %vm139_vm0, %v15116_v19 }
 0x8e1   :  { %9229 = vmatprep.mubr.bf16.mxu1 %v16670_v62 }
 0x8e2   :  { %12883 = vperm.xlu0 %15043, %v12865_v58   ;;  %v15118_v58 = vld [vmem:[%s19502_s3 + $0xb8] sm:$0xff]  }
 0x8e8   :  { %13694 = vmatmul.mubr.msk.bf16.vlgmr.msra.gmra.mrb[16].mxu1 %vm139_vm0, %v15115_v13  ;;  %v15117_v13 = vld [vmem:[%s19502_s3 + $0xb0] sm:$0xff]  }
 0x8e9   :  { %9342 = vmatpush1.bf16.msra.mxu1 %v9313_v2  ;;  %9239 = vmatprep.mubr.bf16.mxu1 %v16670_v62  ;;  %v9322_v2 = vsel %vm2778_vm11, %v19712_v39, %v17853_v46 }
 0x8ea   :  { %9343 = vmatprep.subr.bf16.mxu1 %v9319_v18 }
 0x8ed   :  { %9344 = vmatpush1.bf16.msra.mxu1 %v9318_v21  ;;  %v9568_v21 = vsel %vm3029_vm12, %v17903_v24, %v17884_v7  ;;  %v9571_v24 = vsel %vm3029_vm12, %v17907_v43, %v17936_v28 }
 0x8ee   :  { %9394 = vmatprep.subr.bf16.mxu1 %v9316_v1  ;;  %v9570_v1 = vsel %vm3029_vm12, %v17873_v31, %v17907_v43 }
 0x8f0   :  { %13695 = vmatmul.mubr.msk.bf16.gmra.mrb[20].mxu1 %vm139_vm0, %v15116_v19  ;;  %v9320_v19 = vsel %vm2778_vm11, %v19710_v20, %v19713_v22  ;;  %v19715_v20 = vld [vmem:[#allocation40_spill] sm:$0xff]  ;;  %v19719_v22 = vld [vmem:[#allocation45_spill] sm:$0xff]  ;;  %vm19741_vm11 = vcmask 556032  }
 0x8f1   :  { %9373 = vmatprep.mubr.bf16.mxu1 %v16670_v62  ;;  %v9564_v18 = vsel %vm3029_vm12, %v19715_v20, %v17869_v47  ;;  %v9563_v29 = vsel %vm3029_vm12, %v17858_v27, %v19715_v20  ;;  %v15119_v27 = vld [vmem:[%s19502_s3 + $0xc0] sm:$0xff]  }
 0x8f2   :  { %v19722_v20 = vld [vmem:[#allocation9_spill] sm:$0xff] }
 0x8f8   :  { %13702 = vmatmul.mubr.msk.bf16.vlgmr.msra.gmra.mrb[0].mxu1 %vm139_vm0, %v15117_v13 }
 0x8f9   :  { %9395 = vmatpush1.bf16.msra.mxu1 %v9315_v33  ;;  %9383 = vmatprep.mubr.bf16.mxu1 %v16670_v62  ;;  %v19716_v33 = vld [vmem:[#allocation42_spill] sm:$0xff] }
 0x8fa   :  { %9396 = vmatprep.subr.bf16.mxu1 %v9321_v25  ;;  %v19720_v25 = vld [vmem:[#allocation46_spill] sm:$0xff] }
 0x8fd   :  { %9397 = vmatpush1.bf16.msra.mxu1 %v9320_v19  ;;  %v9816_v19 = vsel %vm3280_vm13, %v19720_v25, %v18014_v6 }
 0x8fe   :  { %9447 = vmatprep.subr.bf16.mxu1 %v19714_v36 }
 0x900   :  { %13703 = vmatmul.mubr.msk.bf16.gmra.mrb[4].mxu1 %vm139_vm0, %v15118_v58 }
 0x901   :  { %9426 = vmatprep.mubr.bf16.mxu1 %v16670_v62 }
 0x908   :  { %13704 = vmatmul.mubr.msk.bf16.vlgmr.msra.gmra.mrb[8].mxu1 %vm139_vm0, %v15117_v13 }
 0x909   :  { %9448 = vmatpush1.bf16.msra.mxu1 %v9317_v26  ;;  %9436 = vmatprep.mubr.bf16.mxu1 %v16670_v62 }
 0x90a   :  { %9449 = vmatprep.subr.bf16.mxu1 %v17853_v46  ;;  %v9569_v46 = vsel %vm3029_vm12, %v17884_v7, %v17873_v31  ;;  %v9565_v7 = vsel %vm3029_vm12, %v17869_v47, %v17887_v42  ;;  %v9567_v47 = vsel %vm3029_vm12, %v17917_v14, %v19716_v33  ;;  %v9572_v31 = vsel %vm3029_vm12, %v17936_v28, %v17955_v49  ;;  %v19717_v42 = vld [vmem:[#allocation43_spill] sm:$0xff]  ;;  %v19718_v14 = vld [vmem:[#allocation44_spill] sm:$0xff] }
 0x90b   :  { %v9814_v43 = vsel %vm3280_vm13, %v19717_v42, %v17965_v48  ;;  %v9813_v39 = vsel %vm3280_vm13, %v19718_v14, %v19717_v42  ;;  %v9819_v28 = vsel %vm3280_vm13, %v17983_v59, %v19719_v22  ;;  %v10072_v14 = vsel %vm19739_vm10, %v18129_v44, %v18144_v32 }
 0x90d   :  { %9450 = vmatpush1.bf16.msra.mxu1 %v9322_v2  ;;  %v15122_v2 = vld [vmem:[%s19502_s3 + $0xd8] sm:$0xff]  }
 0x90e   :  { %9591 = vmatprep.subr.bf16.mxu1 %v9564_v18  ;;  %v19723_v18 = vld [vmem:[#allocation11_spill] sm:$0xff] }
 0x910   :  { %13705 = vmatmul.mubr.msk.bf16.gmra.mrb[12].mxu1 %vm139_vm0, %v15118_v58 }
 0x911   :  { %9479 = vmatprep.mubr.bf16.mxu1 %v16670_v62 }
 0x918   :  { %13706 = vmatmul.mubr.msk.bf16.vlgmr.msra.gmra.mrb[16].mxu1 %vm139_vm0, %v15117_v13  ;;  %v15120_v13 = vld [vmem:[%s19502_s3 + $0xc8] sm:$0xff]  }
 0x919   :  { %9592 = vmatpush1.bf16.msra.mxu1 %v9563_v29  ;;  %9489 = vmatprep.mubr.bf16.mxu1 %v16670_v62  ;;  %v9822_v29 = vsel %vm3280_vm13, %v18033_v12, %v19723_v18 }
 0x91a   :  { %9593 = vmatprep.subr.bf16.mxu1 %v9569_v46  ;;  %v19724_v46 = vld [vmem:[#allocation10_spill] sm:$0xff] }
 0x91d   :  { %9594 = vmatpush1.bf16.msra.mxu1 %v9568_v21  ;;  %v10064_v21 = vsel %vm19725_vm1, %v19724_v46, %v18066_v40  ;;  %vm19744_vm1 = vmmov %vm19741_vm11 }
 0x91e   :  { %9644 = vmatprep.subr.bf16.mxu1 %v9566_v35  ;;  %vm19757_vm10 = vmmov %vm19744_vm1 }
 0x920   :  { %13707 = vmatmul.mubr.msk.bf16.gmra.mrb[20].mxu1 %vm139_vm0, %v15118_v58  ;;  %v15121_v58 = vld [vmem:[%s19502_s3 + $0xd0] sm:$0xff]  }
 0x921   :  { %9623 = vmatprep.mubr.bf16.mxu1 %v16670_v62 }
 0x928   :  { %13714 = vmatmul.mubr.msk.bf16.vlgmr.msra.gmra.mrb[0].mxu1 %vm139_vm0, %v15119_v27 }
 0x929   :  { %9645 = vmatpush1.bf16.msra.mxu1 %v9565_v7  ;;  %9633 = vmatprep.mubr.bf16.mxu1 %v16670_v62  ;;  %v19730_v7 = vld [vmem:[#allocation13_spill] sm:$0xff] }
 0x92a   :  { %9646 = vmatprep.subr.bf16.mxu1 %v9571_v24  ;;  %v10068_v24 = vsel %vm19731_vm4, %v19730_v7, %v18085_v34  ;;  %vm19748_vm4 = vmmov %vm19744_vm1  ;;  %v19772_v7 = vld [vmem:[#allocation19_spill] sm:$0xff] }
 0x92d   :  { %9647 = vmatpush1.bf16.msra.mxu1 %v9570_v1  ;;  %v19732_v1 = vld [vmem:[#allocation12_spill] sm:$0xff] }
 0x92e   :  { %9697 = vmatprep.subr.bf16.mxu1 %v19716_v33  ;;  %v15123_v33 = vld [vmem:[%s19502_s3 + $0xe0] sm:$0xff]  }
 0x930   :  { %13715 = vmatmul.mubr.msk.bf16.gmra.mrb[4].mxu1 %vm139_vm0, %v15120_v13 }
 0x931   :  { %9676 = vmatprep.mubr.bf16.mxu1 %v16670_v62 }
 0x938   :  { %13716 = vmatmul.mubr.msk.bf16.vlgmr.msra.gmra.mrb[8].mxu1 %vm139_vm0, %v15119_v27 }
 0x939   :  { %9698 = vmatpush1.bf16.msra.mxu1 %v9567_v47  ;;  %9686 = vmatprep.mubr.bf16.mxu1 %v16670_v62  ;;  %v19735_v47 = vld [vmem:[#allocation49_spill] sm:$0xff] }
 0x93a   :  { %9699 = vmatprep.subr.bf16.mxu1 %v17955_v49  ;;  %v9818_v49 = vsel %vm3280_vm13, %v17999_v63, %v17983_v59  ;;  %v9815_v59 = vsel %vm3280_vm13, %v17965_v48, %v19720_v25  ;;  %v19721_v63 = vld [vmem:[#allocation47_spill] sm:$0xff]  ;;  %v9817_v48 = vsel %vm3280_vm13, %v18014_v6, %v19722_v20  ;;  %v19726_v6 = vld [vmem:[#allocation48_spill] sm:$0xff] }
 0x93b   :  { %v9821_v36 = vsel %vm3280_vm13, %v19721_v63, %v18033_v12  ;;  %v9820_v26 = vsel %vm3280_vm13, %v19719_v22, %v19721_v63  ;;  %v10063_v35 = vsel %vm19727_vm2, %v19726_v6, %v19724_v46  ;;  %vm19742_vm13 = vmmov %vm19741_vm11  ;;  %v19749_v25 = vld [vmem:[#allocation16_spill] sm:$0xff]  ;;  %v15127_v46 = vld [vmem:[%s19502_s3 + $0x100] sm:$0xff]  }
 0x93c   :  { %vm19745_vm2 = vmmov %vm19744_vm1  ;;  %v19752_v63 = vld [vmem:[#allocation52_spill] sm:$0xff] }
 0x93d   :  { %9700 = vmatpush1.bf16.msra.mxu1 %v9572_v31  ;;  %v10071_v31 = vsel %vm19736_vm7, %v19735_v47, %v18129_v44  ;;  %vm19753_vm7 = vmmov %vm19744_vm1 }
 0x93e   :  { %9841 = vmatprep.subr.bf16.mxu1 %v9814_v43  ;;  %v15124_v43 = vld [vmem:[%s19502_s3 + $0xe8] sm:$0xff]  }
 0x940   :  { %13717 = vmatmul.mubr.msk.bf16.gmra.mrb[12].mxu1 %vm139_vm0, %v15120_v13 }
 0x941   :  { %9729 = vmatprep.mubr.bf16.mxu1 %v16670_v62 }
 0x948   :  { %13718 = vmatmul.mubr.msk.bf16.vlgmr.msra.gmra.mrb[16].mxu1 %vm139_vm0, %v15119_v27  ;;  %v19728_v27 = vld [vmem:[#allocation15_spill] sm:$0xff] }
 0x949   :  { %9842 = vmatpush1.bf16.msra.mxu1 %v9813_v39  ;;  %9739 = vmatprep.mubr.bf16.mxu1 %v16670_v62  ;;  %v10069_v12 = vsel %vm19729_vm3, %v18085_v34, %v19728_v27  ;;  %v10065_v34 = vsel %vm19734_vm6, %v18066_v40, %v19732_v1  ;;  %v10070_v42 = vsel %vm19737_vm8, %v19728_v27, %v19735_v47  ;;  %v19740_v39 = vld [vmem:[#allocation14_spill] sm:$0xff]  ;;  %vm19747_vm3 = vmmov %vm19744_vm1  ;;  %v19780_v47 = vld [vmem:[#allocation59_spill] sm:$0xff] }
 0x94a   :  { %9843 = vmatprep.subr.bf16.mxu1 %v9819_v28  ;;  %v10067_v40 = vsel %vm19738_vm9, %v18113_v5, %v18118_v17  ;;  %v10346_v22 = vsel %vm19741_vm11, %v19740_v39, %v18163_v38  ;;  %v19746_v28 = vld [vmem:[#allocation51_spill] sm:$0xff]  ;;  %vm19751_vm6 = vmmov %vm19744_vm1  ;;  %vm19759_vm11 = vcmask 547840   ;;  %v15128_v27 = vld [vmem:[%s19502_s3 + $0x108] sm:$0xff]  }
 0x94b   :  { %vm19754_vm8 = vmmov %vm19744_vm1 }
 0x94c   :  { %vm19756_vm9 = vmmov %vm19744_vm1 }
 0x94d   :  { %9844 = vmatpush1.bf16.msra.mxu1 %v9818_v49  ;;  %v10348_v49 = vsel %vm19747_vm3, %v19746_v28, %v18215_v55 }
 0x94e   :  { %9894 = vmatprep.subr.bf16.mxu1 %v9816_v19 }
 0x950   :  { %13719 = vmatmul.mubr.msk.bf16.gmra.mrb[20].mxu1 %vm139_vm0, %v15120_v13  ;;  %v10066_v13 = vsel %vm19733_vm5, %v19732_v1, %v18113_v5  ;;  %v19743_v5 = vld [vmem:[#allocation50_spill] sm:$0xff]  ;;  %vm19750_vm5 = vmmov %vm19744_vm1  ;;  %v19776_v1 = vld [vmem:[#allocation57_spill] sm:$0xff] }
 0x951   :  { %9873 = vmatprep.mubr.bf16.mxu1 %v16670_v62  ;;  %v10352_v44 = vsel %vm19744_vm1, %v19743_v5, %v18167_v3  ;;  %v10354_v19 = vsel %vm19750_vm5, %v19749_v25, %v18225_v8  ;;  %vm19763_vm1 = vmmov %vm19759_vm11 }
 0x952   :  { %vm19765_vm3 = vmmov %vm19763_vm1 }
 0x953   :  { %vm19769_vm5 = vmmov %vm19763_vm1 }
 0x958   :  { %13726 = vmatmul.mubr.msk.bf16.vlgmr.msra.gmra.mrb[0].mxu1 %vm139_vm0, %v15121_v58 }
 0x959   :  { %9895 = vmatpush1.bf16.msra.mxu1 %v9815_v59  ;;  %9883 = vmatprep.mubr.bf16.mxu1 %v16670_v62  ;;  %v15126_v59 = vld [vmem:[%s19502_s3 + $0xf8] sm:$0xff]  }
 0x95a   :  { %9896 = vmatprep.subr.bf16.mxu1 %v9821_v36  ;;  %v19755_v36 = vld [vmem:[#allocation53_spill] sm:$0xff] }
 0x95d   :  { %9897 = vmatpush1.bf16.msra.mxu1 %v9820_v26  ;;  %v10356_v26 = vsel %vm19756_vm9, %v19755_v36, %v18259_v37  ;;  %vm19777_vm9 = vmmov %vm19763_vm1 }
 0x95e   :  { %9947 = vmatprep.subr.bf16.mxu1 %v19722_v20 }
 0x960   :  { %13727 = vmatmul.mubr.msk.bf16.gmra.mrb[4].mxu1 %vm139_vm0, %v15122_v2 }
 0x961   :  { %9926 = vmatprep.mubr.bf16.mxu1 %v16670_v62 }
 0x968   :  { %13728 = vmatmul.mubr.msk.bf16.vlgmr.msra.gmra.mrb[8].mxu1 %vm139_vm0, %v15121_v58 }
 0x969   :  { %9948 = vmatpush1.bf16.msra.mxu1 %v9817_v48  ;;  %9936 = vmatprep.mubr.bf16.mxu1 %v16670_v62  ;;  %v19762_v48 = vld [vmem:[#allocation17_spill] sm:$0xff] }
 0x96a   :  { %9949 = vmatprep.subr.bf16.mxu1 %v19723_v18 }
 0x96d   :  { %9950 = vmatpush1.bf16.msra.mxu1 %v9822_v29  ;;  %v10604_v29 = vsel %vm19765_vm3, %v18297_v9, %v18326_v11 }
 0x96e   :  { %10091 = vmatprep.subr.bf16.mxu1 %v10064_v21  ;;  %v19768_v21 = vld [vmem:[#allocation18_spill] sm:$0xff] }
 0x970   :  { %13729 = vmatmul.mubr.msk.bf16.gmra.mrb[12].mxu1 %vm139_vm0, %v15122_v2 }
 0x971   :  { %9979 = vmatprep.mubr.bf16.mxu1 %v16670_v62 }
 0x978   :  { %13730 = vmatmul.mubr.msk.bf16.vlgmr.msra.gmra.mrb[16].mxu1 %vm139_vm0, %v15121_v58  ;;  %v10353_v58 = vsel %vm19751_vm6, %v18167_v3, %v19749_v25  ;;  %v10349_v3 = vsel %vm19754_vm8, %v18215_v55, %v19752_v63  ;;  %v19760_v55 = vld [vmem:[#allocation55_spill] sm:$0xff]  ;;  %vm19770_vm6 = vmmov %vm19763_vm1 }
 0x979   :  { %10092 = vmatpush1.bf16.msra.mxu1 %v10063_v35  ;;  %9989 = vmatprep.mubr.bf16.mxu1 %v16670_v62  ;;  %v10609_v35 = vsel %vm19770_vm6, %v19762_v48, %v19768_v21  ;;  %vm19774_vm8 = vmmov %vm19763_vm1 }
 0x97a   :  { %10093 = vmatprep.subr.bf16.mxu1 %v10069_v12  ;;  %v19771_v12 = vld [vmem:[#allocation58_spill] sm:$0xff] }
 0x97d   :  { %10094 = vmatpush1.bf16.msra.mxu1 %v10068_v24  ;;  %v19775_v24 = vld [vmem:[#allocation22_spill] sm:$0xff] }
 0x97e   :  { %10144 = vmatprep.subr.bf16.mxu1 %v10066_v13  ;;  %v10612_v13 = vsel %vm19777_vm9, %v19776_v1, %v19775_v24 }
 0x980   :  { %13731 = vmatmul.mubr.msk.bf16.gmra.mrb[20].mxu1 %vm139_vm0, %v15122_v2  ;;  %v19758_v2 = vld [vmem:[#allocation54_spill] sm:$0xff] }
 0x981   :  { %10123 = vmatprep.mubr.bf16.mxu1 %v16670_v62  ;;  %v10602_v20 = vsel %vm19759_vm11, %v19758_v2, %v18274_v50 }
 0x988   :  { %13738 = vmatmul.mubr.msk.bf16.vlgmr.msra.gmra.mrb[0].mxu1 %vm139_vm0, %v15123_v33 }
 0x989   :  { %10145 = vmatpush1.bf16.msra.mxu1 %v10065_v34  ;;  %10133 = vmatprep.mubr.bf16.mxu1 %v16670_v62  ;;  %v19779_v34 = vld [vmem:[#allocation24_spill] sm:$0xff] }
 0x98a   :  { %10146 = vmatprep.subr.bf16.mxu1 %v10071_v31 }
 0x98d   :  { %10147 = vmatpush1.bf16.msra.mxu1 %v10070_v42 }
 0x98e   :  { %10197 = vmatprep.subr.bf16.mxu1 %v18118_v17  ;;  %v10345_v17 = vsel %vm19742_vm13, %v18147_v53, %v19740_v39  ;;  %v15125_v53 = vld [vmem:[%s19502_s3 + $0xf0] sm:$0xff]   ;;  %vm19761_vm13 = vmmov %vm19759_vm11  ;;  %vm19781_vm11 = vcmask 539648  }
 0x98f   :  { %v10601_v37 = vsel %vm19761_vm13, %v19760_v55, %v19758_v2  ;;  %v10858_v31 = vsel %vm19781_vm11, %v19780_v47, %v19779_v34  ;;  %vm19783_vm13 = vmmov %vm19781_vm11 }
 0x990   :  { %13739 = vmatmul.mubr.msk.bf16.gmra.mrb[4].mxu1 %vm139_vm0, %v15124_v43 }
 0x991   :  { %10176 = vmatprep.mubr.bf16.mxu1 %v16670_v62 }
 0x998   :  { %13740 = vmatmul.mubr.msk.bf16.vlgmr.msra.gmra.mrb[8].mxu1 %vm139_vm0, %v15123_v33 }
 0x999   :  { %10198 = vmatpush1.bf16.msra.mxu1 %v10067_v40  ;;  %10186 = vmatprep.mubr.bf16.mxu1 %v16670_v62  ;;  %v19785_v40 = vld [vmem:[#allocation21_spill] sm:$0xff] }
 0x99a   :  { %10199 = vmatprep.subr.bf16.mxu1 %v18144_v32  ;;  %v10351_v32 = vsel %vm19745_vm2, %v18196_v16, %v19743_v5  ;;  %v10347_v16 = vsel %vm19748_vm4, %v18163_v38, %v19746_v28  ;;  %v10350_v38 = vsel %vm19753_vm7, %v19752_v63, %v18243_v54  ;;  %v10355_v54 = vsel %vm19757_vm10, %v18225_v8, %v19755_v36  ;;  %vm19764_vm2 = vmmov %vm19763_vm1  ;;  %v15129_v5 = vld [vmem:[%s19502_s3 + $0x110] sm:$0xff]   ;;  %v15130_v28 = vld [vmem:[%s19502_s3 + $0x118] sm:$0xff]  }
 0x99b   :  { %v10608_v8 = vsel %vm19763_vm1, %v18293_v52, %v19762_v48  ;;  %v10607_v18 = vsel %vm19764_vm2, %v18307_v51, %v18293_v52  ;;  %vm19766_vm4 = vmmov %vm19763_vm1  ;;  %v19767_v51 = vld [vmem:[#allocation56_spill] sm:$0xff] }
 0x99c   :  { %v10603_v52 = vsel %vm19766_vm4, %v18274_v50, %v18297_v9  ;;  %v10610_v6 = vsel %vm19769_vm5, %v19768_v21, %v19767_v51  ;;  %vm19773_vm7 = vmmov %vm19763_vm1  ;;  %v10605_v9 = vsel %vm19774_vm8, %v18326_v11, %v19772_v7  ;;  %v19782_v11 = vld [vmem:[#allocation60_spill] sm:$0xff] }
 0x99d   :  { %10200 = vmatpush1.bf16.msra.mxu1 %v10072_v14  ;;  %v10606_v50 = vsel %vm19773_vm7, %v19772_v7, %v19771_v12  ;;  %vm19778_vm10 = vmmov %vm19763_vm1  ;;  %v10857_v42 = vsel %vm19783_vm13, %v19782_v11, %v19780_v47 }
 0x99e   :  { %10375 = vmatprep.subr.bf16.mxu1 %v10346_v22  ;;  %vm19786_vm1 = vmmov %vm19781_vm11  ;;  %v19788_v22 = vld [vmem:[#allocation61_spill] sm:$0xff]  ;;  %vm19797_vm11 = vcmask 531456  }
 0x99f   :  { %vm19787_vm2 = vmmov %vm19786_vm1 }
 0x9a0   :  { %13741 = vmatmul.mubr.msk.bf16.gmra.mrb[12].mxu1 %vm139_vm0, %v15124_v43  ;;  %v10863_v39 = vsel %vm19787_vm2, %v18423_v56, %v19785_v40  ;;  %vm19789_vm3 = vmmov %vm19786_vm1 }
 0x9a1   :  { %10229 = vmatprep.mubr.bf16.mxu1 %v16670_v62  ;;  %vm19790_vm4 = vmmov %vm19786_vm1 }
 0x9a2   :  { %v10859_v56 = vsel %vm19790_vm4, %v19779_v34, %v19788_v22  ;;  %vm19791_vm5 = vmmov %vm19786_vm1 }
 0x9a3   :  { %vm19792_vm6 = vmmov %vm19786_vm1 }
 0x9a4   :  { %vm19793_vm7 = vmmov %vm19786_vm1 }
 0x9a5   :  { %vm19794_vm8 = vmmov %vm19786_vm1 }
 0x9a6   :  { %vm19795_vm9 = vmmov %vm19786_vm1 }
 0x9a7   :  { %vm19798_vm13 = vmmov %vm19797_vm11 }
 0x9a8   :  { %13742 = vmatmul.mubr.msk.bf16.vlgmr.msra.gmra.mrb[16].mxu1 %vm139_vm0, %v15123_v33  ;;  %v10611_v33 = vsel %vm19778_vm10, %v19767_v51, %v19776_v1  ;;  %vm19796_vm10 = vmmov %vm19786_vm1 }
 0x9a9   :  { %10376 = vmatpush1.bf16.msra.mxu1 %v10345_v17  ;;  %10239 = vmatprep.mubr.bf16.mxu1 %v16670_v62  ;;  %v10860_v17 = vsel %vm19789_vm3, %v19788_v22, %v18437_v61 }
 0x9aa   :  { %10377 = vmatprep.subr.bf16.mxu1 %v10352_v44  ;;  %v10866_v44 = vsel %vm19791_vm5, %v18427_v57, %v18456_v41 }
 0x9ad   :  { %10378 = vmatpush1.bf16.msra.mxu1 %v10351_v32 }
 0x9ae   :  { %10428 = vmatprep.subr.bf16.mxu1 %v10348_v49  ;;  %v10862_v49 = vsel %vm19793_vm7, %v18442_v60, %v18475_v4  ;;  %v10867_v4 = vsel %vm19796_vm10, %v18456_v41, %v18460_v10 }
 0x9b0   :  { %13743 = vmatmul.mubr.msk.bf16.gmra.mrb[20].mxu1 %vm139_vm0, %v15124_v43  ;;  %v19784_v43 = vld [vmem:[#allocation20_spill] sm:$0xff] }
 0x9b1   :  { %10407 = vmatprep.mubr.bf16.mxu1 %v16670_v62  ;;  %v10864_v14 = vsel %vm19786_vm1, %v19785_v40, %v19784_v43  ;;  %v10865_v32 = vsel %vm19792_vm6, %v19784_v43, %v18427_v57  ;;  %v10861_v57 = vsel %vm19794_vm8, %v18437_v61, %v18442_v60  ;;  %v11100_v61 = vpop.permute.xlu0 %11099  ;;  %v11104_v60 = vpop.permute.xlu1 %11103  ;;  %vm19799_vm1 = vmmov %vm19797_vm11 }
 0x9b2   :  { %v11120_v41 = vsel %vm19799_vm1, %v18519_v0, %v11104_v60  ;;  %vm19800_vm2 = vmmov %vm19799_vm1 }
 0x9b3   :  { %vm19801_vm3 = vmmov %vm19799_vm1 }
 0x9b4   :  { %vm19802_vm4 = vmmov %vm19799_vm1 }
 0x9b5   :  { %v11092_v25 = vpop.permute.xlu1 %11091  ;;  %vm19803_vm5 = vmmov %vm19799_vm1 }
 0x9b6   :  { %v11115_v63 = vsel %vm19802_vm4, %v18506_v30, %v11092_v25  ;;  %vm19804_vm6 = vmmov %vm19799_vm1 }
 0x9b7   :  { %vm19805_vm7 = vmmov %vm19799_vm1 }
 0x9b8   :  { %13750 = vmatmul.mubr.msk.bf16.vlgmr.msra.gmra.mrb[0].mxu1 %vm139_vm0, %v15125_v53  ;;  %vm19806_vm8 = vmmov %vm19799_vm1 }
 0x9b9   :  { %10429 = vmatpush1.bf16.msra.mxu1 %v10347_v16  ;;  %10417 = vmatprep.mubr.bf16.mxu1 %v16670_v62  ;;  %v11114_v16 = vsel %vm19797_vm11, %v18481_v23, %v18506_v30  ;;  %vm19808_vm10 = vmmov %vm19799_vm1  ;;  %vm19809_vm11 = vcmask 523264  }
 0x9ba   :  { %10430 = vmatprep.subr.bf16.mxu1 %v10354_v19  ;;  %v11119_v19 = vsel %vm19800_vm2, %v11100_v61, %v18519_v0 }
 0x9bd   :  { %10431 = vmatpush1.bf16.msra.mxu1 %v10353_v58 }
 0x9be   :  { %10481 = vmatprep.subr.bf16.mxu1 %v10350_v38 }
 0x9c0   :  { %13751 = vmatmul.mubr.msk.bf16.gmra.mrb[4].mxu1 %vm139_vm0, %v15126_v59 }
 0x9c1   :  { %10460 = vmatprep.mubr.bf16.mxu1 %v16670_v62 }
 0x9c8   :  { %13752 = vmatmul.mubr.msk.bf16.vlgmr.msra.gmra.mrb[8].mxu1 %vm139_vm0, %v15125_v53 }
 0x9c9   :  { %10482 = vmatpush1.bf16.msra.mxu1 %v10349_v3  ;;  %10470 = vmatprep.mubr.bf16.mxu1 %v16670_v62 }
 0x9ca   :  { %10483 = vmatprep.subr.bf16.mxu1 %v10356_v26  ;;  %v15132_v26 = vld [vmem:[%s19502_s3 + $0x128] sm:$0xff]  }
 0x9cd   :  { %10484 = vmatpush1.bf16.msra.mxu1 %v10355_v54 }
 0x9ce   :  { %10631 = vmatprep.subr.bf16.mxu1 %v10602_v20 }
 0x9d0   :  { %13753 = vmatmul.mubr.msk.bf16.gmra.mrb[12].mxu1 %vm139_vm0, %v15126_v59 }
 0x9d1   :  { %10513 = vmatprep.mubr.bf16.mxu1 %v16670_v62 }
 0x9d8   :  { %13754 = vmatmul.mubr.msk.bf16.vlgmr.msra.gmra.mrb[16].mxu1 %vm139_vm0, %v15125_v53  ;;  %v10868_v53 = vsel %vm19795_vm9, %v18460_v10, %v18489_v45  ;;  %v11113_v45 = vsel %vm19798_vm13, %v18493_v15, %v18481_v23  ;;  %v11094_v10 = vpop.permute.xlu0 %11093  ;;  %v15131_v15 = vld [vmem:[%s19502_s3 + $0x120] sm:$0xff]   ;;  %vm19807_vm9 = vmmov %vm19799_vm1 }
 0x9d9   :  { %10632 = vmatpush1.bf16.msra.mxu1 %v10601_v37  ;;  %10523 = vmatprep.mubr.bf16.mxu1 %v16670_v62  ;;  %v11116_v58 = vsel %vm19801_vm3, %v11092_v25, %v11094_v10  ;;  %vm19810_vm13 = vmmov %vm19809_vm11 }
 0x9da   :  { %10633 = vmatprep.subr.bf16.mxu1 %v10608_v8  ;;  %vm19811_vm1 = vmmov %vm19809_vm11 }
 0x9db   :  { %vm19812_vm2 = vmmov %vm19811_vm1 }
 0x9dc   :  { %v11108_v23 = vpop.permute.xlu0 %11107  ;;  %vm19813_vm3 = vmmov %vm19811_vm1 }
 0x9dd   :  { %10634 = vmatpush1.bf16.msra.mxu1 %v10607_v18  ;;  %vm19814_vm4 = vmmov %vm19811_vm1 }
 0x9de   :  { %10684 = vmatprep.subr.bf16.mxu1 %v10604_v29 }
 0x9e0   :  { %13755 = vmatmul.mubr.msk.bf16.gmra.mrb[20].mxu1 %vm139_vm0, %v15126_v59  ;;  %v11106_v59 = vpop.permute.xlu1 %11105  ;;  %v11098_v38 = vpop.permute.xlu0 %11097 }
 0x9e1   :  { %10663 = vmatprep.mubr.bf16.mxu1 %v16670_v62  ;;  %v11122_v0 = vsel %vm19803_vm5, %v11106_v59, %v11108_v23  ;;  %v11121_v36 = vsel %vm19804_vm6, %v11104_v60, %v11106_v59  ;;  %vm19815_vm5 = vmmov %vm19811_vm1 }
 0x9e2   :  { %vm19816_vm6 = vmmov %vm19811_vm1 }
 0x9e4   :  { %v11096_v3 = vpop.permute.xlu1 %11095  ;;  %v11112_v30 = vpop.permute.xlu0 %11111 }
 0x9e5   :  { %v11118_v54 = vsel %vm19805_vm7, %v11096_v3, %v11098_v38  ;;  %v11117_v55 = vsel %vm19806_vm8, %v11094_v10, %v11096_v3  ;;  %vm19817_vm7 = vmmov %vm19811_vm1 }
 0x9e6   :  { %vm19818_vm8 = vmmov %vm19811_vm1 }
 0x9e8   :  { %13762 = vmatmul.mubr.msk.bf16.vlgmr.msra.gmra.mrb[0].mxu1 %vm139_vm0, %v15127_v46  ;;  %v11110_v2 = vpop.permute.xlu1 %11109  ;;  %v11346_v20 = vpop.permute.xlu0 %11345 }
 0x9e9   :  { %10685 = vmatpush1.bf16.msra.mxu1 %v10603_v52  ;;  %10673 = vmatprep.mubr.bf16.mxu1 %v16670_v62  ;;  %v11124_v37 = vsel %vm19807_vm9, %v11110_v2, %v11112_v30  ;;  %v11123_v8 = vsel %vm19808_vm10, %v11108_v23, %v11110_v2  ;;  %vm19819_vm9 = vmmov %vm19811_vm1 }
 0x9ea   :  { %10686 = vmatprep.subr.bf16.mxu1 %v10610_v6  ;;  %vm19820_vm10 = vmmov %vm19811_vm1 }
 0x9ec   :  { %v11344_v48 = vpop.permute.xlu1 %11343  ;;  %v11358_v29 = vpop.permute.xlu0 %11357 }
 0x9ed   :  { %10687 = vmatpush1.bf16.msra.mxu1 %v10609_v35  ;;  %v11370_v18 = vsel %vm19809_vm11, %v11344_v48, %v11346_v20  ;;  %vm19821_vm11 = vcmask 392192  }
 0x9ee   :  { %10737 = vmatprep.subr.bf16.mxu1 %v10606_v50 }
 0x9f0   :  { %13763 = vmatmul.mubr.msk.bf16.gmra.mrb[4].mxu1 %vm139_vm0, %v15128_v27  ;;  %v11356_v52 = vpop.permute.xlu0 %11355 }
 0x9f1   :  { %10716 = vmatprep.mubr.bf16.mxu1 %v16670_v62  ;;  %v11375_v12 = vsel %vm19812_vm2, %v11356_v52, %v11358_v29 }
 0x9f4   :  { %v11350_v35 = vpop.permute.xlu0 %11349 }
 0x9f8   :  { %13764 = vmatmul.mubr.msk.bf16.vlgmr.msra.gmra.mrb[8].mxu1 %vm139_vm0, %v15127_v46  ;;  %v11364_v50 = vpop.permute.xlu0 %11363 }
 0x9f9   :  { %10738 = vmatpush1.bf16.msra.mxu1 %v10605_v9  ;;  %10726 = vmatprep.mubr.bf16.mxu1 %v16670_v62  ;;  %v15133_v9 = vld [vmem:[%s19502_s3 + $0x130] sm:$0xff]  }
 0x9fa   :  { %10739 = vmatprep.subr.bf16.mxu1 %v10612_v13 }
 0x9fd   :  { %10740 = vmatpush1.bf16.msra.mxu1 %v10611_v33  ;;  %v11354_v33 = vpop.permute.xlu0 %11353 }
 0x9fe   :  { %10887 = vmatprep.subr.bf16.mxu1 %v10858_v31  ;;  %v15134_v31 = vld [vmem:[%s19502_s3 + $0x138] sm:$0xff]  }
 0xa00   :  { %13765 = vmatmul.mubr.msk.bf16.gmra.mrb[12].mxu1 %vm139_vm0, %v15128_v27 }
 0xa01   :  { %10769 = vmatprep.mubr.bf16.mxu1 %v16670_v62 }
 0xa08   :  { %13766 = vmatmul.mubr.msk.bf16.vlgmr.msra.gmra.mrb[16].mxu1 %vm139_vm0, %v15127_v46  ;;  %v11342_v46 = vpop.permute.xlu1 %11341 }
 0xa09   :  { %10888 = vmatpush1.bf16.msra.mxu1 %v10857_v42  ;;  %10779 = vmatprep.mubr.bf16.mxu1 %v16670_v62  ;;  %v11369_v21 = vsel %vm19810_vm13, %v11342_v46, %v11344_v48  ;;  %v11368_v42 = vpop.permute.xlu0 %11367  ;;  %vm19822_vm13 = vmmov %vm19821_vm11 }
 0xa0a   :  { %10889 = vmatprep.subr.bf16.mxu1 %v10864_v14 }
 0xa0c   :  { %v11360_v51 = vpop.permute.xlu1 %11359 }
 0xa0d   :  { %10890 = vmatpush1.bf16.msra.mxu1 %v10863_v39  ;;  %v11376_v6 = vsel %vm19811_vm1, %v11358_v29, %v11360_v51  ;;  %v11602_v40 = vpop.permute.xlu0 %11601  ;;  %vm19823_vm1 = vmmov %vm19821_vm11 }
 0xa0e   :  { %10940 = vmatprep.subr.bf16.mxu1 %v10860_v17  ;;  %vm19824_vm2 = vmmov %vm19823_vm1 }
 0xa10   :  { %13767 = vmatmul.mubr.msk.bf16.gmra.mrb[20].mxu1 %vm139_vm0, %v15128_v27  ;;  %v11348_v27 = vpop.permute.xlu1 %11347 }
 0xa11   :  { %10919 = vmatprep.mubr.bf16.mxu1 %v16670_v62  ;;  %v11372_v7 = vsel %vm19813_vm3, %v11348_v27, %v11350_v35  ;;  %v11371_v1 = vsel %vm19814_vm4, %v11346_v20, %v11348_v27  ;;  %vm19825_vm3 = vmmov %vm19823_vm1 }
 0xa12   :  { %vm19826_vm4 = vmmov %vm19823_vm1 }
 0xa14   :  { %v11362_v24 = vpop.permute.xlu1 %11361 }
 0xa15   :  { %v11378_v13 = vsel %vm19815_vm5, %v11362_v24, %v11364_v50  ;;  %v11377_v47 = vsel %vm19816_vm6, %v11360_v51, %v11362_v24  ;;  %vm19827_vm5 = vmmov %vm19823_vm1 }
 0xa16   :  { %vm19828_vm6 = vmmov %vm19823_vm1 }
 0xa18   :  { %13774 = vmatmul.mubr.msk.bf16.vlgmr.msra.gmra.mrb[0].mxu1 %vm139_vm0, %v15129_v5  ;;  %v11352_v34 = vpop.permute.xlu1 %11351 }
 0xa19   :  { %10941 = vmatpush1.bf16.msra.mxu1 %v10859_v56  ;;  %10929 = vmatprep.mubr.bf16.mxu1 %v16670_v62  ;;  %v11374_v11 = vsel %vm19817_vm7, %v11352_v34, %v11354_v33  ;;  %v11373_v14 = vsel %vm19818_vm8, %v11350_v35, %v11352_v34  ;;  %v11614_v56 = vpop.permute.xlu0 %11613  ;;  %vm19829_vm7 = vmmov %vm19823_vm1 }
 0xa1a   :  { %10942 = vmatprep.subr.bf16.mxu1 %v10866_v44  ;;  %vm19830_vm8 = vmmov %vm19823_vm1 }
 0xa1c   :  { %v11366_v43 = vpop.permute.xlu1 %11365 }
 0xa1d   :  { %10943 = vmatpush1.bf16.msra.mxu1 %v10865_v32  ;;  %v11380_v39 = vsel %vm19819_vm9, %v11366_v43, %v11368_v42  ;;  %v11379_v17 = vsel %vm19820_vm10, %v11364_v50, %v11366_v43  ;;  %v11612_v32 = vpop.permute.xlu0 %11611  ;;  %vm19831_vm9 = vmmov %vm19823_vm1 }
 0xa1e   :  { %10993 = vmatprep.subr.bf16.mxu1 %v10862_v49  ;;  %vm19832_vm10 = vmmov %vm19823_vm1 }
 0xa20   :  { %13775 = vmatmul.mubr.msk.bf16.gmra.mrb[4].mxu1 %vm139_vm0, %v15130_v28  ;;  %v11600_v22 = vpop.permute.xlu1 %11599 }
 0xa21   :  { %10972 = vmatprep.mubr.bf16.mxu1 %v16670_v62 }
 0xa24   :  { %v11598_v44 = vpop.permute.xlu1 %11597 }
 0xa25   :  { %v11625_v49 = vsel %vm19822_vm13, %v11598_v44, %v11600_v22 }
 0xa28   :  { %13776 = vmatmul.mubr.msk.bf16.vlgmr.msra.gmra.mrb[8].mxu1 %vm139_vm0, %v15129_v5 }
 0xa29   :  { %10994 = vmatpush1.bf16.msra.mxu1 %v10861_v57  ;;  %10982 = vmatprep.mubr.bf16.mxu1 %v16670_v62 }
 0xa2a   :  { %10995 = vmatprep.subr.bf16.mxu1 %v10868_v53  ;;  %v11606_v53 = vpop.permute.xlu0 %11605 }
 0xa2d   :  { %10996 = vmatpush1.bf16.msra.mxu1 %v10867_v4 }
 0xa2e   :  { %11143 = vmatprep.subr.bf16.mxu1 %v11114_v16  ;;  %v11631_v16 = vsel %vm19824_vm2, %v11612_v32, %v11614_v56  ;;  %v11620_v60 = vpop.permute.xlu0 %11619 }
 0xa30   :  { %13777 = vmatmul.mubr.msk.bf16.gmra.mrb[12].mxu1 %vm139_vm0, %v15130_v28 }
 0xa31   :  { %11025 = vmatprep.mubr.bf16.mxu1 %v16670_v62 }
 0xa38   :  { %13778 = vmatmul.mubr.msk.bf16.vlgmr.msra.gmra.mrb[16].mxu1 %vm139_vm0, %v15129_v5  ;;  %v11626_v5 = vsel %vm19821_vm11, %v11600_v22, %v11602_v40  ;;  %vm19833_vm11 = vcmask 384000  }
 0xa39   :  { %11144 = vmatpush1.bf16.msra.mxu1 %v11113_v45  ;;  %11035 = vmatprep.mubr.bf16.mxu1 %v16670_v62  ;;  %v15135_v45 = vld [vmem:[%s19502_s3 + $0x140] sm:$0xff]   ;;  %vm19834_vm13 = vmmov %vm19833_vm11 }
 0xa3a   :  { %11145 = vmatprep.subr.bf16.mxu1 %v11120_v41 }
 0xa3d   :  { %11146 = vmatpush1.bf16.msra.mxu1 %v11119_v19  ;;  %v11610_v19 = vpop.permute.xlu0 %11609 }
 0xa3e   :  { %11196 = vmatprep.subr.bf16.mxu1 %v11116_v58 }
 0xa40   :  { %13779 = vmatmul.mubr.msk.bf16.gmra.mrb[20].mxu1 %vm139_vm0, %v15130_v28  ;;  %v11616_v28 = vpop.permute.xlu1 %11615 }
 0xa41   :  { %11175 = vmatprep.mubr.bf16.mxu1 %v16670_v62  ;;  %v11632_v57 = vsel %vm19823_vm1, %v11614_v56, %v11616_v28  ;;  %vm19835_vm1 = vmmov %vm19833_vm11 }
 0xa42   :  { %vm19836_vm2 = vmmov %vm19835_vm1 }
 0xa44   :  { %v11604_v4 = vpop.permute.xlu1 %11603 }
 0xa45   :  { %v11628_v61 = vsel %vm19825_vm3, %v11604_v4, %v11606_v53  ;;  %v11627_v10 = vsel %vm19826_vm4, %v11602_v40, %v11604_v4  ;;  %vm19837_vm3 = vmmov %vm19835_vm1 }
 0xa46   :  { %vm19838_vm4 = vmmov %vm19835_vm1 }
 0xa48   :  { %13786 = vmatmul.mubr.msk.bf16.vlgmr.msra.gmra.mrb[0].mxu1 %vm139_vm0, %v15131_v15  ;;  %v11618_v41 = vpop.permute.xlu1 %11617 }
 0xa49   :  { %11197 = vmatpush1.bf16.msra.mxu1 %v11115_v63  ;;  %11185 = vmatprep.mubr.bf16.mxu1 %v16670_v62  ;;  %v11634_v25 = vsel %vm19827_vm5, %v11618_v41, %v11620_v60  ;;  %v11633_v23 = vsel %vm19828_vm6, %v11616_v28, %v11618_v41  ;;  %v11624_v63 = vpop.permute.xlu0 %11623  ;;  %vm19839_vm5 = vmmov %vm19835_vm1 }
 0xa4a   :  { %11198 = vmatprep.subr.bf16.mxu1 %v11122_v0  ;;  %vm19840_vm6 = vmmov %vm19835_vm1 }
 0xa4c   :  { %v11608_v58 = vpop.permute.xlu1 %11607 }
 0xa4d   :  { %11199 = vmatpush1.bf16.msra.mxu1 %v11121_v36  ;;  %v11630_v59 = vsel %vm19829_vm7, %v11608_v58, %v11610_v19  ;;  %v11858_v38 = vpop.permute.xlu0 %11857  ;;  %v11629_v3 = vsel %vm19830_vm8, %v11606_v53, %v11608_v58  ;;  %vm19841_vm7 = vmmov %vm19835_vm1  ;;  %v12936_v58 = vld [vmem:[%s19498_s0 + $0x10] sm:$0xff] }
 0xa4e   :  { %11249 = vmatprep.subr.bf16.mxu1 %v11118_v54  ;;  %vm19842_vm8 = vmmov %vm19835_vm1 }
 0xa50   :  { %13787 = vmatmul.mubr.msk.bf16.gmra.mrb[4].mxu1 %vm139_vm0, %v15132_v26  ;;  %v11622_v0 = vpop.permute.xlu1 %11621 }
 0xa51   :  { %11228 = vmatprep.mubr.bf16.mxu1 %v16670_v62  ;;  %v11636_v36 = vsel %vm19831_vm9, %v11622_v0, %v11624_v63  ;;  %v11635_v54 = vsel %vm19832_vm10, %v11620_v60, %v11622_v0  ;;  %v11870_v2 = vpop.permute.xlu0 %11869  ;;  %vm19843_vm9 = vmmov %vm19835_vm1 }
 0xa52   :  { %vm19844_vm10 = vmmov %vm19835_vm1 }
 0xa58   :  { %13788 = vmatmul.mubr.msk.bf16.vlgmr.msra.gmra.mrb[8].mxu1 %vm139_vm0, %v15131_v15 }
 0xa59   :  { %11250 = vmatpush1.bf16.msra.mxu1 %v11117_v55  ;;  %11238 = vmatprep.mubr.bf16.mxu1 %v16670_v62  ;;  %v11868_v55 = vpop.permute.xlu0 %11867 }
 0xa5a   :  { %11251 = vmatprep.subr.bf16.mxu1 %v11124_v37  ;;  %v11887_v46 = vsel %vm19836_vm2, %v11868_v55, %v11870_v2  ;;  %v12942_v55 = vld [vmem:[%s19498_s0 + $0x48] sm:$0xff] }
 0xa5d   :  { %11252 = vmatpush1.bf16.msra.mxu1 %v11123_v8 }
 0xa5e   :  { %11399 = vmatprep.subr.bf16.mxu1 %v11370_v18  ;;  %v11862_v18 = vpop.permute.xlu0 %11861 }
 0xa60   :  { %13789 = vmatmul.mubr.msk.bf16.gmra.mrb[12].mxu1 %vm139_vm0, %v15132_v26 }
 0xa61   :  { %11281 = vmatprep.mubr.bf16.mxu1 %v16670_v62 }
 0xa62   :  { %v11876_v51 = vpop.permute.xlu0 %11875 }
 0xa68   :  { %13790 = vmatmul.mubr.msk.bf16.vlgmr.msra.gmra.mrb[16].mxu1 %vm139_vm0, %v15131_v15  ;;  %v15136_v15 = vld [vmem:[%s19502_s3 + $0x148] sm:$0xff]  }
 0xa69   :  { %11400 = vmatpush1.bf16.msra.mxu1 %v11369_v21  ;;  %11291 = vmatprep.mubr.bf16.mxu1 %v16670_v62  ;;  %v15137_v21 = vld [vmem:[%s19502_s3 + $0x150] sm:$0xff]  }
 0xa6a   :  { %11401 = vmatprep.subr.bf16.mxu1 %v11376_v6 }
 0xa6d   :  { %11402 = vmatpush1.bf16.msra.mxu1 %v11375_v12  ;;  %v11866_v12 = vpop.permute.xlu0 %11865 }
 0xa6e   :  { %11452 = vmatprep.subr.bf16.mxu1 %v11372_v7 }
 0xa70   :  { %13791 = vmatmul.mubr.msk.bf16.gmra.mrb[20].mxu1 %vm139_vm0, %v15132_v26  ;;  %v11856_v26 = vpop.permute.xlu1 %11855 }
 0xa71   :  { %11431 = vmatprep.mubr.bf16.mxu1 %v16670_v62  ;;  %v11882_v30 = vsel %vm19833_vm11, %v11856_v26, %v11858_v38  ;;  %vm19845_vm11 = vcmask 375808  }
 0xa74   :  { %v11854_v20 = vpop.permute.xlu1 %11853 }
 0xa75   :  { %v11881_v48 = vsel %vm19834_vm13, %v11854_v20, %v11856_v26  ;;  %vm19846_vm13 = vmmov %vm19845_vm11  ;;  %v12940_v26 = vld [vmem:[%s19498_s0 + $0x38] sm:$0xff] }
 0xa78   :  { %13798 = vmatmul.mubr.msk.bf16.vlgmr.msra.gmra.mrb[0].mxu1 %vm139_vm0, %v15133_v9  ;;  %v11872_v37 = vpop.permute.xlu1 %11871 }
 0xa79   :  { %11453 = vmatpush1.bf16.msra.mxu1 %v11371_v1  ;;  %11441 = vmatprep.mubr.bf16.mxu1 %v16670_v62  ;;  %v11888_v8 = vsel %vm19835_vm1, %v11870_v2, %v11872_v37  ;;  %v11880_v1 = vpop.permute.xlu0 %11879  ;;  %vm19847_vm1 = vmmov %vm19845_vm11 }
 0xa7a   :  { %11454 = vmatprep.subr.bf16.mxu1 %v11378_v13  ;;  %vm19848_vm2 = vmmov %vm19847_vm1 }
 0xa7c   :  { %v11860_v29 = vpop.permute.xlu1 %11859 }
 0xa7d   :  { %11455 = vmatpush1.bf16.msra.mxu1 %v11377_v47  ;;  %v11884_v52 = vsel %vm19837_vm3, %v11860_v29, %v11862_v18  ;;  %v11883_v35 = vsel %vm19838_vm4, %v11858_v38, %v11860_v29  ;;  %v12114_v34 = vpop.permute.xlu0 %12113  ;;  %vm19849_vm3 = vmmov %vm19847_vm1  ;;  %v12939_v38 = vld [vmem:[%s19498_s0 + $0x28] sm:$0xff]  ;;  %v12945_v29 = vld [vmem:[%s19498_s0 + $0x60] sm:$0xff] }
 0xa7e   :  { %11505 = vmatprep.subr.bf16.mxu1 %v11374_v11  ;;  %vm19850_vm4 = vmmov %vm19847_vm1 }
 0xa80   :  { %13799 = vmatmul.mubr.msk.bf16.gmra.mrb[4].mxu1 %vm139_vm0, %v15134_v31  ;;  %v11874_v6 = vpop.permute.xlu1 %11873 }
 0xa81   :  { %11484 = vmatprep.mubr.bf16.mxu1 %v16670_v62  ;;  %v11890_v27 = vsel %vm19839_vm5, %v11874_v6, %v11876_v51  ;;  %v11889_v50 = vsel %vm19840_vm6, %v11872_v37, %v11874_v6  ;;  %v12126_v43 = vpop.permute.xlu0 %12125  ;;  %vm19851_vm5 = vmmov %vm19847_vm1 }
 0xa82   :  { %vm19852_vm6 = vmmov %vm19847_vm1 }
 0xa84   :  { %v11864_v7 = vpop.permute.xlu1 %11863 }
 0xa85   :  { %v11886_v24 = vsel %vm19841_vm7, %v11864_v7, %v11866_v12  ;;  %v11885_v33 = vsel %vm19842_vm8, %v11862_v18, %v11864_v7  ;;  %vm19853_vm7 = vmmov %vm19847_vm1 }
 0xa86   :  { %vm19854_vm8 = vmmov %vm19847_vm1 }
 0xa88   :  { %13800 = vmatmul.mubr.msk.bf16.vlgmr.msra.gmra.mrb[8].mxu1 %vm139_vm0, %v15133_v9  ;;  %v11878_v13 = vpop.permute.xlu1 %11877 }
 0xa89   :  { %11506 = vmatpush1.bf16.msra.mxu1 %v11373_v14  ;;  %11494 = vmatprep.mubr.bf16.mxu1 %v16670_v62  ;;  %v11892_v47 = vsel %vm19843_vm9, %v11878_v13, %v11880_v1  ;;  %v11891_v11 = vsel %vm19844_vm10, %v11876_v51, %v11878_v13  ;;  %v12124_v14 = vpop.permute.xlu0 %12123  ;;  %vm19855_vm9 = vmmov %vm19847_vm1  ;;  %v12951_v1 = vld [vmem:[%s19498_s0 + $0x98] sm:$0xff]  ;;  %v12952_v13 = vld [vmem:[%s19498_s0 + $0xa8] sm:$0xff] }
 0xa8a   :  { %11507 = vmatprep.subr.bf16.mxu1 %v11380_v39  ;;  %v12143_v44 = vsel %vm19848_vm2, %v12124_v14, %v12126_v43  ;;  %vm19856_vm10 = vmmov %vm19847_vm1 }
 0xa8d   :  { %11508 = vmatpush1.bf16.msra.mxu1 %v11379_v17 }
 0xa8e   :  { %11655 = vmatprep.subr.bf16.mxu1 %v11626_v5  ;;  %v12118_v5 = vpop.permute.xlu0 %12117 }
 0xa90   :  { %13801 = vmatmul.mubr.msk.bf16.gmra.mrb[12].mxu1 %vm139_vm0, %v15134_v31 }
 0xa91   :  { %11537 = vmatprep.mubr.bf16.mxu1 %v16670_v62 }
 0xa92   :  { %v12132_v28 = vpop.permute.xlu0 %12131 }
 0xa98   :  { %13802 = vmatmul.mubr.msk.bf16.vlgmr.msra.gmra.mrb[16].mxu1 %vm139_vm0, %v15133_v9  ;;  %v15138_v9 = vld [vmem:[%s19502_s3 + $0x158] sm:$0xff]  }
 0xa99   :  { %11656 = vmatpush1.bf16.msra.mxu1 %v11625_v49  ;;  %11547 = vmatprep.mubr.bf16.mxu1 %v16670_v62  ;;  %v19019_v49 = vld [vmem:[%s19502_s3 + $0x160] sm:$0xff]  }
 0xa9a   :  { %11657 = vmatprep.subr.bf16.mxu1 %v11632_v57 }
 0xa9d   :  { %11658 = vmatpush1.bf16.msra.mxu1 %v11631_v16  ;;  %v12122_v16 = vpop.permute.xlu0 %12121 }
 0xa9e   :  { %11708 = vmatprep.subr.bf16.mxu1 %v11628_v61 }
 0xaa0   :  { %13803 = vmatmul.mubr.msk.bf16.gmra.mrb[20].mxu1 %vm139_vm0, %v15134_v31  ;;  %v12112_v31 = vpop.permute.xlu1 %12111 }
 0xaa1   :  { %11687 = vmatprep.mubr.bf16.mxu1 %v16670_v62  ;;  %v12138_v42 = vsel %vm19845_vm11, %v12112_v31, %v12114_v34  ;;  %v12136_v19 = vpop.permute.xlu0 %12135  ;;  %vm19857_vm11 = vcmask 367616  }
 0xaa4   :  { %v12110_v40 = vpop.permute.xlu1 %12109 }
 0xaa5   :  { %v12137_v22 = vsel %vm19846_vm13, %v12110_v40, %v12112_v31  ;;  %v19056_v0 = vpop.permute.xlu0 %12369  ;;  %vm19858_vm13 = vmmov %vm19857_vm11 }
 0xaa8   :  { %13810 = vmatmul.mubr.msk.bf16.vlgmr.msra.gmra.mrb[0].mxu1 %vm139_vm0, %v15135_v45  ;;  %v12128_v39 = vpop.permute.xlu1 %12127 }
 0xaa9   :  { %11709 = vmatpush1.bf16.msra.mxu1 %v11627_v10  ;;  %11697 = vmatprep.mubr.bf16.mxu1 %v16670_v62  ;;  %v12144_v17 = vsel %vm19847_vm1, %v12126_v43, %v12128_v39  ;;  %v12934_v10 = vld [vmem:[%s19498_s0] sm:$0xff]  ;;  %v12382_v20 = vpop.permute.xlu0 %12381  ;;  %vm19859_vm1 = vmmov %vm19857_vm11 }
 0xaaa   :  { %11710 = vmatprep.subr.bf16.mxu1 %v11634_v25  ;;  %v12935_v25 = vld [vmem:[%s19498_s0 + $0x8] sm:$0xff]  ;;  %12982 = vrot.lane.b32.xlu1 %v12934_v10, %s15165_s22  ;;  %vm19860_vm2 = vmmov %vm19859_vm1  ;;  %v12955_v43 = vld [vmem:[%s19498_s0 + $0xc0] sm:$0xff] }
 0xaab   :  { %12984 = vrot.lane.b32.xlu0 %v12935_v25, %s15165_s22 }
 0xaac   :  { %v12116_v56 = vpop.permute.xlu1 %12115 }
 0xaad   :  { %11711 = vmatpush1.bf16.msra.mxu1 %v11633_v23  ;;  %v12140_v32 = vsel %vm19849_vm3, %v12116_v56, %v12118_v5  ;;  %v12139_v53 = vsel %vm19850_vm4, %v12114_v34, %v12116_v56  ;;  %v12937_v23 = vld [vmem:[%s19498_s0 + $0x18] sm:$0xff]  ;;  %v12380_v18 = vpop.permute.xlu0 %12379  ;;  %vm19861_vm3 = vmmov %vm19859_vm1  ;;  %v15141_v34 = vld [vmem:[%s19502_s3 + $0x170] sm:$0xff]  }
 0xaae   :  { %11761 = vmatprep.subr.bf16.mxu1 %v11630_v59  ;;  %12986 = vrot.lane.b32.xlu1 %v12936_v58, %s15165_s22  ;;  %v12938_v59 = vld [vmem:[%s19498_s0 + $0x20] sm:$0xff]  ;;  %v12399_v7 = vsel %vm19860_vm2, %v12380_v18, %v12382_v20  ;;  %vm19862_vm4 = vmmov %vm19859_vm1  ;;  %v12957_v56 = vld [vmem:[%s19498_s0 + $0xd0] sm:$0xff] }
 0xaaf   :  { %12988 = vrot.lane.b32.xlu0 %v12937_v23, %s15165_s22 }
 0xab0   :  { %13811 = vmatmul.mubr.msk.bf16.gmra.mrb[4].mxu1 %vm139_vm0, %v15136_v15  ;;  %v12130_v57 = vpop.permute.xlu1 %12129 }
 0xab1   :  { %11740 = vmatprep.mubr.bf16.mxu1 %v16670_v62  ;;  %v12146_v4 = vsel %vm19851_vm5, %v12130_v57, %v12132_v28  ;;  %v12145_v61 = vsel %vm19852_vm6, %v12128_v39, %v12130_v57  ;;  %vm19863_vm5 = vmmov %vm19859_vm1  ;;  %v12956_v39 = vld [vmem:[%s19498_s0 + $0xc8] sm:$0xff] }
 0xab2   :  { %12990 = vrot.lane.b32.xlu1 %v12938_v59, %s15165_s22  ;;  %vm19864_vm6 = vmmov %vm19859_vm1 }
 0xab3   :  { %12992 = vrot.lane.b32.xlu0 %v12939_v38, %s15165_s22 }
 0xab4   :  { %v12120_v60 = vpop.permute.xlu1 %12119 }
 0xab5   :  { %v12142_v41 = vsel %vm19853_vm7, %v12120_v60, %v12122_v16  ;;  %v12141_v63 = vsel %vm19854_vm8, %v12118_v5, %v12120_v60  ;;  %v15142_v5 = vld [vmem:[%s19502_s3 + $0x178] sm:$0xff]   ;;  %vm19865_vm7 = vmmov %vm19859_vm1 }
 0xab6   :  { %12994 = vrot.lane.b32.xlu1 %v12940_v26, %s15165_s22  ;;  %vm19866_vm8 = vmmov %vm19859_vm1 }
 0xab8   :  { %13812 = vmatmul.mubr.msk.bf16.vlgmr.msra.gmra.mrb[8].mxu1 %vm139_vm0, %v15135_v45 }
 0xab9   :  { %11762 = vmatpush1.bf16.msra.mxu1 %v11629_v3  ;;  %11750 = vmatprep.mubr.bf16.mxu1 %v16670_v62 }
 0xaba   :  { %11763 = vmatprep.subr.bf16.mxu1 %v11636_v36  ;;  %12998 = vrot.lane.b32.xlu1 %v12942_v55, %s15165_s22 }
 0xabd   :  { %11764 = vmatpush1.bf16.msra.mxu1 %v11635_v54 }
 0xabe   :  { %11911 = vmatprep.subr.bf16.mxu1 %v11882_v30  ;;  %v12941_v30 = vld [vmem:[%s19498_s0 + $0x40] sm:$0xff] }
 0xabf   :  { %12996 = vrot.lane.b32.xlu0 %v12941_v30, %s15165_s22 }
 0xac0   :  { %13813 = vmatmul.mubr.msk.bf16.gmra.mrb[12].mxu1 %vm139_vm0, %v15136_v15 }
 0xac1   :  { %11793 = vmatprep.mubr.bf16.mxu1 %v16670_v62 }
 0xac8   :  { %13814 = vmatmul.mubr.msk.bf16.vlgmr.msra.gmra.mrb[16].mxu1 %vm139_vm0, %v15135_v45  ;;  %v19030_v45 = vld [vmem:[%s19502_s3 + $0x168] sm:$0xff]  }
 0xac9   :  { %11912 = vmatpush1.bf16.msra.mxu1 %v11881_v48  ;;  %11803 = vmatprep.mubr.bf16.mxu1 %v16670_v62  ;;  %v12943_v48 = vld [vmem:[%s19498_s0 + $0x50] sm:$0xff] }
 0xaca   :  { %11913 = vmatprep.subr.bf16.mxu1 %v11888_v8  ;;  %13000 = vrot.lane.b32.xlu0 %v12943_v48, %s15165_s22  ;;  %v12944_v8 = vld [vmem:[%s19498_s0 + $0x58] sm:$0xff] }
 0xacb   :  { %13002 = vrot.lane.b32.xlu1 %v12944_v8, %s15165_s22 }
 0xacd   :  { %11914 = vmatpush1.bf16.msra.mxu1 %v11887_v46 }
 0xace   :  { %11964 = vmatprep.subr.bf16.mxu1 %v11884_v52  ;;  %13004 = vrot.lane.b32.xlu0 %v12945_v29, %s15165_s22  ;;  %v12946_v52 = vld [vmem:[%s19498_s0 + $0x70] sm:$0xff]  ;;  %v15179_v29 = vmov 0.0  }
 0xacf   :  { %13006 = vrot.lane.b32.xlu1 %v12946_v52, %s15165_s22  ;;  %13099 = vst [vmem:[%s19504_s6] sm:$0xff] %v15179_v29  ;;  %13105 = vst.msk [vmem:[%s19504_s6 + $0x30] sm:$0xff] %vm139_vm0, %v15179_v29 }
 0xad0   :  { %13815 = vmatmul.mubr.msk.bf16.gmra.mrb[20].mxu1 %vm139_vm0, %v15136_v15  ;;  %v12134_v15 = vpop.permute.xlu1 %12133  ;;  %13112 = vst.msk [vmem:[%s19504_s6 + $0x68] sm:$0xff] %vm139_vm0, %v15179_v29  ;;  %13119 = vst.msk [vmem:[%s19504_s6 + $0xa0] sm:$0xff] %vm139_vm0, %v15179_v29 }
 0xad1   :  { %11943 = vmatprep.mubr.bf16.mxu1 %v16670_v62  ;;  %v12148_v3 = vsel %vm19855_vm9, %v12134_v15, %v12136_v19  ;;  %v12147_v54 = vsel %vm19856_vm10, %v12132_v28, %v12134_v15  ;;  %vm19867_vm9 = vmmov %vm19859_vm1  ;;  %13126 = vst.msk [vmem:[%s19504_s6 + $0xd8] sm:$0xff] %vm139_vm0, %v15179_v29 }
 0xad2   :  { %vm19868_vm10 = vmmov %vm19859_vm1  ;;  %13104 = vst [vmem:[%s19504_s6 + $0x28] sm:$0xff] %v15179_v29 }
 0xad3   :  { %13106 = vst [vmem:[%s19504_s6 + $0x38] sm:$0xff] %v15179_v29  ;;  %13111 = vst [vmem:[%s19504_s6 + $0x60] sm:$0xff] %v15179_v29 }
 0xad4   :  { %v12368_v36 = vpop.permute.xlu1 %12367  ;;  %13113 = vst [vmem:[%s19504_s6 + $0x70] sm:$0xff] %v15179_v29  ;;  %13118 = vst [vmem:[%s19504_s6 + $0x98] sm:$0xff] %v15179_v29 }
 0xad5   :  { %v12394_v2 = vsel %vm19857_vm11, %v12368_v36, %v19056_v0  ;;  %vm19869_vm11 = vcmask 359424   ;;  %13120 = vst [vmem:[%s19504_s6 + $0xa8] sm:$0xff] %v15179_v29  ;;  %13125 = vst [vmem:[%s19504_s6 + $0xd0] sm:$0xff] %v15179_v29 }
 0xad8   :  { %13822 = vmatmul.mubr.msk.bf16.vlgmr.msra.gmra.mrb[0].mxu1 %vm139_vm0, %v15137_v21  ;;  %v12366_v37 = vpop.permute.xlu1 %12365 }
 0xad9   :  { %11965 = vmatpush1.bf16.msra.mxu1 %v11883_v35  ;;  %11953 = vmatprep.mubr.bf16.mxu1 %v16670_v62  ;;  %v12393_v51 = vsel %vm19858_vm13, %v12366_v37, %v12368_v36  ;;  %v12374_v35 = vpop.permute.xlu0 %12373  ;;  %vm19870_vm13 = vmmov %vm19869_vm11 }
 0xada   :  { %11966 = vmatprep.subr.bf16.mxu1 %v11890_v27  ;;  %v12948_v27 = vld [vmem:[%s19498_s0 + $0x80] sm:$0xff] }
 0xadb   :  { %13010 = vrot.lane.b32.xlu1 %v12948_v27, %s15165_s22 }
 0xadc   :  { %v12384_v46 = vpop.permute.xlu1 %12383 }
 0xadd   :  { %11967 = vmatpush1.bf16.msra.mxu1 %v11889_v50  ;;  %v12400_v6 = vsel %vm19859_vm1, %v12382_v20, %v12384_v46  ;;  %v12949_v50 = vld [vmem:[%s19498_s0 + $0x88] sm:$0xff]  ;;  %vm19871_vm1 = vmmov %vm19869_vm11 }
 0xade   :  { %12017 = vmatprep.subr.bf16.mxu1 %v11886_v24  ;;  %v12950_v24 = vld [vmem:[%s19498_s0 + $0x90] sm:$0xff]  ;;  %vm19872_vm2 = vmmov %vm19871_vm1 }
 0xadf   :  { %13014 = vrot.lane.b32.xlu1 %v12950_v24, %s15165_s22 }
 0xae0   :  { %13823 = vmatmul.mubr.msk.bf16.gmra.mrb[4].mxu1 %vm139_vm0, %v15138_v9  ;;  %v12372_v12 = vpop.permute.xlu1 %12371 }
 0xae1   :  { %11996 = vmatprep.mubr.bf16.mxu1 %v16670_v62 }
 0xae3   :  { %13018 = vrot.lane.b32.xlu1 %v12952_v13, %s15165_s22 }
 0xae4   :  { %v12386_v31 = vpop.permute.xlu1 %12385 }
 0xae8   :  { %13824 = vmatmul.mubr.msk.bf16.vlgmr.msra.gmra.mrb[8].mxu1 %vm139_vm0, %v15137_v21 }
 0xae9   :  { %12018 = vmatpush1.bf16.msra.mxu1 %v11885_v33  ;;  %12006 = vmatprep.mubr.bf16.mxu1 %v16670_v62  ;;  %v12388_v33 = vpop.permute.xlu0 %12387 }
 0xaea   :  { %12019 = vmatprep.subr.bf16.mxu1 %v11892_v47  ;;  %v12953_v47 = vld [vmem:[%s19498_s0 + $0xb0] sm:$0xff]  ;;  %v12402_v40 = vsel %vm19863_vm5, %v12386_v31, %v12388_v33  ;;  %vm19875_vm5 = vmmov %vm19871_vm1 }
 0xaed   :  { %12020 = vmatpush1.bf16.msra.mxu1 %v11891_v11  ;;  %v12954_v11 = vld [vmem:[%s19498_s0 + $0xb8] sm:$0xff]  ;;  %v12378_v14 = vpop.permute.xlu0 %12377 }
 0xaee   :  { %12167 = vmatprep.subr.bf16.mxu1 %v12138_v42  ;;  %v12395_v42 = vsel %vm19862_vm4, %v19056_v0, %v12372_v12  ;;  %13022 = vrot.lane.b32.xlu1 %v12954_v11, %s15165_s22  ;;  %v15143_v0 = vld [vmem:[%s19502_s3 + $0x180] sm:$0xff]   ;;  %vm19874_vm4 = vmmov %vm19871_vm1 }
 0xaf0   :  { %13825 = vmatmul.mubr.msk.bf16.gmra.mrb[12].mxu1 %vm139_vm0, %v15138_v9 }
 0xaf1   :  { %12049 = vmatprep.mubr.bf16.mxu1 %v16670_v62 }
 0xaf2   :  { %13026 = vrot.lane.b32.xlu1 %v12956_v39, %s15165_s22 }
 0xaf8   :  { %13826 = vmatmul.mubr.msk.bf16.vlgmr.msra.gmra.mrb[16].mxu1 %vm139_vm0, %v15137_v21  ;;  %v12947_v21 = vld [vmem:[%s19498_s0 + $0x78] sm:$0xff] }
 0xaf9   :  { %12168 = vmatpush1.bf16.msra.mxu1 %v12137_v22  ;;  %12059 = vmatprep.mubr.bf16.mxu1 %v16670_v62  ;;  %v12401_v22 = vsel %vm19864_vm6, %v12384_v46, %v12386_v31  ;;  %vm19876_vm6 = vmmov %vm19871_vm1 }
 0xafa   :  { %12169 = vmatprep.subr.bf16.mxu1 %v12144_v17  ;;  %13008 = vrot.lane.b32.xlu0 %v12947_v21, %s15165_s22  ;;  %v12376_v17 = vpop.permute.xlu1 %12375 }
 0xafd   :  { %12170 = vmatpush1.bf16.msra.mxu1 %v12143_v44  ;;  %v12398_v44 = vsel %vm19865_vm7, %v12376_v17, %v12378_v14  ;;  %vm19877_vm7 = vmmov %vm19871_vm1 }
 0xafe   :  { %12220 = vmatprep.subr.bf16.mxu1 %v12140_v32  ;;  %13012 = vrot.lane.b32.xlu0 %v12949_v50, %s15165_s22  ;;  %v12392_v32 = vpop.permute.xlu0 %12391  ;;  %v12390_v28 = vpop.permute.xlu1 %12389 }
 0xaff   :  { %v12403_v16 = vsel %vm19868_vm10, %v12388_v33, %v12390_v28  ;;  %vm19880_vm10 = vmmov %vm19871_vm1 }
 0xb00   :  { %13827 = vmatmul.mubr.msk.bf16.gmra.mrb[20].mxu1 %vm139_vm0, %v15138_v9  ;;  %v12396_v9 = vsel %vm19861_vm3, %v12372_v12, %v12374_v35  ;;  %vm19873_vm3 = vmmov %vm19871_vm1 }
 0xb01   :  { %12199 = vmatprep.mubr.bf16.mxu1 %v16670_v62 }
 0xb02   :  { %13016 = vrot.lane.b32.xlu0 %v12951_v1, %s15165_s22  ;;  %v12626_v57 = vpop.permute.xlu0 %12625 }
 0xb06   :  { %13020 = vrot.lane.b32.xlu0 %v12953_v47, %s15165_s22  ;;  %v12638_v60 = vpop.permute.xlu0 %12637 }
 0xb08   :  { %13834 = vmatmul.mubr.msk.bf16.vlgmr.msra.gmra.mrb[0].mxu1 %vm139_vm0, %v19019_v49 }
 0xb09   :  { %12221 = vmatpush1.bf16.msra.mxu1 %v12139_v53  ;;  %12209 = vmatprep.mubr.bf16.mxu1 %v16670_v62  ;;  %v12404_v53 = vsel %vm19867_vm9, %v12390_v28, %v12392_v32  ;;  %vm19879_vm9 = vmmov %vm19871_vm1  ;;  %v19882_v28 = vld [vmem:[#allocation4_spill] sm:$0xff] }
 0xb0a   :  { %12222 = vmatprep.subr.bf16.mxu1 %v12146_v4  ;;  %13024 = vrot.lane.b32.xlu0 %v12955_v43, %s15165_s22  ;;  %v12624_v4 = vpop.permute.xlu1 %12623 }
 0xb0d   :  { %12223 = vmatpush1.bf16.msra.mxu1 %v12145_v61  ;;  %v12650_v61 = vsel %vm19869_vm11, %v12624_v4, %v12626_v57 }
 0xb0e   :  { %12273 = vmatprep.subr.bf16.mxu1 %v12142_v41  ;;  %13028 = vrot.lane.b32.xlu0 %v12957_v56, %s15165_s22  ;;  %v12636_v41 = vpop.permute.xlu0 %12635 }
 0xb0f   :  { %v12655_v15 = vsel %vm19872_vm2, %v12636_v41, %v12638_v60 }
 0xb10   :  { %13835 = vmatmul.mubr.msk.bf16.gmra.mrb[4].mxu1 %vm139_vm0, %v19030_v45 }
 0xb11   :  { %12252 = vmatprep.mubr.bf16.mxu1 %v16670_v62 }
 0xb12   :  { %v12630_v58 = vpop.permute.xlu0 %12629 }
 0xb18   :  { %13836 = vmatmul.mubr.msk.bf16.vlgmr.msra.gmra.mrb[8].mxu1 %vm139_vm0, %v19019_v49 }
 0xb19   :  { %12274 = vmatpush1.bf16.msra.mxu1 %v12141_v63  ;;  %12262 = vmatprep.mubr.bf16.mxu1 %v16670_v62  ;;  %v12644_v63 = vpop.permute.xlu0 %12643 }
 0xb1a   :  { %12275 = vmatprep.subr.bf16.mxu1 %v12148_v3 }
 0xb1d   :  { %12276 = vmatpush1.bf16.msra.mxu1 %v12147_v54  ;;  %v12634_v26 = vpop.permute.xlu0 %12633 }
 0xb1e   :  { %12423 = vmatprep.subr.bf16.mxu1 %v12394_v2  ;;  %v15144_v2 = vld [vmem:[%s19502_s3 + $0x188] sm:$0xff]  }
 0xb20   :  { %13837 = vmatmul.mubr.msk.bf16.gmra.mrb[12].mxu1 %vm139_vm0, %v19030_v45 }
 0xb21   :  { %12305 = vmatprep.mubr.bf16.mxu1 %v16670_v62  ;;  %v12648_v55 = vpop.permute.xlu0 %12647 }
 0xb25   :  { %v19252_v46 = vpop.permute.xlu0 %12873 }
 0xb28   :  { %13838 = vmatmul.mubr.msk.bf16.vlgmr.msra.gmra.mrb[16].mxu1 %vm139_vm0, %v19019_v49  ;;  %v12397_v49 = vsel %vm19866_vm8, %v12374_v35, %v12376_v17  ;;  %vm19878_vm8 = vmmov %vm19871_vm1  ;;  %v19881_v17 = vld [vmem:[#allocation3_spill] sm:$0xff] }
 0xb29   :  { %12424 = vmatpush1.bf16.msra.mxu1 %v12393_v51  ;;  %12315 = vmatprep.mubr.bf16.mxu1 %v16670_v62  ;;  %v19256_v21 = vpop.permute.xlu0 %12883 }
 0xb2a   :  { %12425 = vmatprep.subr.bf16.mxu1 %v12400_v6 }
 0xb2d   :  { %12426 = vmatpush1.bf16.msra.mxu1 %v12399_v7  ;;  %v12985_v6 = vpop.permute.xlu0 %12984 }
 0xb2e   :  { %12476 = vmatprep.subr.bf16.mxu1 %v12396_v9 }
 0xb30   :  { %13839 = vmatmul.mubr.msk.bf16.gmra.mrb[20].mxu1 %vm139_vm0, %v19030_v45  ;;  %v12622_v45 = vpop.permute.xlu1 %12621 }
 0xb31   :  { %12455 = vmatprep.mubr.bf16.mxu1 %v16670_v62  ;;  %v12649_v25 = vsel %vm19870_vm13, %v12622_v45, %v12624_v4  ;;  %v19260_v27 = vpop.permute.xlu0 %12988 }
 0xb34   :  { %v12640_v10 = vpop.permute.xlu1 %12639 }
 0xb35   :  { %v12656_v19 = vsel %vm19871_vm1, %v12638_v60, %v12640_v10  ;;  %v19264_v7 = vpop.permute.xlu0 %12992 }
 0xb38   :  { %13846 = vmatmul.mubr.msk.bf16.vlgmr.msra.gmra.mrb[0].mxu1 %vm139_vm0, %v15141_v34  ;;  %v12628_v23 = vpop.permute.xlu1 %12627 }
 0xb39   :  { %12477 = vmatpush1.bf16.msra.mxu1 %v12395_v42  ;;  %12465 = vmatprep.mubr.bf16.mxu1 %v16670_v62  ;;  %v12652_v59 = vsel %vm19873_vm3, %v12628_v23, %v12630_v58  ;;  %v12651_v3 = vsel %vm19874_vm4, %v12626_v57, %v12628_v23  ;;  %v12997_v9 = vpop.permute.xlu0 %12996 }
 0xb3a   :  { %12478 = vmatprep.subr.bf16.mxu1 %v12402_v40 }
 0xb3c   :  { %v12642_v38 = vpop.permute.xlu1 %12641 }
 0xb3d   :  { %12479 = vmatpush1.bf16.msra.mxu1 %v12401_v22  ;;  %v12658_v36 = vsel %vm19875_vm5, %v12642_v38, %v12644_v63  ;;  %v12657_v54 = vsel %vm19876_vm6, %v12640_v10, %v12642_v38  ;;  %v19268_v1 = vpop.permute.xlu0 %13000 }
 0xb3e   :  { %12529 = vmatprep.subr.bf16.mxu1 %v12398_v44 }
 0xb40   :  { %13847 = vmatmul.mubr.msk.bf16.gmra.mrb[4].mxu1 %vm139_vm0, %v15142_v5  ;;  %v12632_v30 = vpop.permute.xlu1 %12631 }
 0xb41   :  { %12508 = vmatprep.mubr.bf16.mxu1 %v16670_v62  ;;  %v12654_v20 = vsel %vm19877_vm7, %v12632_v30, %v12634_v26  ;;  %v12653_v37 = vsel %vm19878_vm8, %v12630_v58, %v12632_v30  ;;  %v19272_v33 = vpop.permute.xlu0 %13004 }
 0xb44   :  { %v12646_v48 = vpop.permute.xlu1 %12645 }
 0xb45   :  { %v12660_v8 = vsel %vm19879_vm9, %v12646_v48, %v12648_v55  ;;  %v12659_v18 = vsel %vm19880_vm10, %v12644_v63, %v12646_v48 }
 0xb48   :  { %13848 = vmatmul.mubr.msk.bf16.vlgmr.msra.gmra.mrb[8].mxu1 %vm139_vm0, %v15141_v34 }
 0xb49   :  { %12530 = vmatpush1.bf16.msra.mxu1 %v12397_v49  ;;  %12518 = vmatprep.mubr.bf16.mxu1 %v16670_v62 }
 0xb4a   :  { %12531 = vmatprep.subr.bf16.mxu1 %v12404_v53 }
 0xb4d   :  { %12532 = vmatpush1.bf16.msra.mxu1 %v12403_v16 }
 0xb4e   :  { %12679 = vmatprep.subr.bf16.mxu1 %v12650_v61 }
 0xb50   :  { %13849 = vmatmul.mubr.msk.bf16.gmra.mrb[12].mxu1 %vm139_vm0, %v15142_v5 }
 0xb51   :  { %12561 = vmatprep.mubr.bf16.mxu1 %v16670_v62 }
 0xb58   :  { %13850 = vmatmul.mubr.msk.bf16.vlgmr.msra.gmra.mrb[16].mxu1 %vm139_vm0, %v15141_v34 }
 0xb59   :  { %12680 = vmatpush1.bf16.msra.mxu1 %v12649_v25  ;;  %12571 = vmatprep.mubr.bf16.mxu1 %v16670_v62 }
 0xb5a   :  { %12681 = vmatprep.subr.bf16.mxu1 %v12656_v19 }
 0xb5d   :  { %12682 = vmatpush1.bf16.msra.mxu1 %v12655_v15 }
 0xb5e   :  { %12732 = vmatprep.subr.bf16.mxu1 %v12652_v59 }
 0xb60   :  { %13851 = vmatmul.mubr.msk.bf16.gmra.mrb[20].mxu1 %vm139_vm0, %v15142_v5 }
 0xb61   :  { %12711 = vmatprep.mubr.bf16.mxu1 %v16670_v62 }
 0xb68   :  { %13858 = vmatmul.mubr.msk.bf16.vlgmr.msra.gmra.mrb[0].mxu1 %vm139_vm0, %v15143_v0 }
 0xb69   :  { %12733 = vmatpush1.bf16.msra.mxu1 %v12651_v3  ;;  %12721 = vmatprep.mubr.bf16.mxu1 %v16670_v62 }
 0xb6a   :  { %12734 = vmatprep.subr.bf16.mxu1 %v12658_v36 }
 0xb6c   :  { %v13009_v47 = vpop.permute.xlu0 %13008 }
 0xb6d   :  { %12735 = vmatpush1.bf16.msra.mxu1 %v12657_v54 }
 0xb6e   :  { %12785 = vmatprep.subr.bf16.mxu1 %v12654_v20 }
 0xb70   :  { %13859 = vmatmul.mubr.msk.bf16.gmra.mrb[4].mxu1 %vm139_vm0, %v15144_v2  ;;  %v19276_v11 = vpop.permute.xlu0 %13012 }
 0xb71   :  { %12764 = vmatprep.mubr.bf16.mxu1 %v16670_v62 }
 0xb74   :  { %v19290_v61 = vpop.permute.xlu0 %13016 }
 0xb78   :  { %13860 = vmatmul.mubr.msk.bf16.vlgmr.msra.gmra.mrb[8].mxu1 %vm139_vm0, %v15143_v0  ;;  %v13021_v26 = vpop.permute.xlu0 %13020 }
 0xb79   :  { %12786 = vmatpush1.bf16.msra.mxu1 %v12653_v37  ;;  %12774 = vmatprep.mubr.bf16.mxu1 %v16670_v62 }
 0xb7a   :  { %12787 = vmatprep.subr.bf16.mxu1 %v12660_v8 }
 0xb7d   :  { %12788 = vmatpush1.bf16.msra.mxu1 %v12659_v18 }
 0xb80   :  { %13861 = vmatmul.mubr.msk.bf16.gmra.mrb[12].mxu1 %vm139_vm0, %v15144_v2 }
 0xb81   :  { %12817 = vmatprep.mubr.bf16.mxu1 %v16670_v62 }
 0xb88   :  { %13862 = vmatmul.mubr.msk.bf16.vlgmr.msra.gmra.mrb[16].mxu1 %vm139_vm0, %v15143_v0 }
 0xb89   :  { %12827 = vmatprep.mubr.bf16.mxu1 %v16670_v62  ;;  %v19250_v62 = vpop.permute.xlu1 %12868 }
 0xb8d   :  { %v19254_v52 = vpop.permute.xlu1 %12878 }
 0xb90   :  { %13863 = vmatmul.mubr.msk.bf16.gmra.mrb[20].mxu1 %vm139_vm0, %v15144_v2  ;;  %vm19887_vm0 = vcmask 1047888  }
 0xb91   :  { %v12983_v51 = vpop.permute.xlu1 %12982  ;;  %vm19889_vm11 = vmmov %vm19887_vm0 }
 0xb92   :  { %v13031_v32 = vsel %vm3029_vm12, %v12983_v51, %v12985_v6  ;;  %vm19890_vm13 = vmmov %vm19887_vm0 }
 0xb95   :  { %v19258_v35 = vpop.permute.xlu1 %12986 }
 0xb96   :  { %v13032_v53 = vsel %vm3029_vm12, %v12985_v6, %v19258_v35 }
 0xb99   :  { %v19262_v12 = vpop.permute.xlu1 %12990 }
 0xb9d   :  { %v12995_v50 = vpop.permute.xlu1 %12994 }
 0xb9e   :  { %v13036_v10 = vsel %vm3029_vm12, %v12995_v50, %v12997_v9 }
 0xba1   :  { %v19266_v24 = vpop.permute.xlu1 %12998 }
 0xba2   :  { %v13037_v19 = vsel %vm3029_vm12, %v12997_v9, %v19266_v24 }
 0xba5   :  { %v19270_v13 = vpop.permute.xlu1 %13002 }
 0xba9   :  { %v13007_v34 = vpop.permute.xlu1 %13006 }
 0xbaa   :  { %v13041_v54 = vsel %vm3029_vm12, %v13007_v34, %v13009_v47 }
 0xbad   :  { %v19274_v31 = vpop.permute.xlu1 %13010 }
 0xbae   :  { %v13042_v55 = vsel %vm3029_vm12, %v13009_v47, %v19274_v31 }
 0xbb1   :  { %v19278_v43 = vpop.permute.xlu1 %13014 }
 0xbb5   :  { %v13019_v41 = vpop.permute.xlu1 %13018 }
 0xbb6   :  { %v13046_v29 = vsel %vm3029_vm12, %v13019_v41, %v13021_v26 }
 0xbb9   :  { %v13023_v20 = vpop.permute.xlu1 %13022 }
 0xbba   :  { %v13047_v51 = vsel %vm3029_vm12, %v13021_v26, %v13023_v20 }
 0xc3b   :  { %v12713_v42 = vpop.f32.mrb[0].mxu1 }
 0xc3c   :  { %v12886_v40 = vadd.f32 %v19250_v62, %v12713_v42  ;;  %v12715_v14 = vpop.f32.mrb[1].mxu1 }
 0xc3d   :  { %v12887_v39 = vadd.f32 %v19250_v62, %v12715_v14  ;;  %v12717_v22 = vpop.f32.mrb[2].mxu1  ;;  %v19883_v14 = vld [vmem:[#allocation5_spill] sm:$0xff] }
 0xc3e   :  { %v12910_v5 = vmul.f32 %v12886_v40, %v19881_v17  ;;  %v12892_v56 = vadd.f32 %v19252_v46, %v12717_v22  ;;  %v12719_v44 = vpop.f32.mrb[3].mxu1 }
 0xc3f   :  { %v12911_v49 = vmul.f32 %v12887_v39, %v19882_v28  ;;  %v12893_v57 = vadd.f32 %v19252_v46, %v12719_v44 }
 0xc40   :  { %v13075_v4 = vadd.f32 %v13031_v32, %v12910_v5  ;;  %v12916_v16 = vmul.f32 %v12892_v56, %v19881_v17  ;;  %v13033_v5 = vsel %vm3029_vm12, %v19258_v35, %v19260_v27  ;;  %v19884_v56 = vld [vmem:[#allocation6_spill] sm:$0xff]  ;;  %v13038_v35 = vsel %vm3029_vm12, %v19266_v24, %v19268_v1 }
 0xc41   :  { %v13076_v60 = vadd.f32 %v13032_v53, %v12911_v49  ;;  %v12917_v45 = vmul.f32 %v12893_v57, %v19882_v28 }
 0xc42   :  { %13151 = vrot.lane.b32.xlu1 %v13075_v4, %s15178_s5  ;;  %v13081_v58 = vadd.f32 %v13036_v10, %v12916_v16 }
 0xc43   :  { %v12723_v25 = vpop.f32.mrb[4].mxu1  ;;  %13153 = vrot.lane.b32.xlu0 %v13076_v60, %s15178_s5  ;;  %v13082_v59 = vadd.f32 %v13037_v19, %v12917_v45  ;;  %v13039_v60 = vsel %vm3029_vm12, %v19268_v1, %v19270_v13 }
 0xc44   :  { %v12898_v23 = vadd.f32 %v19254_v52, %v12723_v25  ;;  %v12725_v15 = vpop.f32.mrb[5].mxu1 }
 0xc45   :  { %v12899_v63 = vadd.f32 %v19254_v52, %v12725_v15  ;;  %v12727_v0 = vpop.f32.mrb[6].mxu1  ;;  %v13043_v15 = vsel %vm3029_vm12, %v19274_v31, %v19276_v11 }
 0xc46   :  { %v12922_v38 = vmul.f32 %v12898_v23, %v19881_v17  ;;  %v12904_v3 = vadd.f32 %v19256_v21, %v12727_v0  ;;  %v12729_v36 = vpop.f32.mrb[7].mxu1  ;;  %13163 = vrot.lane.b32.xlu1 %v13081_v58, %s15178_s5  ;;  %v13044_v0 = vsel %vm3029_vm12, %v19276_v11, %v19278_v43 }
 0xc47   :  { %v12923_v30 = vmul.f32 %v12899_v63, %v19882_v28  ;;  %v12905_v2 = vadd.f32 %v19256_v21, %v12729_v36  ;;  %13165 = vrot.lane.b32.xlu0 %v13082_v59, %s15178_s5  ;;  %v13027_v63 = vpop.permute.xlu1 %13026 }
 0xc48   :  { %v13087_v37 = vadd.f32 %v13041_v54, %v12922_v38  ;;  %v12928_v48 = vmul.f32 %v12904_v3, %v19881_v17  ;;  %v13025_v38 = vpop.permute.xlu0 %13024 }
 0xc49   :  { %v13088_v8 = vadd.f32 %v13042_v55, %v12923_v30  ;;  %v12929_v18 = vmul.f32 %v12905_v2, %v19882_v28  ;;  %v13034_v28 = vsel %vm3029_vm12, %v19260_v27, %v19262_v12  ;;  %v13049_v31 = vsel %vm3029_vm12, %v13025_v38, %v13027_v63 }
 0xc4a   :  { %13175 = vrot.lane.b32.xlu1 %v13087_v37, %s15178_s5  ;;  %v13093_v50 = vadd.f32 %v13046_v29, %v12928_v48  ;;  %v13048_v30 = vsel %vm3029_vm12, %v13023_v20, %v13025_v38  ;;  %v19885_v29 = vld [vmem:[#allocation7_spill] sm:$0xff]  ;;  %v13035_v20 = vsel %vm3029_vm12, %v19262_v12, %v19264_v7 }
 0xc4b   :  { %v12766_v6 = vpop.f32.mrb[8].mxu1  ;;  %13177 = vrot.lane.b32.xlu0 %v13088_v8, %s15178_s5  ;;  %v13094_v47 = vadd.f32 %v13047_v51, %v12929_v18 }
 0xc4c   :  { %v12888_v9 = vadd.f32 %v19250_v62, %v12766_v6  ;;  %v12768_v34 = vpop.f32.mrb[9].mxu1 }
 0xc4d   :  { %v12889_v42 = vadd.f32 %v19250_v62, %v12768_v34  ;;  %v12770_v40 = vpop.f32.mrb[10].mxu1 }
 0xc4e   :  { %v12912_v39 = vmul.f32 %v12888_v9, %v19883_v14  ;;  %v12894_v22 = vadd.f32 %v19252_v46, %v12770_v40  ;;  %v12772_v17 = vpop.f32.mrb[11].mxu1  ;;  %13187 = vrot.lane.b32.xlu1 %v13093_v50, %s15178_s5  ;;  %v19886_v9 = vld [vmem:[#allocation8_spill] sm:$0xff] }
 0xc4f   :  { %v12913_v44 = vmul.f32 %v12889_v42, %v19884_v56  ;;  %v12895_v32 = vadd.f32 %v19252_v46, %v12772_v17  ;;  %13189 = vrot.lane.b32.xlu0 %v13094_v47, %s15178_s5 }
 0xc50   :  { %v13077_v49 = vadd.f32 %v13033_v5, %v12912_v39  ;;  %v12918_v57 = vmul.f32 %v12894_v22, %v19883_v14  ;;  %v13040_v39 = vsel %vm3029_vm12, %v19270_v13, %v19272_v33  ;;  %v13045_v13 = vsel %vm3029_vm12, %v19278_v43, %v19290_v61 }
 0xc51   :  { %v13078_v53 = vadd.f32 %v13034_v28, %v12913_v44  ;;  %v12919_v4 = vmul.f32 %v12895_v32, %v19884_v56 }
 0xc52   :  { %13155 = vrot.lane.b32.xlu1 %v13077_v49, %s15178_s5  ;;  %v13083_v27 = vadd.f32 %v13038_v35, %v12918_v57 }
 0xc53   :  { %v12776_v16 = vpop.f32.mrb[12].mxu1  ;;  %13157 = vrot.lane.b32.xlu0 %v13078_v53, %s15178_s5  ;;  %v13084_v10 = vadd.f32 %v13039_v60, %v12919_v4 }
 0xc54   :  { %v12900_v45 = vadd.f32 %v19254_v52, %v12776_v16  ;;  %v12778_v41 = vpop.f32.mrb[13].mxu1 }
 0xc55   :  { %v12901_v25 = vadd.f32 %v19254_v52, %v12778_v41  ;;  %v12780_v19 = vpop.f32.mrb[14].mxu1 }
 0xc56   :  { %v12924_v58 = vmul.f32 %v12900_v45, %v19883_v14  ;;  %v12906_v23 = vadd.f32 %v19256_v21, %v12780_v19  ;;  %v12782_v24 = vpop.f32.mrb[15].mxu1  ;;  %13167 = vrot.lane.b32.xlu1 %v13083_v27, %s15178_s5 }
 0xc57   :  { %v12925_v1 = vmul.f32 %v12901_v25, %v19884_v56  ;;  %v12907_v59 = vadd.f32 %v19256_v21, %v12782_v24  ;;  %13169 = vrot.lane.b32.xlu0 %v13084_v10, %s15178_s5 }
 0xc58   :  { %v13089_v3 = vadd.f32 %v13043_v15, %v12924_v58  ;;  %v12930_v36 = vmul.f32 %v12906_v23, %v19883_v14 }
 0xc59   :  { %v13090_v26 = vadd.f32 %v13044_v0, %v12925_v1  ;;  %v12931_v54 = vmul.f32 %v12907_v59, %v19884_v56 }
 0xc5a   :  { %13179 = vrot.lane.b32.xlu1 %v13089_v3, %s15178_s5  ;;  %v13095_v55 = vadd.f32 %v13048_v30, %v12930_v36 }
 0xc5b   :  { %v12819_v2 = vpop.f32.mrb[16].mxu1  ;;  %13181 = vrot.lane.b32.xlu0 %v13090_v26, %s15178_s5  ;;  %v13096_v48 = vadd.f32 %v13049_v31, %v12931_v54 }
 0xc5c   :  { %v12890_v37 = vadd.f32 %v19250_v62, %v12819_v2  ;;  %v12821_v11 = vpop.f32.mrb[17].mxu1 }
 0xc5d   :  { %v12891_v8 = vadd.f32 %v19250_v62, %v12821_v11  ;;  %v12823_v18 = vpop.f32.mrb[18].mxu1 }
 0xc5e   :  { %v12914_v51 = vmul.f32 %v12890_v37, %v19885_v29  ;;  %v12896_v6 = vadd.f32 %v19252_v46, %v12823_v18  ;;  %v12825_v50 = vpop.f32.mrb[19].mxu1  ;;  %13191 = vrot.lane.b32.xlu1 %v13095_v55, %s15178_s5 }
 0xc5f   :  { %v12915_v34 = vmul.f32 %v12891_v8, %v19886_v9  ;;  %v12897_v47 = vadd.f32 %v19252_v46, %v12825_v50  ;;  %13193 = vrot.lane.b32.xlu0 %v13096_v48, %s15178_s5 }
 0xc60   :  { %v13079_v42 = vadd.f32 %v13035_v20, %v12914_v51  ;;  %v12920_v62 = vmul.f32 %v12896_v6, %v19885_v29 }
 0xc61   :  { %v13080_v40 = vadd.f32 %v19264_v7, %v12915_v34  ;;  %v12921_v14 = vmul.f32 %v12897_v47, %v19886_v9 }
 0xc62   :  { %13159 = vrot.lane.b32.xlu1 %v13079_v42, %s15178_s5  ;;  %v13085_v22 = vadd.f32 %v13040_v39, %v12920_v62 }
 0xc63   :  { %v12829_v12 = vpop.f32.mrb[20].mxu1  ;;  %13161 = vrot.lane.b32.xlu0 %v13080_v40, %s15178_s5  ;;  %v13086_v5 = vadd.f32 %v19272_v33, %v12921_v14  ;;  %v13029_v33 = vpop.permute.xlu0 %13028 }
 0xc64   :  { %v12902_v46 = vadd.f32 %v19254_v52, %v12829_v12  ;;  %v12831_v17 = vpop.f32.mrb[21].mxu1  ;;  %v13050_v16 = vsel %vm3029_vm12, %v13027_v63, %v13029_v33  ;;  %vm19888_vm12 = vmmov %vm19887_vm0 }
 0xc65   :  { %v12903_v56 = vadd.f32 %v19254_v52, %v12831_v17  ;;  %v12833_v7 = vpop.f32.mrb[22].mxu1 }
 0xc66   :  { %v12926_v44 = vmul.f32 %v12902_v46, %v19885_v29  ;;  %v12908_v32 = vadd.f32 %v19256_v21, %v12833_v7  ;;  %v12835_v28 = vpop.f32.mrb[23].mxu1  ;;  %13171 = vrot.lane.b32.xlu1 %v13085_v22, %s15178_s5 }
 0xc67   :  { %v12927_v49 = vmul.f32 %v12903_v56, %v19886_v9  ;;  %v12909_v57 = vadd.f32 %v19256_v21, %v12835_v28  ;;  %13173 = vrot.lane.b32.xlu0 %v13086_v5, %s15178_s5 }
 0xc68   :  { %v13091_v52 = vadd.f32 %v13045_v13, %v12926_v44  ;;  %v12932_v53 = vmul.f32 %v12908_v32, %v19885_v29 }
 0xc69   :  { %v13092_v4 = vadd.f32 %v19290_v61, %v12927_v49  ;;  %v12933_v35 = vmul.f32 %v12909_v57, %v19886_v9 }
 0xc6a   :  { %13183 = vrot.lane.b32.xlu1 %v13091_v52, %s15178_s5  ;;  %v13097_v43 = vadd.f32 %v13050_v16, %v12932_v53 }
 0xc6b   :  { %13185 = vrot.lane.b32.xlu0 %v13092_v4, %s15178_s5  ;;  %v13098_v60 = vadd.f32 %v13029_v33, %v12933_v35 }
 0xc6e   :  { %13195 = vrot.lane.b32.xlu1 %v13097_v43, %s15178_s5 }
 0xc6f   :  { %13197 = vrot.lane.b32.xlu0 %v13098_v60, %s15178_s5 }
 0xcb4   :  { %v13152_v21 = vpop.permute.xlu1 %13151 }
 0xcb5   :  { %13244 = vst.msk [vmem:[%s19504_s6] sm:$0xff] %vm19887_vm0, %v13152_v21  ;;  %v13154_v61 = vpop.permute.xlu0 %13153 }
 0xcb6   :  { %v13200_v27 = vsel %vm6558_vm15, %v13152_v21, %v13154_v61 }
 0xcb7   :  { %13245 = vst [vmem:[%s19504_s6 + $0x8] sm:$0xff] %v13200_v27 }
 0xcb8   :  { %v13164_v45 = vpop.permute.xlu1 %13163 }
 0xcb9   :  { %13250 = vst.msk [vmem:[%s19504_s6 + $0x38] sm:$0xff] %vm19888_vm12, %v13164_v45  ;;  %v13166_v41 = vpop.permute.xlu0 %13165 }
 0xcba   :  { %v13205_v10 = vsel %vm6558_vm15, %v13164_v45, %v13166_v41 }
 0xcbb   :  { %13251 = vst [vmem:[%s19504_s6 + $0x40] sm:$0xff] %v13205_v10 }
 0xcbc   :  { %v13176_v25 = vpop.permute.xlu1 %13175 }
 0xcbd   :  { %13256 = vst.msk [vmem:[%s19504_s6 + $0x70] sm:$0xff] %vm19889_vm11, %v13176_v25  ;;  %v13178_v19 = vpop.permute.xlu0 %13177 }
 0xcbe   :  { %v13210_v58 = vsel %vm6558_vm15, %v13176_v25, %v13178_v19 }
 0xcbf   :  { %13257 = vst [vmem:[%s19504_s6 + $0x78] sm:$0xff] %v13210_v58 }
 0xcc0   :  { %v13188_v23 = vpop.permute.xlu1 %13187 }
 0xcc1   :  { %13262 = vst.msk [vmem:[%s19504_s6 + $0xa8] sm:$0xff] %vm19890_vm13, %v13188_v23  ;;  %v13190_v24 = vpop.permute.xlu0 %13189 }
 0xcc2   :  { %v13215_v15 = vsel %vm6558_vm15, %v13188_v23, %v13190_v24 }
 0xcc3   :  { %13263 = vst [vmem:[%s19504_s6 + $0xb0] sm:$0xff] %v13215_v15 }
 0xcc4   :  { %v13156_v1 = vpop.permute.xlu1 %13155 }
 0xcc5   :  { %v13201_v59 = vsel %vm6558_vm15, %v13154_v61, %v13156_v1  ;;  %v13158_v63 = vpop.permute.xlu0 %13157 }
 0xcc6   :  { %13246 = vst [vmem:[%s19504_s6 + $0x10] sm:$0xff] %v13201_v59  ;;  %v13202_v0 = vsel %vm6558_vm15, %v13156_v1, %v13158_v63 }
 0xcc7   :  { %13247 = vst [vmem:[%s19504_s6 + $0x18] sm:$0xff] %v13202_v0 }
 0xcc8   :  { %v13168_v38 = vpop.permute.xlu1 %13167 }
 0xcc9   :  { %v13206_v3 = vsel %vm6558_vm15, %v13166_v41, %v13168_v38  ;;  %v13170_v36 = vpop.permute.xlu0 %13169 }
 0xcca   :  { %13252 = vst [vmem:[%s19504_s6 + $0x48] sm:$0xff] %v13206_v3  ;;  %v13207_v26 = vsel %vm6558_vm15, %v13168_v38, %v13170_v36 }
 0xccb   :  { %13253 = vst [vmem:[%s19504_s6 + $0x50] sm:$0xff] %v13207_v26 }
 0xccc   :  { %v13180_v54 = vpop.permute.xlu1 %13179 }
 0xccd   :  { %v13211_v31 = vsel %vm6558_vm15, %v13178_v19, %v13180_v54  ;;  %v13182_v30 = vpop.permute.xlu0 %13181 }
 0xcce   :  { %13258 = vst [vmem:[%s19504_s6 + $0x80] sm:$0xff] %v13211_v31  ;;  %v13212_v2 = vsel %vm6558_vm15, %v13180_v54, %v13182_v30 }
 0xccf   :  { %13259 = vst [vmem:[%s19504_s6 + $0x88] sm:$0xff] %v13212_v2 }
 0xcd0   :  { %v13192_v55 = vpop.permute.xlu1 %13191 }
 0xcd1   :  { %v13216_v37 = vsel %vm6558_vm15, %v13190_v24, %v13192_v55  ;;  %v13194_v11 = vpop.permute.xlu0 %13193 }
 0xcd2   :  { %13264 = vst [vmem:[%s19504_s6 + $0xb8] sm:$0xff] %v13216_v37  ;;  %v13217_v48 = vsel %vm6558_vm15, %v13192_v55, %v13194_v11 }
 0xcd3   :  { %13265 = vst [vmem:[%s19504_s6 + $0xc0] sm:$0xff] %v13217_v48 }
 0xcd4   :  { %v13160_v8 = vpop.permute.xlu1 %13159 }
 0xcd5   :  { %v13203_v18 = vsel %vm6558_vm15, %v13158_v63, %v13160_v8  ;;  %v13162_v29 = vpop.permute.xlu0 %13161 }
 0xcd6   :  { %13248 = vst [vmem:[%s19504_s6 + $0x20] sm:$0xff] %v13203_v18  ;;  %v13204_v51 = vsel %vm6558_vm15, %v13160_v8, %v13162_v29 }
 0xcd7   :  { %13249 = vst.msk [vmem:[%s19504_s6 + $0x28] sm:$0xff] %vm6587_vm14, %v13204_v51 }
 0xcd8   :  { %v13172_v6 = vpop.permute.xlu1 %13171 }
 0xcd9   :  { %v13208_v50 = vsel %vm6558_vm15, %v13170_v36, %v13172_v6  ;;  %v13174_v20 = vpop.permute.xlu0 %13173 }
 0xcda   :  { %13254 = vst [vmem:[%s19504_s6 + $0x58] sm:$0xff] %v13208_v50  ;;  %v13209_v9 = vsel %vm6558_vm15, %v13172_v6, %v13174_v20 }
 0xcdb   :  { %13255 = vst.msk [vmem:[%s19504_s6 + $0x60] sm:$0xff] %vm6587_vm14, %v13209_v9 }
 0xcdc   :  { %v13184_v34 = vpop.permute.xlu1 %13183 }
 0xcdd   :  { %v13213_v47 = vsel %vm6558_vm15, %v13182_v30, %v13184_v34  ;;  %v13186_v42 = vpop.permute.xlu0 %13185 }
 0xcde   :  { %13260 = vst [vmem:[%s19504_s6 + $0x90] sm:$0xff] %v13213_v47  ;;  %v13214_v62 = vsel %vm6558_vm15, %v13184_v34, %v13186_v42 }
 0xcdf   :  { %13261 = vst.msk [vmem:[%s19504_s6 + $0x98] sm:$0xff] %vm6587_vm14, %v13214_v62 }
 0xce0   :  { %v13196_v40 = vpop.permute.xlu1 %13195 }
 0xce1   :  { %v13218_v14 = vsel %vm6558_vm15, %v13194_v11, %v13196_v40  ;;  %v13198_v39 = vpop.permute.xlu0 %13197 }
 0xce2   :  { %13266 = vst [vmem:[%s19504_s6 + $0xc8] sm:$0xff] %v13218_v14  ;;  %v13219_v12 = vsel %vm6558_vm15, %v13196_v40, %v13198_v39 }
 0xce3   :  { %13267 = vst.msk [vmem:[%s19504_s6 + $0xd0] sm:$0xff] %vm6587_vm14, %v13219_v12 }

</bundles_post_ra>
